<compile_context>
chip_gen: v7x
topology: tpu7x:2x2x1
jax: 0.10.0
libtpu: 0.0.40
codegen_flags: <defaults>
</compile_context>

<pallas_src>
import functools

import jax
import jax.numpy as jnp
from jax import lax
from jax.experimental import pallas as pl
from jax.experimental.pallas import tpu as pltpu

LEAKY_SLOPE = 0.2
MATMUL_DTYPE = jnp.bfloat16   # MXU operand dtype (accumulation stays f32)


# ---------------------------------------------------------------------------
# Fused per-batch kernel
# ---------------------------------------------------------------------------
def _make_fused_kernel(H, W, n_conv):
    log2_w = W.bit_length() - 1

    def roll_rows(a, off):
        # shifted[r] = a[(r + off) % m]   (off is a static python int)
        m = a.shape[0]
        k = (-off) % m
        return pltpu.roll(a, k, axis=0) if k else a

    def kernel(x_ref, *refs):
        conv_refs = refs[:2 * n_conv]
        (wmu_ref, bmu_ref, wsig_ref, bsig_ref,
         eps_ref, res_ref, kl_ref) = refs[2 * n_conv:]

        # Activation: (h*W, C) row matrix, rows in (i, w) row-major order.
        # h (row axis) stays DENSE (compacted after each pool); image columns
        # stay on the original W grid, live at spacing 2^l after l layers.
        x = x_ref[...]                        # (H*W, Cin0) f32
        h = H
        for l in range(n_conv):
            w_l = conv_refs[2 * l][...]       # (Cin, 9*Cout) bf16 wide weight
            b_l = conv_refs[2 * l + 1][...]   # (1, Cout) f32
            cout = b_l.shape[-1]
            s = 1 << l                        # live-column spacing
            m = h * W

            # Hoisted per-layer coordinates + the 4 boundary masks.
            r = lax.broadcasted_iota(jnp.int32, (m, 1), 0)
            w_co = jnp.bitwise_and(r, W - 1)           # image column
            i_co = jnp.right_shift(r, log2_w)          # dense row
            up_ok = i_co >= 1
            down_ok = i_co < h - 1
            left_ok = w_co >= s
            right_ok = w_co < W - s

            # conv3x3 (pad 1): ONE wide matmul; tap kh*3+kw occupies output
            # lanes [tap*Cout, (tap+1)*Cout).  Activation cast to bf16 once.
            z = jnp.dot(x.astype(MATMUL_DTYPE), w_l,
                        preferred_element_type=jnp.float32)   # (m, 9*Cout)

            # Center tap: no roll / no mask; bias folded into the init add.
            y = z[:, 4 * cout:5 * cout] + b_l
            for kh in range(3):
                for kw in range(3):
                    if kh == 1 and kw == 1:
                        continue
                    di, dj = kh - 1, kw - 1
                    tap = kh * 3 + kw
                    zt = roll_rows(z[:, tap * cout:(tap + 1) * cout],
                                   di * W + dj * s)
                    conds = []
                    if di < 0:
                        conds.append(up_ok)
                    elif di > 0:
                        conds.append(down_ok)
                    if dj < 0:
                        conds.append(left_ok)
                    elif dj > 0:
                        conds.append(right_ok)
                    ok = functools.reduce(jnp.logical_and, conds)
                    y = y + jnp.where(ok, zt, 0.0)     # zero-padding taps

            # maxpool(2x2), separable: 2 rolls + 2 maxes (all 4 window members
            # of a live output are in-bounds, so no masks needed).
            t = jnp.maximum(y, roll_rows(y, s))
            p = jnp.maximum(t, roll_rows(t, W))

            # Compact even-h rows (layout-trivial: W % 8 == 0), then LeakyReLU
            # on the 2x smaller activation.
            h //= 2
            p = p.reshape(h, 2 * W, cout)[:, :W, :].reshape(h * W, cout)
            x = jnp.where(p > 0, p, LEAKY_SLOPE * p)

        # --- head: masked spatial mean + mu/sigma + sample + KL terms ------
        sf = 1 << n_conv
        m = h * W
        r = lax.broadcasted_iota(jnp.int32, (m, 1), 0)
        live = jnp.bitwise_and(r, sf - 1) == 0          # live columns only
        n_live = h * (W // sf)
        feat = jnp.sum(jnp.where(live, x, 0.0), axis=0,
                       keepdims=True) * (1.0 / float(n_live))   # (1, latent)
        mu = jnp.dot(feat, wmu_ref[...],
                     preferred_element_type=jnp.float32) + bmu_ref[...]
        log_sigma = jnp.dot(feat, wsig_ref[...],
                            preferred_element_type=jnp.float32) + bsig_ref[...]
        sigma = jnp.exp(log_sigma)
        res_ref[0] = mu + sigma * eps_ref[0]
        # KL terms (summed in the wrapper): sigma^2 + mu^2 - log(sigma) - 1/2
        kl_ref[0] = sigma * sigma + mu * mu - log_sigma - 0.5

    return kernel


# ---------------------------------------------------------------------------
# Forward wrapper (matches VEncoder.forward; also returns the KL which the
# torch module stores as self.kl)
# ---------------------------------------------------------------------------
def vencoder_forward(x_nchw, params, eps):
    B, cin0, H, W = x_nchw.shape
    n_conv = len(params["convs"])
    assert H == 1 << (H.bit_length() - 1) and W == 1 << (W.bit_length() - 1), \
        "H and W must be powers of two"
    assert W % 8 == 0, "W must be a multiple of 8 (layout-trivial compaction)"
    assert H % (1 << n_conv) == 0 and W % (1 << n_conv) == 0

    latent = params["mu"][0].shape[0]

    # NCHW -> NHWC -> (B*H*W, Cin) rows in (b, h, w) row-major order.
    x2d = jnp.transpose(x_nchw, (0, 2, 3, 1)).reshape(B * H * W, cin0)
    x2d = x2d.astype(jnp.float32)

    args = [x2d]
    in_specs = [pl.BlockSpec((H * W, cin0), lambda b: (b, 0))]

    for w, b in params["convs"]:
        cout, cin = w.shape[0], w.shape[1]
        # torch OIHW -> wide-N (Cin, 9*Cout); tap kh*3+kw at cols [tap*Cout,.)
        w_wide = jnp.transpose(w, (1, 2, 3, 0)).reshape(cin, 9 * cout)
        for a in (w_wide.astype(MATMUL_DTYPE),
                  b.reshape(1, cout).astype(jnp.float32)):
            args.append(a)
            in_specs.append(pl.BlockSpec(a.shape, lambda b_: (0, 0)))

    wmu, bmu = params["mu"]
    wsig, bsig = params["sigma"]
    for a in (wmu.T.astype(jnp.float32),
              bmu.reshape(1, latent).astype(jnp.float32),
              wsig.T.astype(jnp.float32),
              bsig.reshape(1, latent).astype(jnp.float32)):
        args.append(a)
        in_specs.append(pl.BlockSpec(a.shape, lambda b_: (0, 0)))

    # TODO(synk): eps could be drawn in-kernel with pltpu.prng_*; passed in to
    # mirror torch.distributions.Normal(0,1).sample() exactly.
    args.append(eps.reshape(B, 1, latent).astype(jnp.float32))
    in_specs.append(pl.BlockSpec((1, 1, latent), lambda b: (b, 0, 0)))

    kernel = _make_fused_kernel(H, W, n_conv)
    res3, kl3 = pl.pallas_call(
        kernel,
        grid=(B,),
        in_specs=in_specs,
        out_specs=(pl.BlockSpec((1, 1, latent), lambda b: (b, 0, 0)),
                   pl.BlockSpec((1, 1, latent), lambda b: (b, 0, 0))),
        out_shape=(jax.ShapeDtypeStruct((B, 1, latent), jnp.float32),
                   jax.ShapeDtypeStruct((B, 1, latent), jnp.float32)),
        compiler_params=pltpu.CompilerParams(
            dimension_semantics=("parallel",),    # v7x: use both TensorCores
            vmem_limit_bytes=32 * 1024 * 1024),
    )(*args)
    return res3.reshape(B, latent), jnp.sum(kl3)


# ---------------------------------------------------------------------------
# Parameters (deterministic, mimicking torch default uniform(-1/sqrt(fan_in)))
# ---------------------------------------------------------------------------
def init_params(key, latent_size):
    conv_specs = [(3, 16), (16, 32), (32, 32), (32, latent_size)]
    params = {"convs": []}
    for cin, cout in conv_specs:
        key, k1, k2 = jax.random.split(key, 3)
        bound = 1.0 / (cin * 9) ** 0.5
        w = jax.random.uniform(k1, (cout, cin, 3, 3), jnp.float32, -bound, bound)
        b = jax.random.uniform(k2, (cout,), jnp.float32, -bound, bound)
        params["convs"].append((w, b))
    for name in ("mu", "sigma"):
        key, k1, k2 = jax.random.split(key, 3)
        bound = 1.0 / latent_size ** 0.5
        w = jax.random.uniform(k1, (latent_size, latent_size), jnp.float32,
                               -bound, bound)
        b = jax.random.uniform(k2, (latent_size,), jnp.float32, -bound, bound)
        params[name] = (w, b)
    return params


# ---------------------------------------------------------------------------
# Pure-JAX reference (same bf16 operand rounding as the kernel's matmuls)
# ---------------------------------------------------------------------------
def _reference_forward(x_nchw, params, eps):
    x = jnp.transpose(x_nchw, (0, 2, 3, 1)).astype(jnp.float32)
    for w, b in params["convs"]:
        w_hwio = jnp.transpose(w, (2, 3, 1, 0)).astype(MATMUL_DTYPE)
        y = lax.conv_general_dilated(
            x.astype(MATMUL_DTYPE), w_hwio, window_strides=(1, 1),
            padding=((1, 1), (1, 1)),
            dimension_numbers=("NHWC", "HWIO", "NHWC"),
            preferred_element_type=jnp.float32)
        y = y + b.reshape(1, 1, 1, -1)
        y = lax.reduce_window(y, -jnp.inf, lax.max,
                              (1, 2, 2, 1), (1, 2, 2, 1), "VALID")
        x = jnp.where(y > 0, y, LEAKY_SLOPE * y)
    feat = x.mean(axis=(1, 2))
    wmu, bmu = params["mu"]
    wsig, bsig = params["sigma"]
    hi = jax.lax.Precision.HIGHEST
    mu = jnp.dot(feat, wmu.T, precision=hi) + bmu
    log_sigma = jnp.dot(feat, wsig.T, precision=hi) + bsig
    sigma = jnp.exp(log_sigma)
    res = mu + sigma * eps
    kl = jnp.sum(sigma ** 2 + mu ** 2 - log_sigma - 0.5)
    return res, kl


if __name__ == "__main__":
    latent_size = 8
    key = jax.random.PRNGKey(0)
    kx, kp, keps = jax.random.split(key, 3)

    # Input: batch=2, channels=3 (Conv2d(3, 16) expects 3), spatial 16x16
    x = jax.random.normal(kx, (2, 3, 16, 16), jnp.float32)
    params = init_params(kp, latent_size)
    eps = jax.random.normal(keps, (2, latent_size), jnp.float32)

    res, kl = jax.jit(vencoder_forward)(x, params, eps)
    jax.block_until_ready((res, kl))

    ref_res, ref_kl = jax.jit(_reference_forward)(x, params, eps)
    assert res.shape == (2, latent_size)
    assert bool(jnp.isfinite(kl))
    assert jnp.allclose(res, ref_res, rtol=1e-2, atol=1e-2)
    assert jnp.allclose(kl, ref_kl, rtol=1e-2, atol=1e-2)
    print("KERNEL_OK")
</pallas_src>

<mosaic_0001>
module attributes {stable_mosaic.version = 11 : i64} {
  func.func @kernel(%arg0: i32, %arg1: memref<256x3xf32, #tpu.memory_space<vmem>>, %arg2: memref<3x144xbf16, #tpu.memory_space<vmem>>, %arg3: memref<1x16xf32, #tpu.memory_space<vmem>>, %arg4: memref<16x288xbf16, #tpu.memory_space<vmem>>, %arg5: memref<1x32xf32, #tpu.memory_space<vmem>>, %arg6: memref<32x288xbf16, #tpu.memory_space<vmem>>, %arg7: memref<1x32xf32, #tpu.memory_space<vmem>>, %arg8: memref<32x72xbf16, #tpu.memory_space<vmem>>, %arg9: memref<1x8xf32, #tpu.memory_space<vmem>>, %arg10: memref<8x8xf32, #tpu.memory_space<vmem>>, %arg11: memref<1x8xf32, #tpu.memory_space<vmem>>, %arg12: memref<8x8xf32, #tpu.memory_space<vmem>>, %arg13: memref<1x8xf32, #tpu.memory_space<vmem>>, %arg14: memref<1x1x8xf32, #tpu.memory_space<vmem>>, %arg15: memref<1x1x8xf32, #tpu.memory_space<vmem>>, %arg16: memref<1x1x8xf32, #tpu.memory_space<vmem>>) attributes {dimension_semantics = [#tpu.dimension_semantics<parallel>], iteration_bounds = array<i64: 2>, scalar_prefetch = 0 : i64, scratch_operands = 0 : i64, tpu.core_type = #tpu.core_type<tc>, window_params = [{transform_indices = @transform_0, window_bounds = array<i64: 256, 3>}, {pipeline_mode = #tpu.pipeline_mode<synchronous>, transform_indices = @transform_1, window_bounds = array<i64: 3, 144>}, {pipeline_mode = #tpu.pipeline_mode<synchronous>, transform_indices = @transform_2, window_bounds = array<i64: 1, 16>}, {pipeline_mode = #tpu.pipeline_mode<synchronous>, transform_indices = @transform_3, window_bounds = array<i64: 16, 288>}, {pipeline_mode = #tpu.pipeline_mode<synchronous>, transform_indices = @transform_4, window_bounds = array<i64: 1, 32>}, {pipeline_mode = #tpu.pipeline_mode<synchronous>, transform_indices = @transform_5, window_bounds = array<i64: 32, 288>}, {pipeline_mode = #tpu.pipeline_mode<synchronous>, transform_indices = @transform_6, window_bounds = array<i64: 1, 32>}, {pipeline_mode = #tpu.pipeline_mode<synchronous>, transform_indices = @transform_7, window_bounds = array<i64: 32, 72>}, {pipeline_mode = #tpu.pipeline_mode<synchronous>, transform_indices = @transform_8, window_bounds = array<i64: 1, 8>}, {pipeline_mode = #tpu.pipeline_mode<synchronous>, transform_indices = @transform_9, window_bounds = array<i64: 8, 8>}, {pipeline_mode = #tpu.pipeline_mode<synchronous>, transform_indices = @transform_10, window_bounds = array<i64: 1, 8>}, {pipeline_mode = #tpu.pipeline_mode<synchronous>, transform_indices = @transform_11, window_bounds = array<i64: 8, 8>}, {pipeline_mode = #tpu.pipeline_mode<synchronous>, transform_indices = @transform_12, window_bounds = array<i64: 1, 8>}, {transform_indices = @transform_13, window_bounds = array<i64: 1, 1, 8>}, {transform_indices = @transform_14, window_bounds = array<i64: 1, 1, 8>}, {transform_indices = @transform_15, window_bounds = array<i64: 1, 1, 8>}]} {
    %c0 = arith.constant 0 : index
    %c0_0 = arith.constant 0 : index
    %0 = vector.load %arg1[%c0, %c0_0] : memref<256x3xf32, #tpu.memory_space<vmem>>, vector<256x3xf32>
    %c0_1 = arith.constant 0 : index
    %c0_2 = arith.constant 0 : index
    %1 = vector.load %arg2[%c0_1, %c0_2] : memref<3x144xbf16, #tpu.memory_space<vmem>>, vector<3x144xbf16>
    %c0_3 = arith.constant 0 : index
    %c0_4 = arith.constant 0 : index
    %2 = vector.load %arg3[%c0_3, %c0_4] : memref<1x16xf32, #tpu.memory_space<vmem>>, vector<1x16xf32>
    %3 = tpu.iota {dimensions = array<i32: 0>} : vector<256x1xi32>
    %c15_i32 = arith.constant 15 : i32
    %4 = vector.broadcast %c15_i32 : i32 to vector<256x1xi32>
    %5 = arith.andi %3, %4 : vector<256x1xi32>
    %c4_i32 = arith.constant 4 : i32
    %6 = vector.broadcast %c4_i32 : i32 to vector<256x1xi32>
    %7 = arith.shrsi %3, %6 : vector<256x1xi32>
    %c1_i32 = arith.constant 1 : i32
    %8 = vector.broadcast %c1_i32 : i32 to vector<256x1xi32>
    %9 = arith.cmpi sge, %7, %8 : vector<256x1xi32>
    %c15_i32_5 = arith.constant 15 : i32
    %10 = vector.broadcast %c15_i32_5 : i32 to vector<256x1xi32>
    %11 = arith.cmpi slt, %7, %10 : vector<256x1xi32>
    %c1_i32_6 = arith.constant 1 : i32
    %12 = vector.broadcast %c1_i32_6 : i32 to vector<256x1xi32>
    %13 = arith.cmpi sge, %5, %12 : vector<256x1xi32>
    %c15_i32_7 = arith.constant 15 : i32
    %14 = vector.broadcast %c15_i32_7 : i32 to vector<256x1xi32>
    %15 = arith.cmpi slt, %5, %14 : vector<256x1xi32>
    %16 = arith.truncf %0 : vector<256x3xf32> to vector<256x3xbf16>
    %cst = arith.constant dense<0.000000e+00> : vector<256x144xf32>
    %17 = tpu.matmul %16, %1, %cst {dimension_numbers = #tpu.dot_dimension_numbers<[1], [0], [0], [1], [0, 0, 1, 1], [], []>} : vector<256x3xbf16>, vector<3x144xbf16>, vector<256x144xf32> -> vector<256x144xf32>
    %18 = vector.extract_strided_slice %17 {offsets = [0, 64], sizes = [256, 16], strides = [1, 1]} : vector<256x144xf32> to vector<256x16xf32>
    %19 = vector.broadcast %2 : vector<1x16xf32> to vector<256x16xf32>
    %20 = arith.addf %18, %19 : vector<256x16xf32>
    %21 = vector.extract_strided_slice %17 {offsets = [0, 0], sizes = [256, 16], strides = [1, 1]} : vector<256x144xf32> to vector<256x16xf32>
    %c17_i32 = arith.constant 17 : i32
    %22 = tpu.dynamic_rotate %21 by %c17_i32 dim 0 : vector<256x16xf32>, i32 -> vector<256x16xf32>
    %23 = arith.andi %9, %13 : vector<256x1xi1>
    %cst_8 = arith.constant 0.000000e+00 : f32
    %24 = vector.shape_cast %23 : vector<256x1xi1> to vector<256x1xi1>
    %25 = vector.broadcast %24 : vector<256x1xi1> to vector<256x16xi1>
    %26 = vector.broadcast %cst_8 : f32 to vector<256x16xf32>
    %27 = arith.select %25, %22, %26 : vector<256x16xi1>, vector<256x16xf32>
    %28 = arith.addf %20, %27 : vector<256x16xf32>
    %29 = vector.extract_strided_slice %17 {offsets = [0, 16], sizes = [256, 16], strides = [1, 1]} : vector<256x144xf32> to vector<256x16xf32>
    %c16_i32 = arith.constant 16 : i32
    %30 = tpu.dynamic_rotate %29 by %c16_i32 dim 0 : vector<256x16xf32>, i32 -> vector<256x16xf32>
    %cst_9 = arith.constant 0.000000e+00 : f32
    %31 = vector.shape_cast %9 : vector<256x1xi1> to vector<256x1xi1>
    %32 = vector.broadcast %31 : vector<256x1xi1> to vector<256x16xi1>
    %33 = vector.broadcast %cst_9 : f32 to vector<256x16xf32>
    %34 = arith.select %32, %30, %33 : vector<256x16xi1>, vector<256x16xf32>
    %35 = arith.addf %28, %34 : vector<256x16xf32>
    %36 = vector.extract_strided_slice %17 {offsets = [0, 32], sizes = [256, 16], strides = [1, 1]} : vector<256x144xf32> to vector<256x16xf32>
    %c15_i32_10 = arith.constant 15 : i32
    %37 = tpu.dynamic_rotate %36 by %c15_i32_10 dim 0 : vector<256x16xf32>, i32 -> vector<256x16xf32>
    %38 = arith.andi %9, %15 : vector<256x1xi1>
    %cst_11 = arith.constant 0.000000e+00 : f32
    %39 = vector.shape_cast %38 : vector<256x1xi1> to vector<256x1xi1>
    %40 = vector.broadcast %39 : vector<256x1xi1> to vector<256x16xi1>
    %41 = vector.broadcast %cst_11 : f32 to vector<256x16xf32>
    %42 = arith.select %40, %37, %41 : vector<256x16xi1>, vector<256x16xf32>
    %43 = arith.addf %35, %42 : vector<256x16xf32>
    %44 = vector.extract_strided_slice %17 {offsets = [0, 48], sizes = [256, 16], strides = [1, 1]} : vector<256x144xf32> to vector<256x16xf32>
    %c1_i32_12 = arith.constant 1 : i32
    %45 = tpu.dynamic_rotate %44 by %c1_i32_12 dim 0 : vector<256x16xf32>, i32 -> vector<256x16xf32>
    %cst_13 = arith.constant 0.000000e+00 : f32
    %46 = vector.shape_cast %13 : vector<256x1xi1> to vector<256x1xi1>
    %47 = vector.broadcast %46 : vector<256x1xi1> to vector<256x16xi1>
    %48 = vector.broadcast %cst_13 : f32 to vector<256x16xf32>
    %49 = arith.select %47, %45, %48 : vector<256x16xi1>, vector<256x16xf32>
    %50 = arith.addf %43, %49 : vector<256x16xf32>
    %51 = vector.extract_strided_slice %17 {offsets = [0, 80], sizes = [256, 16], strides = [1, 1]} : vector<256x144xf32> to vector<256x16xf32>
    %c255_i32 = arith.constant 255 : i32
    %52 = tpu.dynamic_rotate %51 by %c255_i32 dim 0 : vector<256x16xf32>, i32 -> vector<256x16xf32>
    %cst_14 = arith.constant 0.000000e+00 : f32
    %53 = vector.shape_cast %15 : vector<256x1xi1> to vector<256x1xi1>
    %54 = vector.broadcast %53 : vector<256x1xi1> to vector<256x16xi1>
    %55 = vector.broadcast %cst_14 : f32 to vector<256x16xf32>
    %56 = arith.select %54, %52, %55 : vector<256x16xi1>, vector<256x16xf32>
    %57 = arith.addf %50, %56 : vector<256x16xf32>
    %58 = vector.extract_strided_slice %17 {offsets = [0, 96], sizes = [256, 16], strides = [1, 1]} : vector<256x144xf32> to vector<256x16xf32>
    %c241_i32 = arith.constant 241 : i32
    %59 = tpu.dynamic_rotate %58 by %c241_i32 dim 0 : vector<256x16xf32>, i32 -> vector<256x16xf32>
    %60 = arith.andi %11, %13 : vector<256x1xi1>
    %cst_15 = arith.constant 0.000000e+00 : f32
    %61 = vector.shape_cast %60 : vector<256x1xi1> to vector<256x1xi1>
    %62 = vector.broadcast %61 : vector<256x1xi1> to vector<256x16xi1>
    %63 = vector.broadcast %cst_15 : f32 to vector<256x16xf32>
    %64 = arith.select %62, %59, %63 : vector<256x16xi1>, vector<256x16xf32>
    %65 = arith.addf %57, %64 : vector<256x16xf32>
    %66 = vector.extract_strided_slice %17 {offsets = [0, 112], sizes = [256, 16], strides = [1, 1]} : vector<256x144xf32> to vector<256x16xf32>
    %c240_i32 = arith.constant 240 : i32
    %67 = tpu.dynamic_rotate %66 by %c240_i32 dim 0 : vector<256x16xf32>, i32 -> vector<256x16xf32>
    %cst_16 = arith.constant 0.000000e+00 : f32
    %68 = vector.shape_cast %11 : vector<256x1xi1> to vector<256x1xi1>
    %69 = vector.broadcast %68 : vector<256x1xi1> to vector<256x16xi1>
    %70 = vector.broadcast %cst_16 : f32 to vector<256x16xf32>
    %71 = arith.select %69, %67, %70 : vector<256x16xi1>, vector<256x16xf32>
    %72 = arith.addf %65, %71 : vector<256x16xf32>
    %73 = vector.extract_strided_slice %17 {offsets = [0, 128], sizes = [256, 16], strides = [1, 1]} : vector<256x144xf32> to vector<256x16xf32>
    %c239_i32 = arith.constant 239 : i32
    %74 = tpu.dynamic_rotate %73 by %c239_i32 dim 0 : vector<256x16xf32>, i32 -> vector<256x16xf32>
    %75 = arith.andi %11, %15 : vector<256x1xi1>
    %cst_17 = arith.constant 0.000000e+00 : f32
    %76 = vector.shape_cast %75 : vector<256x1xi1> to vector<256x1xi1>
    %77 = vector.broadcast %76 : vector<256x1xi1> to vector<256x16xi1>
    %78 = vector.broadcast %cst_17 : f32 to vector<256x16xf32>
    %79 = arith.select %77, %74, %78 : vector<256x16xi1>, vector<256x16xf32>
    %80 = arith.addf %72, %79 : vector<256x16xf32>
    %c255_i32_18 = arith.constant 255 : i32
    %81 = tpu.dynamic_rotate %80 by %c255_i32_18 dim 0 : vector<256x16xf32>, i32 -> vector<256x16xf32>
    %82 = arith.maximumf %80, %81 : vector<256x16xf32>
    %c240_i32_19 = arith.constant 240 : i32
    %83 = tpu.dynamic_rotate %82 by %c240_i32_19 dim 0 : vector<256x16xf32>, i32 -> vector<256x16xf32>
    %84 = arith.maximumf %82, %83 : vector<256x16xf32>
    %85 = vector.shape_cast %84 : vector<256x16xf32> to vector<8x32x16xf32>
    %86 = vector.extract_strided_slice %85 {offsets = [0, 0, 0], sizes = [8, 16, 16], strides = [1, 1, 1]} : vector<8x32x16xf32> to vector<8x16x16xf32>
    %87 = vector.shape_cast %86 : vector<8x16x16xf32> to vector<128x16xf32>
    %cst_20 = arith.constant 0.000000e+00 : f32
    %88 = vector.broadcast %cst_20 : f32 to vector<128x16xf32>
    %89 = arith.cmpf ogt, %87, %88 : vector<128x16xf32>
    %cst_21 = arith.constant 2.000000e-01 : f32
    %90 = vector.broadcast %cst_21 : f32 to vector<128x16xf32>
    %91 = arith.mulf %90, %87 : vector<128x16xf32>
    %92 = arith.select %89, %87, %91 : vector<128x16xi1>, vector<128x16xf32>
    %c0_22 = arith.constant 0 : index
    %c0_23 = arith.constant 0 : index
    %93 = vector.load %arg4[%c0_22, %c0_23] : memref<16x288xbf16, #tpu.memory_space<vmem>>, vector<16x288xbf16>
    %c0_24 = arith.constant 0 : index
    %c0_25 = arith.constant 0 : index
    %94 = vector.load %arg5[%c0_24, %c0_25] : memref<1x32xf32, #tpu.memory_space<vmem>>, vector<1x32xf32>
    %95 = tpu.iota {dimensions = array<i32: 0>} : vector<128x1xi32>
    %c15_i32_26 = arith.constant 15 : i32
    %96 = vector.broadcast %c15_i32_26 : i32 to vector<128x1xi32>
    %97 = arith.andi %95, %96 : vector<128x1xi32>
    %c4_i32_27 = arith.constant 4 : i32
    %98 = vector.broadcast %c4_i32_27 : i32 to vector<128x1xi32>
    %99 = arith.shrsi %95, %98 : vector<128x1xi32>
    %c1_i32_28 = arith.constant 1 : i32
    %100 = vector.broadcast %c1_i32_28 : i32 to vector<128x1xi32>
    %101 = arith.cmpi sge, %99, %100 : vector<128x1xi32>
    %c7_i32 = arith.constant 7 : i32
    %102 = vector.broadcast %c7_i32 : i32 to vector<128x1xi32>
    %103 = arith.cmpi slt, %99, %102 : vector<128x1xi32>
    %c2_i32 = arith.constant 2 : i32
    %104 = vector.broadcast %c2_i32 : i32 to vector<128x1xi32>
    %105 = arith.cmpi sge, %97, %104 : vector<128x1xi32>
    %c14_i32 = arith.constant 14 : i32
    %106 = vector.broadcast %c14_i32 : i32 to vector<128x1xi32>
    %107 = arith.cmpi slt, %97, %106 : vector<128x1xi32>
    %108 = arith.truncf %92 : vector<128x16xf32> to vector<128x16xbf16>
    %cst_29 = arith.constant dense<0.000000e+00> : vector<128x288xf32>
    %109 = tpu.matmul %108, %93, %cst_29 {dimension_numbers = #tpu.dot_dimension_numbers<[1], [0], [0], [1], [0, 0, 1, 1], [], []>} : vector<128x16xbf16>, vector<16x288xbf16>, vector<128x288xf32> -> vector<128x288xf32>
    %110 = vector.extract_strided_slice %109 {offsets = [0, 128], sizes = [128, 32], strides = [1, 1]} : vector<128x288xf32> to vector<128x32xf32>
    %111 = vector.broadcast %94 : vector<1x32xf32> to vector<128x32xf32>
    %112 = arith.addf %110, %111 : vector<128x32xf32>
    %113 = vector.extract_strided_slice %109 {offsets = [0, 0], sizes = [128, 32], strides = [1, 1]} : vector<128x288xf32> to vector<128x32xf32>
    %c18_i32 = arith.constant 18 : i32
    %114 = tpu.dynamic_rotate %113 by %c18_i32 dim 0 : vector<128x32xf32>, i32 -> vector<128x32xf32>
    %115 = arith.andi %101, %105 : vector<128x1xi1>
    %cst_30 = arith.constant 0.000000e+00 : f32
    %116 = vector.shape_cast %115 : vector<128x1xi1> to vector<128x1xi1>
    %117 = vector.broadcast %116 : vector<128x1xi1> to vector<128x32xi1>
    %118 = vector.broadcast %cst_30 : f32 to vector<128x32xf32>
    %119 = arith.select %117, %114, %118 : vector<128x32xi1>, vector<128x32xf32>
    %120 = arith.addf %112, %119 : vector<128x32xf32>
    %121 = vector.extract_strided_slice %109 {offsets = [0, 32], sizes = [128, 32], strides = [1, 1]} : vector<128x288xf32> to vector<128x32xf32>
    %c16_i32_31 = arith.constant 16 : i32
    %122 = tpu.dynamic_rotate %121 by %c16_i32_31 dim 0 : vector<128x32xf32>, i32 -> vector<128x32xf32>
    %cst_32 = arith.constant 0.000000e+00 : f32
    %123 = vector.shape_cast %101 : vector<128x1xi1> to vector<128x1xi1>
    %124 = vector.broadcast %123 : vector<128x1xi1> to vector<128x32xi1>
    %125 = vector.broadcast %cst_32 : f32 to vector<128x32xf32>
    %126 = arith.select %124, %122, %125 : vector<128x32xi1>, vector<128x32xf32>
    %127 = arith.addf %120, %126 : vector<128x32xf32>
    %128 = vector.extract_strided_slice %109 {offsets = [0, 64], sizes = [128, 32], strides = [1, 1]} : vector<128x288xf32> to vector<128x32xf32>
    %c14_i32_33 = arith.constant 14 : i32
    %129 = tpu.dynamic_rotate %128 by %c14_i32_33 dim 0 : vector<128x32xf32>, i32 -> vector<128x32xf32>
    %130 = arith.andi %101, %107 : vector<128x1xi1>
    %cst_34 = arith.constant 0.000000e+00 : f32
    %131 = vector.shape_cast %130 : vector<128x1xi1> to vector<128x1xi1>
    %132 = vector.broadcast %131 : vector<128x1xi1> to vector<128x32xi1>
    %133 = vector.broadcast %cst_34 : f32 to vector<128x32xf32>
    %134 = arith.select %132, %129, %133 : vector<128x32xi1>, vector<128x32xf32>
    %135 = arith.addf %127, %134 : vector<128x32xf32>
    %136 = vector.extract_strided_slice %109 {offsets = [0, 96], sizes = [128, 32], strides = [1, 1]} : vector<128x288xf32> to vector<128x32xf32>
    %c2_i32_35 = arith.constant 2 : i32
    %137 = tpu.dynamic_rotate %136 by %c2_i32_35 dim 0 : vector<128x32xf32>, i32 -> vector<128x32xf32>
    %cst_36 = arith.constant 0.000000e+00 : f32
    %138 = vector.shape_cast %105 : vector<128x1xi1> to vector<128x1xi1>
    %139 = vector.broadcast %138 : vector<128x1xi1> to vector<128x32xi1>
    %140 = vector.broadcast %cst_36 : f32 to vector<128x32xf32>
    %141 = arith.select %139, %137, %140 : vector<128x32xi1>, vector<128x32xf32>
    %142 = arith.addf %135, %141 : vector<128x32xf32>
    %143 = vector.extract_strided_slice %109 {offsets = [0, 160], sizes = [128, 32], strides = [1, 1]} : vector<128x288xf32> to vector<128x32xf32>
    %c126_i32 = arith.constant 126 : i32
    %144 = tpu.dynamic_rotate %143 by %c126_i32 dim 0 : vector<128x32xf32>, i32 -> vector<128x32xf32>
    %cst_37 = arith.constant 0.000000e+00 : f32
    %145 = vector.shape_cast %107 : vector<128x1xi1> to vector<128x1xi1>
    %146 = vector.broadcast %145 : vector<128x1xi1> to vector<128x32xi1>
    %147 = vector.broadcast %cst_37 : f32 to vector<128x32xf32>
    %148 = arith.select %146, %144, %147 : vector<128x32xi1>, vector<128x32xf32>
    %149 = arith.addf %142, %148 : vector<128x32xf32>
    %150 = vector.extract_strided_slice %109 {offsets = [0, 192], sizes = [128, 32], strides = [1, 1]} : vector<128x288xf32> to vector<128x32xf32>
    %c114_i32 = arith.constant 114 : i32
    %151 = tpu.dynamic_rotate %150 by %c114_i32 dim 0 : vector<128x32xf32>, i32 -> vector<128x32xf32>
    %152 = arith.andi %103, %105 : vector<128x1xi1>
    %cst_38 = arith.constant 0.000000e+00 : f32
    %153 = vector.shape_cast %152 : vector<128x1xi1> to vector<128x1xi1>
    %154 = vector.broadcast %153 : vector<128x1xi1> to vector<128x32xi1>
    %155 = vector.broadcast %cst_38 : f32 to vector<128x32xf32>
    %156 = arith.select %154, %151, %155 : vector<128x32xi1>, vector<128x32xf32>
    %157 = arith.addf %149, %156 : vector<128x32xf32>
    %158 = vector.extract_strided_slice %109 {offsets = [0, 224], sizes = [128, 32], strides = [1, 1]} : vector<128x288xf32> to vector<128x32xf32>
    %c112_i32 = arith.constant 112 : i32
    %159 = tpu.dynamic_rotate %158 by %c112_i32 dim 0 : vector<128x32xf32>, i32 -> vector<128x32xf32>
    %cst_39 = arith.constant 0.000000e+00 : f32
    %160 = vector.shape_cast %103 : vector<128x1xi1> to vector<128x1xi1>
    %161 = vector.broadcast %160 : vector<128x1xi1> to vector<128x32xi1>
    %162 = vector.broadcast %cst_39 : f32 to vector<128x32xf32>
    %163 = arith.select %161, %159, %162 : vector<128x32xi1>, vector<128x32xf32>
    %164 = arith.addf %157, %163 : vector<128x32xf32>
    %165 = vector.extract_strided_slice %109 {offsets = [0, 256], sizes = [128, 32], strides = [1, 1]} : vector<128x288xf32> to vector<128x32xf32>
    %c110_i32 = arith.constant 110 : i32
    %166 = tpu.dynamic_rotate %165 by %c110_i32 dim 0 : vector<128x32xf32>, i32 -> vector<128x32xf32>
    %167 = arith.andi %103, %107 : vector<128x1xi1>
    %cst_40 = arith.constant 0.000000e+00 : f32
    %168 = vector.shape_cast %167 : vector<128x1xi1> to vector<128x1xi1>
    %169 = vector.broadcast %168 : vector<128x1xi1> to vector<128x32xi1>
    %170 = vector.broadcast %cst_40 : f32 to vector<128x32xf32>
    %171 = arith.select %169, %166, %170 : vector<128x32xi1>, vector<128x32xf32>
    %172 = arith.addf %164, %171 : vector<128x32xf32>
    %c126_i32_41 = arith.constant 126 : i32
    %173 = tpu.dynamic_rotate %172 by %c126_i32_41 dim 0 : vector<128x32xf32>, i32 -> vector<128x32xf32>
    %174 = arith.maximumf %172, %173 : vector<128x32xf32>
    %c112_i32_42 = arith.constant 112 : i32
    %175 = tpu.dynamic_rotate %174 by %c112_i32_42 dim 0 : vector<128x32xf32>, i32 -> vector<128x32xf32>
    %176 = arith.maximumf %174, %175 : vector<128x32xf32>
    %177 = vector.shape_cast %176 : vector<128x32xf32> to vector<4x32x32xf32>
    %178 = vector.extract_strided_slice %177 {offsets = [0, 0, 0], sizes = [4, 16, 32], strides = [1, 1, 1]} : vector<4x32x32xf32> to vector<4x16x32xf32>
    %179 = vector.shape_cast %178 : vector<4x16x32xf32> to vector<64x32xf32>
    %cst_43 = arith.constant 0.000000e+00 : f32
    %180 = vector.broadcast %cst_43 : f32 to vector<64x32xf32>
    %181 = arith.cmpf ogt, %179, %180 : vector<64x32xf32>
    %cst_44 = arith.constant 2.000000e-01 : f32
    %182 = vector.broadcast %cst_44 : f32 to vector<64x32xf32>
    %183 = arith.mulf %182, %179 : vector<64x32xf32>
    %184 = arith.select %181, %179, %183 : vector<64x32xi1>, vector<64x32xf32>
    %c0_45 = arith.constant 0 : index
    %c0_46 = arith.constant 0 : index
    %185 = vector.load %arg6[%c0_45, %c0_46] : memref<32x288xbf16, #tpu.memory_space<vmem>>, vector<32x288xbf16>
    %c0_47 = arith.constant 0 : index
    %c0_48 = arith.constant 0 : index
    %186 = vector.load %arg7[%c0_47, %c0_48] : memref<1x32xf32, #tpu.memory_space<vmem>>, vector<1x32xf32>
    %187 = tpu.iota {dimensions = array<i32: 0>} : vector<64x1xi32>
    %c15_i32_49 = arith.constant 15 : i32
    %188 = vector.broadcast %c15_i32_49 : i32 to vector<64x1xi32>
    %189 = arith.andi %187, %188 : vector<64x1xi32>
    %c4_i32_50 = arith.constant 4 : i32
    %190 = vector.broadcast %c4_i32_50 : i32 to vector<64x1xi32>
    %191 = arith.shrsi %187, %190 : vector<64x1xi32>
    %c1_i32_51 = arith.constant 1 : i32
    %192 = vector.broadcast %c1_i32_51 : i32 to vector<64x1xi32>
    %193 = arith.cmpi sge, %191, %192 : vector<64x1xi32>
    %c3_i32 = arith.constant 3 : i32
    %194 = vector.broadcast %c3_i32 : i32 to vector<64x1xi32>
    %195 = arith.cmpi slt, %191, %194 : vector<64x1xi32>
    %c4_i32_52 = arith.constant 4 : i32
    %196 = vector.broadcast %c4_i32_52 : i32 to vector<64x1xi32>
    %197 = arith.cmpi sge, %189, %196 : vector<64x1xi32>
    %c12_i32 = arith.constant 12 : i32
    %198 = vector.broadcast %c12_i32 : i32 to vector<64x1xi32>
    %199 = arith.cmpi slt, %189, %198 : vector<64x1xi32>
    %200 = arith.truncf %184 : vector<64x32xf32> to vector<64x32xbf16>
    %cst_53 = arith.constant dense<0.000000e+00> : vector<64x288xf32>
    %201 = tpu.matmul %200, %185, %cst_53 {dimension_numbers = #tpu.dot_dimension_numbers<[1], [0], [0], [1], [0, 0, 1, 1], [], []>} : vector<64x32xbf16>, vector<32x288xbf16>, vector<64x288xf32> -> vector<64x288xf32>
    %202 = vector.extract_strided_slice %201 {offsets = [0, 128], sizes = [64, 32], strides = [1, 1]} : vector<64x288xf32> to vector<64x32xf32>
    %203 = vector.broadcast %186 : vector<1x32xf32> to vector<64x32xf32>
    %204 = arith.addf %202, %203 : vector<64x32xf32>
    %205 = vector.extract_strided_slice %201 {offsets = [0, 0], sizes = [64, 32], strides = [1, 1]} : vector<64x288xf32> to vector<64x32xf32>
    %c20_i32 = arith.constant 20 : i32
    %206 = tpu.dynamic_rotate %205 by %c20_i32 dim 0 : vector<64x32xf32>, i32 -> vector<64x32xf32>
    %207 = arith.andi %193, %197 : vector<64x1xi1>
    %cst_54 = arith.constant 0.000000e+00 : f32
    %208 = vector.shape_cast %207 : vector<64x1xi1> to vector<64x1xi1>
    %209 = vector.broadcast %208 : vector<64x1xi1> to vector<64x32xi1>
    %210 = vector.broadcast %cst_54 : f32 to vector<64x32xf32>
    %211 = arith.select %209, %206, %210 : vector<64x32xi1>, vector<64x32xf32>
    %212 = arith.addf %204, %211 : vector<64x32xf32>
    %213 = vector.extract_strided_slice %201 {offsets = [0, 32], sizes = [64, 32], strides = [1, 1]} : vector<64x288xf32> to vector<64x32xf32>
    %c16_i32_55 = arith.constant 16 : i32
    %214 = tpu.dynamic_rotate %213 by %c16_i32_55 dim 0 : vector<64x32xf32>, i32 -> vector<64x32xf32>
    %cst_56 = arith.constant 0.000000e+00 : f32
    %215 = vector.shape_cast %193 : vector<64x1xi1> to vector<64x1xi1>
    %216 = vector.broadcast %215 : vector<64x1xi1> to vector<64x32xi1>
    %217 = vector.broadcast %cst_56 : f32 to vector<64x32xf32>
    %218 = arith.select %216, %214, %217 : vector<64x32xi1>, vector<64x32xf32>
    %219 = arith.addf %212, %218 : vector<64x32xf32>
    %220 = vector.extract_strided_slice %201 {offsets = [0, 64], sizes = [64, 32], strides = [1, 1]} : vector<64x288xf32> to vector<64x32xf32>
    %c12_i32_57 = arith.constant 12 : i32
    %221 = tpu.dynamic_rotate %220 by %c12_i32_57 dim 0 : vector<64x32xf32>, i32 -> vector<64x32xf32>
    %222 = arith.andi %193, %199 : vector<64x1xi1>
    %cst_58 = arith.constant 0.000000e+00 : f32
    %223 = vector.shape_cast %222 : vector<64x1xi1> to vector<64x1xi1>
    %224 = vector.broadcast %223 : vector<64x1xi1> to vector<64x32xi1>
    %225 = vector.broadcast %cst_58 : f32 to vector<64x32xf32>
    %226 = arith.select %224, %221, %225 : vector<64x32xi1>, vector<64x32xf32>
    %227 = arith.addf %219, %226 : vector<64x32xf32>
    %228 = vector.extract_strided_slice %201 {offsets = [0, 96], sizes = [64, 32], strides = [1, 1]} : vector<64x288xf32> to vector<64x32xf32>
    %c4_i32_59 = arith.constant 4 : i32
    %229 = tpu.dynamic_rotate %228 by %c4_i32_59 dim 0 : vector<64x32xf32>, i32 -> vector<64x32xf32>
    %cst_60 = arith.constant 0.000000e+00 : f32
    %230 = vector.shape_cast %197 : vector<64x1xi1> to vector<64x1xi1>
    %231 = vector.broadcast %230 : vector<64x1xi1> to vector<64x32xi1>
    %232 = vector.broadcast %cst_60 : f32 to vector<64x32xf32>
    %233 = arith.select %231, %229, %232 : vector<64x32xi1>, vector<64x32xf32>
    %234 = arith.addf %227, %233 : vector<64x32xf32>
    %235 = vector.extract_strided_slice %201 {offsets = [0, 160], sizes = [64, 32], strides = [1, 1]} : vector<64x288xf32> to vector<64x32xf32>
    %c60_i32 = arith.constant 60 : i32
    %236 = tpu.dynamic_rotate %235 by %c60_i32 dim 0 : vector<64x32xf32>, i32 -> vector<64x32xf32>
    %cst_61 = arith.constant 0.000000e+00 : f32
    %237 = vector.shape_cast %199 : vector<64x1xi1> to vector<64x1xi1>
    %238 = vector.broadcast %237 : vector<64x1xi1> to vector<64x32xi1>
    %239 = vector.broadcast %cst_61 : f32 to vector<64x32xf32>
    %240 = arith.select %238, %236, %239 : vector<64x32xi1>, vector<64x32xf32>
    %241 = arith.addf %234, %240 : vector<64x32xf32>
    %242 = vector.extract_strided_slice %201 {offsets = [0, 192], sizes = [64, 32], strides = [1, 1]} : vector<64x288xf32> to vector<64x32xf32>
    %c52_i32 = arith.constant 52 : i32
    %243 = tpu.dynamic_rotate %242 by %c52_i32 dim 0 : vector<64x32xf32>, i32 -> vector<64x32xf32>
    %244 = arith.andi %195, %197 : vector<64x1xi1>
    %cst_62 = arith.constant 0.000000e+00 : f32
    %245 = vector.shape_cast %244 : vector<64x1xi1> to vector<64x1xi1>
    %246 = vector.broadcast %245 : vector<64x1xi1> to vector<64x32xi1>
    %247 = vector.broadcast %cst_62 : f32 to vector<64x32xf32>
    %248 = arith.select %246, %243, %247 : vector<64x32xi1>, vector<64x32xf32>
    %249 = arith.addf %241, %248 : vector<64x32xf32>
    %250 = vector.extract_strided_slice %201 {offsets = [0, 224], sizes = [64, 32], strides = [1, 1]} : vector<64x288xf32> to vector<64x32xf32>
    %c48_i32 = arith.constant 48 : i32
    %251 = tpu.dynamic_rotate %250 by %c48_i32 dim 0 : vector<64x32xf32>, i32 -> vector<64x32xf32>
    %cst_63 = arith.constant 0.000000e+00 : f32
    %252 = vector.shape_cast %195 : vector<64x1xi1> to vector<64x1xi1>
    %253 = vector.broadcast %252 : vector<64x1xi1> to vector<64x32xi1>
    %254 = vector.broadcast %cst_63 : f32 to vector<64x32xf32>
    %255 = arith.select %253, %251, %254 : vector<64x32xi1>, vector<64x32xf32>
    %256 = arith.addf %249, %255 : vector<64x32xf32>
    %257 = vector.extract_strided_slice %201 {offsets = [0, 256], sizes = [64, 32], strides = [1, 1]} : vector<64x288xf32> to vector<64x32xf32>
    %c44_i32 = arith.constant 44 : i32
    %258 = tpu.dynamic_rotate %257 by %c44_i32 dim 0 : vector<64x32xf32>, i32 -> vector<64x32xf32>
    %259 = arith.andi %195, %199 : vector<64x1xi1>
    %cst_64 = arith.constant 0.000000e+00 : f32
    %260 = vector.shape_cast %259 : vector<64x1xi1> to vector<64x1xi1>
    %261 = vector.broadcast %260 : vector<64x1xi1> to vector<64x32xi1>
    %262 = vector.broadcast %cst_64 : f32 to vector<64x32xf32>
    %263 = arith.select %261, %258, %262 : vector<64x32xi1>, vector<64x32xf32>
    %264 = arith.addf %256, %263 : vector<64x32xf32>
    %c60_i32_65 = arith.constant 60 : i32
    %265 = tpu.dynamic_rotate %264 by %c60_i32_65 dim 0 : vector<64x32xf32>, i32 -> vector<64x32xf32>
    %266 = arith.maximumf %264, %265 : vector<64x32xf32>
    %c48_i32_66 = arith.constant 48 : i32
    %267 = tpu.dynamic_rotate %266 by %c48_i32_66 dim 0 : vector<64x32xf32>, i32 -> vector<64x32xf32>
    %268 = arith.maximumf %266, %267 : vector<64x32xf32>
    %269 = vector.shape_cast %268 : vector<64x32xf32> to vector<2x32x32xf32>
    %270 = vector.extract_strided_slice %269 {offsets = [0, 0, 0], sizes = [2, 16, 32], strides = [1, 1, 1]} : vector<2x32x32xf32> to vector<2x16x32xf32>
    %271 = vector.shape_cast %270 : vector<2x16x32xf32> to vector<32x32xf32>
    %cst_67 = arith.constant 0.000000e+00 : f32
    %272 = vector.broadcast %cst_67 : f32 to vector<32x32xf32>
    %273 = arith.cmpf ogt, %271, %272 : vector<32x32xf32>
    %cst_68 = arith.constant 2.000000e-01 : f32
    %274 = vector.broadcast %cst_68 : f32 to vector<32x32xf32>
    %275 = arith.mulf %274, %271 : vector<32x32xf32>
    %276 = arith.select %273, %271, %275 : vector<32x32xi1>, vector<32x32xf32>
    %c0_69 = arith.constant 0 : index
    %c0_70 = arith.constant 0 : index
    %277 = vector.load %arg8[%c0_69, %c0_70] : memref<32x72xbf16, #tpu.memory_space<vmem>>, vector<32x72xbf16>
    %c0_71 = arith.constant 0 : index
    %c0_72 = arith.constant 0 : index
    %278 = vector.load %arg9[%c0_71, %c0_72] : memref<1x8xf32, #tpu.memory_space<vmem>>, vector<1x8xf32>
    %279 = tpu.iota {dimensions = array<i32: 0>} : vector<32x1xi32>
    %c15_i32_73 = arith.constant 15 : i32
    %280 = vector.broadcast %c15_i32_73 : i32 to vector<32x1xi32>
    %281 = arith.andi %279, %280 : vector<32x1xi32>
    %c4_i32_74 = arith.constant 4 : i32
    %282 = vector.broadcast %c4_i32_74 : i32 to vector<32x1xi32>
    %283 = arith.shrsi %279, %282 : vector<32x1xi32>
    %c1_i32_75 = arith.constant 1 : i32
    %284 = vector.broadcast %c1_i32_75 : i32 to vector<32x1xi32>
    %285 = arith.cmpi sge, %283, %284 : vector<32x1xi32>
    %c1_i32_76 = arith.constant 1 : i32
    %286 = vector.broadcast %c1_i32_76 : i32 to vector<32x1xi32>
    %287 = arith.cmpi slt, %283, %286 : vector<32x1xi32>
    %c8_i32 = arith.constant 8 : i32
    %288 = vector.broadcast %c8_i32 : i32 to vector<32x1xi32>
    %289 = arith.cmpi sge, %281, %288 : vector<32x1xi32>
    %c8_i32_77 = arith.constant 8 : i32
    %290 = vector.broadcast %c8_i32_77 : i32 to vector<32x1xi32>
    %291 = arith.cmpi slt, %281, %290 : vector<32x1xi32>
    %292 = arith.truncf %276 : vector<32x32xf32> to vector<32x32xbf16>
    %cst_78 = arith.constant dense<0.000000e+00> : vector<32x72xf32>
    %293 = tpu.matmul %292, %277, %cst_78 {dimension_numbers = #tpu.dot_dimension_numbers<[1], [0], [0], [1], [0, 0, 1, 1], [], []>} : vector<32x32xbf16>, vector<32x72xbf16>, vector<32x72xf32> -> vector<32x72xf32>
    %294 = vector.extract_strided_slice %293 {offsets = [0, 32], sizes = [32, 8], strides = [1, 1]} : vector<32x72xf32> to vector<32x8xf32>
    %295 = vector.broadcast %278 : vector<1x8xf32> to vector<32x8xf32>
    %296 = arith.addf %294, %295 : vector<32x8xf32>
    %297 = vector.extract_strided_slice %293 {offsets = [0, 0], sizes = [32, 8], strides = [1, 1]} : vector<32x72xf32> to vector<32x8xf32>
    %c24_i32 = arith.constant 24 : i32
    %298 = tpu.dynamic_rotate %297 by %c24_i32 dim 0 : vector<32x8xf32>, i32 -> vector<32x8xf32>
    %299 = arith.andi %285, %289 : vector<32x1xi1>
    %cst_79 = arith.constant 0.000000e+00 : f32
    %300 = vector.shape_cast %299 : vector<32x1xi1> to vector<32x1xi1>
    %301 = vector.broadcast %300 : vector<32x1xi1> to vector<32x8xi1>
    %302 = vector.broadcast %cst_79 : f32 to vector<32x8xf32>
    %303 = arith.select %301, %298, %302 : vector<32x8xi1>, vector<32x8xf32>
    %304 = arith.addf %296, %303 : vector<32x8xf32>
    %305 = vector.extract_strided_slice %293 {offsets = [0, 8], sizes = [32, 8], strides = [1, 1]} : vector<32x72xf32> to vector<32x8xf32>
    %c16_i32_80 = arith.constant 16 : i32
    %306 = tpu.dynamic_rotate %305 by %c16_i32_80 dim 0 : vector<32x8xf32>, i32 -> vector<32x8xf32>
    %cst_81 = arith.constant 0.000000e+00 : f32
    %307 = vector.shape_cast %285 : vector<32x1xi1> to vector<32x1xi1>
    %308 = vector.broadcast %307 : vector<32x1xi1> to vector<32x8xi1>
    %309 = vector.broadcast %cst_81 : f32 to vector<32x8xf32>
    %310 = arith.select %308, %306, %309 : vector<32x8xi1>, vector<32x8xf32>
    %311 = arith.addf %304, %310 : vector<32x8xf32>
    %312 = vector.extract_strided_slice %293 {offsets = [0, 16], sizes = [32, 8], strides = [1, 1]} : vector<32x72xf32> to vector<32x8xf32>
    %c8_i32_82 = arith.constant 8 : i32
    %313 = tpu.dynamic_rotate %312 by %c8_i32_82 dim 0 : vector<32x8xf32>, i32 -> vector<32x8xf32>
    %314 = arith.andi %285, %291 : vector<32x1xi1>
    %cst_83 = arith.constant 0.000000e+00 : f32
    %315 = vector.shape_cast %314 : vector<32x1xi1> to vector<32x1xi1>
    %316 = vector.broadcast %315 : vector<32x1xi1> to vector<32x8xi1>
    %317 = vector.broadcast %cst_83 : f32 to vector<32x8xf32>
    %318 = arith.select %316, %313, %317 : vector<32x8xi1>, vector<32x8xf32>
    %319 = arith.addf %311, %318 : vector<32x8xf32>
    %320 = vector.extract_strided_slice %293 {offsets = [0, 24], sizes = [32, 8], strides = [1, 1]} : vector<32x72xf32> to vector<32x8xf32>
    %c8_i32_84 = arith.constant 8 : i32
    %321 = tpu.dynamic_rotate %320 by %c8_i32_84 dim 0 : vector<32x8xf32>, i32 -> vector<32x8xf32>
    %cst_85 = arith.constant 0.000000e+00 : f32
    %322 = vector.shape_cast %289 : vector<32x1xi1> to vector<32x1xi1>
    %323 = vector.broadcast %322 : vector<32x1xi1> to vector<32x8xi1>
    %324 = vector.broadcast %cst_85 : f32 to vector<32x8xf32>
    %325 = arith.select %323, %321, %324 : vector<32x8xi1>, vector<32x8xf32>
    %326 = arith.addf %319, %325 : vector<32x8xf32>
    %327 = vector.extract_strided_slice %293 {offsets = [0, 40], sizes = [32, 8], strides = [1, 1]} : vector<32x72xf32> to vector<32x8xf32>
    %c24_i32_86 = arith.constant 24 : i32
    %328 = tpu.dynamic_rotate %327 by %c24_i32_86 dim 0 : vector<32x8xf32>, i32 -> vector<32x8xf32>
    %cst_87 = arith.constant 0.000000e+00 : f32
    %329 = vector.shape_cast %291 : vector<32x1xi1> to vector<32x1xi1>
    %330 = vector.broadcast %329 : vector<32x1xi1> to vector<32x8xi1>
    %331 = vector.broadcast %cst_87 : f32 to vector<32x8xf32>
    %332 = arith.select %330, %328, %331 : vector<32x8xi1>, vector<32x8xf32>
    %333 = arith.addf %326, %332 : vector<32x8xf32>
    %334 = vector.extract_strided_slice %293 {offsets = [0, 48], sizes = [32, 8], strides = [1, 1]} : vector<32x72xf32> to vector<32x8xf32>
    %c24_i32_88 = arith.constant 24 : i32
    %335 = tpu.dynamic_rotate %334 by %c24_i32_88 dim 0 : vector<32x8xf32>, i32 -> vector<32x8xf32>
    %336 = arith.andi %287, %289 : vector<32x1xi1>
    %cst_89 = arith.constant 0.000000e+00 : f32
    %337 = vector.shape_cast %336 : vector<32x1xi1> to vector<32x1xi1>
    %338 = vector.broadcast %337 : vector<32x1xi1> to vector<32x8xi1>
    %339 = vector.broadcast %cst_89 : f32 to vector<32x8xf32>
    %340 = arith.select %338, %335, %339 : vector<32x8xi1>, vector<32x8xf32>
    %341 = arith.addf %333, %340 : vector<32x8xf32>
    %342 = vector.extract_strided_slice %293 {offsets = [0, 56], sizes = [32, 8], strides = [1, 1]} : vector<32x72xf32> to vector<32x8xf32>
    %c16_i32_90 = arith.constant 16 : i32
    %343 = tpu.dynamic_rotate %342 by %c16_i32_90 dim 0 : vector<32x8xf32>, i32 -> vector<32x8xf32>
    %cst_91 = arith.constant 0.000000e+00 : f32
    %344 = vector.shape_cast %287 : vector<32x1xi1> to vector<32x1xi1>
    %345 = vector.broadcast %344 : vector<32x1xi1> to vector<32x8xi1>
    %346 = vector.broadcast %cst_91 : f32 to vector<32x8xf32>
    %347 = arith.select %345, %343, %346 : vector<32x8xi1>, vector<32x8xf32>
    %348 = arith.addf %341, %347 : vector<32x8xf32>
    %349 = vector.extract_strided_slice %293 {offsets = [0, 64], sizes = [32, 8], strides = [1, 1]} : vector<32x72xf32> to vector<32x8xf32>
    %c8_i32_92 = arith.constant 8 : i32
    %350 = tpu.dynamic_rotate %349 by %c8_i32_92 dim 0 : vector<32x8xf32>, i32 -> vector<32x8xf32>
    %351 = arith.andi %287, %291 : vector<32x1xi1>
    %cst_93 = arith.constant 0.000000e+00 : f32
    %352 = vector.shape_cast %351 : vector<32x1xi1> to vector<32x1xi1>
    %353 = vector.broadcast %352 : vector<32x1xi1> to vector<32x8xi1>
    %354 = vector.broadcast %cst_93 : f32 to vector<32x8xf32>
    %355 = arith.select %353, %350, %354 : vector<32x8xi1>, vector<32x8xf32>
    %356 = arith.addf %348, %355 : vector<32x8xf32>
    %c24_i32_94 = arith.constant 24 : i32
    %357 = tpu.dynamic_rotate %356 by %c24_i32_94 dim 0 : vector<32x8xf32>, i32 -> vector<32x8xf32>
    %358 = arith.maximumf %356, %357 : vector<32x8xf32>
    %c16_i32_95 = arith.constant 16 : i32
    %359 = tpu.dynamic_rotate %358 by %c16_i32_95 dim 0 : vector<32x8xf32>, i32 -> vector<32x8xf32>
    %360 = arith.maximumf %358, %359 : vector<32x8xf32>
    %361 = vector.shape_cast %360 : vector<32x8xf32> to vector<1x32x8xf32>
    %362 = vector.extract_strided_slice %361 {offsets = [0, 0, 0], sizes = [1, 16, 8], strides = [1, 1, 1]} : vector<1x32x8xf32> to vector<1x16x8xf32>
    %363 = vector.shape_cast %362 : vector<1x16x8xf32> to vector<16x8xf32>
    %cst_96 = arith.constant 0.000000e+00 : f32
    %364 = vector.broadcast %cst_96 : f32 to vector<16x8xf32>
    %365 = arith.cmpf ogt, %363, %364 : vector<16x8xf32>
    %cst_97 = arith.constant 2.000000e-01 : f32
    %366 = vector.broadcast %cst_97 : f32 to vector<16x8xf32>
    %367 = arith.mulf %366, %363 : vector<16x8xf32>
    %368 = arith.select %365, %363, %367 : vector<16x8xi1>, vector<16x8xf32>
    %369 = tpu.iota {dimensions = array<i32: 0>} : vector<16x1xi32>
    %c15_i32_98 = arith.constant 15 : i32
    %370 = vector.broadcast %c15_i32_98 : i32 to vector<16x1xi32>
    %371 = arith.andi %369, %370 : vector<16x1xi32>
    %c0_i32 = arith.constant 0 : i32
    %372 = vector.broadcast %c0_i32 : i32 to vector<16x1xi32>
    %373 = arith.cmpi eq, %371, %372 : vector<16x1xi32>
    %cst_99 = arith.constant 0.000000e+00 : f32
    %374 = vector.shape_cast %373 : vector<16x1xi1> to vector<16x1xi1>
    %375 = vector.broadcast %374 : vector<16x1xi1> to vector<16x8xi1>
    %376 = vector.broadcast %cst_99 : f32 to vector<16x8xf32>
    %377 = arith.select %375, %368, %376 : vector<16x8xi1>, vector<16x8xf32>
    %cst_100 = arith.constant dense<0.000000e+00> : vector<8xf32>
    %378 = vector.multi_reduction <add>, %377, %cst_100 [0] : vector<16x8xf32> to vector<8xf32>
    %379 = vector.shape_cast %378 : vector<8xf32> to vector<1x8xf32>
    %cst_101 = arith.constant 1.000000e+00 : f32
    %380 = vector.broadcast %cst_101 : f32 to vector<1x8xf32>
    %381 = arith.mulf %379, %380 : vector<1x8xf32>
    %c0_102 = arith.constant 0 : index
    %c0_103 = arith.constant 0 : index
    %382 = vector.load %arg10[%c0_102, %c0_103] : memref<8x8xf32, #tpu.memory_space<vmem>>, vector<8x8xf32>
    %cst_104 = arith.constant dense<0.000000e+00> : vector<1x8xf32>
    %383 = tpu.matmul %381, %382, %cst_104 {dimension_numbers = #tpu.dot_dimension_numbers<[1], [0], [0], [1], [0, 0, 1, 1], [], []>} : vector<1x8xf32>, vector<8x8xf32>, vector<1x8xf32> -> vector<1x8xf32>
    %c0_105 = arith.constant 0 : index
    %c0_106 = arith.constant 0 : index
    %384 = vector.load %arg11[%c0_105, %c0_106] : memref<1x8xf32, #tpu.memory_space<vmem>>, vector<1x8xf32>
    %385 = arith.addf %383, %384 : vector<1x8xf32>
    %c0_107 = arith.constant 0 : index
    %c0_108 = arith.constant 0 : index
    %386 = vector.load %arg12[%c0_107, %c0_108] : memref<8x8xf32, #tpu.memory_space<vmem>>, vector<8x8xf32>
    %cst_109 = arith.constant dense<0.000000e+00> : vector<1x8xf32>
    %387 = tpu.matmul %381, %386, %cst_109 {dimension_numbers = #tpu.dot_dimension_numbers<[1], [0], [0], [1], [0, 0, 1, 1], [], []>} : vector<1x8xf32>, vector<8x8xf32>, vector<1x8xf32> -> vector<1x8xf32>
    %c0_110 = arith.constant 0 : index
    %c0_111 = arith.constant 0 : index
    %388 = vector.load %arg13[%c0_110, %c0_111] : memref<1x8xf32, #tpu.memory_space<vmem>>, vector<1x8xf32>
    %389 = arith.addf %387, %388 : vector<1x8xf32>
    %390 = math.exp %389 : vector<1x8xf32>
    %c0_112 = arith.constant 0 : index
    %c0_113 = arith.constant 0 : index
    %c0_114 = arith.constant 0 : index
    %391 = vector.load %arg14[%c0_112, %c0_113, %c0_114] : memref<1x1x8xf32, #tpu.memory_space<vmem>>, vector<1x1x8xf32>
    %392 = vector.shape_cast %391 : vector<1x1x8xf32> to vector<1x8xf32>
    %393 = arith.mulf %390, %392 : vector<1x8xf32>
    %394 = arith.addf %385, %393 : vector<1x8xf32>
    %c0_115 = arith.constant 0 : index
    %c0_116 = arith.constant 0 : index
    %c0_117 = arith.constant 0 : index
    %395 = vector.load %arg15[%c0_115, %c0_116, %c0_117] : memref<1x1x8xf32, #tpu.memory_space<vmem>>, vector<1x1x8xf32>
    %396 = vector.shape_cast %395 : vector<1x1x8xf32> to vector<1x8xf32>
    %397 = vector.shape_cast %394 : vector<1x8xf32> to vector<1x1x8xf32>
    tpu.vector_store %arg15[%c0_115, %c0_116, %c0_117], %397 {strides = array<i32>} : memref<1x1x8xf32, #tpu.memory_space<vmem>>, vector<1x1x8xf32>,
    %398 = arith.mulf %390, %390 : vector<1x8xf32>
    %399 = arith.mulf %385, %385 : vector<1x8xf32>
    %400 = arith.addf %398, %399 : vector<1x8xf32>
    %401 = arith.subf %400, %389 : vector<1x8xf32>
    %cst_118 = arith.constant 5.000000e-01 : f32
    %402 = vector.broadcast %cst_118 : f32 to vector<1x8xf32>
    %403 = arith.subf %401, %402 : vector<1x8xf32>
    %c0_119 = arith.constant 0 : index
    %c0_120 = arith.constant 0 : index
    %c0_121 = arith.constant 0 : index
    %404 = vector.load %arg16[%c0_119, %c0_120, %c0_121] : memref<1x1x8xf32, #tpu.memory_space<vmem>>, vector<1x1x8xf32>
    %405 = vector.shape_cast %404 : vector<1x1x8xf32> to vector<1x8xf32>
    %406 = vector.shape_cast %403 : vector<1x8xf32> to vector<1x1x8xf32>
    tpu.vector_store %arg16[%c0_119, %c0_120, %c0_121], %406 {strides = array<i32>} : memref<1x1x8xf32, #tpu.memory_space<vmem>>, vector<1x1x8xf32>,
    return
  }
  func.func @transform_0(%arg0: i32) -> (i32, i32) {
    %c0_i32 = arith.constant 0 : i32
    %c0_i32_0 = arith.constant 0 : i32
    return %arg0, %c0_i32 : i32, i32
  }
  func.func @transform_1(%arg0: i32) -> (i32, i32) {
    %c0_i32 = arith.constant 0 : i32
    %c0_i32_0 = arith.constant 0 : i32
    %c0_i32_1 = arith.constant 0 : i32
    return %c0_i32, %c0_i32_0 : i32, i32
  }
  func.func @transform_2(%arg0: i32) -> (i32, i32) {
    %c0_i32 = arith.constant 0 : i32
    %c0_i32_0 = arith.constant 0 : i32
    %c0_i32_1 = arith.constant 0 : i32
    return %c0_i32, %c0_i32_0 : i32, i32
  }
  func.func @transform_3(%arg0: i32) -> (i32, i32) {
    %c0_i32 = arith.constant 0 : i32
    %c0_i32_0 = arith.constant 0 : i32
    %c0_i32_1 = arith.constant 0 : i32
    return %c0_i32, %c0_i32_0 : i32, i32
  }
  func.func @transform_4(%arg0: i32) -> (i32, i32) {
    %c0_i32 = arith.constant 0 : i32
    %c0_i32_0 = arith.constant 0 : i32
    %c0_i32_1 = arith.constant 0 : i32
    return %c0_i32, %c0_i32_0 : i32, i32
  }
  func.func @transform_5(%arg0: i32) -> (i32, i32) {
    %c0_i32 = arith.constant 0 : i32
    %c0_i32_0 = arith.constant 0 : i32
    %c0_i32_1 = arith.constant 0 : i32
    return %c0_i32, %c0_i32_0 : i32, i32
  }
  func.func @transform_6(%arg0: i32) -> (i32, i32) {
    %c0_i32 = arith.constant 0 : i32
    %c0_i32_0 = arith.constant 0 : i32
    %c0_i32_1 = arith.constant 0 : i32
    return %c0_i32, %c0_i32_0 : i32, i32
  }
  func.func @transform_7(%arg0: i32) -> (i32, i32) {
    %c0_i32 = arith.constant 0 : i32
    %c0_i32_0 = arith.constant 0 : i32
    %c0_i32_1 = arith.constant 0 : i32
    return %c0_i32, %c0_i32_0 : i32, i32
  }
  func.func @transform_8(%arg0: i32) -> (i32, i32) {
    %c0_i32 = arith.constant 0 : i32
    %c0_i32_0 = arith.constant 0 : i32
    %c0_i32_1 = arith.constant 0 : i32
    return %c0_i32, %c0_i32_0 : i32, i32
  }
  func.func @transform_9(%arg0: i32) -> (i32, i32) {
    %c0_i32 = arith.constant 0 : i32
    %c0_i32_0 = arith.constant 0 : i32
    %c0_i32_1 = arith.constant 0 : i32
    return %c0_i32, %c0_i32_0 : i32, i32
  }
  func.func @transform_10(%arg0: i32) -> (i32, i32) {
    %c0_i32 = arith.constant 0 : i32
    %c0_i32_0 = arith.constant 0 : i32
    %c0_i32_1 = arith.constant 0 : i32
    return %c0_i32, %c0_i32_0 : i32, i32
  }
  func.func @transform_11(%arg0: i32) -> (i32, i32) {
    %c0_i32 = arith.constant 0 : i32
    %c0_i32_0 = arith.constant 0 : i32
    %c0_i32_1 = arith.constant 0 : i32
    return %c0_i32, %c0_i32_0 : i32, i32
  }
  func.func @transform_12(%arg0: i32) -> (i32, i32) {
    %c0_i32 = arith.constant 0 : i32
    %c0_i32_0 = arith.constant 0 : i32
    %c0_i32_1 = arith.constant 0 : i32
    return %c0_i32, %c0_i32_0 : i32, i32
  }
  func.func @transform_13(%arg0: i32) -> (i32, i32, i32) {
    %c0_i32 = arith.constant 0 : i32
    %c0_i32_0 = arith.constant 0 : i32
    %c0_i32_1 = arith.constant 0 : i32
    return %arg0, %c0_i32, %c0_i32_0 : i32, i32, i32
  }
  func.func @transform_14(%arg0: i32) -> (i32, i32, i32) {
    %c0_i32 = arith.constant 0 : i32
    %c0_i32_0 = arith.constant 0 : i32
    %c0_i32_1 = arith.constant 0 : i32
    return %arg0, %c0_i32, %c0_i32_0 : i32, i32, i32
  }
  func.func @transform_15(%arg0: i32) -> (i32, i32, i32) {
    %c0_i32 = arith.constant 0 : i32
    %c0_i32_0 = arith.constant 0 : i32
    %c0_i32_1 = arith.constant 0 : i32
    return %arg0, %c0_i32, %c0_i32_0 : i32, i32, i32
  }
}

</mosaic_0001>

<bundles_post_ra>
// kernel: vencoder_forward.1
= control target key start
LH: loop header
LB: loop body
LE: loop exit
PB: predicated region body
PF: predicated region fallthrough
CT: control target
= control target key end

     0   :  { %s15181_s0 = inlined_call_operand.vmem [shape: f32[512,3], index: 0, kind: input, shape index: {}]   ;;  %s15182_s1 = inlined_call_operand.vmem [shape: bf16[3,144], index: 1, kind: input, shape index: {}]   ;;  %s15183_s2 = inlined_call_operand.vmem [shape: f32[1,16], index: 2, kind: input, shape index: {}]   ;;  %s15184_s3 = inlined_call_operand.vmem [shape: bf16[16,288], index: 3, kind: input, shape index: {}]   ;;  %s15185_s4 = inlined_call_operand.vmem [shape: f32[1,32], index: 4, kind: input, shape index: {}]   ;;  %s15186_s5 = inlined_call_operand.vmem [shape: bf16[32,288], index: 5, kind: input, shape index: {}]   ;;  %s15187_s6 = inlined_call_operand.vmem [shape: f32[1,32], index: 6, kind: input, shape index: {}]   ;;  %s15188_s7 = inlined_call_operand.vmem [shape: bf16[32,72], index: 7, kind: input, shape index: {}]   ;;  %s15189_s8 = inlined_call_operand.vmem [shape: f32[1,8], index: 8, kind: input, shape index: {}]   ;;  %s15190_s9 = inlined_call_operand.vmem [shape: f32[8,8], index: 9, kind: input, shape index: {}]   ;;  %s15191_s10 = inlined_call_operand.vmem [shape: f32[1,8], index: 10, kind: input, shape index: {}]   ;;  %s15192_s11 = inlined_call_operand.vmem [shape: f32[8,8], index: 11, kind: input, shape index: {}]   ;;  %s15193_s12 = inlined_call_operand.vmem [shape: f32[1,8], index: 12, kind: input, shape index: {}]   ;;  %s15194_s13 = inlined_call_operand.vmem [shape: f32[2,1,8], index: 13, kind: input, shape index: {}]   ;;  %s15195_s14 = inlined_call_operand.hbm [shape: f32[2,1,8], index: 14, kind: output, shape index: {0}]   ;;  %s15196_s15 = inlined_call_operand.vmem [shape: f32[2,1,8], index: 15, kind: output, shape index: {1}]  }
   0x1   :  { %15560 = sst [smem:[#allocation236_spill]] %s15181_s0 }
   0x2   :  { %15561 = sst [smem:[#allocation237_spill]] %s15182_s1 }
   0x3   :  { %15562 = sst [smem:[#allocation238_spill]] %s15183_s2 }
   0x4   :  { %15563 = sst [smem:[#allocation239_spill]] %s15184_s3 }
   0x5   :  { %15564 = sst [smem:[#allocation240_spill]] %s15185_s4 }
   0x6   :  { %15565 = sst [smem:[#allocation241_spill]] %s15186_s5 }
   0x7   :  { %21 = vsyncpa [#allocation3], 0 }
   0x8   :  { %23 = vsyncpa [#allocation3 + $0x1], 0  ;;  %s8241_s18 = smov 0   ;;  %s8243_s19 = smov 0  }
   0x9   :  { %s8245_s20 = smov 0   ;;  %s8247_s21 = smov 0  }
   0xa LB: > { %s8262_s22 = sadd.s32 4294967295, %s8143_s21   ;;  %s7856_s23 = sadd.s32 4294967294, %s8143_s21   ;;  %s8143_s21 = sphi %s8247_s21, %s16936_s21   ;;  %s8139_s20 = sphi %s8245_s20, %s16935_s20   ;;  %s8135_s19 = sphi %s8243_s19, %s16934_s19   ;;  %s8131_s18 = sphi %s8241_s18, %s16933_s18  }
   0xb   : > { %s8266_s24 = sadd.s32 1, %s8143_s21   ;;  %s340_s25 = sadd.s32 1, %s8139_s20 }
   0xc   : > { %s337_s26 = ssub.s32 %s8143_s21, %s8266_s24  ;;  %p350_p0 = scmp.ne.s32.totalorder %s8139_s20, %s8135_s19 }
   0xd   : > { %p338_p1 = scmp.eq.s32.totalorder %s337_s26, 0  ;;  %p351_p2 = scmp.eq.s32.totalorder %s8262_s22, 1 }
   0xe   : > { %p356_p3 = scmp.ne.s32.totalorder %s8135_s19, %s8131_s18  ;;  %p357_p4 = scmp.eq.s32.totalorder %s7856_s23, 1 }
   0xf   : > { %s8277_s27 = scalar_select %p338_p1, %s8139_s20, %s340_s25  }
  0x10   : > { %p8279_p5 = por %p351_p2, %p350_p0  ;;  %p8283_p6 = por %p357_p4, %p356_p3 }
  0x11   : > { %p7859_p7 = scmp.ge.s32.totalorder %s8143_s21, 1  ;;  %p452_p8 = scmp.lt.s32.totalorder %s8143_s21, 3 }
  0x13   : > { %p453_p9 = pnand %p7859_p7, %p452_p8 }
  0x15   : > { %456 = sbr.rel (%p453_p9) target bundleno = 3877 (0xf25), region = 76 }
  0x1c   : > { %s15568_s1 = sld [smem:[#allocation237_spill]]  ;;  %vm851_vm0 = vcmask 1040384   ;;  %vm852_vm1 = vcmask 1041408   ;;  %s7860_s17 = sshll.u32 %s8262_s22, 5  ;;  %v8145_v3 = vmov 65535   ;;  %v15199_v5 = vmov 0  }
  0x1d   : > { %s15569_s2 = sld [smem:[#allocation238_spill]]  ;;  %v853_v4 = vsel %vm851_vm0, 4294967295, %v8145_v3  ;;  %893 = vmatprep.mubr.bf16.mxu0 %v15199_v5  ;;  %p506_p10 = scmp.lt.s32.totalorder %s7860_s17, 63  ;;  %4934 = vmatprep.mubr.bf16.mxu1 %v15199_v5  ;;  %vm802_vm2 = vcmask 23552   ;;  %v552_v57 = vlaneseq }
  0x1e   : > { %v854_v6 = vsel %vm852_vm1, %v853_v4, 0  ;;  %s15197_s26 = smov 64   ;;  %s15570_s0 = sld [smem:[#allocation236_spill]] }
  0x1f   : > { %s16938_s17 = smov (!%p506_p10, %s7860_s17), 63  ;;  %v8373_v60 = vshrl.u32 %v552_v57, 7  ;;  %s15302_s16 = smov 80  }
  0x20   : > { %s7861_s30 = sshll.u32 %s16938_s17, 3  ;;  %s15481_s17 = smov 96  }
  0x21   : > { %15573 = vst [vmem:[#allocation7_spill] sm:$0xff] %v8373_v60  ;;  %v8384_v63 = vadd.s32 24, %v8373_v60  ;;  %vm15413_vm3 = vcmp.lt.s32.totalorder %v8373_v60, 1  ;;  %vm1959_vm4 = vcmp.lt.s32.totalorder %v8373_v60, 7  ;;  %s8151_s23 = smov 48   ;;  %s16536_s3 = sld [smem:[#allocation239_spill]] }
  0x22   : > { %v7862_v0 = vld.sshfl [vmem:[%s15568_s1] sm:$0x33 pattern:$0x76325410]  ;;  %s16545_s4 = sld [smem:[#allocation240_spill]]  ;;  %s16622_s5 = sld [smem:[#allocation241_spill]] }
  0x23   : > { %v801_v1 = vcombine.high %v7862_v0, %v7862_v0  ;;  %v7879_v2 = vld [vmem:[%s15569_s2] ss:$0 sm:$0xff]  ;;  %v856_v8 = vand.u32 %v7862_v0, %v854_v6  ;;  %s8157_s1 = smov 72   ;;  %s16926_s2 = smov 104  }
  0x24   : > { %1059 = vrot.lane.b32.xlu1 %v7879_v2, %s15197_s26  ;;  %s8302_s25 = scalar_lea.vmem %s15570_s0, %s7861_s30  ;;  %s15479_s30 = smov 112   ;;  %v8393_v2 = vshra.s32 %v8384_v63, 4 }
  0x25   : > { %v859_v7 = vand.u32 %v854_v6, %v801_v1  ;;  %v518_v9 = vld [vmem:[%s8302_s25] sm:$0xff]  ;;  %v519_v10 = vld [vmem:[%s8302_s25 + $0x8] sm:$0xff]  ;;  %v520_v12 = vld [vmem:[%s8302_s25 + $0x10] sm:$0xff]  ;;  %s8156_s0 = smov 120   ;;  %p511_p11 = scmp.lt.s32.totalorder %s8262_s22, 1 }
  0x26   : > { %v777_v11 = vpack.c.bf16 %v519_v10, %v518_v9  ;;  %v521_v13 = vld [vmem:[%s8302_s25 + $0x18] sm:$0xff]  ;;  %v522_v15 = vld [vmem:[%s8302_s25 + $0x20] sm:$0xff]  ;;  %v523_v16 = vld [vmem:[%s8302_s25 + $0x28] sm:$0xff]  ;;  %15577 = vst [vmem:[#allocation11_spill] sm:$0xff] %v8393_v2  ;;  %vm15340_vm5 = vcmp.ge.s32.totalorder %v8393_v2, 1 }
  0x27   : > { %861 = vmatprep.subr.bf16.mxu0 %v859_v7  ;;  %v778_v14 = vpack.c.bf16 %v521_v13, %v520_v12  ;;  %v779_v17 = vpack.c.bf16 %v523_v16, %v522_v15  ;;  %v524_v18 = vld [vmem:[%s8302_s25 + $0x30] sm:$0xff]  ;;  %v525_v19 = vld [vmem:[%s8302_s25 + $0x38] sm:$0xff]  ;;  %v526_v21 = vld [vmem:[%s8302_s25 + $0x40] sm:$0xff] }
  0x28   : > { %862 = vmatpush1.bf16.msra.mxu0 %v856_v8  ;;  %v780_v20 = vpack.c.bf16 %v525_v19, %v524_v18  ;;  %v527_v22 = vld [vmem:[%s8302_s25 + $0x48] sm:$0xff]  ;;  %v528_v24 = vld [vmem:[%s8302_s25 + $0x50] sm:$0xff]  ;;  %v529_v25 = vld [vmem:[%s8302_s25 + $0x58] sm:$0xff] }
  0x29   : > { %v781_v23 = vpack.c.bf16 %v527_v22, %v526_v21  ;;  %v782_v26 = vpack.c.bf16 %v529_v25, %v528_v24  ;;  %v530_v27 = vld [vmem:[%s8302_s25 + $0x60] sm:$0xff]  ;;  %v531_v28 = vld [vmem:[%s8302_s25 + $0x68] sm:$0xff]  ;;  %v532_v30 = vld [vmem:[%s8302_s25 + $0x70] sm:$0xff] }
  0x2a   : > { %v783_v29 = vpack.c.bf16 %v531_v28, %v530_v27  ;;  %v533_v31 = vld [vmem:[%s8302_s25 + $0x78] sm:$0xff]  ;;  %v534_v33 = vld [vmem:[%s8302_s25 + $0x80] sm:$0xff]  ;;  %v535_v34 = vld [vmem:[%s8302_s25 + $0x88] sm:$0xff]  ;;  %v557_v28 = vadd.s32 32, %v8373_v60 }
  0x2b   : > { %7863 = vmatmul.mubr.msk.bf16.vlgmr.msra.gmra.mrb[0].mxu0 %vm802_vm2, %v777_v11  ;;  %v784_v32 = vpack.c.bf16 %v533_v31, %v532_v30  ;;  %v785_v35 = vpack.c.bf16 %v535_v34, %v534_v33  ;;  %v536_v36 = vld [vmem:[%s8302_s25 + $0x90] sm:$0xff]  ;;  %v537_v37 = vld [vmem:[%s8302_s25 + $0x98] sm:$0xff]  ;;  %v538_v39 = vld [vmem:[%s8302_s25 + $0xa0] sm:$0xff] }
  0x2c   : > { %903 = vmatprep.mubr.bf16.mxu0 %v15199_v5  ;;  %v786_v38 = vpack.c.bf16 %v537_v37, %v536_v36  ;;  %v539_v40 = vld [vmem:[%s8302_s25 + $0xa8] sm:$0xff]  ;;  %v540_v42 = vld [vmem:[%s8302_s25 + $0xb0] sm:$0xff]  ;;  %v541_v43 = vld [vmem:[%s8302_s25 + $0xb8] sm:$0xff]  ;;  %v8465_v33 = vand.u32 15, %v557_v28  ;;  %v8467_v34 = vshra.s32 %v557_v28, 4 }
  0x2d   : > { %v787_v41 = vpack.c.bf16 %v539_v40, %v538_v39  ;;  %v788_v44 = vpack.c.bf16 %v541_v43, %v540_v42  ;;  %v542_v45 = vld [vmem:[%s8302_s25 + $0xc0] sm:$0xff]  ;;  %v543_v46 = vld [vmem:[%s8302_s25 + $0xc8] sm:$0xff]  ;;  %v544_v48 = vld [vmem:[%s8302_s25 + $0xd0] sm:$0xff] }
  0x2e   : > { %v789_v47 = vpack.c.bf16 %v543_v46, %v542_v45  ;;  %v545_v49 = vld [vmem:[%s8302_s25 + $0xd8] sm:$0xff]  ;;  %v546_v51 = vld [vmem:[%s8302_s25 + $0xe0] sm:$0xff]  ;;  %v547_v52 = vld [vmem:[%s8302_s25 + $0xe8] sm:$0xff]  ;;  %15587 = vst [vmem:[#allocation21_spill] sm:$0xff] %v8465_v33  ;;  %vm15332_vm6 = vcmp.ge.s32.totalorder %v8467_v34, 1  ;;  %vm717_vm7 = vcmp.ge.s32.totalorder %v8465_v33, 1 }
  0x2f   : > { %v790_v50 = vpack.c.bf16 %v545_v49, %v544_v48  ;;  %v791_v53 = vpack.c.bf16 %v547_v52, %v546_v51  ;;  %v548_v54 = vld [vmem:[%s8302_s25 + $0xf0] sm:$0xff]  ;;  %v549_v55 = vld [vmem:[%s8302_s25 + $0xf8] sm:$0xff]  ;;  %15588 = vst [vmem:[#allocation22_spill] sm:$0xff] %v8467_v34  ;;  %s15309_s25 = smov 32   ;;  %vm1163_vm8 = vmand %vm15332_vm6, %vm717_vm7 }
  0x30   : > { %v792_v56 = vpack.c.bf16 %v549_v55, %v548_v54 }
  0x33   : > { %7864 = vmatmul.mubr.msk.bf16.gmra.mrb[4].mxu0 %vm802_vm2, %v778_v14 }
  0x34   : > { %913 = vmatprep.mubr.bf16.mxu0 %v15199_v5 }
  0x3b   : > { %7865 = vmatmul.mubr.msk.bf16.gmra.mrb[8].mxu0 %vm802_vm2, %v779_v17 }
  0x3c   : > { %923 = vmatprep.mubr.bf16.mxu0 %v15199_v5 }
  0x43   : > { %7866 = vmatmul.mubr.msk.bf16.gmra.mrb[12].mxu0 %vm802_vm2, %v780_v20 }
  0x44   : > { %933 = vmatprep.mubr.bf16.mxu0 %v15199_v5 }
  0x4b   : > { %7867 = vmatmul.mubr.msk.bf16.gmra.mrb[16].mxu0 %vm802_vm2, %v781_v23 }
  0x4c   : > { %943 = vmatprep.mubr.bf16.mxu0 %v15199_v5 }
  0x53   : > { %7868 = vmatmul.mubr.msk.bf16.gmra.mrb[20].mxu0 %vm802_vm2, %v782_v26 }
  0x54   : > { %953 = vmatprep.mubr.bf16.mxu0 %v15199_v5 }
  0x5b   : > { %7869 = vmatmul.mubr.msk.bf16.gmra.mrb[24].mxu0 %vm802_vm2, %v783_v29 }
  0x5c   : > { %963 = vmatprep.mubr.bf16.mxu0 %v15199_v5 }
  0x63   : > { %7870 = vmatmul.mubr.msk.bf16.gmra.mrb[28].mxu0 %vm802_vm2, %v784_v32 }
  0x64   : > { %973 = vmatprep.mubr.bf16.mxu0 %v15199_v5 }
  0x6b   : > { %7871 = vmatmul.mubr.msk.bf16.gmra.mrb[32].mxu0 %vm802_vm2, %v785_v35 }
  0x6c   : > { %983 = vmatprep.mubr.bf16.mxu0 %v15199_v5 }
  0x73   : > { %7872 = vmatmul.mubr.msk.bf16.gmra.mrb[36].mxu0 %vm802_vm2, %v786_v38 }
  0x74   : > { %993 = vmatprep.mubr.bf16.mxu0 %v15199_v5 }
  0x7b   : > { %7873 = vmatmul.mubr.msk.bf16.gmra.mrb[40].mxu0 %vm802_vm2, %v787_v41 }
  0x7c   : > { %1003 = vmatprep.mubr.bf16.mxu0 %v15199_v5 }
  0x83   : > { %7874 = vmatmul.mubr.msk.bf16.gmra.mrb[44].mxu0 %vm802_vm2, %v788_v44 }
  0x84   : > { %1013 = vmatprep.mubr.bf16.mxu0 %v15199_v5 }
  0x8b   : > { %7875 = vmatmul.mubr.msk.bf16.gmra.mrb[48].mxu0 %vm802_vm2, %v789_v47 }
  0x8c   : > { %1023 = vmatprep.mubr.bf16.mxu0 %v15199_v5 }
  0x93   : > { %7876 = vmatmul.mubr.msk.bf16.gmra.mrb[52].mxu0 %vm802_vm2, %v790_v50 }
  0x94   : > { %1033 = vmatprep.mubr.bf16.mxu0 %v15199_v5 }
  0x9b   : > { %7877 = vmatmul.mubr.msk.bf16.gmra.mrb[56].mxu0 %vm802_vm2, %v791_v53 }
  0x9c   : > { %1043 = vmatprep.mubr.bf16.mxu0 %v15199_v5 }
  0xa3   : > { %7878 = vmatmul.mubr.msk.bf16.gmra.mrb[60].mxu0 %vm802_vm2, %v792_v56 }
  0xfe   : > { %v8367_v58 = vpop.f32.mrb[0].mxu0 }
  0xff   : > { %15571 = vst [vmem:[#allocation5_spill] sm:$0xff] %v8367_v58  ;;  %1831 = vrot.lane.b32.xlu0 %v8367_v58, %s15481_s17  ;;  %v8371_v59 = vpop.f32.mrb[1].mxu0  ;;  %v15202_v10 = vrot.slane %v8367_v58, 7 }
 0x100   : > { %15572 = vst [vmem:[#allocation6_spill] sm:$0xff] %v8371_v59  ;;  %v8375_v61 = vpop.f32.mrb[2].mxu0 }
 0x101   : > { %15574 = vst [vmem:[#allocation8_spill] sm:$0xff] %v8375_v61  ;;  %1481 = vrot.lane.b32.xlu1 %v8375_v61, %s15479_s30  ;;  %v8379_v62 = vpop.f32.mrb[3].mxu0  ;;  %v1095_v3 = vrot.slane %v8375_v61, 7 }
 0x102   : > { %15575 = vst [vmem:[#allocation9_spill] sm:$0xff] %v8379_v62  ;;  %v15201_v6 = vrot.slane %v8379_v62, 1 }
 0x103   : > { %1479 = vrot.lane.b32.xlu0 %v8367_v58, %s15479_s30  ;;  %v1157_v15 = vsel %vm15413_vm3, %v15202_v10, %v1095_v3 }
 0x104   : > { %v1258_v19 = vsel %vm15340_vm5, %v1157_v15, 0.0 }
 0x105   : > { %2282 = vrot.lane.b32.xlu1 %v8375_v61, %s15302_s16 }
 0x106   : > { %v8388_v0 = vpop.f32.mrb[4].mxu0 }
 0x107   : > { %15576 = vst [vmem:[#allocation10_spill] sm:$0xff] %v8388_v0  ;;  %2280 = vrot.lane.b32.xlu0 %v8367_v58, %s15302_s16  ;;  %v907_v1 = vpop.f32.mrb[5].mxu0  ;;  %v1096_v4 = vrot.slane %v8388_v0, 7 }
 0x108   : > { %v3914_v7 = vrot.slane %v907_v1, 1  ;;  %v8398_v8 = vpop.f32.mrb[6].mxu0 }
 0x109   : > { %15578 = vst [vmem:[#allocation12_spill] sm:$0xff] %v8398_v8  ;;  %1835 = vrot.lane.b32.xlu1 %v8388_v0, %s15481_s17  ;;  %v911_v9 = vpop.f32.mrb[7].mxu0  ;;  %v1156_v11 = vsel %vm15413_vm3, %v1095_v3, %v1096_v4  ;;  %v1097_v12 = vrot.slane %v8398_v8, 7 }
 0x10a   : > { %v3915_v13 = vrot.slane %v911_v9, 1  ;;  %v8412_v14 = vsel %vm1959_vm4, %v15201_v6, %v3914_v7  ;;  %v1259_v49 = vsel %vm1163_vm8, %v1156_v11, 0.0 }
 0x10b   : > { %15579 = vst [vmem:[#allocation13_spill] sm:$0xff] %v8412_v14  ;;  %1833 = vrot.lane.b32.xlu0 %v8375_v61, %s15481_s17  ;;  %v8423_v16 = vsel %vm15413_vm3, %v1096_v4, %v1097_v12  ;;  %v15633_v14 = vmov 0 }
 0x10c   : > { %15580 = vst [vmem:[#allocation14_spill] sm:$0xff] %v8423_v16  ;;  %v8427_v17 = vsel %vm1959_vm4, %v3914_v7, %v3915_v13 }
 0x10d   : > { %15581 = vst [vmem:[#allocation15_spill] sm:$0xff] %v8427_v17  ;;  %2700 = vrot.lane.b32.xlu1 %v8388_v0, %s8151_s23 }
 0x10e   : > { %v8431_v18 = vpop.f32.mrb[8].mxu0 }
 0x10f   : > { %15582 = vst [vmem:[#allocation16_spill] sm:$0xff] %v8431_v18  ;;  %1325 = vrot.lane.b32.xlu0 %v1258_v19, %s15197_s26  ;;  %v917_v20 = vpop.f32.mrb[9].mxu0  ;;  %v1098_v21 = vrot.slane %v8431_v18, 7 }
 0x110   : > { %v3916_v22 = vrot.slane %v917_v20, 1  ;;  %v8437_v23 = vpop.f32.mrb[10].mxu0 }
 0x111   : > { %15583 = vst [vmem:[#allocation17_spill] sm:$0xff] %v8437_v23  ;;  %1837 = vrot.lane.b32.xlu1 %v8398_v8, %s15481_s17  ;;  %v921_v24 = vpop.f32.mrb[11].mxu0  ;;  %v1099_v25 = vrot.slane %v8437_v23, 7  ;;  %v8444_v26 = vsel %vm15413_vm3, %v1097_v12, %v1098_v21 }
 0x112   : > { %v3917_v27 = vrot.slane %v921_v24, 1  ;;  %v8455_v30 = vsel %vm1959_vm4, %v3915_v13, %v3916_v22 }
 0x113   : > { %1483 = vrot.lane.b32.xlu0 %v8388_v0, %s15479_s30  ;;  %v8451_v29 = vsel %vm15413_vm3, %v1098_v21, %v1099_v25  ;;  %15584 = vst [vmem:[#allocation18_spill] sm:$0xff] %v8455_v30 }
 0x114   : > { %v8459_v31 = vsel %vm1959_vm4, %v3916_v22, %v3917_v27 }
 0x115   : > { %15585 = vst [vmem:[#allocation19_spill] sm:$0xff] %v8459_v31  ;;  %2286 = vrot.lane.b32.xlu1 %v8398_v8, %s15302_s16 }
 0x116   : > { %v8463_v32 = vpop.f32.mrb[12].mxu0 }
 0x117   : > { %15586 = vst [vmem:[#allocation20_spill] sm:$0xff] %v8463_v32  ;;  %2284 = vrot.lane.b32.xlu0 %v8388_v0, %s15302_s16  ;;  %v927_v35 = vpop.f32.mrb[13].mxu0  ;;  %v1100_v36 = vrot.slane %v8463_v32, 7 }
 0x118   : > { %v3918_v37 = vrot.slane %v927_v35, 1  ;;  %v8472_v38 = vpop.f32.mrb[14].mxu0 }
 0x119   : > { %15589 = vst [vmem:[#allocation23_spill] sm:$0xff] %v8472_v38  ;;  %2702 = vrot.lane.b32.xlu1 %v8398_v8, %s8151_s23  ;;  %v931_v39 = vpop.f32.mrb[15].mxu0  ;;  %v8478_v40 = vsel %vm15413_vm3, %v1099_v25, %v1100_v36  ;;  %v1101_v41 = vrot.slane %v8472_v38, 7 }
 0x11a   : > { %v3919_v42 = vrot.slane %v931_v39, 1  ;;  %v8485_v43 = vsel %vm1959_vm4, %v3917_v27, %v3918_v37 }
 0x11b   : > { %15590 = vst [vmem:[#allocation24_spill] sm:$0xff] %v8485_v43  ;;  %2288 = vrot.lane.b32.xlu0 %v8431_v18, %s15302_s16  ;;  %v8491_v44 = vsel %vm15413_vm3, %v1100_v36, %v1101_v41 }
 0x11c   : > { %15591 = vst [vmem:[#allocation25_spill] sm:$0xff] %v8491_v44  ;;  %v8495_v45 = vsel %vm1959_vm4, %v3918_v37, %v3919_v42 }
 0x11d   : > { %15592 = vst [vmem:[#allocation26_spill] sm:$0xff] %v8495_v45  ;;  %3118 = vrot.lane.b32.xlu1 %v8398_v8, %s15309_s25 }
 0x11e   : > { %v8503_v46 = vpop.f32.mrb[16].mxu0 }
 0x11f   : > { %15593 = vst [vmem:[#allocation27_spill] sm:$0xff] %v8503_v46  ;;  %2704 = vrot.lane.b32.xlu0 %v8431_v18, %s8151_s23  ;;  %v937_v47 = vpop.f32.mrb[17].mxu0  ;;  %v1102_v48 = vrot.slane %v8503_v46, 7 }
 0x120   : > { %v3920_v50 = vrot.slane %v937_v47, 1  ;;  %v8508_v51 = vpop.f32.mrb[18].mxu0 }
 0x121   : > { %15594 = vst [vmem:[#allocation28_spill] sm:$0xff] %v8508_v51  ;;  %1327 = vrot.lane.b32.xlu1 %v1259_v49, %s15197_s26  ;;  %v941_v52 = vpop.f32.mrb[19].mxu0  ;;  %v8513_v53 = vsel %vm15413_vm3, %v1101_v41, %v1102_v48  ;;  %v1103_v54 = vrot.slane %v8508_v51, 7  ;;  %s8153_s26 = smov 16  }
 0x122   : > { %15595 = vst [vmem:[#allocation29_spill] sm:$0xff] %v8513_v53  ;;  %v3921_v55 = vrot.slane %v941_v52, 1  ;;  %v8524_v57 = vsel %vm1959_vm4, %v3919_v42, %v3920_v50 }
 0x123   : > { %3120 = vrot.lane.b32.xlu0 %v8431_v18, %s15309_s25  ;;  %v8520_v56 = vsel %vm15413_vm3, %v1102_v48, %v1103_v54  ;;  %15597 = vst [vmem:[#allocation31_spill] sm:$0xff] %v8524_v57 }
 0x124   : > { %15596 = vst [vmem:[#allocation30_spill] sm:$0xff] %v8520_v56  ;;  %v8528_v1 = vsel %vm1959_vm4, %v3920_v50, %v3921_v55 }
 0x125   : > { %15598 = vst [vmem:[#allocation32_spill] sm:$0xff] %v8528_v1  ;;  %1839 = vrot.lane.b32.xlu1 %v8431_v18, %s15481_s17 }
 0x126   : > { %v8532_v3 = vpop.f32.mrb[20].mxu0 }
 0x127   : > { %15599 = vst [vmem:[#allocation33_spill] sm:$0xff] %v8532_v3  ;;  %3568 = vrot.lane.b32.xlu0 %v8431_v18, %s8153_s26  ;;  %v947_v4 = vpop.f32.mrb[21].mxu0  ;;  %v1104_v7 = vrot.slane %v8532_v3, 7 }
 0x128   : > { %v3922_v9 = vrot.slane %v947_v4, 1  ;;  %v8537_v11 = vpop.f32.mrb[22].mxu0 }
 0x129   : > { %15600 = vst [vmem:[#allocation34_spill] sm:$0xff] %v8537_v11  ;;  %1487 = vrot.lane.b32.xlu1 %v8431_v18, %s15479_s30  ;;  %v951_v12 = vpop.f32.mrb[23].mxu0  ;;  %v8543_v13 = vsel %vm15413_vm3, %v1103_v54, %v1104_v7  ;;  %v1105_v15 = vrot.slane %v8537_v11, 7 }
 0x12a   : > { %15601 = vst [vmem:[#allocation35_spill] sm:$0xff] %v8543_v13  ;;  %v3923_v19 = vrot.slane %v951_v12, 1  ;;  %v8548_v20 = vsel %vm1959_vm4, %v3921_v55, %v3922_v9 }
 0x12b   : > { %15602 = vst [vmem:[#allocation36_spill] sm:$0xff] %v8548_v20  ;;  %2706 = vrot.lane.b32.xlu0 %v8437_v23, %s8151_s23  ;;  %v8554_v21 = vsel %vm15413_vm3, %v1104_v7, %v1105_v15 }
 0x12c   : > { %15603 = vst [vmem:[#allocation37_spill] sm:$0xff] %v8554_v21  ;;  %v8558_v22 = vsel %vm1959_vm4, %v3922_v9, %v3923_v19  ;;  %v8677_v21 = vadd.s32 144, %v8373_v60 }
 0x12d   : > { %15604 = vst [vmem:[#allocation38_spill] sm:$0xff] %v8558_v22  ;;  %3122 = vrot.lane.b32.xlu1 %v8437_v23, %s15309_s25 }
 0x12e   : > { %v8562_v24 = vpop.f32.mrb[24].mxu0  ;;  %15628 = vst [vmem:[#allocation62_spill] sm:$0xff] %v8677_v21  ;;  %v15206_v44 = vshra.s32 %v8677_v21, 4 }
 0x12f   : > { %15605 = vst [vmem:[#allocation39_spill] sm:$0xff] %v8562_v24  ;;  %1841 = vrot.lane.b32.xlu0 %v8437_v23, %s15481_s17  ;;  %v957_v25 = vpop.f32.mrb[25].mxu0  ;;  %v1106_v27 = vrot.slane %v8562_v24, 7 }
 0x130   : > { %v3924_v28 = vrot.slane %v957_v25, 1  ;;  %v8567_v35 = vpop.f32.mrb[26].mxu0  ;;  %vm8701_vm9 = vcmp.lt.s32.totalorder %v15206_v44, 15 }
 0x131   : > { %15606 = vst [vmem:[#allocation40_spill] sm:$0xff] %v8567_v35  ;;  %3570 = vrot.lane.b32.xlu1 %v8437_v23, %s8153_s26  ;;  %v961_v36 = vpop.f32.mrb[27].mxu0  ;;  %v8573_v37 = vsel %vm15413_vm3, %v1105_v15, %v1106_v27  ;;  %v1107_v39 = vrot.slane %v8567_v35, 7  ;;  %v15634_v14 = vsel %vm8701_vm9, 4294967295, %v15633_v14 }
 0x132   : > { %15607 = vst [vmem:[#allocation41_spill] sm:$0xff] %v8573_v37  ;;  %v3925_v41 = vrot.slane %v961_v36, 1  ;;  %v8578_v42 = vsel %vm1959_vm4, %v3923_v19, %v3924_v28  ;;  %15635 = vst [vmem:[#allocation67_spill] sm:$0xff] %v15634_v14 }
 0x133   : > { %15608 = vst [vmem:[#allocation42_spill] sm:$0xff] %v8578_v42  ;;  %1489 = vrot.lane.b32.xlu0 %v8437_v23, %s15479_s30  ;;  %v8584_v47 = vsel %vm15413_vm3, %v1106_v27, %v1107_v39 }
 0x134   : > { %15609 = vst [vmem:[#allocation43_spill] sm:$0xff] %v8584_v47  ;;  %v8588_v48 = vsel %vm1959_vm4, %v3924_v28, %v3925_v41  ;;  %v15665_v47 = vmov 0 }
 0x135   : > { %15610 = vst [vmem:[#allocation44_spill] sm:$0xff] %v8588_v48  ;;  %1843 = vrot.lane.b32.xlu1 %v8463_v32, %s15481_s17 }
 0x136   : > { %v8592_v49 = vpop.f32.mrb[28].mxu0 }
 0x137   : > { %15611 = vst [vmem:[#allocation45_spill] sm:$0xff] %v8592_v49  ;;  %2290 = vrot.lane.b32.xlu0 %v8437_v23, %s15302_s16  ;;  %v967_v50 = vpop.f32.mrb[29].mxu0  ;;  %v1108_v52 = vrot.slane %v8592_v49, 7 }
 0x138   : > { %v3926_v54 = vrot.slane %v967_v50, 1  ;;  %v8597_v55 = vpop.f32.mrb[30].mxu0 }
 0x139   : > { %15612 = vst [vmem:[#allocation46_spill] sm:$0xff] %v8597_v55  ;;  %1491 = vrot.lane.b32.xlu1 %v8463_v32, %s15479_s30  ;;  %v971_v4 = vpop.f32.mrb[31].mxu0  ;;  %v8603_v7 = vsel %vm15413_vm3, %v1107_v39, %v1108_v52  ;;  %v1109_v9 = vrot.slane %v8597_v55, 7 }
 0x13a   : > { %15613 = vst [vmem:[#allocation47_spill] sm:$0xff] %v8603_v7  ;;  %v3927_v12 = vrot.slane %v971_v4, 1  ;;  %v8608_v15 = vsel %vm1959_vm4, %v3925_v41, %v3926_v54 }
 0x13b   : > { %15614 = vst [vmem:[#allocation48_spill] sm:$0xff] %v8608_v15  ;;  %3124 = vrot.lane.b32.xlu0 %v8463_v32, %s15309_s25  ;;  %v8614_v19 = vsel %vm15413_vm3, %v1108_v52, %v1109_v9 }
 0x13c   : > { %15615 = vst [vmem:[#allocation49_spill] sm:$0xff] %v8614_v19  ;;  %v8618_v25 = vsel %vm1959_vm4, %v3926_v54, %v3927_v12 }
 0x13d   : > { %15616 = vst [vmem:[#allocation50_spill] sm:$0xff] %v8618_v25  ;;  %2292 = vrot.lane.b32.xlu1 %v8463_v32, %s15302_s16 }
 0x13e   : > { %v8622_v27 = vpop.f32.mrb[32].mxu0 }
 0x13f   : > { %15617 = vst [vmem:[#allocation51_spill] sm:$0xff] %v8622_v27  ;;  %3572 = vrot.lane.b32.xlu0 %v8463_v32, %s8153_s26  ;;  %v977_v28 = vpop.f32.mrb[33].mxu0  ;;  %v1110_v36 = vrot.slane %v8622_v27, 7 }
 0x140   : > { %v3928_v39 = vrot.slane %v977_v28, 1  ;;  %v8627_v41 = vpop.f32.mrb[34].mxu0 }
 0x141   : > { %15618 = vst [vmem:[#allocation52_spill] sm:$0xff] %v8627_v41  ;;  %2708 = vrot.lane.b32.xlu1 %v8463_v32, %s8151_s23  ;;  %v981_v50 = vpop.f32.mrb[35].mxu0  ;;  %v8633_v52 = vsel %vm15413_vm3, %v1109_v9, %v1110_v36  ;;  %v1111_v54 = vrot.slane %v8627_v41, 7 }
 0x142   : > { %15619 = vst [vmem:[#allocation53_spill] sm:$0xff] %v8633_v52  ;;  %v3929_v4 = vrot.slane %v981_v50, 1  ;;  %v8638_v5 = vsel %vm1959_vm4, %v3927_v12, %v3928_v39 }
 0x143   : > { %15620 = vst [vmem:[#allocation54_spill] sm:$0xff] %v8638_v5  ;;  %1845 = vrot.lane.b32.xlu0 %v8472_v38, %s15481_s17  ;;  %v8644_v28 = vsel %vm15413_vm3, %v1110_v36, %v1111_v54 }
 0x144   : > { %15621 = vst [vmem:[#allocation55_spill] sm:$0xff] %v8644_v28  ;;  %v8648_v6 = vsel %vm1959_vm4, %v3928_v39, %v3929_v4 }
 0x145   : > { %15622 = vst [vmem:[#allocation56_spill] sm:$0xff] %v8648_v6  ;;  %2710 = vrot.lane.b32.xlu1 %v8472_v38, %s8151_s23 }
 0x146   : > { %v8652_v9 = vpop.f32.mrb[36].mxu0 }
 0x147   : > { %15623 = vst [vmem:[#allocation57_spill] sm:$0xff] %v8652_v9  ;;  %2294 = vrot.lane.b32.xlu0 %v8472_v38, %s15302_s16  ;;  %v987_v12 = vpop.f32.mrb[37].mxu0  ;;  %v1112_v50 = vrot.slane %v8652_v9, 7 }
 0x148   : > { %v3930_v10 = vrot.slane %v987_v12, 1  ;;  %v8657_v23 = vpop.f32.mrb[38].mxu0 }
 0x149   : > { %15624 = vst [vmem:[#allocation58_spill] sm:$0xff] %v8657_v23  ;;  %3126 = vrot.lane.b32.xlu1 %v8472_v38, %s15309_s25  ;;  %v991_v36 = vpop.f32.mrb[39].mxu0  ;;  %v8663_v39 = vsel %vm15413_vm3, %v1111_v54, %v1112_v50  ;;  %v1113_v5 = vrot.slane %v8657_v23, 7 }
 0x14a   : > { %15625 = vst [vmem:[#allocation59_spill] sm:$0xff] %v8663_v39  ;;  %v3931_v19 = vrot.slane %v991_v36, 1  ;;  %v8668_v42 = vsel %vm1959_vm4, %v3929_v4, %v3930_v10 }
 0x14b   : > { %15626 = vst [vmem:[#allocation60_spill] sm:$0xff] %v8668_v42  ;;  %2712 = vrot.lane.b32.xlu0 %v8503_v46, %s8151_s23  ;;  %v8674_v12 = vsel %vm15413_vm3, %v1112_v50, %v1113_v5 }
 0x14c   : > { %15627 = vst [vmem:[#allocation61_spill] sm:$0xff] %v8674_v12  ;;  %v8681_v54 = vsel %vm1959_vm4, %v3930_v10, %v3931_v19 }
 0x14d   : > { %15629 = vst [vmem:[#allocation63_spill] sm:$0xff] %v8681_v54  ;;  %2296 = vrot.lane.b32.xlu1 %v8503_v46, %s15302_s16 }
 0x14e   : > { %v8685_v36 = vpop.f32.mrb[40].mxu0 }
 0x14f   : > { %15630 = vst [vmem:[#allocation64_spill] sm:$0xff] %v8685_v36  ;;  %3128 = vrot.lane.b32.xlu0 %v8503_v46, %s15309_s25  ;;  %v997_v4 = vpop.f32.mrb[41].mxu0  ;;  %v1114_v57 = vrot.slane %v8685_v36, 7 }
 0x150   : > { %v3932_v50 = vrot.slane %v997_v4, 1  ;;  %v8690_v12 = vpop.f32.mrb[42].mxu0 }
 0x151   : > { %15631 = vst [vmem:[#allocation65_spill] sm:$0xff] %v8690_v12  ;;  %1847 = vrot.lane.b32.xlu1 %v8503_v46, %s15481_s17  ;;  %v1001_v10 = vpop.f32.mrb[43].mxu0  ;;  %v8697_v30 = vsel %vm15413_vm3, %v1113_v5, %v1114_v57  ;;  %v1115_v4 = vrot.slane %v8690_v12, 7 }
 0x152   : > { %15632 = vst [vmem:[#allocation66_spill] sm:$0xff] %v8697_v30  ;;  %v3933_v16 = vrot.slane %v1001_v10, 1  ;;  %v8708_v38 = vsel %vm1959_vm4, %v3931_v19, %v3932_v50  ;;  %v8786_v30 = vpop.permute.xlu1 %1059 }
 0x153   : > { %15636 = vst [vmem:[#allocation68_spill] sm:$0xff] %v8708_v38  ;;  %3576 = vrot.lane.b32.xlu0 %v8503_v46, %s8153_s26  ;;  %v8714_v5 = vsel %vm15413_vm3, %v1114_v57, %v1115_v4  ;;  %15650 = vst [vmem:[#allocation82_spill] sm:$0xff] %v8786_v30 }
 0x154   : > { %15637 = vst [vmem:[#allocation69_spill] sm:$0xff] %v8714_v5  ;;  %v8718_v10 = vsel %vm1959_vm4, %v3932_v50, %v3933_v16 }
 0x155   : > { %15638 = vst [vmem:[#allocation70_spill] sm:$0xff] %v8718_v10  ;;  %1495 = vrot.lane.b32.xlu1 %v8503_v46, %s15479_s30 }
 0x156   : > { %v8725_v19 = vpop.f32.mrb[44].mxu0 }
 0x157   : > { %15639 = vst [vmem:[#allocation71_spill] sm:$0xff] %v8725_v19  ;;  %2714 = vrot.lane.b32.xlu0 %v8508_v51, %s8151_s23  ;;  %v1007_v38 = vpop.f32.mrb[45].mxu0  ;;  %v1116_v57 = vrot.slane %v8725_v19, 7 }
 0x158   : > { %v3934_v62 = vrot.slane %v1007_v38, 1  ;;  %v8730_v17 = vpop.f32.mrb[46].mxu0 }
 0x159   : > { %15640 = vst [vmem:[#allocation72_spill] sm:$0xff] %v8730_v17  ;;  %3130 = vrot.lane.b32.xlu1 %v8508_v51, %s15309_s25  ;;  %v1011_v50 = vpop.f32.mrb[47].mxu0  ;;  %v8736_v46 = vsel %vm15413_vm3, %v1115_v4, %v1116_v57 }
 0x15a   : > { %15641 = vst [vmem:[#allocation73_spill] sm:$0xff] %v8736_v46  ;;  %v8740_v44 = vsel %vm1959_vm4, %v3933_v16, %v3934_v62  ;;  %v3935_v10 = vrot.slane %v1011_v50, 1 }
 0x15b   : > { %15642 = vst [vmem:[#allocation74_spill] sm:$0xff] %v8740_v44  ;;  %1849 = vrot.lane.b32.xlu0 %v8508_v51, %s15481_s17 }
 0x15c   : > { %v8782_v50 = vsel %vm1959_vm4, %v3934_v62, %v3935_v10 }
 0x15d   : > { %3578 = vrot.lane.b32.xlu1 %v8508_v51, %s8153_s26  ;;  %15648 = vst [vmem:[#allocation80_spill] sm:$0xff] %v8782_v50 }
 0x15e   : > { %v8746_v38 = vpop.f32.mrb[48].mxu0 }
 0x15f   : > { %15643 = vst [vmem:[#allocation75_spill] sm:$0xff] %v8746_v38  ;;  %1497 = vrot.lane.b32.xlu0 %v8508_v51, %s15479_s30  ;;  %v1017_v59 = vpop.f32.mrb[49].mxu0  ;;  %v1118_v14 = vrot.slane %v8746_v38, 7 }
 0x160   : > { %v8750_v32 = vpop.f32.mrb[50].mxu0  ;;  %v3936_v5 = vrot.slane %v1017_v59, 1 }
 0x161   : > { %15644 = vst [vmem:[#allocation76_spill] sm:$0xff] %v8750_v32  ;;  %1851 = vrot.lane.b32.xlu1 %v8532_v3, %s15481_s17  ;;  %v1021_v4 = vpop.f32.mrb[51].mxu0  ;;  %v1119_v48 = vrot.slane %v8750_v32, 7 }
 0x162   : > { %v3937_v39 = vrot.slane %v1021_v4, 1 }
 0x163   : > { %2298 = vrot.lane.b32.xlu0 %v8508_v51, %s15302_s16  ;;  %v1117_v51 = vrot.slane %v8730_v17, 7  ;;  %v8849_v4 = vsel %vm15413_vm3, %v1118_v14, %v1119_v48 }
 0x164   : > { %15662 = vst [vmem:[#allocation94_spill] sm:$0xff] %v8849_v4  ;;  %v8867_v7 = vsel %vm1959_vm4, %v3936_v5, %v3937_v39 }
 0x165   : > { %1499 = vrot.lane.b32.xlu1 %v8532_v3, %s15479_s30  ;;  %v8778_v46 = vsel %vm15413_vm3, %v1117_v51, %v1118_v14  ;;  %15668 = vst [vmem:[#allocation98_spill] sm:$0xff] %v8867_v7 }
 0x166   : > { %v8758_v16 = vpop.f32.mrb[52].mxu0  ;;  %15647 = vst [vmem:[#allocation79_spill] sm:$0xff] %v8778_v46  ;;  %v8800_v46 = vsel %vm1959_vm4, %v3935_v10, %v3936_v5 }
 0x167   : > { %15645 = vst [vmem:[#allocation77_spill] sm:$0xff] %v8758_v16  ;;  %3132 = vrot.lane.b32.xlu0 %v8532_v3, %s15309_s25  ;;  %v8762_v18 = vpop.f32.mrb[53].mxu0  ;;  %15653 = vst [vmem:[#allocation85_spill] sm:$0xff] %v8800_v46 }
 0x168   : > { %v8764_v8 = vpop.f32.mrb[54].mxu0  ;;  %v3938_v25 = vrot.slane %v8762_v18, 1 }
 0x169   : > { %15646 = vst [vmem:[#allocation78_spill] sm:$0xff] %v8764_v8  ;;  %2300 = vrot.lane.b32.xlu1 %v8532_v3, %s15302_s16  ;;  %v8768_v44 = vpop.f32.mrb[55].mxu0  ;;  %v1121_v37 = vrot.slane %v8764_v8, 7 }
 0x16a   : > { %v8853_v18 = vsel %vm1959_vm4, %v3937_v39, %v3938_v25 }
 0x16b   : > { %3580 = vrot.lane.b32.xlu0 %v8532_v3, %s8153_s26  ;;  %15663 = vst [vmem:[#allocation95_spill] sm:$0xff] %v8853_v18 }
 0x16d   : > { %2716 = vrot.lane.b32.xlu1 %v8532_v3, %s8151_s23  ;;  %v8796_v3 = vsel %vm15413_vm3, %v1116_v57, %v1117_v51 }
 0x16e   : > { %v8784_v54 = vpop.f32.mrb[56].mxu0  ;;  %15652 = vst [vmem:[#allocation84_spill] sm:$0xff] %v8796_v3 }
 0x16f   : > { %15649 = vst [vmem:[#allocation81_spill] sm:$0xff] %v8784_v54  ;;  %1853 = vrot.lane.b32.xlu0 %v8537_v11, %s15481_s17  ;;  %v8790_v6 = vpop.f32.mrb[57].mxu0 }
 0x170   : > { %v8792_v59 = vpop.f32.mrb[58].mxu0 }
 0x171   : > { %15651 = vst [vmem:[#allocation83_spill] sm:$0xff] %v8792_v59  ;;  %v8802_v62 = vpop.permute.xlu0 %1831  ;;  %2718 = vrot.lane.b32.xlu1 %v8537_v11, %s8151_s23  ;;  %v8806_v30 = vpop.f32.mrb[59].mxu0 }
 0x172   : > { %15654 = vst [vmem:[#allocation86_spill] sm:$0xff] %v8802_v62 }
 0x173   : > { %v8808_v50 = vpop.permute.xlu1 %1481  ;;  %2302 = vrot.lane.b32.xlu0 %v8537_v11, %s15302_s16 }
 0x175   : > { %v8812_v42 = vpop.permute.xlu0 %1479  ;;  %3134 = vrot.lane.b32.xlu1 %v8537_v11, %s15309_s25  ;;  %v8833_v11 = vadd.s32 176, %v8373_v60 }
 0x176   : > { %v8816_v51 = vpop.f32.mrb[60].mxu0 }
 0x177   : > { %15655 = vst [vmem:[#allocation87_spill] sm:$0xff] %v8816_v51  ;;  %v8818_v10 = vpop.permute.xlu1 %2282  ;;  %2720 = vrot.lane.b32.xlu0 %v8562_v24, %s8151_s23  ;;  %v8822_v57 = vpop.f32.mrb[61].mxu0  ;;  %15661 = vst [vmem:[#allocation93_spill] sm:$0xff] %v8833_v11 }
 0x178   : > { %15656 = vst [vmem:[#allocation88_spill] sm:$0xff] %v8818_v10  ;;  %15657 = vst [vmem:[#allocation89_spill] sm:$0xff] %v8822_v57  ;;  %v8824_v46 = vpop.f32.mrb[62].mxu0 }
 0x179   : > { %15658 = vst [vmem:[#allocation90_spill] sm:$0xff] %v8824_v46  ;;  %v8826_v3 = vpop.permute.xlu0 %2280  ;;  %2304 = vrot.lane.b32.xlu1 %v8562_v24, %s15302_s16  ;;  %v8830_v28 = vpop.f32.mrb[63].mxu0 }
 0x17a   : > { %15659 = vst [vmem:[#allocation91_spill] sm:$0xff] %v8826_v3  ;;  %15660 = vst [vmem:[#allocation92_spill] sm:$0xff] %v8830_v28  ;;  %v15226_v28 = vshra.s32 %v8833_v11, 4  ;;  %v1120_v3 = vrot.slane %v8758_v16, 7 }
 0x17b   : > { %v8836_v52 = vpop.permute.xlu1 %1835  ;;  %3136 = vrot.lane.b32.xlu0 %v8562_v24, %s15309_s25 }
 0x17c   : > { %vm8861_vm10 = vcmp.lt.s32.totalorder %v15226_v28, 15  ;;  %v8871_v14 = vsel %vm15413_vm3, %v1119_v48, %v1120_v3 }
 0x17d   : > { %v8841_v15 = vpop.permute.xlu0 %1833  ;;  %1855 = vrot.lane.b32.xlu1 %v8562_v24, %s15481_s17  ;;  %v15666_v47 = vsel %vm8861_vm10, 4294967295, %v15665_v47  ;;  %15669 = vst [vmem:[#allocation99_spill] sm:$0xff] %v8871_v14  ;;  %v3939_v14 = vrot.slane %v8768_v44, 1 }
 0x17e   : > { %15667 = vst [vmem:[#allocation97_spill] sm:$0xff] %v15666_v47 }
 0x17f   : > { %v8855_v21 = vpop.permute.xlu1 %2700  ;;  %3584 = vrot.lane.b32.xlu0 %v8562_v24, %s8153_s26  ;;  %v8936_v56 = vsel %vm1959_vm4, %v3938_v25, %v3939_v14  ;;  %v8956_v25 = vsel %vm15413_vm3, %v1120_v3, %v1121_v37 }
 0x180   : > { %15664 = vst [vmem:[#allocation96_spill] sm:$0xff] %v8855_v21  ;;  %15674 = vst [vmem:[#allocation104_spill] sm:$0xff] %v8936_v56  ;;  %v15242_v56 = vrot.slane %v8816_v51, 7 }
 0x181   : > { %v8873_v18 = vpop.permute.xlu0 %1325  ;;  %1503 = vrot.lane.b32.xlu1 %v8562_v24, %s15479_s30  ;;  %15677 = vst [vmem:[#allocation107_spill] sm:$0xff] %v8956_v25 }
 0x182   : > { %15670 = vst [vmem:[#allocation100_spill] sm:$0xff] %v8873_v18 }
 0x183   : > { %v8880_v4 = vpop.permute.xlu1 %1837  ;;  %2722 = vrot.lane.b32.xlu0 %v8567_v35, %s8151_s23 }
 0x184   : > { %v15236_v1 = vrot.slane %v8880_v4, 1 }
 0x185   : > { %v8884_v39 = vpop.permute.xlu0 %1483  ;;  %3138 = vrot.lane.b32.xlu1 %v8567_v35, %s15309_s25 }
 0x187   : > { %v8888_v48 = vpop.permute.xlu1 %2286  ;;  %1857 = vrot.lane.b32.xlu0 %v8567_v35, %s15481_s17 }
 0x189   : > { %v8892_v5 = vpop.permute.xlu0 %2284  ;;  %3586 = vrot.lane.b32.xlu1 %v8567_v35, %s8153_s26 }
 0x18b   : > { %v8896_v28 = vpop.permute.xlu1 %2702  ;;  %1505 = vrot.lane.b32.xlu0 %v8567_v35, %s15479_s30 }
 0x18d   : > { %v8900_v24 = vpop.permute.xlu0 %2288  ;;  %1859 = vrot.lane.b32.xlu1 %v8592_v49, %s15481_s17 }
 0x18f   : > { %v8904_v18 = vpop.permute.xlu1 %3118  ;;  %2306 = vrot.lane.b32.xlu0 %v8567_v35, %s15302_s16  ;;  %v1122_v35 = vrot.slane %v8784_v54, 7 }
 0x190   : > { %15671 = vst [vmem:[#allocation101_spill] sm:$0xff] %v8904_v18 }
 0x191   : > { %v8908_v7 = vpop.permute.xlu0 %2704  ;;  %1507 = vrot.lane.b32.xlu1 %v8592_v49, %s15479_s30  ;;  %v8940_v13 = vsel %vm15413_vm3, %v1121_v37, %v1122_v35  ;;  %v8979_v37 = vadd.s32 208, %v8373_v60 }
 0x192   : > { %15675 = vst [vmem:[#allocation105_spill] sm:$0xff] %v8940_v13 }
 0x193   : > { %v8912_v47 = vpop.permute.xlu1 %1327  ;;  %3140 = vrot.lane.b32.xlu0 %v8592_v49, %s15309_s25  ;;  %15680 = vst [vmem:[#allocation110_spill] sm:$0xff] %v8979_v37 }
 0x194   : > { %15672 = vst [vmem:[#allocation102_spill] sm:$0xff] %v8912_v47  ;;  %v3940_v47 = vrot.slane %v8790_v6, 1 }
 0x195   : > { %v8917_v11 = vpop.permute.xlu0 %3120  ;;  %2308 = vrot.lane.b32.xlu1 %v8592_v49, %s15302_s16 }
 0x197   : > { %v8921_v22 = vpop.permute.xlu1 %1839  ;;  %3588 = vrot.lane.b32.xlu0 %v8592_v49, %s8153_s26 }
 0x198   : > { %v15235_v44 = vrot.slane %v8921_v22, 1 }
 0x199   : > { %v8930_v20 = vpop.permute.xlu0 %3568  ;;  %2724 = vrot.lane.b32.xlu1 %v8592_v49, %s8151_s23  ;;  %v8960_v49 = vsel %vm1959_vm4, %v3939_v14, %v3940_v47 }
 0x19a   : > { %15673 = vst [vmem:[#allocation103_spill] sm:$0xff] %v8930_v20  ;;  %v8948_v6 = vsel %vm1959_vm4, %v15236_v1, %v15235_v44  ;;  %15678 = vst [vmem:[#allocation108_spill] sm:$0xff] %v8960_v49  ;;  %v3941_v49 = vrot.slane %v8806_v30, 1  ;;  %v15681_v30 = vmov 0  ;;  %v15687_v20 = vrot.slane %v8822_v57, 1 }
 0x19b   : > { %15676 = vst [vmem:[#allocation106_spill] sm:$0xff] %v8948_v6  ;;  %v8950_v45 = vpop.permute.xlu1 %1487  ;;  %1861 = vrot.lane.b32.xlu0 %v8597_v55, %s15481_s17  ;;  %v15239_v6 = vshra.s32 %v8979_v37, 4 }
 0x19c   : > { %v9031_v53 = vsel %vm1959_vm4, %v3941_v49, %v15687_v20 }
 0x19d   : > { %v8962_v13 = vpop.permute.xlu0 %2706  ;;  %2726 = vrot.lane.b32.xlu1 %v8597_v55, %s8151_s23  ;;  %vm9000_vm11 = vcmp.lt.s32.totalorder %v15239_v6, 15  ;;  %v9018_v6 = vsel %vm1959_vm4, %v3940_v47, %v3941_v49  ;;  %15688 = vst [vmem:[#allocation115_spill] sm:$0xff] %v9031_v53  ;;  %v15690_v47 = vrot.slane %v8900_v24, 7 }
 0x19e   : > { %v15682_v30 = vsel %vm9000_vm11, 4294967295, %v15681_v30  ;;  %15686 = vst [vmem:[#allocation114_spill] sm:$0xff] %v9018_v6 }
 0x19f   : > { %v8966_v44 = vpop.permute.xlu1 %3122  ;;  %2310 = vrot.lane.b32.xlu0 %v8597_v55, %s15302_s16  ;;  %15683 = vst [vmem:[#allocation111_spill] sm:$0xff] %v15682_v30 }
 0x1a1   : > { %v8970_v1 = vpop.permute.xlu0 %1841  ;;  %3142 = vrot.lane.b32.xlu1 %v8597_v55, %s15309_s25  ;;  %v1123_v55 = vrot.slane %v8792_v59, 7 }
 0x1a3   : > { %v8974_v3 = vpop.permute.xlu1 %3570  ;;  %2728 = vrot.lane.b32.xlu0 %v8622_v27, %s8151_s23  ;;  %v9008_v43 = vsel %vm15413_vm3, %v1123_v55, %v15242_v56 }
 0x1a4   : > { %15679 = vst [vmem:[#allocation109_spill] sm:$0xff] %v8974_v3  ;;  %15684 = vst [vmem:[#allocation112_spill] sm:$0xff] %v9008_v43  ;;  %v9014_v3 = vsel %vm15413_vm3, %v1122_v35, %v1123_v55 }
 0x1a5   : > { %v8981_v14 = vpop.permute.xlu0 %1489  ;;  %2312 = vrot.lane.b32.xlu1 %v8622_v27, %s15302_s16  ;;  %15685 = vst [vmem:[#allocation113_spill] sm:$0xff] %v9014_v3 }
 0x1a7   : > { %v8986_v25 = vpop.permute.xlu1 %1843  ;;  %3144 = vrot.lane.b32.xlu0 %v8622_v27, %s15309_s25 }
 0x1a9   : > { %v8994_v31 = vpop.permute.xlu0 %2290  ;;  %1863 = vrot.lane.b32.xlu1 %v8622_v27, %s15481_s17 }
 0x1aa   : > { %v15689_v35 = vrot.slane %v8994_v31, 7 }
 0x1ab   : > { %v9020_v37 = vpop.permute.xlu1 %1491  ;;  %3592 = vrot.lane.b32.xlu0 %v8622_v27, %s8153_s26 }
 0x1ac   : > { %v9039_v55 = vsel %vm15413_vm3, %v15690_v47, %v15689_v35  ;;  %v15249_v35 = vrot.slane %v8962_v13, 1 }
 0x1ad   : > { %15691 = vst [vmem:[#allocation116_spill] sm:$0xff] %v9039_v55  ;;  %v9041_v3 = vpop.permute.xlu0 %3124  ;;  %1511 = vrot.lane.b32.xlu1 %v8622_v27, %s15479_s30 }
 0x1ae   : > { %v15254_v30 = vrot.slane %v9041_v3, 7 }
 0x1af   : > { %v9045_v56 = vpop.permute.xlu1 %2292  ;;  %2730 = vrot.lane.b32.xlu0 %v8627_v41, %s8151_s23 }
 0x1b1   : > { %v9049_v20 = vpop.permute.xlu0 %3572  ;;  %3146 = vrot.lane.b32.xlu1 %v8627_v41, %s15309_s25 }
 0x1b3   : > { %v9053_v49 = vpop.permute.xlu1 %2708  ;;  %1865 = vrot.lane.b32.xlu0 %v8627_v41, %s15481_s17 }
 0x1b4   : > { %15692 = vst [vmem:[#allocation117_spill] sm:$0xff] %v9053_v49  ;;  %v15248_v47 = vrot.slane %v9053_v49, 1 }
 0x1b5   : > { %v9059_v55 = vpop.permute.xlu0 %1845  ;;  %3594 = vrot.lane.b32.xlu1 %v8627_v41, %s8153_s26 }
 0x1b6   : > { %v9069_v27 = vsel %vm1959_vm4, %v15249_v35, %v15248_v47 }
 0x1b7   : > { %15693 = vst [vmem:[#allocation118_spill] sm:$0xff] %v9069_v27  ;;  %v9071_v53 = vpop.permute.xlu1 %2710  ;;  %1513 = vrot.lane.b32.xlu0 %v8627_v41, %s15479_s30 }
 0x1b8   : > { %15694 = vst [vmem:[#allocation119_spill] sm:$0xff] %v9071_v53 }
 0x1b9   : > { %v9075_v57 = vpop.permute.xlu0 %2294  ;;  %1867 = vrot.lane.b32.xlu1 %v8652_v9, %s15481_s17 }
 0x1bb   : > { %v9079_v6 = vpop.permute.xlu1 %3126  ;;  %2314 = vrot.lane.b32.xlu0 %v8627_v41, %s15302_s16 }
 0x1bc   : > { %15695 = vst [vmem:[#allocation120_spill] sm:$0xff] %v9079_v6  ;;  %v15253_v47 = vrot.slane %v9079_v6, 7  ;;  %v15257_v6 = vrot.slane %v9059_v55, 1 }
 0x1bd   : > { %v9085_v35 = vpop.permute.xlu0 %2712  ;;  %1515 = vrot.lane.b32.xlu1 %v8652_v9, %s15479_s30 }
 0x1be   : > { %v9095_v27 = vsel %vm15413_vm3, %v15254_v30, %v15253_v47 }
 0x1bf   : > { %15696 = vst [vmem:[#allocation121_spill] sm:$0xff] %v9095_v27  ;;  %v9097_v43 = vpop.permute.xlu1 %2296  ;;  %3148 = vrot.lane.b32.xlu0 %v8652_v9, %s15309_s25 }
 0x1c1   : > { %v9101_v41 = vpop.permute.xlu0 %3128  ;;  %2316 = vrot.lane.b32.xlu1 %v8652_v9, %s15302_s16 }
 0x1c2   : > { %15697 = vst [vmem:[#allocation122_spill] sm:$0xff] %v9101_v41 }
 0x1c3   : > { %v9105_v49 = vpop.permute.xlu1 %1847  ;;  %3596 = vrot.lane.b32.xlu0 %v8652_v9, %s8153_s26 }
 0x1c4   : > { %15698 = vst [vmem:[#allocation123_spill] sm:$0xff] %v9105_v49  ;;  %v15256_v47 = vrot.slane %v9105_v49, 1 }
 0x1c5   : > { %v9111_v30 = vpop.permute.xlu0 %3576  ;;  %2732 = vrot.lane.b32.xlu1 %v8652_v9, %s8151_s23 }
 0x1c6   : > { %15699 = vst [vmem:[#allocation124_spill] sm:$0xff] %v9111_v30  ;;  %v9121_v27 = vsel %vm1959_vm4, %v15257_v6, %v15256_v47 }
 0x1c7   : > { %15700 = vst [vmem:[#allocation125_spill] sm:$0xff] %v9121_v27  ;;  %v9123_v41 = vpop.permute.xlu1 %1495  ;;  %1869 = vrot.lane.b32.xlu0 %v8657_v23, %s15481_s17 }
 0x1c8   : > { %15701 = vst [vmem:[#allocation126_spill] sm:$0xff] %v9123_v41 }
 0x1c9   : > { %v9127_v53 = vpop.permute.xlu0 %2714  ;;  %2734 = vrot.lane.b32.xlu1 %v8657_v23, %s8151_s23 }
 0x1cb   : > { %v9131_v30 = vpop.permute.xlu1 %3130  ;;  %2318 = vrot.lane.b32.xlu0 %v8657_v23, %s15302_s16 }
 0x1cc   : > { %15702 = vst [vmem:[#allocation127_spill] sm:$0xff] %v9131_v30 }
 0x1cd   : > { %v9135_v9 = vpop.permute.xlu0 %1849  ;;  %3150 = vrot.lane.b32.xlu1 %v8657_v23, %s15309_s25  ;;  %v15263_v23 = vrot.slane %v9097_v43, 7 }
 0x1ce   : > { %15703 = vst [vmem:[#allocation128_spill] sm:$0xff] %v9135_v9 }
 0x1cf   : > { %v9139_v47 = vpop.permute.xlu1 %3578  ;;  %2736 = vrot.lane.b32.xlu0 %v8685_v36, %s8151_s23 }
 0x1d0   : > { %15704 = vst [vmem:[#allocation129_spill] sm:$0xff] %v9139_v47 }
 0x1d1   : > { %v9143_v6 = vpop.permute.xlu0 %1497  ;;  %2320 = vrot.lane.b32.xlu1 %v8685_v36, %s15302_s16 }
 0x1d2   : > { %15705 = vst [vmem:[#allocation130_spill] sm:$0xff] %v9143_v6 }
 0x1d3   : > { %v9147_v27 = vpop.permute.xlu1 %1851  ;;  %3152 = vrot.lane.b32.xlu0 %v8685_v36, %s15309_s25 }
 0x1d4   : > { %15706 = vst [vmem:[#allocation131_spill] sm:$0xff] %v9147_v27 }
 0x1d5   : > { %v9151_v49 = vpop.permute.xlu0 %2298  ;;  %1871 = vrot.lane.b32.xlu1 %v8685_v36, %s15481_s17 }
 0x1d6   : > { %15707 = vst [vmem:[#allocation132_spill] sm:$0xff] %v9151_v49  ;;  %v15262_v47 = vrot.slane %v9151_v49, 7 }
 0x1d7   : > { %v9157_v9 = vpop.permute.xlu1 %1499  ;;  %3600 = vrot.lane.b32.xlu0 %v8685_v36, %s8153_s26 }
 0x1d8   : > { %15708 = vst [vmem:[#allocation133_spill] sm:$0xff] %v9157_v9  ;;  %v9167_v27 = vsel %vm15413_vm3, %v15263_v23, %v15262_v47  ;;  %v15267_v47 = vrot.slane %v9127_v53, 1 }
 0x1d9   : > { %15709 = vst [vmem:[#allocation134_spill] sm:$0xff] %v9167_v27  ;;  %v9169_v6 = vpop.permute.xlu0 %3132  ;;  %1519 = vrot.lane.b32.xlu1 %v8685_v36, %s15479_s30 }
 0x1db   : > { %v9173_v30 = vpop.permute.xlu1 %2300  ;;  %2738 = vrot.lane.b32.xlu0 %v8690_v12, %s8151_s23 }
 0x1dc   : > { %15710 = vst [vmem:[#allocation135_spill] sm:$0xff] %v9173_v30 }
 0x1dd   : > { %v9177_v9 = vpop.permute.xlu0 %3580  ;;  %3154 = vrot.lane.b32.xlu1 %v8690_v12, %s15309_s25 }
 0x1de   : > { %15711 = vst [vmem:[#allocation136_spill] sm:$0xff] %v9177_v9 }
 0x1df   : > { %v9181_v49 = vpop.permute.xlu1 %2716  ;;  %1873 = vrot.lane.b32.xlu0 %v8690_v12, %s15481_s17 }
 0x1e0   : > { %15712 = vst [vmem:[#allocation137_spill] sm:$0xff] %v9181_v49  ;;  %v15266_v23 = vrot.slane %v9181_v49, 1  ;;  %v15271_v49 = vrot.slane %v9169_v6, 7 }
 0x1e1   : > { %v9187_v27 = vpop.permute.xlu0 %1853  ;;  %3602 = vrot.lane.b32.xlu1 %v8690_v12, %s8153_s26 }
 0x1e2   : > { %v9197_v36 = vsel %vm1959_vm4, %v15267_v47, %v15266_v23 }
 0x1e3   : > { %15713 = vst [vmem:[#allocation138_spill] sm:$0xff] %v9197_v36  ;;  %v9199_v9 = vpop.permute.xlu1 %2718  ;;  %1521 = vrot.lane.b32.xlu0 %v8690_v12, %s15479_s30 }
 0x1e4   : > { %15714 = vst [vmem:[#allocation139_spill] sm:$0xff] %v9199_v9 }
 0x1e5   : > { %v9203_v30 = vpop.permute.xlu0 %2302  ;;  %1875 = vrot.lane.b32.xlu1 %v8725_v19, %s15481_s17 }
 0x1e6   : > { %15715 = vst [vmem:[#allocation140_spill] sm:$0xff] %v9203_v30 }
 0x1e7   : > { %v9207_v41 = vpop.permute.xlu1 %3134  ;;  %2322 = vrot.lane.b32.xlu0 %v8690_v12, %s15302_s16 }
 0x1e8   : > { %15716 = vst [vmem:[#allocation141_spill] sm:$0xff] %v9207_v41  ;;  %v15270_v23 = vrot.slane %v9207_v41, 7  ;;  %v15274_v41 = vrot.slane %v9187_v27, 1 }
 0x1e9   : > { %v9213_v47 = vpop.permute.xlu0 %2720  ;;  %1523 = vrot.lane.b32.xlu1 %v8725_v19, %s15479_s30 }
 0x1ea   : > { %15717 = vst [vmem:[#allocation142_spill] sm:$0xff] %v9213_v47  ;;  %v9223_v36 = vsel %vm15413_vm3, %v15271_v49, %v15270_v23 }
 0x1eb   : > { %15718 = vst [vmem:[#allocation143_spill] sm:$0xff] %v9223_v36  ;;  %v9225_v9 = vpop.permute.xlu1 %2304  ;;  %3156 = vrot.lane.b32.xlu0 %v8725_v19, %s15309_s25 }
 0x1ed   : > { %v9229_v12 = vpop.permute.xlu0 %3136  ;;  %2324 = vrot.lane.b32.xlu1 %v8725_v19, %s15302_s16 }
 0x1ee   : > { %15719 = vst [vmem:[#allocation144_spill] sm:$0xff] %v9229_v12 }
 0x1ef   : > { %v9233_v47 = vpop.permute.xlu1 %1855  ;;  %3604 = vrot.lane.b32.xlu0 %v8725_v19, %s8153_s26 }
 0x1f0   : > { %15720 = vst [vmem:[#allocation145_spill] sm:$0xff] %v9233_v47  ;;  %v15273_v23 = vrot.slane %v9233_v47, 1 }
 0x1f1   : > { %v9239_v49 = vpop.permute.xlu0 %3584  ;;  %2740 = vrot.lane.b32.xlu1 %v8725_v19, %s8151_s23 }
 0x1f2   : > { %15721 = vst [vmem:[#allocation146_spill] sm:$0xff] %v9239_v49  ;;  %v9249_v36 = vsel %vm1959_vm4, %v15274_v41, %v15273_v23 }
 0x1f3   : > { %15722 = vst [vmem:[#allocation147_spill] sm:$0xff] %v9249_v36  ;;  %v9251_v12 = vpop.permute.xlu1 %1503  ;;  %1877 = vrot.lane.b32.xlu0 %v8730_v17, %s15481_s17 }
 0x1f4   : > { %15723 = vst [vmem:[#allocation148_spill] sm:$0xff] %v9251_v12 }
 0x1f5   : > { %v9255_v30 = vpop.permute.xlu0 %2722  ;;  %2742 = vrot.lane.b32.xlu1 %v8730_v17, %s8151_s23 }
 0x1f7   : > { %v9259_v49 = vpop.permute.xlu1 %3138  ;;  %2326 = vrot.lane.b32.xlu0 %v8730_v17, %s15302_s16 }
 0x1f8   : > { %15724 = vst [vmem:[#allocation149_spill] sm:$0xff] %v9259_v49 }
 0x1f9   : > { %v9263_v19 = vpop.permute.xlu0 %1857  ;;  %3158 = vrot.lane.b32.xlu1 %v8730_v17, %s15309_s25  ;;  %v15280_v17 = vrot.slane %v9225_v9, 7 }
 0x1fa   : > { %15725 = vst [vmem:[#allocation150_spill] sm:$0xff] %v9263_v19 }
 0x1fb   : > { %v9267_v23 = vpop.permute.xlu1 %3586  ;;  %2744 = vrot.lane.b32.xlu0 %v8746_v38, %s8151_s23 }
 0x1fc   : > { %15726 = vst [vmem:[#allocation151_spill] sm:$0xff] %v9267_v23 }
 0x1fd   : > { %v9271_v41 = vpop.permute.xlu0 %1505  ;;  %2328 = vrot.lane.b32.xlu1 %v8746_v38, %s15302_s16 }
 0x1fe   : > { %15727 = vst [vmem:[#allocation152_spill] sm:$0xff] %v9271_v41 }
 0x1ff   : > { %v9275_v36 = vpop.permute.xlu1 %1859  ;;  %3160 = vrot.lane.b32.xlu0 %v8746_v38, %s15309_s25 }
 0x200   : > { %15728 = vst [vmem:[#allocation153_spill] sm:$0xff] %v9275_v36 }
 0x201   : > { %v9279_v47 = vpop.permute.xlu0 %2306  ;;  %1879 = vrot.lane.b32.xlu1 %v8746_v38, %s15481_s17 }
 0x202   : > { %15729 = vst [vmem:[#allocation154_spill] sm:$0xff] %v9279_v47  ;;  %v15279_v23 = vrot.slane %v9279_v47, 7 }
 0x203   : > { %v9285_v19 = vpop.permute.xlu1 %1507  ;;  %3608 = vrot.lane.b32.xlu0 %v8746_v38, %s8153_s26 }
 0x204   : > { %15730 = vst [vmem:[#allocation155_spill] sm:$0xff] %v9285_v19  ;;  %v9295_v36 = vsel %vm15413_vm3, %v15280_v17, %v15279_v23  ;;  %v15284_v23 = vrot.slane %v9255_v30, 1 }
 0x205   : > { %15731 = vst [vmem:[#allocation156_spill] sm:$0xff] %v9295_v36  ;;  %v9297_v41 = vpop.permute.xlu0 %3140  ;;  %1527 = vrot.lane.b32.xlu1 %v8746_v38, %s15479_s30 }
 0x207   : > { %v9301_v49 = vpop.permute.xlu1 %2308  ;;  %2746 = vrot.lane.b32.xlu0 %v8750_v32, %s8151_s23 }
 0x208   : > { %15732 = vst [vmem:[#allocation157_spill] sm:$0xff] %v9301_v49 }
 0x209   : > { %v9305_v19 = vpop.permute.xlu0 %3588  ;;  %3162 = vrot.lane.b32.xlu1 %v8750_v32, %s15309_s25 }
 0x20a   : > { %15733 = vst [vmem:[#allocation158_spill] sm:$0xff] %v9305_v19 }
 0x20b   : > { %v9309_v47 = vpop.permute.xlu1 %2724  ;;  %1881 = vrot.lane.b32.xlu0 %v8750_v32, %s15481_s17 }
 0x20c   : > { %15734 = vst [vmem:[#allocation159_spill] sm:$0xff] %v9309_v47  ;;  %v15283_v17 = vrot.slane %v9309_v47, 1  ;;  %v15288_v47 = vrot.slane %v9297_v41, 7 }
 0x20d   : > { %v9315_v36 = vpop.permute.xlu0 %1861  ;;  %3610 = vrot.lane.b32.xlu1 %v8750_v32, %s8153_s26 }
 0x20e   : > { %v9325_v38 = vsel %vm1959_vm4, %v15284_v23, %v15283_v17 }
 0x20f   : > { %15735 = vst [vmem:[#allocation160_spill] sm:$0xff] %v9325_v38  ;;  %v9327_v19 = vpop.permute.xlu1 %2726  ;;  %1529 = vrot.lane.b32.xlu0 %v8750_v32, %s15479_s30 }
 0x210   : > { %15736 = vst [vmem:[#allocation161_spill] sm:$0xff] %v9327_v19 }
 0x211   : > { %v9331_v49 = vpop.permute.xlu0 %2310  ;;  %1883 = vrot.lane.b32.xlu1 %v8758_v16, %s15481_s17 }
 0x212   : > { %15737 = vst [vmem:[#allocation162_spill] sm:$0xff] %v9331_v49 }
 0x213   : > { %v9335_v12 = vpop.permute.xlu1 %3142  ;;  %2330 = vrot.lane.b32.xlu0 %v8750_v32, %s15302_s16 }
 0x214   : > { %15738 = vst [vmem:[#allocation163_spill] sm:$0xff] %v9335_v12  ;;  %v15287_v17 = vrot.slane %v9335_v12, 7  ;;  %v15291_v12 = vrot.slane %v9315_v36, 1 }
 0x215   : > { %v9341_v23 = vpop.permute.xlu0 %2728  ;;  %1531 = vrot.lane.b32.xlu1 %v8758_v16, %s15479_s30 }
 0x216   : > { %15739 = vst [vmem:[#allocation164_spill] sm:$0xff] %v9341_v23  ;;  %v9351_v38 = vsel %vm15413_vm3, %v15288_v47, %v15287_v17 }
 0x217   : > { %15740 = vst [vmem:[#allocation165_spill] sm:$0xff] %v9351_v38  ;;  %v9353_v19 = vpop.permute.xlu1 %2312  ;;  %3164 = vrot.lane.b32.xlu0 %v8758_v16, %s15309_s25 }
 0x218   : > { %15741 = vst [vmem:[#allocation166_spill] sm:$0xff] %v9353_v19 }
 0x219   : > { %v9357_v32 = vpop.permute.xlu0 %3144  ;;  %2332 = vrot.lane.b32.xlu1 %v8758_v16, %s15302_s16 }
 0x21a   : > { %15742 = vst [vmem:[#allocation167_spill] sm:$0xff] %v9357_v32 }
 0x21b   : > { %v9361_v23 = vpop.permute.xlu1 %1863  ;;  %3612 = vrot.lane.b32.xlu0 %v8758_v16, %s8153_s26 }
 0x21c   : > { %15743 = vst [vmem:[#allocation168_spill] sm:$0xff] %v9361_v23  ;;  %v15290_v17 = vrot.slane %v9361_v23, 1 }
 0x21d   : > { %v9367_v47 = vpop.permute.xlu0 %3592  ;;  %2748 = vrot.lane.b32.xlu1 %v8758_v16, %s8151_s23 }
 0x21e   : > { %15744 = vst [vmem:[#allocation169_spill] sm:$0xff] %v9367_v47  ;;  %v9377_v38 = vsel %vm1959_vm4, %v15291_v12, %v15290_v17 }
 0x21f   : > { %15745 = vst [vmem:[#allocation170_spill] sm:$0xff] %v9377_v38  ;;  %v9379_v32 = vpop.permute.xlu1 %1511  ;;  %1885 = vrot.lane.b32.xlu0 %v8764_v8, %s15481_s17 }
 0x220   : > { %15746 = vst [vmem:[#allocation171_spill] sm:$0xff] %v9379_v32 }
 0x221   : > { %v9383_v49 = vpop.permute.xlu0 %2730  ;;  %2750 = vrot.lane.b32.xlu1 %v8764_v8, %s8151_s23 }
 0x223   : > { %v9387_v47 = vpop.permute.xlu1 %3146  ;;  %2334 = vrot.lane.b32.xlu0 %v8764_v8, %s15302_s16 }
 0x224   : > { %15747 = vst [vmem:[#allocation172_spill] sm:$0xff] %v9387_v47 }
 0x225   : > { %v9391_v16 = vpop.permute.xlu0 %1865  ;;  %3166 = vrot.lane.b32.xlu1 %v8764_v8, %s15309_s25  ;;  %v15297_v8 = vrot.slane %v9353_v19, 7 }
 0x226   : > { %15748 = vst [vmem:[#allocation173_spill] sm:$0xff] %v9391_v16 }
 0x227   : > { %v9395_v17 = vpop.permute.xlu1 %3594  ;;  %2752 = vrot.lane.b32.xlu0 %v8784_v54, %s8151_s23 }
 0x228   : > { %15749 = vst [vmem:[#allocation174_spill] sm:$0xff] %v9395_v17 }
 0x229   : > { %v9399_v12 = vpop.permute.xlu0 %1513  ;;  %2336 = vrot.lane.b32.xlu1 %v8784_v54, %s15302_s16 }
 0x22a   : > { %15750 = vst [vmem:[#allocation175_spill] sm:$0xff] %v9399_v12 }
 0x22b   : > { %v9403_v38 = vpop.permute.xlu1 %1867  ;;  %3168 = vrot.lane.b32.xlu0 %v8784_v54, %s15309_s25 }
 0x22c   : > { %15751 = vst [vmem:[#allocation176_spill] sm:$0xff] %v9403_v38 }
 0x22d   : > { %v9407_v23 = vpop.permute.xlu0 %2314  ;;  %3170 = vrot.lane.b32.xlu1 %v8792_v59, %s15309_s25 }
 0x22e   : > { %15752 = vst [vmem:[#allocation177_spill] sm:$0xff] %v9407_v23  ;;  %v15296_v17 = vrot.slane %v9407_v23, 7  ;;  %v555_v23 = vadd.s32 16, %v8373_v60 }
 0x22f   : > { %v9413_v16 = vpop.permute.xlu1 %1515  ;;  %1887 = vrot.lane.b32.xlu0 %v8784_v54, %s15481_s17 }
 0x230   : > { %15753 = vst [vmem:[#allocation178_spill] sm:$0xff] %v9413_v16  ;;  %v9423_v38 = vsel %vm15413_vm3, %v15297_v8, %v15296_v17  ;;  %v15304_v17 = vrot.slane %v9383_v49, 1 }
 0x231   : > { %15754 = vst [vmem:[#allocation179_spill] sm:$0xff] %v9423_v38  ;;  %v9425_v12 = vpop.permute.xlu0 %3148  ;;  %1889 = vrot.lane.b32.xlu1 %v8792_v59, %s15481_s17 }
 0x233   : > { %v9429_v47 = vpop.permute.xlu1 %2316  ;;  %1535 = vrot.lane.b32.xlu0 %v8784_v54, %s15479_s30 }
 0x234   : > { %15755 = vst [vmem:[#allocation180_spill] sm:$0xff] %v9429_v47  ;;  %v9456_v47 = vshra.s32 %v555_v23, 4 }
 0x235   : > { %v9433_v16 = vpop.permute.xlu0 %3596  ;;  %1537 = vrot.lane.b32.xlu1 %v8792_v59, %s15479_s30 }
 0x236   : > { %15756 = vst [vmem:[#allocation181_spill] sm:$0xff] %v9433_v16  ;;  %15760 = vst [vmem:[#allocation185_spill] sm:$0xff] %v9456_v47  ;;  %vm15329_vm12 = vcmp.ge.s32.totalorder %v9456_v47, 1 }
 0x237   : > { %v9438_v32 = vpop.permute.xlu1 %2732  ;;  %3616 = vrot.lane.b32.xlu0 %v8784_v54, %s8153_s26 }
 0x238   : > { %15757 = vst [vmem:[#allocation182_spill] sm:$0xff] %v9438_v32  ;;  %v15301_v8 = vrot.slane %v9438_v32, 1  ;;  %v1642_v32 = vsel %vm15340_vm5, %v8808_v50, 0.0 }
 0x239   : > { %v9444_v38 = vpop.permute.xlu0 %1869  ;;  %2338 = vrot.lane.b32.xlu1 %v8792_v59, %s15302_s16  ;;  %s15764_s16 = smov 64  }
 0x23a   : > { %15758 = vst [vmem:[#allocation183_spill] sm:$0xff] %v9444_v38  ;;  %v9454_v16 = vsel %vm1959_vm4, %v15304_v17, %v15301_v8  ;;  %v1641_v17 = vsel %vm15329_vm12, %v8812_v42, 0.0 }
 0x23b   : > { %15759 = vst [vmem:[#allocation184_spill] sm:$0xff] %v9454_v16  ;;  %v9458_v54 = vpop.permute.xlu1 %2734  ;;  %2754 = vrot.lane.b32.xlu0 %v8792_v59, %s8151_s23  ;;  %v15307_v16 = vrot.slane %v9425_v12, 7 }
 0x23c   : > { %15761 = vst [vmem:[#allocation186_spill] sm:$0xff] %v9458_v54 }
 0x23d   : > { %v9463_v19 = vpop.permute.xlu0 %2318  ;;  %3618 = vrot.lane.b32.xlu1 %v8792_v59, %s8153_s26 }
 0x23e   : > { %15762 = vst [vmem:[#allocation187_spill] sm:$0xff] %v9463_v19 }
 0x23f   : > { %v9470_v8 = vpop.permute.xlu1 %3150  ;;  %1709 = vrot.lane.b32.xlu0 %v1642_v32, %s15764_s16 }
 0x240   : > { %15763 = vst [vmem:[#allocation188_spill] sm:$0xff] %v9470_v8  ;;  %v15306_v54 = vrot.slane %v9470_v8, 7 }
 0x241   : > { %v9478_v19 = vpop.permute.xlu0 %2736  ;;  %1707 = vrot.lane.b32.xlu1 %v1641_v17, %s15764_s16  ;;  %v15313_v17 = vrot.slane %v9444_v38, 1 }
 0x242   : > { %15765 = vst [vmem:[#allocation189_spill] sm:$0xff] %v9478_v19  ;;  %v9487_v50 = vsel %vm15413_vm3, %v15307_v16, %v15306_v54 }
 0x243   : > { %15766 = vst [vmem:[#allocation190_spill] sm:$0xff] %v9487_v50  ;;  %v9489_v32 = vpop.permute.xlu1 %2320  ;;  %3172 = vrot.lane.b32.xlu0 %v8816_v51, %s15309_s25  ;;  %s15772_s25 = smov 80  }
 0x245   : > { %v9493_v42 = vpop.permute.xlu0 %3152  ;;  %2756 = vrot.lane.b32.xlu1 %v8816_v51, %s8151_s23 }
 0x246   : > { %15767 = vst [vmem:[#allocation191_spill] sm:$0xff] %v9493_v42 }
 0x247   : > { %v9497_v59 = vpop.permute.xlu1 %1871  ;;  %1891 = vrot.lane.b32.xlu0 %v8816_v51, %s15481_s17 }
 0x248   : > { %15768 = vst [vmem:[#allocation192_spill] sm:$0xff] %v9497_v59  ;;  %v15312_v54 = vrot.slane %v9497_v59, 1 }
 0x249   : > { %v9503_v16 = vpop.permute.xlu0 %3600  ;;  %1893 = vrot.lane.b32.xlu1 %v8824_v46, %s15481_s17  ;;  %s8158_s17 = smov 88  }
 0x24a   : > { %15769 = vst [vmem:[#allocation193_spill] sm:$0xff] %v9503_v16  ;;  %v9513_v50 = vsel %vm1959_vm4, %v15313_v17, %v15312_v54  ;;  %v9523_v16 = vand.u32 15, %v555_v23  ;;  %v1643_v23 = vsel %vm15332_vm6, %v8884_v39, 0.0  ;;  %v15779_v54 = vrot.slane %v8367_v58, 7 }
 0x24b   : > { %15770 = vst [vmem:[#allocation194_spill] sm:$0xff] %v9513_v50  ;;  %v9515_v8 = vpop.permute.xlu1 %1519  ;;  %1539 = vrot.lane.b32.xlu0 %v8816_v51, %s15479_s30  ;;  %v9543_v50 = vand.u32 15, %v8384_v63 }
 0x24c   : > { %15771 = vst [vmem:[#allocation195_spill] sm:$0xff] %v9515_v8  ;;  %15773 = vst [vmem:[#allocation196_spill] sm:$0xff] %v9523_v16  ;;  %vm715_vm13 = vcmp.ge.s32.totalorder %v9523_v16, 1 }
 0x24d   : > { %v9519_v42 = vpop.permute.xlu0 %2738  ;;  %2342 = vrot.lane.b32.xlu1 %v8824_v46, %s15772_s25  ;;  %15777 = vst [vmem:[#allocation200_spill] sm:$0xff] %v9543_v50  ;;  %vm1161_vm14 = vmand %vm15329_vm12, %vm715_vm13  ;;  %vm15348_vm15 = vcmp.lt.s32.totalorder %v9543_v50, 15 }
 0x24e   : > { %vm1995_vm0 = vmand %vm15340_vm5, %vm15348_vm15 }
 0x24f   : > { %v9525_v19 = vpop.permute.xlu1 %3154  ;;  %2340 = vrot.lane.b32.xlu0 %v8816_v51, %s15772_s25 }
 0x250   : > { %15774 = vst [vmem:[#allocation197_spill] sm:$0xff] %v9525_v19  ;;  %v1928_v19 = vrot.slane %v8841_v15, 1 }
 0x251   : > { %v9529_v59 = vpop.permute.xlu0 %1873  ;;  %2758 = vrot.lane.b32.xlu1 %v8824_v46, %s8151_s23 }
 0x252   : > { %15775 = vst [vmem:[#allocation198_spill] sm:$0xff] %v9529_v59  ;;  %v1929_v59 = vrot.slane %v8836_v52, 1  ;;  %v15318_v52 = vrot.slane %v8802_v62, 1 }
 0x253   : > { %v9535_v17 = vpop.permute.xlu1 %3602  ;;  %3620 = vrot.lane.b32.xlu0 %v8816_v51, %s8153_s26 }
 0x254   : > { %15776 = vst [vmem:[#allocation199_spill] sm:$0xff] %v9535_v17  ;;  %v15780_v17 = vrot.slane %v8824_v46, 7 }
 0x255   : > { %v9547_v8 = vpop.permute.xlu0 %1521  ;;  %1711 = vrot.lane.b32.xlu1 %v1643_v23, %s15764_s16 }
 0x256   : > { %15778 = vst [vmem:[#allocation201_spill] sm:$0xff] %v9547_v8  ;;  %v1158_v51 = vsel %vm15413_vm3, %v15780_v17, %v15779_v54  ;;  %v1989_v54 = vsel %vm1959_vm4, %v1928_v19, %v1929_v59  ;;  %v15320_v17 = vrot.slane %v9489_v32, 7 }
 0x257   : > { %v9560_v63 = vpop.permute.xlu1 %1875  ;;  %2696 = vrot.lane.b32.xlu0 %v8367_v58, %s8151_s23  ;;  %v1257_v15 = vsel %vm1161_vm14, %v1158_v51, 0.0 }
 0x258   : > { %15781 = vst [vmem:[#allocation202_spill] sm:$0xff] %v9560_v63  ;;  %v2091_v63 = vsel %vm1995_vm0, %v1989_v54, 0.0 }
 0x259   : > { %v9566_v39 = vpop.permute.xlu0 %2322  ;;  %1323 = vrot.lane.b32.xlu1 %v1257_v15, %s15764_s16  ;;  %v1990_v15 = vsel %vm1959_vm4, %v15318_v52, %v1928_v19  ;;  %v15786_v19 = vrot.slane %v8880_v4, 1  ;;  %v2378_v52 = vrot.slane %v8892_v5, 7  ;;  %v9620_v5 = vadd.s32 56, %v8373_v60 }
 0x25a   : > { %15782 = vst [vmem:[#allocation203_spill] sm:$0xff] %v9566_v39  ;;  %v15319_v51 = vrot.slane %v9566_v39, 7  ;;  %v9642_v39 = vadd.s32 64, %v8373_v60 }
 0x25b   : > { %v9577_v23 = vpop.permute.xlu1 %1523  ;;  %2698 = vrot.lane.b32.xlu0 %v8375_v61, %s8151_s23  ;;  %v1988_v54 = vsel %vm1959_vm4, %v1929_v59, %v15786_v19  ;;  %s15788_s23 = smov 32   ;;  %v15325_v59 = vrot.slane %v9519_v42, 1  ;;  %v9823_v16 = vand.u32 15, %v9620_v5 }
 0x25c   : > { %15783 = vst [vmem:[#allocation204_spill] sm:$0xff] %v9577_v23  ;;  %v9591_v8 = vsel %vm15413_vm3, %v15320_v17, %v15319_v51  ;;  %v2090_v23 = vsel %vm15329_vm12, %v1990_v15, 0.0  ;;  %v15322_v15 = vrot.slane %v8818_v10, 7  ;;  %v559_v17 = vadd.s32 48, %v8373_v60  ;;  %15792 = vst [vmem:[#allocation211_spill] sm:$0xff] %v9642_v39 }
 0x25d   : > { %15784 = vst [vmem:[#allocation205_spill] sm:$0xff] %v9591_v8  ;;  %v9593_v38 = vpop.permute.xlu0 %3156  ;;  %2158 = vrot.lane.b32.xlu1 %v2091_v63, %s15764_s16  ;;  %v2092_v63 = vsel %vm15332_vm6, %v1988_v54, 0.0  ;;  %v2379_v8 = vrot.slane %v8888_v48, 7  ;;  %v15797_v48 = vrot.slane %v8900_v24, 7  ;;  %15806 = vst [vmem:[#allocation220_spill] sm:$0xff] %v9823_v16 }
 0x25e   : > { %v2437_v54 = vsel %vm15413_vm3, %v15322_v15, %v2378_v52  ;;  %v9648_v15 = vand.u32 15, %v559_v17 }
 0x25f   : > { %v9598_v62 = vpop.permute.xlu1 %2324  ;;  %2156 = vrot.lane.b32.xlu0 %v2090_v23, %s15764_s16  ;;  %v2506_v10 = vsel %vm715_vm13, %v2437_v54, 0.0  ;;  %v15331_v54 = vrot.slane %v9593_v38, 7 }
 0x260   : > { %15785 = vst [vmem:[#allocation206_spill] sm:$0xff] %v9598_v62  ;;  %15794 = vst [vmem:[#allocation213_spill] sm:$0xff] %v9648_v15  ;;  %vm719_vm2 = vcmp.ge.s32.totalorder %v9648_v15, 1 }
 0x261   : > { %v9606_v51 = vpop.permute.xlu0 %3604  ;;  %3112 = vrot.lane.b32.xlu1 %v8367_v58, %s15788_s23 }
 0x262   : > { %15787 = vst [vmem:[#allocation207_spill] sm:$0xff] %v9606_v51  ;;  %v9639_v51 = vshra.s32 %v559_v17, 4  ;;  %v9664_v17 = vshra.s32 %v9642_v39, 4 }
 0x263   : > { %v9614_v23 = vpop.permute.xlu1 %2740  ;;  %2160 = vrot.lane.b32.xlu0 %v2092_v63, %s15764_s16 }
 0x264   : > { %15789 = vst [vmem:[#allocation208_spill] sm:$0xff] %v9614_v23  ;;  %v15324_v4 = vrot.slane %v9614_v23, 1  ;;  %15791 = vst [vmem:[#allocation210_spill] sm:$0xff] %v9639_v51  ;;  %vm15374_vm1 = vcmp.ge.s32.totalorder %v9639_v51, 1  ;;  %vm15354_vm0 = vcmp.ge.s32.totalorder %v9664_v17, 1 }
 0x265   : > { %v9622_v19 = vpop.permute.xlu0 %1877  ;;  %3116 = vrot.lane.b32.xlu1 %v8388_v0, %s15788_s23  ;;  %15798 = vst [vmem:[#allocation216_spill] sm:$0xff] %v9664_v17  ;;  %vm1165_vm14 = vmand %vm15374_vm1, %vm719_vm2 }
 0x266   : > { %v9636_v63 = vsel %vm1959_vm4, %v15325_v59, %v15324_v4  ;;  %v9653_v4 = vshra.s32 %v9620_v5, 4 }
 0x267   : > { %15790 = vst [vmem:[#allocation209_spill] sm:$0xff] %v9636_v63  ;;  %v9644_v62 = vpop.permute.xlu1 %2742  ;;  %3114 = vrot.lane.b32.xlu0 %v8375_v61, %s15788_s23  ;;  %v2435_v63 = vsel %vm15413_vm3, %v2379_v8, %v15797_v48  ;;  %v15333_v48 = vand.u32 15, %v9642_v39 }
 0x268   : > { %15793 = vst [vmem:[#allocation212_spill] sm:$0xff] %v9644_v62  ;;  %15795 = vst [vmem:[#allocation214_spill] sm:$0xff] %v9653_v4  ;;  %v2508_v24 = vsel %vm717_vm7, %v2435_v63, 0.0  ;;  %vm15355_vm8 = vcmp.ge.s32.totalorder %v9653_v4, 1 }
 0x269   : > { %v9655_v59 = vpop.permute.xlu0 %2326  ;;  %2572 = vrot.lane.b32.xlu1 %v2506_v10, %s15764_s16  ;;  %vm9704_vm12 = vcmp.ge.s32.totalorder %v15333_v48, 1 }
 0x26a   : > { %15796 = vst [vmem:[#allocation215_spill] sm:$0xff] %v9655_v59  ;;  %vm1167_vm6 = vmand %vm15354_vm0, %vm9704_vm12 }
 0x26b   : > { %v9666_v23 = vpop.permute.xlu1 %3158  ;;  %3174 = vrot.lane.b32.xlu0 %v8824_v46, %s15788_s23  ;;  %v2436_v46 = vsel %vm15413_vm3, %v2378_v52, %v2379_v8  ;;  %v1262_v8 = vsel %vm15355_vm8, %v8451_v29, 0.0  ;;  %v15338_v29 = vrot.slane %v9622_v19, 1 }
 0x26c   : > { %v15330_v10 = vrot.slane %v9666_v23, 7 }
 0x26d   : > { %v9677_v62 = vpop.permute.xlu0 %2744  ;;  %2576 = vrot.lane.b32.xlu1 %v2508_v24, %s15764_s16  ;;  %v2795_v24 = vrot.slane %v8896_v28, 1  ;;  %v1261_v28 = vsel %vm1165_vm14, %v8444_v26, 0.0  ;;  %vm684_vm14 = vcmp.lt.s32.totalorder %v8393_v2, 15 }
 0x26e   : > { %v9688_v59 = vsel %vm15413_vm3, %v15331_v54, %v15330_v10  ;;  %v15335_v10 = vrot.slane %v8855_v21, 1  ;;  %v2796_v54 = vrot.slane %v8908_v7, 1  ;;  %v1263_v7 = vsel %vm1167_vm6, %v8478_v40, 0.0 }
 0x26f   : > { %15799 = vst [vmem:[#allocation217_spill] sm:$0xff] %v9688_v59  ;;  %v9690_v63 = vpop.permute.xlu1 %2328  ;;  %2574 = vrot.lane.b32.xlu0 %v2436_v46, %s15764_s16  ;;  %v15803_v21 = vrot.slane %v8962_v13, 1  ;;  %vm683_vm6 = vcmp.lt.s32.totalorder %v9456_v47, 15 }
 0x270   : > { %v2852_v26 = vsel %vm1959_vm4, %v15335_v10, %v2795_v24  ;;  %v2851_v10 = vsel %vm1959_vm4, %v2795_v24, %v2796_v54  ;;  %vm3274_vm5 = vmand %vm683_vm6, %vm715_vm13  ;;  %vm685_vm13 = vcmp.lt.s32.totalorder %v8467_v34, 15 }
 0x271   : > { %v9708_v46 = vpop.permute.xlu0 %3160  ;;  %1333 = vrot.lane.b32.xlu1 %v1262_v8, %s15764_s16  ;;  %v2850_v40 = vsel %vm1959_vm4, %v2796_v54, %v15803_v21  ;;  %v1645_v21 = vsel %vm15374_vm1, %v8950_v45, 0.0  ;;  %v3213_v54 = vrot.slane %v8966_v44, 7  ;;  %v1932_v45 = vrot.slane %v8970_v1, 1 }
 0x273   : > { %v9714_v59 = vpop.permute.xlu1 %1879  ;;  %1331 = vrot.lane.b32.xlu0 %v1261_v28, %s15764_s16 }
 0x274   : > { %v15337_v48 = vrot.slane %v9714_v59, 1 }
 0x275   : > { %v9727_v8 = vpop.permute.xlu0 %3608  ;;  %2988 = vrot.lane.b32.xlu1 %v2852_v26, %s15764_s16 }
 0x276   : > { %v9737_v28 = vsel %vm1959_vm4, %v15338_v29, %v15337_v48  ;;  %v2923_v48 = vsel %vm15348_vm15, %v2851_v10, 0.0  ;;  %vm3276_vm15 = vmand %vm685_vm13, %vm717_vm7 }
 0x277   : > { %15802 = vst [vmem:[#allocation218_spill] sm:$0xff] %v9737_v28  ;;  %v9739_v39 = vpop.permute.xlu1 %1527  ;;  %1335 = vrot.lane.b32.xlu0 %v1263_v7, %s15764_s16  ;;  %v15351_v28 = vrot.slane %v9690_v63, 7 }
 0x279   : > { %v9748_v26 = vpop.permute.xlu0 %2746  ;;  %2992 = vrot.lane.b32.xlu1 %v2850_v40, %s15764_s16  ;;  %v1647_v40 = vsel %vm15354_vm0, %v9020_v37, 0.0 }
 0x27b   : > { %v9753_v29 = vpop.permute.xlu1 %3162  ;;  %2990 = vrot.lane.b32.xlu0 %v2923_v48, %s15764_s16  ;;  %v3212_v48 = vrot.slane %v8917_v11, 7 }
 0x27d   : > { %v9756_v7 = vpop.permute.xlu0 %1881  ;;  %3562 = vrot.lane.b32.xlu1 %v8375_v61, %s8153_s26  ;;  %v15342_v61 = vrot.slane %v8904_v18, 7  ;;  %v3266_v11 = vsel %vm15413_vm3, %v3212_v48, %v3213_v54 }
 0x27f   : > { %v9760_v13 = vpop.permute.xlu1 %3610  ;;  %3560 = vrot.lane.b32.xlu0 %v8367_v58, %s8153_s26  ;;  %v1933_v58 = vrot.slane %v8986_v25, 1  ;;  %v15808_v25 = vrot.slane %v9059_v55, 1 }
 0x281   : > { %v9768_v10 = vpop.permute.xlu0 %1529  ;;  %1715 = vrot.lane.b32.xlu1 %v1645_v21, %s15764_s16  ;;  %v1646_v21 = vsel %vm15355_vm8, %v8981_v14, 0.0  ;;  %v3371_v14 = vsel %vm684_vm14, %v3266_v11, 0.0 }
 0x283   : > { %v9772_v24 = vpop.permute.xlu1 %1883  ;;  %3564 = vrot.lane.b32.xlu0 %v8388_v0, %s8153_s26 }
 0x285   : > { %v9781_v44 = vpop.permute.xlu0 %2330  ;;  %1719 = vrot.lane.b32.xlu1 %v1647_v40, %s15764_s16  ;;  %v3267_v40 = vsel %vm15413_vm3, %v15342_v61, %v3212_v48  ;;  %v15805_v48 = vrot.slane %v8921_v22, 1 }
 0x286   : > { %v15347_v37 = vrot.slane %v9781_v44, 7  ;;  %v3370_v11 = vsel %vm3274_vm5, %v3267_v40, 0.0  ;;  %vm15375_vm5 = vcmp.lt.s32.totalorder %v9823_v16, 15 }
 0x287   : > { %v9793_v1 = vpop.permute.xlu1 %1531  ;;  %1717 = vrot.lane.b32.xlu0 %v1646_v21, %s15764_s16  ;;  %v1986_v61 = vsel %vm1959_vm4, %v15805_v48, %v1932_v45  ;;  %vm1999_vm7 = vmand %vm15355_vm8, %vm15375_vm5 }
 0x288   : > { %v9812_v21 = vsel %vm15413_vm3, %v15351_v28, %v15347_v37  ;;  %v15807_v37 = vrot.slane %v9041_v3, 7  ;;  %v2094_v5 = vsel %vm15374_vm1, %v1986_v61, 0.0  ;;  %v1984_v3 = vsel %vm1959_vm4, %v1933_v58, %v15808_v25  ;;  %v15811_v25 = vld [vmem:[#allocation109_spill] sm:$0xff] }
 0x289   : > { %15804 = vst [vmem:[#allocation219_spill] sm:$0xff] %v9812_v21  ;;  %v9814_v18 = vpop.permute.xlu0 %3164  ;;  %3438 = vrot.lane.b32.xlu1 %v3371_v14, %s15764_s16  ;;  %v15350_v61 = vrot.slane %v9748_v26, 1  ;;  %v2096_v48 = vsel %vm15354_vm0, %v1984_v3, 0.0 }
 0x28a   : > { %v3265_v22 = vsel %vm15413_vm3, %v3213_v54, %v15807_v37  ;;  %v1985_v37 = vsel %vm1959_vm4, %v1932_v45, %v1933_v58 }
 0x28b   : > { %v9826_v0 = vpop.permute.xlu1 %2332  ;;  %3436 = vrot.lane.b32.xlu0 %v3370_v11, %s15764_s16  ;;  %v3372_v14 = vsel %vm3276_vm15, %v3265_v22, 0.0  ;;  %v2382_v11 = vrot.slane %v9045_v56, 7  ;;  %v3723_v56 = vsel %vm684_vm14, %v15811_v25, 0.0  ;;  %vm15823_vm15 = vcmp.lt.s32.totalorder %v9543_v50, 15  ;;  %v15828_v50 = vld [vmem:[#allocation24_spill] sm:$0xff] }
 0x28d   : > { %v9839_v40 = vpop.permute.xlu0 %3612  ;;  %2164 = vrot.lane.b32.xlu1 %v2094_v5, %s15764_s16  ;;  %v2095_v5 = vsel %vm1999_vm7, %v1985_v37, 0.0  ;;  %vm3979_vm7 = vmand %vm684_vm14, %vm15823_vm15 }
 0x28e   : > { %v4075_v2 = vsel %vm3979_vm7, %v15828_v50, 0.0 }
 0x28f   : > { %v9847_v54 = vpop.permute.xlu1 %2748  ;;  %3440 = vrot.lane.b32.xlu0 %v3372_v14, %s15764_s16  ;;  %v15812_v14 = vrot.slane %v8994_v31, 7 }
 0x290   : > { %15809 = vst [vmem:[#allocation221_spill] sm:$0xff] %v9847_v54  ;;  %v15349_v55 = vrot.slane %v9847_v54, 1 }
 0x291   : > { %v9861_v22 = vpop.permute.xlu0 %1885  ;;  %2168 = vrot.lane.b32.xlu1 %v2096_v48, %s15764_s16  ;;  %v2433_v37 = vsel %vm15413_vm3, %v15812_v14, %v2382_v11  ;;  %v15813_v48 = vld [vmem:[#allocation103_spill] sm:$0xff]  ;;  %v9900_v14 = vadd.s32 96, %v8373_v60 }
 0x292   : > { %v9870_v58 = vsel %vm1959_vm4, %v15350_v61, %v15349_v55  ;;  %v3722_v55 = vsel %vm683_vm6, %v15813_v48, 0.0  ;;  %v9889_v61 = vadd.s32 80, %v8373_v60  ;;  %v15837_v47 = vrot.slane %v9861_v22, 1 }
 0x293   : > { %15810 = vst [vmem:[#allocation222_spill] sm:$0xff] %v9870_v58  ;;  %v9872_v45 = vpop.permute.xlu1 %2750  ;;  %2166 = vrot.lane.b32.xlu0 %v2095_v5, %s15764_s16  ;;  %v2383_v5 = vrot.slane %v9075_v57, 7  ;;  %15816 = vst [vmem:[#allocation223_spill] sm:$0xff] %v9900_v14  ;;  %v15817_v57 = vrot.slane %v9097_v43, 7  ;;  %v15819_v58 = vrot.slane %v9814_v18, 7  ;;  %v15831_v50 = vand.u32 15, %v9900_v14 }
 0x294   : > { %15814 = vst [vmem:[#allocation109_spill] sm:$0xff] %v9889_v61  ;;  %v9913_v25 = vshra.s32 %v9889_v61, 4 }
 0x295   : > { %v9878_v3 = vpop.permute.xlu0 %2334  ;;  %3790 = vrot.lane.b32.xlu1 %v3723_v56, %s15764_s16  ;;  %v2510_v56 = vsel %vm719_vm2, %v2433_v37, 0.0  ;;  %v2431_v33 = vsel %vm15413_vm3, %v2383_v5, %v15817_v57  ;;  %v15361_v37 = vand.u32 15, %v9889_v61  ;;  %v9930_v57 = vshra.s32 %v9900_v14, 4 }
 0x296   : > { %15818 = vst [vmem:[#allocation224_spill] sm:$0xff] %v9913_v25  ;;  %vm15395_vm0 = vcmp.ge.s32.totalorder %v9913_v25, 1  ;;  %vm9971_vm7 = vcmp.ge.s32.totalorder %v15831_v50, 1  ;;  %v2800_v50 = vrot.slane %v9085_v35, 1  ;;  %v15843_v35 = vld [vmem:[#allocation35_spill] sm:$0xff] }
 0x297   : > { %v9892_v28 = vpop.permute.xlu1 %3166  ;;  %3788 = vrot.lane.b32.xlu0 %v3722_v55, %s15764_s16  ;;  %v3724_v55 = vsel %vm685_vm13, %v9049_v20, 0.0  ;;  %v2512_v20 = vsel %vm9704_vm12, %v2431_v33, 0.0  ;;  %15821 = vst [vmem:[#allocation226_spill] sm:$0xff] %v9930_v57  ;;  %vm9944_vm8 = vcmp.ge.s32.totalorder %v15361_v37, 1  ;;  %vm15384_vm14 = vcmp.ge.s32.totalorder %v9930_v57, 1 }
 0x298   : > { %15815 = vst [vmem:[#allocation103_spill] sm:$0xff] %v9892_v28  ;;  %v15356_v31 = vrot.slane %v9892_v28, 7  ;;  %vm1169_vm15 = vmand %vm15395_vm0, %vm9944_vm8 }
 0x299   : > { %v9902_v48 = vpop.permute.xlu0 %2752  ;;  %2580 = vrot.lane.b32.xlu1 %v2510_v56, %s15764_s16 }
 0x29a   : > { %v9922_v56 = vsel %vm15413_vm3, %v15819_v58, %v15356_v31  ;;  %v2432_v58 = vsel %vm15413_vm3, %v2382_v11, %v2383_v5  ;;  %v15836_v5 = vld [vmem:[#allocation29_spill] sm:$0xff] }
 0x29b   : > { %15820 = vst [vmem:[#allocation225_spill] sm:$0xff] %v9922_v56  ;;  %v9924_v43 = vpop.permute.xlu1 %2336  ;;  %3792 = vrot.lane.b32.xlu0 %v3724_v55, %s15764_s16  ;;  %v15830_v55 = vld [vmem:[#allocation19_spill] sm:$0xff]  ;;  %v1265_v28 = vsel %vm1169_vm15, %v15836_v5, 0.0  ;;  %v15840_v5 = vld [vmem:[#allocation26_spill] sm:$0xff] }
 0x29c   : > { %v15373_v34 = vrot.slane %v9924_v43, 7 }
 0x29d   : > { %v9932_v21 = vpop.permute.xlu0 %3168  ;;  %2584 = vrot.lane.b32.xlu1 %v2512_v20, %s15764_s16  ;;  %v9950_v20 = vadd.s32 88, %v8373_v60 }
 0x29e   : > { %15822 = vst [vmem:[#allocation227_spill] sm:$0xff] %v9932_v21 }
 0x29f   : > { %15826 = vst [vmem:[#allocation228_spill] sm:$0xff] %v9950_v20  ;;  %v9952_v31 = vpop.permute.xlu1 %3170  ;;  %2582 = vrot.lane.b32.xlu0 %v2432_v58, %s15764_s16  ;;  %v4074_v58 = vsel %vm683_vm6, %v15830_v55, 0.0  ;;  %vm1171_vm6 = vmand %vm15384_vm14, %vm9971_vm7  ;;  %v15381_v15 = vand.u32 15, %v9950_v20 }
 0x2a0   : > { %15827 = vst [vmem:[#allocation229_spill] sm:$0xff] %v9952_v31 }
 0x2a1   : > { %v9957_v11 = vpop.permute.xlu0 %1887  ;;  %4142 = vrot.lane.b32.xlu1 %v4075_v2, %s15764_s16  ;;  %v9976_v2 = vshra.s32 %v9950_v20, 4 }
 0x2a2   : > { %15829 = vst [vmem:[#allocation24_spill] sm:$0xff] %v9957_v11  ;;  %v15368_v37 = vrot.slane %v9957_v11, 1  ;;  %v15841_v11 = vld [vmem:[#allocation119_spill] sm:$0xff] }
 0x2a3   : > { %15834 = vst [vmem:[#allocation19_spill] sm:$0xff] %v9976_v2  ;;  %v9978_v56 = vpop.permute.xlu1 %1889  ;;  %4140 = vrot.lane.b32.xlu0 %v4074_v58, %s15764_s16  ;;  %v4076_v58 = vsel %vm685_vm13, %v15840_v5, 0.0  ;;  %vm15385_vm15 = vcmp.ge.s32.totalorder %v9976_v2, 1  ;;  %vm687_vm13 = vcmp.lt.s32.totalorder %v9639_v51, 15 }
 0x2a4   : > { %15835 = vst [vmem:[#allocation230_spill] sm:$0xff] %v9978_v56  ;;  %v9988_v55 = vsel %vm1959_vm4, %v15837_v47, %v15368_v37  ;;  %v2799_v56 = vrot.slane %v15841_v11, 1  ;;  %v1267_v37 = vsel %vm1171_vm6, %v15843_v35, 0.0  ;;  %vm688_vm6 = vcmp.lt.s32.totalorder %v9653_v4, 15  ;;  %vm3278_vm1 = vmand %vm687_vm13, %vm719_vm2  ;;  %v15896_v4 = vld [vmem:[#allocation36_spill] sm:$0xff] }
 0x2a5   : > { %15838 = vst [vmem:[#allocation29_spill] sm:$0xff] %v9988_v55  ;;  %v9991_v14 = vpop.permute.xlu0 %1535  ;;  %1339 = vrot.lane.b32.xlu1 %v1265_v28, %s15764_s16  ;;  %vm10124_vm2 = vcmp.lt.s32.totalorder %v15381_v15, 15  ;;  %v10150_v15 = vadd.s32 112, %v8373_v60 }
 0x2a6   : > { %15839 = vst [vmem:[#allocation231_spill] sm:$0xff] %v9991_v14  ;;  %v2847_v55 = vsel %vm1959_vm4, %v2799_v56, %v2800_v50  ;;  %v15845_v14 = vld [vmem:[#allocation30_spill] sm:$0xff] }
 0x2a7   : > { %v10003_v47 = vpop.permute.xlu1 %1537  ;;  %4144 = vrot.lane.b32.xlu0 %v4076_v58, %s15764_s16  ;;  %v1266_v5 = vsel %vm15385_vm15, %v15845_v14, 0.0  ;;  %v2927_v35 = vsel %vm15375_vm5, %v2847_v55, 0.0  ;;  %v15851_v55 = vld [vmem:[#allocation126_spill] sm:$0xff]  ;;  %vm689_vm5 = vcmp.lt.s32.totalorder %v9664_v17, 15 }
 0x2a8   : > { %15842 = vst [vmem:[#allocation26_spill] sm:$0xff] %v10003_v47 }
 0x2a9   : > { %v10007_v28 = vpop.permute.xlu0 %3616  ;;  %1343 = vrot.lane.b32.xlu1 %v1267_v37, %s15764_s16  ;;  %v15847_v37 = vld [vmem:[#allocation117_spill] sm:$0xff] }
 0x2aa   : > { %15844 = vst [vmem:[#allocation119_spill] sm:$0xff] %v10007_v28  ;;  %v15848_v47 = vrot.slane %v15847_v37, 1  ;;  %v15852_v37 = vld [vmem:[#allocation127_spill] sm:$0xff] }
 0x2ab   : > { %v10015_v11 = vpop.permute.xlu1 %2338  ;;  %1341 = vrot.lane.b32.xlu0 %v1266_v5, %s15764_s16  ;;  %v3217_v31 = vrot.slane %v15852_v37, 7  ;;  %v15858_v37 = vld [vmem:[#allocation128_spill] sm:$0xff] }
 0x2ac   : > { %15846 = vst [vmem:[#allocation35_spill] sm:$0xff] %v10015_v11  ;;  %v15372_v58 = vrot.slane %v10015_v11, 7  ;;  %v2848_v14 = vsel %vm1959_vm4, %v15848_v47, %v2799_v56  ;;  %v15854_v56 = vrot.slane %v9127_v53, 1  ;;  %v15867_v11 = vld [vmem:[#allocation131_spill] sm:$0xff] }
 0x2ad   : > { %v10022_v28 = vpop.permute.xlu0 %2754  ;;  %2998 = vrot.lane.b32.xlu1 %v2927_v35, %s15764_s16  ;;  %v1649_v35 = vsel %vm15395_vm0, %v15851_v55, 0.0 }
 0x2ae   : > { %v10035_v5 = vsel %vm15413_vm3, %v15373_v34, %v15372_v58  ;;  %v2846_v47 = vsel %vm1959_vm4, %v2800_v50, %v15854_v56  ;;  %v15855_v58 = vld [vmem:[#allocation122_spill] sm:$0xff]  ;;  %v15861_v56 = vld [vmem:[#allocation120_spill] sm:$0xff] }
 0x2af   : > { %15849 = vst [vmem:[#allocation30_spill] sm:$0xff] %v10035_v5  ;;  %v10037_v21 = vpop.permute.xlu1 %3618  ;;  %2996 = vrot.lane.b32.xlu0 %v2848_v14, %s15764_s16  ;;  %v3216_v34 = vrot.slane %v15855_v58, 7  ;;  %v15857_v14 = vld [vmem:[#allocation133_spill] sm:$0xff]  ;;  %v15859_v50 = vld [vmem:[#allocation130_spill] sm:$0xff] }
 0x2b0   : > { %15850 = vst [vmem:[#allocation117_spill] sm:$0xff] %v10037_v21  ;;  %v1651_v55 = vsel %vm15384_vm14, %v15857_v14, 0.0  ;;  %v1936_v21 = vrot.slane %v15858_v37, 1  ;;  %v1650_v58 = vsel %vm15385_vm15, %v15859_v50, 0.0 }
 0x2b1   : > { %v10044_v54 = vpop.permute.xlu0 %1709  ;;  %1723 = vrot.lane.b32.xlu1 %v1649_v35, %s15764_s16  ;;  %v3262_v53 = vsel %vm15413_vm3, %v3216_v34, %v3217_v31 }
 0x2b2   : > { %15853 = vst [vmem:[#allocation126_spill] sm:$0xff] %v10044_v54  ;;  %v3375_v50 = vsel %vm688_vm6, %v3262_v53, 0.0 }
 0x2b3   : > { %v10052_v5 = vpop.permute.xlu1 %1707  ;;  %3000 = vrot.lane.b32.xlu0 %v2846_v47, %s15764_s16  ;;  %v15862_v47 = vrot.slane %v15861_v56, 7 }
 0x2b4   : > { %15856 = vst [vmem:[#allocation127_spill] sm:$0xff] %v10052_v5 }
 0x2b5   : > { %v10059_v54 = vpop.permute.xlu0 %3172  ;;  %1727 = vrot.lane.b32.xlu1 %v1651_v55, %s15764_s16  ;;  %v3263_v14 = vsel %vm15413_vm3, %v15862_v47, %v3216_v34  ;;  %v15380_v55 = vrot.slane %v10022_v28, 1 }
 0x2b6   : > { %v3374_v47 = vsel %vm3278_vm1, %v3263_v14, 0.0  ;;  %vm3280_vm1 = vmand %vm689_vm5, %vm9704_vm12 }
 0x2b7   : > { %v10069_v35 = vpop.permute.xlu1 %2756  ;;  %1725 = vrot.lane.b32.xlu0 %v1650_v58, %s15764_s16  ;;  %v15864_v58 = vld [vmem:[#allocation123_spill] sm:$0xff]  ;;  %vm2003_vm12 = vmand %vm15385_vm15, %vm10124_vm2 }
 0x2b8   : > { %15860 = vst [vmem:[#allocation122_spill] sm:$0xff] %v10069_v35  ;;  %v15379_v37 = vrot.slane %v10069_v35, 1  ;;  %v15865_v56 = vrot.slane %v15864_v58, 1 }
 0x2b9   : > { %v10084_v5 = vpop.permute.xlu0 %1891  ;;  %3446 = vrot.lane.b32.xlu1 %v3375_v50, %s15764_s16  ;;  %v1937_v50 = vrot.slane %v15867_v11, 1  ;;  %v15870_v11 = vrot.slane %v9187_v27, 1 }
 0x2ba   : > { %15863 = vst [vmem:[#allocation133_spill] sm:$0xff] %v10084_v5  ;;  %v1982_v34 = vsel %vm1959_vm4, %v15865_v56, %v1936_v21  ;;  %v10099_v53 = vsel %vm1959_vm4, %v15380_v55, %v15379_v37  ;;  %v15869_v56 = vrot.slane %v9169_v6, 7 }
 0x2bb   : > { %15866 = vst [vmem:[#allocation128_spill] sm:$0xff] %v10099_v53  ;;  %3444 = vrot.lane.b32.xlu0 %v3374_v47, %s15764_s16  ;;  %v10103_v58 = vpop.permute.xlu1 %1893  ;;  %v2098_v37 = vsel %vm15395_vm0, %v1982_v34, 0.0  ;;  %v1980_v6 = vsel %vm1959_vm4, %v1937_v50, %v15870_v11  ;;  %v1981_v34 = vsel %vm1959_vm4, %v1936_v21, %v1937_v50  ;;  %v15877_v21 = vld [vmem:[#allocation129_spill] sm:$0xff]  ;;  %v15883_v53 = vld [vmem:[#allocation140_spill] sm:$0xff] }
 0x2bc   : > { %15868 = vst [vmem:[#allocation130_spill] sm:$0xff] %v10103_v58  ;;  %v3261_v14 = vsel %vm15413_vm3, %v3217_v31, %v15869_v56  ;;  %v2100_v27 = vsel %vm15384_vm14, %v1980_v6, 0.0  ;;  %v2099_v11 = vsel %vm2003_vm12, %v1981_v34, 0.0  ;;  %v3727_v50 = vsel %vm688_vm6, %v15877_v21, 0.0  ;;  %v15880_v6 = vld [vmem:[#allocation132_spill] sm:$0xff] }
 0x2bd   : > { %v10115_v55 = vpop.permute.xlu0 %1539  ;;  %2172 = vrot.lane.b32.xlu1 %v2098_v37, %s15764_s16  ;;  %v3376_v47 = vsel %vm3280_vm1, %v3261_v14, 0.0  ;;  %v15874_v37 = vld [vmem:[#allocation135_spill] sm:$0xff]  ;;  %v2387_v35 = vrot.slane %v15883_v53, 7  ;;  %v15888_v53 = vld [vmem:[#allocation136_spill] sm:$0xff]  ;;  %vm15891_vm12 = vcmp.lt.s32.totalorder %v9823_v16, 15 }
 0x2be   : > { %v2386_v56 = vrot.slane %v15874_v37, 7  ;;  %15878 = vst [vmem:[#allocation135_spill] sm:$0xff] %v10150_v15  ;;  %v15881_v37 = vrot.slane %v15880_v6, 7  ;;  %vm3983_vm14 = vmand %vm688_vm6, %vm15891_vm12 }
 0x2bf   : > { %3448 = vrot.lane.b32.xlu0 %v3376_v47, %s15764_s16  ;;  %v10129_v31 = vpop.permute.xlu1 %2342 }
 0x2c0   : > { %15873 = vst [vmem:[#allocation120_spill] sm:$0xff] %v10129_v31  ;;  %v2429_v34 = vsel %vm15413_vm3, %v15881_v37, %v2386_v56  ;;  %v15887_v37 = vrot.slane %v9225_v9, 7  ;;  %v15914_v31 = vld [vmem:[#allocation43_spill] sm:$0xff] }
 0x2c1   : > { %v10140_v14 = vpop.permute.xlu0 %2340  ;;  %2176 = vrot.lane.b32.xlu1 %v2100_v27, %s15764_s16  ;;  %v15882_v27 = vld [vmem:[#allocation124_spill] sm:$0xff] }
 0x2c2   : > { %15875 = vst [vmem:[#allocation123_spill] sm:$0xff] %v10140_v14 }
 0x2c3   : > { %2174 = vrot.lane.b32.xlu0 %v2099_v11, %s15764_s16  ;;  %v10144_v47 = vpop.permute.xlu1 %2758  ;;  %v3726_v11 = vsel %vm687_vm13, %v15882_v27, 0.0  ;;  %v2427_v27 = vsel %vm15413_vm3, %v2387_v35, %v15887_v37  ;;  %v4079_v37 = vsel %vm3983_vm14, %v15896_v4, 0.0 }
 0x2c4   : > { %15876 = vst [vmem:[#allocation131_spill] sm:$0xff] %v10144_v47  ;;  %v2514_v47 = vsel %vm9944_vm8, %v2429_v34, 0.0  ;;  %v15390_v34 = vand.u32 15, %v10150_v15 }
 0x2c5   : > { %v10152_v20 = vpop.permute.xlu0 %3620  ;;  %3798 = vrot.lane.b32.xlu1 %v3727_v50, %s15764_s16  ;;  %v10169_v50 = vshra.s32 %v10150_v15, 4 }
 0x2c6   : > { %15879 = vst [vmem:[#allocation129_spill] sm:$0xff] %v10152_v20  ;;  %vm10203_vm15 = vcmp.ge.s32.totalorder %v15390_v34, 1 }
 0x2c7   : > { %3796 = vrot.lane.b32.xlu0 %v3726_v11, %s15764_s16  ;;  %v10164_v21 = vpop.permute.xlu1 %1711  ;;  %15885 = vst [vmem:[#allocation124_spill] sm:$0xff] %v10169_v50  ;;  %v3728_v11 = vsel %vm689_vm5, %v15888_v53, 0.0  ;;  %vm15403_vm1 = vcmp.ge.s32.totalorder %v10169_v50, 1  ;;  %v2428_v53 = vsel %vm15413_vm3, %v2386_v56, %v2387_v35  ;;  %v15947_v56 = vld [vmem:[#allocation154_spill] sm:$0xff] }
 0x2c8   : > { %15884 = vst [vmem:[#allocation132_spill] sm:$0xff] %v10164_v21  ;;  %v10182_v21 = vadd.s32 128, %v8373_v60  ;;  %vm1173_vm6 = vmand %vm15403_vm1, %vm10203_vm15 }
 0x2c9   : > { %v10171_v6 = vpop.permute.xlu0 %2696  ;;  %2588 = vrot.lane.b32.xlu1 %v2514_v47, %s15764_s16  ;;  %v2516_v47 = vsel %vm9971_vm7, %v2427_v27, 0.0 }
 0x2ca   : > { %15886 = vst [vmem:[#allocation140_spill] sm:$0xff] %v10171_v6  ;;  %v15898_v35 = vshra.s32 %v10182_v21, 4 }
 0x2cb   : > { %3800 = vrot.lane.b32.xlu0 %v3728_v11, %s15764_s16  ;;  %v10186_v20 = vpop.permute.xlu1 %1323  ;;  %v601_v11 = vand.u32 15, %v10182_v21 }
 0x2cc   : > { %15889 = vst [vmem:[#allocation136_spill] sm:$0xff] %v10186_v20  ;;  %vm10224_vm12 = vcmp.ge.s32.totalorder %v15898_v35, 1 }
 0x2cd   : > { %v10191_v9 = vpop.permute.xlu0 %2698  ;;  %2592 = vrot.lane.b32.xlu1 %v2516_v47, %s15764_s16  ;;  %v10209_v47 = vadd.s32 120, %v8373_v60  ;;  %vm10231_vm14 = vcmp.ge.s32.totalorder %v601_v11, 1  ;;  %v15909_v11 = vld [vmem:[#allocation38_spill] sm:$0xff] }
 0x2ce   : > { %15890 = vst [vmem:[#allocation232_spill] sm:$0xff] %v10191_v9 }
 0x2cf   : > { %15894 = vst [vmem:[#allocation233_spill] sm:$0xff] %v10209_v47  ;;  %2590 = vrot.lane.b32.xlu0 %v2428_v53, %s15764_s16  ;;  %v10212_v16 = vpop.permute.xlu1 %2158  ;;  %v15901_v53 = vld [vmem:[#allocation32_spill] sm:$0xff]  ;;  %v15404_v33 = vand.u32 15, %v10209_v47 }
 0x2d0   : > { %15895 = vst [vmem:[#allocation234_spill] sm:$0xff] %v10212_v16  ;;  %v4078_v34 = vsel %vm687_vm13, %v15901_v53, 0.0  ;;  %v15907_v16 = vld [vmem:[#allocation142_spill] sm:$0xff]  ;;  %vm1175_vm13 = vmand %vm10224_vm12, %vm10231_vm14  ;;  %v4080_v53 = vsel %vm689_vm5, %v15909_v11, 0.0  ;;  %vm691_vm5 = vcmp.lt.s32.totalorder %v9913_v25, 15 }
 0x2d1   : > { %v10215_v20 = vpop.permute.xlu0 %2156  ;;  %4150 = vrot.lane.b32.xlu1 %v4079_v37, %s15764_s16  ;;  %v10236_v37 = vshra.s32 %v10209_v47, 4  ;;  %v2804_v6 = vrot.slane %v15907_v16, 1 }
 0x2d2   : > { %15897 = vst [vmem:[#allocation36_spill] sm:$0xff] %v10215_v20  ;;  %v15906_v20 = vld [vmem:[#allocation41_spill] sm:$0xff] }
 0x2d3   : > { %15904 = vst [vmem:[#allocation32_spill] sm:$0xff] %v10236_v37  ;;  %4148 = vrot.lane.b32.xlu0 %v4078_v34, %s15764_s16  ;;  %v10239_v15 = vpop.permute.xlu1 %3112  ;;  %v1269_v35 = vsel %vm1173_vm6, %v15906_v20, 0.0  ;;  %v15910_v34 = vld [vmem:[#allocation139_spill] sm:$0xff]  ;;  %vm15402_vm0 = vcmp.ge.s32.totalorder %v10236_v37, 1  ;;  %vm692_vm6 = vcmp.lt.s32.totalorder %v9976_v2, 15 }
 0x2d4   : > { %15905 = vst [vmem:[#allocation235_spill] sm:$0xff] %v10239_v15  ;;  %v2803_v51 = vrot.slane %v15910_v34, 1  ;;  %v15912_v20 = vld [vmem:[#allocation47_spill] sm:$0xff]  ;;  %v1270_v11 = vsel %vm15402_vm0, %v15914_v31, 0.0 }
 0x2d5   : > { %v10243_v9 = vpop.permute.xlu0 %2160  ;;  %1347 = vrot.lane.b32.xlu1 %v1269_v35, %s15764_s16 }
 0x2d6   : > { %15908 = vst [vmem:[#allocation41_spill] sm:$0xff] %v10243_v9  ;;  %v1271_v9 = vsel %vm1175_vm13, %v15912_v20, 0.0  ;;  %v2843_v15 = vsel %vm1959_vm4, %v2803_v51, %v2804_v6  ;;  %vm3282_vm13 = vmand %vm691_vm5, %vm9944_vm8 }
 0x2d7   : > { %4152 = vrot.lane.b32.xlu0 %v4080_v53, %s15764_s16  ;;  %v10256_v16 = vpop.permute.xlu1 %3116  ;;  %v2931_v53 = vsel %vm10124_vm2, %v2843_v15, 0.0 }
 0x2d8   : > { %15911 = vst [vmem:[#allocation142_spill] sm:$0xff] %v10256_v16  ;;  %v15917_v16 = vld [vmem:[#allocation137_spill] sm:$0xff] }
 0x2d9   : > { %v10259_v35 = vpop.permute.xlu0 %3114  ;;  %1351 = vrot.lane.b32.xlu1 %v1271_v9, %s15764_s16  ;;  %v15401_v9 = vrot.slane %v10059_v54, 7 }
 0x2da   : > { %15913 = vst [vmem:[#allocation38_spill] sm:$0xff] %v10259_v35  ;;  %v15918_v35 = vrot.slane %v15917_v16, 1  ;;  %v15922_v16 = vld [vmem:[#allocation149_spill] sm:$0xff] }
 0x2db   : > { %1349 = vrot.lane.b32.xlu0 %v1270_v11, %s15764_s16  ;;  %v10268_v34 = vpop.permute.xlu1 %2572  ;;  %v3221_v14 = vrot.slane %v15922_v16, 7  ;;  %v15927_v16 = vld [vmem:[#allocation150_spill] sm:$0xff] }
 0x2dc   : > { %15915 = vst [vmem:[#allocation139_spill] sm:$0xff] %v10268_v34  ;;  %v2844_v31 = vsel %vm1959_vm4, %v15918_v35, %v2803_v51  ;;  %v15920_v34 = vld [vmem:[#allocation148_spill] sm:$0xff]  ;;  %v15923_v51 = vrot.slane %v9255_v30, 1 }
 0x2dd   : > { %v10272_v17 = vpop.permute.xlu0 %3174  ;;  %3006 = vrot.lane.b32.xlu1 %v2931_v53, %s15764_s16  ;;  %v1653_v15 = vsel %vm15403_vm1, %v15920_v34, 0.0  ;;  %v15924_v34 = vld [vmem:[#allocation144_spill] sm:$0xff] }
 0x2de   : > { %15916 = vst [vmem:[#allocation47_spill] sm:$0xff] %v10272_v17  ;;  %v15400_v20 = vrot.slane %v10272_v17, 7  ;;  %v2842_v35 = vsel %vm1959_vm4, %v2804_v6, %v15923_v51  ;;  %v15926_v17 = vld [vmem:[#allocation155_spill] sm:$0xff]  ;;  %v15929_v6 = vld [vmem:[#allocation152_spill] sm:$0xff]  ;;  %v15931_v51 = vld [vmem:[#allocation141_spill] sm:$0xff] }
 0x2df   : > { %3004 = vrot.lane.b32.xlu0 %v2844_v31, %s15764_s16  ;;  %v10282_v11 = vpop.permute.xlu1 %2576  ;;  %v3220_v31 = vrot.slane %v15924_v34, 7 }
 0x2e0   : > { %15919 = vst [vmem:[#allocation43_spill] sm:$0xff] %v10282_v11  ;;  %v10293_v53 = vsel %vm15413_vm3, %v15401_v9, %v15400_v20  ;;  %v1655_v20 = vsel %vm10224_vm12, %v15926_v17, 0.0  ;;  %v1940_v9 = vrot.slane %v15927_v16, 1 }
 0x2e1   : > { %15921 = vst [vmem:[#allocation137_spill] sm:$0xff] %v10293_v53  ;;  %v10296_v5 = vpop.permute.xlu0 %2574  ;;  %1731 = vrot.lane.b32.xlu1 %v1653_v15, %s15764_s16  ;;  %v3258_v30 = vsel %vm15413_vm3, %v3220_v31, %v3221_v14  ;;  %v1654_v15 = vsel %vm15402_vm0, %v15929_v6, 0.0  ;;  %v15934_v6 = vld [vmem:[#allocation145_spill] sm:$0xff]  ;;  %vm693_vm0 = vcmp.lt.s32.totalorder %v9930_v57, 15 }
 0x2e2   : > { %v3379_v34 = vsel %vm692_vm6, %v3258_v30, 0.0  ;;  %v15938_v30 = vrot.slane %v9297_v41, 7  ;;  %vm3284_vm8 = vmand %vm693_vm0, %vm9971_vm7  ;;  %vm15943_vm7 = vcmp.ge.s32.totalorder %v10236_v37, 1 }
 0x2e3   : > { %3008 = vrot.lane.b32.xlu0 %v2842_v35, %s15764_s16  ;;  %v10305_v11 = vpop.permute.xlu1 %1333  ;;  %v15932_v35 = vrot.slane %v15931_v51, 7 }
 0x2e4   : > { %15925 = vst [vmem:[#allocation148_spill] sm:$0xff] %v10305_v11 }
 0x2e5   : > { %v10311_v53 = vpop.permute.xlu0 %1331  ;;  %1735 = vrot.lane.b32.xlu1 %v1655_v20, %s15764_s16  ;;  %v3259_v20 = vsel %vm15413_vm3, %v15932_v35, %v3220_v31  ;;  %v15936_v35 = vld [vmem:[#allocation153_spill] sm:$0xff] }
 0x2e6   : > { %15928 = vst [vmem:[#allocation149_spill] sm:$0xff] %v10311_v53  ;;  %v3378_v31 = vsel %vm3282_vm13, %v3259_v20, 0.0  ;;  %v1941_v11 = vrot.slane %v15936_v35, 1  ;;  %vm10366_vm13 = vcmp.lt.s32.totalorder %v15404_v33, 15  ;;  %v15944_v35 = vld [vmem:[#allocation157_spill] sm:$0xff]  ;;  %v15949_v33 = vld [vmem:[#allocation146_spill] sm:$0xff] }
 0x2e7   : > { %1733 = vrot.lane.b32.xlu0 %v1654_v15, %s15764_s16  ;;  %v10322_v17 = vpop.permute.xlu1 %2988  ;;  %v15935_v15 = vrot.slane %v15934_v6, 1 }
 0x2e8   : > { %15930 = vst [vmem:[#allocation144_spill] sm:$0xff] %v10322_v17 }
 0x2e9   : > { %v10334_v16 = vpop.permute.xlu0 %1335  ;;  %3454 = vrot.lane.b32.xlu1 %v3379_v34, %s15764_s16  ;;  %v1978_v51 = vsel %vm1959_vm4, %v15935_v15, %v1940_v9  ;;  %v3257_v34 = vsel %vm15413_vm3, %v3221_v14, %v15938_v30  ;;  %v15940_v15 = vrot.slane %v9315_v36, 1  ;;  %v2390_v30 = vrot.slane %v15944_v35, 7 }
 0x2ea   : > { %15933 = vst [vmem:[#allocation155_spill] sm:$0xff] %v10334_v16  ;;  %v2102_v20 = vsel %vm15403_vm1, %v1978_v51, 0.0  ;;  %v1977_v51 = vsel %vm1959_vm4, %v1940_v9, %v1941_v11  ;;  %vm2007_vm1 = vmand %vm15943_vm7, %vm10366_vm13  ;;  %v15946_v9 = vld [vmem:[#allocation151_spill] sm:$0xff]  ;;  %v15955_v16 = vld [vmem:[#allocation158_spill] sm:$0xff] }
 0x2eb   : > { %3452 = vrot.lane.b32.xlu0 %v3378_v31, %s15764_s16  ;;  %v10345_v17 = vpop.permute.xlu1 %2992  ;;  %v1976_v41 = vsel %vm1959_vm4, %v1941_v11, %v15940_v15  ;;  %v3380_v31 = vsel %vm3284_vm8, %v3257_v34, 0.0  ;;  %v3731_v11 = vsel %vm692_vm6, %v15946_v9, 0.0 }
 0x2ec   : > { %15937 = vst [vmem:[#allocation150_spill] sm:$0xff] %v10345_v17  ;;  %v2104_v36 = vsel %vm10224_vm12, %v1976_v41, 0.0  ;;  %v15948_v41 = vrot.slane %v15947_v56, 7  ;;  %vm3987_vm12 = vmand %vm692_vm6, %vm10124_vm2 }
 0x2ed   : > { %v10357_v6 = vpop.permute.xlu0 %2990  ;;  %2180 = vrot.lane.b32.xlu1 %v2102_v20, %s15764_s16  ;;  %v2103_v20 = vsel %vm2007_vm1, %v1977_v51, 0.0  ;;  %v3730_v51 = vsel %vm691_vm5, %v15949_v33, 0.0  ;;  %v3732_v33 = vsel %vm693_vm0, %v15955_v16, 0.0 }
 0x2ee   : > { %15939 = vst [vmem:[#allocation152_spill] sm:$0xff] %v10357_v6  ;;  %v2425_v35 = vsel %vm15413_vm3, %v15948_v41, %v2390_v30 }
 0x2ef   : > { %3456 = vrot.lane.b32.xlu0 %v3380_v31, %s15764_s16  ;;  %v10371_v14 = vpop.permute.xlu1 %3562  ;;  %v2518_v9 = vsel %vm10203_vm15, %v2425_v35, 0.0 }
 0x2f1   : > { %v10382_v34 = vpop.permute.xlu0 %3560  ;;  %2184 = vrot.lane.b32.xlu1 %v2104_v36, %s15764_s16  ;;  %v15950_v36 = vld [vmem:[#allocation162_spill] sm:$0xff] }
 0x2f3   : > { %2182 = vrot.lane.b32.xlu0 %v2103_v20, %s15764_s16  ;;  %v10386_v15 = vpop.permute.xlu1 %1715  ;;  %v2391_v20 = vrot.slane %v15950_v36, 7  ;;  %v15956_v36 = vld [vmem:[#allocation62_spill] sm:$0xff] }
 0x2f4   : > { %15945 = vst [vmem:[#allocation141_spill] sm:$0xff] %v10386_v15 }
 0x2f5   : > { %v10391_v31 = vpop.permute.xlu0 %3564  ;;  %3806 = vrot.lane.b32.xlu1 %v3731_v11, %s15764_s16  ;;  %v15953_v11 = vld [vmem:[#allocation166_spill] sm:$0xff] }
 0x2f6   : > { %v15954_v56 = vrot.slane %v15953_v11, 7  ;;  %v15958_v11 = vshra.s32 %v15956_v36, 4 }
 0x2f7   : > { %3804 = vrot.lane.b32.xlu0 %v3730_v51, %s15764_s16  ;;  %v10403_v47 = vpop.permute.xlu1 %1719  ;;  %v10418_v51 = vadd.s32 160, %v8373_v60 }
 0x2f8   : > { %15951 = vst [vmem:[#allocation145_spill] sm:$0xff] %v10403_v47  ;;  %v2423_v41 = vsel %vm15413_vm3, %v2391_v20, %v15954_v56  ;;  %v603_v47 = vand.u32 15, %v15956_v36  ;;  %vm10428_vm1 = vcmp.ge.s32.totalorder %v15958_v11, 1  ;;  %v10448_v11 = vadd.s32 152, %v8373_v60 }
 0x2f9   : > { %v10407_v17 = vpop.permute.xlu0 %1717  ;;  %2596 = vrot.lane.b32.xlu1 %v2518_v9, %s15764_s16  ;;  %v2520_v9 = vsel %vm10231_vm14, %v2423_v41, 0.0  ;;  %v15408_v16 = vshra.s32 %v10418_v51, 4  ;;  %v2424_v41 = vsel %vm15413_vm3, %v2390_v30, %v2391_v20  ;;  %v605_v36 = vand.u32 15, %v10418_v51  ;;  %v15969_v30 = vld [vmem:[#allocation44_spill] sm:$0xff] }
 0x2fa   : > { %15952 = vst [vmem:[#allocation153_spill] sm:$0xff] %v10407_v17  ;;  %vm10442_vm8 = vcmp.ge.s32.totalorder %v603_v47, 1  ;;  %v4082_v20 = vsel %vm691_vm5, %v15969_v30, 0.0  ;;  %v15978_v25 = vshra.s32 %v10448_v11, 4  ;;  %v16021_v47 = vld [vmem:[#allocation177_spill] sm:$0xff] }
 0x2fb   : > { %3808 = vrot.lane.b32.xlu0 %v3732_v33, %s15764_s16  ;;  %v10422_v35 = vpop.permute.xlu1 %3438  ;;  %vm1177_vm2 = vmand %vm10428_vm1, %vm10442_vm8  ;;  %vm10463_vm6 = vcmp.ge.s32.totalorder %v15408_v16, 1  ;;  %vm10470_vm7 = vcmp.ge.s32.totalorder %v605_v36, 1  ;;  %v15974_v16 = vld [vmem:[#allocation164_spill] sm:$0xff]  ;;  %v15976_v36 = vld [vmem:[#allocation50_spill] sm:$0xff] }
 0x2fc   : > { %15957 = vst [vmem:[#allocation157_spill] sm:$0xff] %v10422_v35  ;;  %v2808_v35 = vrot.slane %v15974_v16, 1  ;;  %vm1179_vm5 = vmand %vm10463_vm6, %vm10470_vm7  ;;  %v4084_v30 = vsel %vm693_vm0, %v15976_v36, 0.0  ;;  %vm15414_vm0 = vcmp.lt.s32.totalorder %v10169_v50, 15 }
 0x2fd   : > { %v10432_v17 = vpop.permute.xlu0 %3436  ;;  %2600 = vrot.lane.b32.xlu1 %v2520_v9, %s15764_s16  ;;  %v15965_v9 = vld [vmem:[#allocation48_spill] sm:$0xff] }
 0x2fe   : > { %15961 = vst [vmem:[#allocation151_spill] sm:$0xff] %v10432_v17  ;;  %v4083_v2 = vsel %vm3987_vm12, %v15965_v9, 0.0  ;;  %vm10493_vm12 = vcmp.ge.s32.totalorder %v15978_v25, 1 }
 0x2ff   : > { %2598 = vrot.lane.b32.xlu0 %v2424_v41, %s15764_s16  ;;  %v10451_v52 = vpop.permute.xlu1 %2164 }
 0x300   : > { %15964 = vst [vmem:[#allocation154_spill] sm:$0xff] %v10451_v52 }
 0x301   : > { %v10454_v17 = vpop.permute.xlu0 %3440  ;;  %4158 = vrot.lane.b32.xlu1 %v4083_v2, %s15764_s16 }
 0x302   : > { %15966 = vst [vmem:[#allocation146_spill] sm:$0xff] %v10454_v17  ;;  %v15973_v17 = vld [vmem:[#allocation53_spill] sm:$0xff] }
 0x303   : > { %4156 = vrot.lane.b32.xlu0 %v4082_v20, %s15764_s16  ;;  %v10476_v9 = vpop.permute.xlu1 %2168  ;;  %v1273_v52 = vsel %vm1177_vm2, %v15973_v17, 0.0  ;;  %v15977_v20 = vld [vmem:[#allocation161_spill] sm:$0xff]  ;;  %vm696_vm2 = vcmp.lt.s32.totalorder %v10236_v37, 15 }
 0x304   : > { %15972 = vst [vmem:[#allocation162_spill] sm:$0xff] %v10476_v9  ;;  %v2807_v2 = vrot.slane %v15977_v20, 1  ;;  %v15984_v20 = vld [vmem:[#allocation55_spill] sm:$0xff] }
 0x305   : > { %v10480_v15 = vpop.permute.xlu0 %2166  ;;  %1355 = vrot.lane.b32.xlu1 %v1273_v52, %s15764_s16  ;;  %v15982_v52 = vld [vmem:[#allocation59_spill] sm:$0xff]  ;;  %v1274_v25 = vsel %vm10493_vm12, %v15984_v20, 0.0 }
 0x306   : > { %15975 = vst [vmem:[#allocation166_spill] sm:$0xff] %v10480_v15  ;;  %v1275_v15 = vsel %vm1179_vm5, %v15982_v52, 0.0  ;;  %v2839_v36 = vsel %vm1959_vm4, %v2807_v2, %v2808_v35  ;;  %v15987_v52 = vld [vmem:[#allocation159_spill] sm:$0xff]  ;;  %vm3286_vm5 = vmand %vm15414_vm0, %vm10203_vm15  ;;  %vm16011_vm15 = vcmp.lt.s32.totalorder %v8373_v60, 1 }
 0x307   : > { %4160 = vrot.lane.b32.xlu0 %v4084_v30, %s15764_s16  ;;  %v10498_v16 = vpop.permute.xlu1 %3790  ;;  %v2935_v30 = vsel %vm10366_vm13, %v2839_v36, 0.0  ;;  %v15990_v20 = vld [vmem:[#allocation171_spill] sm:$0xff] }
 0x308   : > { %15981 = vst [vmem:[#allocation158_spill] sm:$0xff] %v10498_v16 }
 0x309   : > { %v10501_v9 = vpop.permute.xlu0 %3788  ;;  %1359 = vrot.lane.b32.xlu1 %v1275_v15, %s15764_s16  ;;  %v15988_v15 = vrot.slane %v15987_v52, 1 }
 0x30a   : > { %15983 = vst [vmem:[#allocation62_spill] sm:$0xff] %v10501_v9 }
 0x30b   : > { %1357 = vrot.lane.b32.xlu0 %v1274_v25, %s15764_s16  ;;  %v10510_v57 = vpop.permute.xlu1 %2580  ;;  %v2840_v9 = vsel %vm1959_vm4, %v15988_v15, %v2807_v2  ;;  %v1657_v25 = vsel %vm10428_vm1, %v15990_v20, 0.0  ;;  %v15994_v2 = vld [vmem:[#allocation167_spill] sm:$0xff] }
 0x30c   : > { %15985 = vst [vmem:[#allocation48_spill] sm:$0xff] %v10510_v57  ;;  %v15991_v57 = vld [vmem:[#allocation172_spill] sm:$0xff]  ;;  %v3224_v15 = vrot.slane %v15994_v2, 7 }
 0x30d   : > { %v10514_v16 = vpop.permute.xlu0 %3792  ;;  %3014 = vrot.lane.b32.xlu1 %v2935_v30, %s15764_s16  ;;  %v3225_v53 = vrot.slane %v15991_v57, 7  ;;  %v15993_v30 = vrot.slane %v9383_v49, 1  ;;  %v15996_v57 = vld [vmem:[#allocation173_spill] sm:$0xff] }
 0x30e   : > { %15986 = vst [vmem:[#allocation44_spill] sm:$0xff] %v10514_v16  ;;  %v1944_v16 = vrot.slane %v15996_v57, 1 }
 0x30f   : > { %3012 = vrot.lane.b32.xlu0 %v2840_v9, %s15764_s16  ;;  %v10522_v6 = vpop.permute.xlu1 %2584  ;;  %v2838_v52 = vsel %vm1959_vm4, %v2808_v35, %v15993_v30  ;;  %v3254_v49 = vsel %vm15413_vm3, %v3224_v15, %v3225_v53  ;;  %v15998_v35 = vld [vmem:[#allocation175_spill] sm:$0xff] }
 0x310   : > { %15989 = vst [vmem:[#allocation53_spill] sm:$0xff] %v10522_v6  ;;  %v15995_v6 = vld [vmem:[#allocation178_spill] sm:$0xff]  ;;  %v16000_v30 = vld [vmem:[#allocation163_spill] sm:$0xff] }
 0x311   : > { %v10528_v36 = vpop.permute.xlu0 %2582  ;;  %1739 = vrot.lane.b32.xlu1 %v1657_v25, %s15764_s16  ;;  %v1659_v20 = vsel %vm10463_vm6, %v15995_v6, 0.0  ;;  %v1658_v25 = vsel %vm10493_vm12, %v15998_v35, 0.0  ;;  %v16003_v35 = vld [vmem:[#allocation168_spill] sm:$0xff] }
 0x312   : > { %15992 = vst [vmem:[#allocation164_spill] sm:$0xff] %v10528_v36 }
 0x313   : > { %3016 = vrot.lane.b32.xlu0 %v2838_v52, %s15764_s16  ;;  %v10537_v9 = vpop.permute.xlu1 %4142  ;;  %v16001_v52 = vrot.slane %v16000_v30, 7 }
 0x315   : > { %v10543_v36 = vpop.permute.xlu0 %4140  ;;  %1743 = vrot.lane.b32.xlu1 %v1659_v20, %s15764_s16  ;;  %v3255_v2 = vsel %vm15413_vm3, %v16001_v52, %v3224_v15  ;;  %v3383_v20 = vsel %vm696_vm2, %v3254_v49, 0.0  ;;  %v604_v52 = vand.u32 15, %v10448_v11 }
 0x316   : > { %15997 = vst [vmem:[#allocation50_spill] sm:$0xff] %v10543_v36  ;;  %v3382_v27 = vsel %vm3286_vm5, %v3255_v2, 0.0  ;;  %v16008_v36 = vld [vmem:[#allocation176_spill] sm:$0xff] }
 0x317   : > { %1741 = vrot.lane.b32.xlu0 %v1658_v25, %s15764_s16  ;;  %v10554_v6 = vpop.permute.xlu1 %1339  ;;  %v16004_v25 = vrot.slane %v16003_v35, 1  ;;  %v1945_v49 = vrot.slane %v16008_v36, 1  ;;  %v16012_v36 = vld [vmem:[#allocation183_spill] sm:$0xff]  ;;  %vm10601_vm5 = vcmp.lt.s32.totalorder %v604_v52, 15 }
 0x318   : > { %15999 = vst [vmem:[#allocation161_spill] sm:$0xff] %v10554_v6  ;;  %v16005_v6 = vshra.s32 %v10182_v21, 4  ;;  %v16013_v2 = vrot.slane %v16012_v36, 1  ;;  %v16022_v36 = vrot.slane %v16021_v47, 7 }
 0x319   : > { %v10566_v57 = vpop.permute.xlu0 %4144  ;;  %3462 = vrot.lane.b32.xlu1 %v3383_v20, %s15764_s16  ;;  %v1974_v30 = vsel %vm1959_vm4, %v16004_v25, %v1944_v16  ;;  %v16010_v20 = vrot.slane %v9425_v12, 7  ;;  %v1973_v56 = vsel %vm1959_vm4, %v1944_v16, %v1945_v49  ;;  %v16019_v16 = vld [vmem:[#allocation174_spill] sm:$0xff] }
 0x31a   : > { %16002 = vst [vmem:[#allocation59_spill] sm:$0xff] %v10566_v57  ;;  %vm10575_vm3 = vcmp.lt.s32.totalorder %v16005_v6, 15  ;;  %v2106_v21 = vsel %vm10428_vm1, %v1974_v30, 0.0  ;;  %v1972_v12 = vsel %vm1959_vm4, %v1945_v49, %v16013_v2  ;;  %v3735_v49 = vsel %vm696_vm2, %v16019_v16, 0.0  ;;  %vm16023_vm1 = vmmov %vm16011_vm15 }
 0x31b   : > { %3460 = vrot.lane.b32.xlu0 %v3382_v27, %s15764_s16  ;;  %v10582_v57 = vpop.permute.xlu1 %1343  ;;  %v3253_v35 = vsel %vm16011_vm15, %v3225_v53, %v16010_v20  ;;  %vm3288_vm0 = vmand %vm10575_vm3, %vm10231_vm14  ;;  %v2108_v30 = vsel %vm10463_vm6, %v1972_v12, 0.0  ;;  %v16017_v27 = vld [vmem:[#allocation180_spill] sm:$0xff]  ;;  %v16024_v12 = vld [vmem:[#allocation169_spill] sm:$0xff]  ;;  %vm16025_vm6 = vcmp.lt.s32.totalorder %v10169_v50, 15 }
 0x31c   : > { %16009 = vst [vmem:[#allocation55_spill] sm:$0xff] %v10582_v57  ;;  %v3384_v25 = vsel %vm3288_vm0, %v3253_v35, 0.0  ;;  %vm2011_vm14 = vmand %vm10493_vm12, %vm10601_vm5  ;;  %v2394_v52 = vrot.slane %v16017_v27, 7 }
 0x31d   : > { %v10594_v6 = vpop.permute.xlu0 %1341  ;;  %2188 = vrot.lane.b32.xlu1 %v2106_v21, %s15764_s16  ;;  %v2107_v35 = vsel %vm2011_vm14, %v1973_v56, 0.0  ;;  %v16026_v56 = vld [vmem:[#allocation187_spill] sm:$0xff]  ;;  %vm16030_vm12 = vmmov %vm16023_vm1 }
 0x31e   : > { %v2421_v2 = vsel %vm16023_vm1, %v16022_v36, %v2394_v52  ;;  %v16031_v36 = vld [vmem:[#allocation181_spill] sm:$0xff]  ;;  %vm3991_vm15 = vmand %vm696_vm2, %vm10366_vm13 }
 0x31f   : > { %3464 = vrot.lane.b32.xlu0 %v3384_v25, %s15764_s16  ;;  %v10606_v4 = vpop.permute.xlu1 %2998  ;;  %v3734_v25 = vsel %vm16025_vm6, %v16024_v12, 0.0  ;;  %v3736_v12 = vsel %vm10575_vm3, %v16031_v36, 0.0  ;;  %vm16037_vm14 = vmmov %vm16023_vm1 }
 0x320   : > { %16016 = vst [vmem:[#allocation159_spill] sm:$0xff] %v10606_v4 }
 0x321   : > { %v10617_v20 = vpop.permute.xlu0 %2996  ;;  %2192 = vrot.lane.b32.xlu1 %v2108_v30, %s15764_s16  ;;  %v2395_v30 = vrot.slane %v16026_v56, 7  ;;  %v16032_v56 = vld [vmem:[#allocation93_spill] sm:$0xff] }
 0x323   : > { %2190 = vrot.lane.b32.xlu0 %v2107_v35, %s15764_s16  ;;  %v10621_v21 = vpop.permute.xlu1 %1723  ;;  %v2522_v35 = vsel %vm10442_vm8, %v2421_v2, 0.0 }
 0x324   : > { %16018 = vst [vmem:[#allocation171_spill] sm:$0xff] %v10621_v21 }
 0x325   : > { %v10626_v17 = vpop.permute.xlu0 %3000  ;;  %3814 = vrot.lane.b32.xlu1 %v3735_v49, %s15764_s16  ;;  %v16029_v49 = vrot.slane %v9489_v32, 7  ;;  %v16034_v32 = vshra.s32 %v16032_v56, 4 }
 0x326   : > { %16020 = vst [vmem:[#allocation172_spill] sm:$0xff] %v10626_v17 }
 0x327   : > { %3812 = vrot.lane.b32.xlu0 %v3734_v25, %s15764_s16  ;;  %v10638_v27 = vpop.permute.xlu1 %1727  ;;  %v2419_v47 = vsel %vm16030_vm12, %v2395_v30, %v16029_v49  ;;  %v10653_v25 = vadd.s32 192, %v8373_v60  ;;  %vm10663_vm0 = vcmp.ge.s32.totalorder %v16034_v32, 1  ;;  %v10683_v32 = vadd.s32 184, %v8373_v60 }
 0x328   : > { %16027 = vst [vmem:[#allocation167_spill] sm:$0xff] %v10638_v27  ;;  %v607_v27 = vand.u32 15, %v16032_v56 }
 0x329   : > { %v10642_v16 = vpop.permute.xlu0 %1725  ;;  %2604 = vrot.lane.b32.xlu1 %v2522_v35, %s15764_s16  ;;  %v2524_v35 = vsel %vm10470_vm7, %v2419_v47, 0.0  ;;  %v15417_v36 = vshra.s32 %v10653_v25, 4  ;;  %v2420_v47 = vsel %vm16037_vm14, %v2394_v52, %v2395_v30  ;;  %v609_v56 = vand.u32 15, %v10653_v25  ;;  %v16045_v30 = vld [vmem:[#allocation56_spill] sm:$0xff]  ;;  %v16101_v52 = vld [vmem:[#allocation203_spill] sm:$0xff] }
 0x32a   : > { %16028 = vst [vmem:[#allocation178_spill] sm:$0xff] %v10642_v16  ;;  %vm10677_vm1 = vcmp.ge.s32.totalorder %v607_v27, 1  ;;  %v4086_v27 = vsel %vm16025_vm6, %v16045_v30, 0.0  ;;  %v16054_v50 = vshra.s32 %v10683_v32, 4 }
 0x32b   : > { %3816 = vrot.lane.b32.xlu0 %v3736_v12, %s15764_s16  ;;  %v10657_v2 = vpop.permute.xlu1 %3446  ;;  %vm1181_vm13 = vmand %vm10663_vm0, %vm10677_vm1  ;;  %vm10698_vm2 = vcmp.ge.s32.totalorder %v15417_v36, 1  ;;  %vm10705_vm12 = vcmp.ge.s32.totalorder %v609_v56, 1  ;;  %v16050_v36 = vld [vmem:[#allocation189_spill] sm:$0xff]  ;;  %v16052_v56 = vld [vmem:[#allocation63_spill] sm:$0xff] }
 0x32c   : > { %16033 = vst [vmem:[#allocation173_spill] sm:$0xff] %v10657_v2  ;;  %v4088_v30 = vsel %vm10575_vm3, %v16052_v56, 0.0  ;;  %vm10728_vm14 = vcmp.ge.s32.totalorder %v16054_v50, 1  ;;  %v16060_v56 = vld [vmem:[#allocation69_spill] sm:$0xff]  ;;  %vm16075_vm3 = vcmp.lt.s32.totalorder %v8373_v60, 1 }
 0x32d   : > { %v10667_v57 = vpop.permute.xlu0 %3444  ;;  %2608 = vrot.lane.b32.xlu1 %v2524_v35, %s15764_s16  ;;  %v16041_v35 = vld [vmem:[#allocation60_spill] sm:$0xff]  ;;  %v1278_v50 = vsel %vm10728_vm14, %v16060_v56, 0.0  ;;  %v16066_v56 = vld [vmem:[#allocation195_spill] sm:$0xff]  ;;  %vm16083_vm6 = vmmov %vm16075_vm3 }
 0x32e   : > { %v4087_v37 = vsel %vm3991_vm15, %v16041_v35, 0.0  ;;  %vm1183_vm15 = vmand %vm10698_vm2, %vm10705_vm12 }
 0x32f   : > { %2606 = vrot.lane.b32.xlu0 %v2420_v47, %s15764_s16  ;;  %v10686_v61 = vpop.permute.xlu1 %2172 }
 0x330   : > { %16040 = vst [vmem:[#allocation175_spill] sm:$0xff] %v10686_v61  ;;  %v16049_v61 = vld [vmem:[#allocation66_spill] sm:$0xff] }
 0x331   : > { %v10689_v2 = vpop.permute.xlu0 %3448  ;;  %4166 = vrot.lane.b32.xlu1 %v4087_v37, %s15764_s16  ;;  %v1277_v21 = vsel %vm1181_vm13, %v16049_v61, 0.0 }
 0x332   : > { %16042 = vst [vmem:[#allocation163_spill] sm:$0xff] %v10689_v2  ;;  %v2812_v2 = vrot.slane %v16050_v36, 1  ;;  %v16058_v36 = vld [vmem:[#allocation73_spill] sm:$0xff] }
 0x333   : > { %4164 = vrot.lane.b32.xlu0 %v4086_v27, %s15764_s16  ;;  %v10711_v35 = vpop.permute.xlu1 %2176  ;;  %v16053_v27 = vld [vmem:[#allocation186_spill] sm:$0xff] }
 0x334   : > { %16048 = vst [vmem:[#allocation168_spill] sm:$0xff] %v10711_v35  ;;  %v2811_v37 = vrot.slane %v16053_v27, 1  ;;  %v1279_v35 = vsel %vm1183_vm15, %v16058_v36, 0.0  ;;  %v16063_v36 = vld [vmem:[#allocation182_spill] sm:$0xff]  ;;  %vm3290_vm15 = vmand %vm8701_vm9, %vm10442_vm8 }
 0x335   : > { %v10715_v16 = vpop.permute.xlu0 %2174  ;;  %1363 = vrot.lane.b32.xlu1 %v1277_v21, %s15764_s16  ;;  %vm16093_vm8 = vmmov %vm16083_vm6 }
 0x336   : > { %16051 = vst [vmem:[#allocation176_spill] sm:$0xff] %v10715_v16  ;;  %v2835_v15 = vsel %vm1959_vm4, %v2811_v37, %v2812_v2 }
 0x337   : > { %4168 = vrot.lane.b32.xlu0 %v4088_v30, %s15764_s16  ;;  %v10733_v21 = vpop.permute.xlu1 %3798  ;;  %v2939_v30 = vsel %vm10601_vm5, %v2835_v15, 0.0 }
 0x338   : > { %16057 = vst [vmem:[#allocation183_spill] sm:$0xff] %v10733_v21 }
 0x339   : > { %v10736_v16 = vpop.permute.xlu0 %3796  ;;  %1367 = vrot.lane.b32.xlu1 %v1279_v35, %s15764_s16  ;;  %v16064_v35 = vrot.slane %v16063_v36, 1 }
 0x33a   : > { %16059 = vst [vmem:[#allocation180_spill] sm:$0xff] %v10736_v16 }
 0x33b   : > { %1365 = vrot.lane.b32.xlu0 %v1278_v50, %s15764_s16  ;;  %v10745_v27 = vpop.permute.xlu1 %2588  ;;  %v2836_v4 = vsel %vm1959_vm4, %v16064_v35, %v2811_v37  ;;  %v1661_v50 = vsel %vm10663_vm0, %v16066_v56, 0.0  ;;  %v16070_v37 = vld [vmem:[#allocation191_spill] sm:$0xff] }
 0x33c   : > { %16061 = vst [vmem:[#allocation174_spill] sm:$0xff] %v10745_v27  ;;  %v16067_v27 = vld [vmem:[#allocation197_spill] sm:$0xff]  ;;  %v3228_v35 = vrot.slane %v16070_v37, 7  ;;  %v16081_v37 = vld [vmem:[#allocation188_spill] sm:$0xff] }
 0x33d   : > { %v10749_v21 = vpop.permute.xlu0 %3800  ;;  %3022 = vrot.lane.b32.xlu1 %v2939_v30, %s15764_s16  ;;  %v3229_v17 = vrot.slane %v16067_v27, 7  ;;  %v16069_v30 = vrot.slane %v9519_v42, 1  ;;  %v16073_v27 = vld [vmem:[#allocation198_spill] sm:$0xff] }
 0x33e   : > { %16062 = vst [vmem:[#allocation177_spill] sm:$0xff] %v10749_v21  ;;  %v1948_v21 = vrot.slane %v16073_v27, 1  ;;  %v16082_v27 = vrot.slane %v16081_v37, 7 }
 0x33f   : > { %3020 = vrot.lane.b32.xlu0 %v2836_v4, %s15764_s16  ;;  %v10757_v16 = vpop.permute.xlu1 %2592  ;;  %v2834_v36 = vsel %vm1959_vm4, %v2812_v2, %v16069_v30  ;;  %v3250_v42 = vsel %vm16075_vm3, %v3228_v35, %v3229_v17  ;;  %v16076_v2 = vld [vmem:[#allocation201_spill] sm:$0xff]  ;;  %v16077_v30 = vshra.s32 %v10448_v11, 4 }
 0x340   : > { %16065 = vst [vmem:[#allocation169_spill] sm:$0xff] %v10757_v16  ;;  %v16072_v16 = vld [vmem:[#allocation204_spill] sm:$0xff] }
 0x341   : > { %v10763_v15 = vpop.permute.xlu0 %2590  ;;  %1747 = vrot.lane.b32.xlu1 %v1661_v50, %s15764_s16  ;;  %v1663_v56 = vsel %vm10698_vm2, %v16072_v16, 0.0  ;;  %v1662_v50 = vsel %vm10728_vm14, %v16076_v2, 0.0  ;;  %vm10788_vm13 = vcmp.lt.s32.totalorder %v16077_v30, 15 }
 0x342   : > { %16068 = vst [vmem:[#allocation187_spill] sm:$0xff] %v10763_v15  ;;  %v3387_v11 = vsel %vm10788_vm13, %v3250_v42, 0.0 }
 0x343   : > { %3024 = vrot.lane.b32.xlu0 %v2834_v36, %s15764_s16  ;;  %v10772_v4 = vpop.permute.xlu1 %4150  ;;  %v16119_v36 = vld [vmem:[#allocation74_spill] sm:$0xff] }
 0x344   : > { %16071 = vst [vmem:[#allocation181_spill] sm:$0xff] %v10772_v4 }
 0x345   : > { %v10778_v15 = vpop.permute.xlu0 %4148  ;;  %1751 = vrot.lane.b32.xlu1 %v1663_v56, %s15764_s16  ;;  %v3251_v56 = vsel %vm16083_vm6, %v16082_v27, %v3228_v35  ;;  %v608_v27 = vand.u32 15, %v10683_v32 }
 0x346   : > { %16074 = vst [vmem:[#allocation93_spill] sm:$0xff] %v10778_v15  ;;  %v3386_v33 = vsel %vm3290_vm15, %v3251_v56, 0.0  ;;  %v16091_v15 = vld [vmem:[#allocation202_spill] sm:$0xff] }
 0x347   : > { %1749 = vrot.lane.b32.xlu0 %v1662_v50, %s15764_s16  ;;  %v10793_v16 = vpop.permute.xlu1 %1347  ;;  %v16086_v50 = vld [vmem:[#allocation192_spill] sm:$0xff]  ;;  %v1949_v42 = vrot.slane %v16091_v15, 1  ;;  %v16095_v15 = vrot.slane %v9622_v19, 1  ;;  %vm10840_vm15 = vcmp.lt.s32.totalorder %v608_v27, 15 }
 0x348   : > { %16080 = vst [vmem:[#allocation60_spill] sm:$0xff] %v10793_v16  ;;  %v16087_v30 = vrot.slane %v16086_v50, 1  ;;  %v16088_v16 = vshra.s32 %v10418_v51, 4 }
 0x349   : > { %v10805_v2 = vpop.permute.xlu0 %4152  ;;  %3470 = vrot.lane.b32.xlu1 %v3387_v11, %s15764_s16  ;;  %v16092_v11 = vrot.slane %v9593_v38, 7  ;;  %v1968_v38 = vsel %vm1959_vm4, %v1949_v42, %v16095_v15  ;;  %v1969_v49 = vsel %vm1959_vm4, %v1948_v21, %v1949_v42  ;;  %v16104_v15 = vld [vmem:[#allocation193_spill] sm:$0xff] }
 0x34a   : > { %16085 = vst [vmem:[#allocation56_spill] sm:$0xff] %v10805_v2  ;;  %v1970_v37 = vsel %vm1959_vm4, %v16087_v30, %v1948_v21  ;;  %vm10814_vm3 = vcmp.lt.s32.totalorder %v16088_v16, 15  ;;  %v2112_v19 = vsel %vm10698_vm2, %v1968_v38, 0.0  ;;  %v16098_v30 = vld [vmem:[#allocation206_spill] sm:$0xff]  ;;  %v16099_v21 = vld [vmem:[#allocation199_spill] sm:$0xff]  ;;  %v3738_v38 = vsel %vm8701_vm9, %v16104_v15, 0.0 }
 0x34b   : > { %3468 = vrot.lane.b32.xlu0 %v3386_v33, %s15764_s16  ;;  %v10821_v2 = vpop.permute.xlu1 %1351  ;;  %v3249_v50 = vsel %vm16093_vm8, %v3229_v17, %v16092_v11  ;;  %vm3292_vm6 = vmand %vm10814_vm3, %vm10470_vm7  ;;  %v2110_v51 = vsel %vm10663_vm0, %v1970_v37, 0.0  ;;  %v2398_v37 = vrot.slane %v16098_v30, 7  ;;  %v3739_v42 = vsel %vm10788_vm13, %v16099_v21, 0.0  ;;  %v16165_v17 = vld [vmem:[#allocation95_spill] sm:$0xff] }
 0x34c   : > { %v3388_v56 = vsel %vm3292_vm6, %v3249_v50, 0.0  ;;  %vm2015_vm7 = vmand %vm10728_vm14, %vm10840_vm15  ;;  %v16102_v50 = vrot.slane %v16101_v52, 7  ;;  %v16108_v21 = vrot.slane %v9690_v63, 7  ;;  %v16110_v52 = vld [vmem:[#allocation207_spill] sm:$0xff]  ;;  %v10892_v15 = vadd.s32 224, %v8373_v60 }
 0x34d   : > { %v10833_v16 = vpop.permute.xlu0 %1349  ;;  %2196 = vrot.lane.b32.xlu1 %v2110_v51, %s15764_s16  ;;  %v2111_v27 = vsel %vm2015_vm7, %v1969_v49, 0.0  ;;  %vm16103_vm0 = vmmov %vm16093_vm8 }
 0x34e   : > { %16094 = vst [vmem:[#allocation66_spill] sm:$0xff] %v10833_v16  ;;  %v2417_v51 = vsel %vm16103_vm0, %v16102_v50, %v2398_v37  ;;  %vm16109_vm2 = vmmov %vm16103_vm0  ;;  %v3740_v50 = vsel %vm10814_vm3, %v16110_v52, 0.0  ;;  %v15420_v52 = vshra.s32 %v10892_v15, 4 }
 0x34f   : > { %3472 = vrot.lane.b32.xlu0 %v3388_v56, %s15764_s16  ;;  %v10845_v41 = vpop.permute.xlu1 %3006  ;;  %v16105_v56 = vld [vmem:[#allocation215_spill] sm:$0xff]  ;;  %v2526_v30 = vsel %vm10677_vm1, %v2417_v51, 0.0  ;;  %vm3995_vm8 = vmand %vm10788_vm13, %vm10601_vm5 }
 0x350   : > { %v2399_v49 = vrot.slane %v16105_v56, 7  ;;  %vm16115_vm6 = vmmov %vm16103_vm0  ;;  %vm10937_vm13 = vcmp.ge.s32.totalorder %v15420_v52, 1  ;;  %v2816_v52 = vrot.slane %v9677_v62, 1 }
 0x351   : > { %v10856_v33 = vpop.permute.xlu0 %3004  ;;  %2200 = vrot.lane.b32.xlu1 %v2112_v19, %s15764_s16 }
 0x353   : > { %2198 = vrot.lane.b32.xlu0 %v2111_v27, %s15764_s16  ;;  %v10860_v11 = vpop.permute.xlu1 %1731 }
 0x355   : > { %v10865_v61 = vpop.permute.xlu0 %3008  ;;  %3822 = vrot.lane.b32.xlu1 %v3739_v42, %s15764_s16  ;;  %v2415_v42 = vsel %vm16109_vm2, %v2399_v49, %v16108_v21 }
 0x356   : > { %16100 = vst [vmem:[#allocation189_spill] sm:$0xff] %v10865_v61 }
 0x357   : > { %3820 = vrot.lane.b32.xlu0 %v3738_v38, %s15764_s16  ;;  %v10877_v19 = vpop.permute.xlu1 %1735  ;;  %v16111_v38 = vld [vmem:[#allocation110_spill] sm:$0xff] }
 0x358   : > { %16106 = vst [vmem:[#allocation63_spill] sm:$0xff] %v10877_v19  ;;  %v611_v56 = vand.u32 15, %v16111_v38  ;;  %v16112_v63 = vshra.s32 %v16111_v38, 4  ;;  %v613_v38 = vand.u32 15, %v10892_v15 }
 0x359   : > { %v10881_v27 = vpop.permute.xlu0 %1733  ;;  %2612 = vrot.lane.b32.xlu1 %v2526_v30, %s15764_s16  ;;  %v2528_v30 = vsel %vm10705_vm12, %v2415_v42, 0.0  ;;  %v2416_v42 = vsel %vm16115_vm6, %v2398_v37, %v2399_v49  ;;  %v16157_v37 = vrot.slane %v9781_v44, 7  ;;  %v16160_v44 = vrot.slane %v9924_v43, 7 }
 0x35a   : > { %16107 = vst [vmem:[#allocation186_spill] sm:$0xff] %v10881_v27  ;;  %vm10902_vm14 = vcmp.ge.s32.totalorder %v16112_v63, 1  ;;  %vm10916_vm7 = vcmp.ge.s32.totalorder %v611_v56, 1  ;;  %v10922_v63 = vadd.s32 216, %v8373_v60  ;;  %vm10941_vm0 = vcmp.ge.s32.totalorder %v613_v38, 1  ;;  %v16130_v38 = vld [vmem:[#allocation80_spill] sm:$0xff] }
 0x35b   : > { %3824 = vrot.lane.b32.xlu0 %v3740_v50, %s15764_s16  ;;  %v10896_v51 = vpop.permute.xlu1 %3454  ;;  %vm1185_vm5 = vmand %vm10902_vm14, %vm10916_vm7  ;;  %v4092_v4 = vsel %vm10814_vm3, %v16130_v38, 0.0  ;;  %v16137_v38 = vld [vmem:[#allocation94_spill] sm:$0xff] }
 0x35c   : > { %v15421_v56 = vshra.s32 %v10922_v63, 4  ;;  %vm1187_vm2 = vmand %vm10937_vm13, %vm10941_vm0 }
 0x35d   : > { %v10906_v27 = vpop.permute.xlu0 %3452  ;;  %2616 = vrot.lane.b32.xlu1 %v2528_v30, %s15764_s16  ;;  %v4091_v30 = vsel %vm3995_vm8, %v16119_v36, 0.0  ;;  %vm16141_vm3 = vmmov %vm16115_vm6 }
 0x35e   : > { %vm16146_vm6 = vmmov %vm16141_vm3 }
 0x35f   : > { %2614 = vrot.lane.b32.xlu0 %v2416_v42, %s15764_s16  ;;  %v10925_v53 = vpop.permute.xlu1 %2180  ;;  %v16125_v42 = vld [vmem:[#allocation70_spill] sm:$0xff] }
 0x360   : > { %16118 = vst [vmem:[#allocation73_spill] sm:$0xff] %v10925_v53  ;;  %v16126_v36 = vsel %vm8701_vm9, %v16125_v42, 0.0  ;;  %v16131_v42 = vld [vmem:[#allocation212_spill] sm:$0xff]  ;;  %vm10968_vm9 = vcmp.ge.s32.totalorder %v15421_v56, 1 }
 0x361   : > { %v10928_v19 = vpop.permute.xlu0 %3456  ;;  %4174 = vrot.lane.b32.xlu1 %v4091_v30, %s15764_s16 }
 0x362   : > { %16120 = vst [vmem:[#allocation69_spill] sm:$0xff] %v10928_v19  ;;  %v16128_v19 = vld [vmem:[#allocation79_spill] sm:$0xff] }
 0x363   : > { %4172 = vrot.lane.b32.xlu0 %v16126_v36, %s15764_s16  ;;  %v10951_v30 = vpop.permute.xlu1 %2184  ;;  %v1281_v61 = vsel %vm1185_vm5, %v16128_v19, 0.0  ;;  %v2815_v36 = vrot.slane %v16131_v42, 1  ;;  %v1282_v42 = vsel %vm10968_vm9, %v16137_v38, 0.0  ;;  %v1665_v38 = vsel %vm10902_vm14, %v9739_v39, 0.0  ;;  %vm3294_vm5 = vmand %vm8861_vm10, %vm10677_vm1 }
 0x364   : > { %16127 = vst [vmem:[#allocation182_spill] sm:$0xff] %v10951_v30  ;;  %v1667_v39 = vsel %vm10937_vm13, %v9793_v1, 0.0  ;;  %v16145_v1 = vrot.slane %v9666_v23, 7  ;;  %vm16153_vm1 = vmmov %vm16141_vm3 }
 0x365   : > { %v10955_v16 = vpop.permute.xlu0 %2182  ;;  %1371 = vrot.lane.b32.xlu1 %v1281_v61, %s15764_s16  ;;  %v16135_v61 = vld [vmem:[#allocation99_spill] sm:$0xff]  ;;  %v2831_v35 = vsel %vm1959_vm4, %v2815_v36, %v2816_v52 }
 0x366   : > { %16129 = vst [vmem:[#allocation195_spill] sm:$0xff] %v10955_v16  ;;  %v1283_v16 = vsel %vm1187_vm2, %v16135_v61, 0.0  ;;  %v16138_v61 = vld [vmem:[#allocation208_spill] sm:$0xff] }
 0x367   : > { %4176 = vrot.lane.b32.xlu0 %v4092_v4, %s15764_s16  ;;  %v10973_v62 = vpop.permute.xlu1 %3806  ;;  %v2943_v4 = vsel %vm10840_vm15, %v2831_v35, 0.0 }
 0x368   : > { %16134 = vst [vmem:[#allocation197_spill] sm:$0xff] %v10973_v62 }
 0x369   : > { %v10976_v30 = vpop.permute.xlu0 %3804  ;;  %1375 = vrot.lane.b32.xlu1 %v1283_v16, %s15764_s16  ;;  %v16139_v16 = vrot.slane %v16138_v61, 1 }
 0x36a   : > { %16136 = vst [vmem:[#allocation191_spill] sm:$0xff] %v10976_v30 }
 0x36b   : > { %1373 = vrot.lane.b32.xlu0 %v1282_v42, %s15764_s16  ;;  %v10985_v56 = vpop.permute.xlu1 %2596  ;;  %v2832_v30 = vsel %vm1959_vm4, %v16139_v16, %v2815_v36  ;;  %v3233_v42 = vrot.slane %v9753_v29, 7  ;;  %v3232_v36 = vrot.slane %v9708_v46, 7  ;;  %v1952_v29 = vrot.slane %v9756_v7, 1 }
 0x36c   : > { %v1666_v46 = vsel %vm10968_vm9, %v9768_v10, 0.0 }
 0x36d   : > { %v10989_v62 = vpop.permute.xlu0 %3808  ;;  %3030 = vrot.lane.b32.xlu1 %v2943_v4, %s15764_s16  ;;  %v16140_v4 = vrot.slane %v9748_v26, 1  ;;  %v3246_v26 = vsel %vm16141_vm3, %v3232_v36, %v3233_v42 }
 0x36f   : > { %3028 = vrot.lane.b32.xlu0 %v2832_v30, %s15764_s16  ;;  %v10997_v53 = vpop.permute.xlu1 %2600  ;;  %v2830_v61 = vsel %vm1959_vm4, %v2816_v52, %v16140_v4  ;;  %v16142_v52 = vshra.s32 %v10683_v32, 4  ;;  %v3247_v4 = vsel %vm16146_vm6, %v16145_v1, %v3232_v36  ;;  %v16179_v36 = vld [vmem:[#allocation105_spill] sm:$0xff] }
 0x370   : > { %v3390_v12 = vsel %vm3294_vm5, %v3247_v4, 0.0 }
 0x371   : > { %v11003_v35 = vpop.permute.xlu0 %2598  ;;  %1755 = vrot.lane.b32.xlu1 %v1665_v38, %s15764_s16  ;;  %vm11028_vm8 = vcmp.lt.s32.totalorder %v16142_v52, 15  ;;  %v612_v52 = vand.u32 15, %v10922_v63 }
 0x372   : > { %v3391_v10 = vsel %vm11028_vm8, %v3246_v26, 0.0  ;;  %v1953_v26 = vrot.slane %v9772_v24, 1  ;;  %v16154_v24 = vrot.slane %v9861_v22, 1 }
 0x373   : > { %3032 = vrot.lane.b32.xlu0 %v2830_v61, %s15764_s16  ;;  %v11012_v30 = vpop.permute.xlu1 %4158  ;;  %vm11080_vm6 = vcmp.lt.s32.totalorder %v612_v52, 15 }
 0x374   : > { %v1965_v21 = vsel %vm1959_vm4, %v1952_v29, %v1953_v26 }
 0x375   : > { %v11018_v16 = vpop.permute.xlu0 %4156  ;;  %1759 = vrot.lane.b32.xlu1 %v1667_v39, %s15764_s16  ;;  %v16148_v39 = vrot.slane %v9714_v59, 1  ;;  %v16152_v59 = vrot.slane %v9814_v18, 7  ;;  %v1964_v18 = vsel %vm1959_vm4, %v1953_v26, %v16154_v24  ;;  %v3742_v26 = vsel %vm8861_vm10, %v9727_v8, 0.0 }
 0x376   : > { %v2116_v22 = vsel %vm10937_vm13, %v1964_v18, 0.0  ;;  %vm16161_vm13 = vmmov %vm16153_vm1 }
 0x377   : > { %1757 = vrot.lane.b32.xlu0 %v1666_v46, %s15764_s16  ;;  %v11033_v7 = vpop.permute.xlu1 %1355  ;;  %v1966_v23 = vsel %vm1959_vm4, %v16148_v39, %v1952_v29  ;;  %v16149_v46 = vshra.s32 %v10653_v25, 4  ;;  %v3743_v29 = vsel %vm11028_vm8, %v9760_v13, 0.0 }
 0x378   : > { %v2114_v25 = vsel %vm10902_vm14, %v1966_v23, 0.0  ;;  %v2402_v23 = vrot.slane %v9826_v0, 7  ;;  %vm16158_vm14 = vmmov %vm16153_vm1 }
 0x379   : > { %v11045_v32 = vpop.permute.xlu0 %4160  ;;  %3478 = vrot.lane.b32.xlu1 %v3391_v10, %s15764_s16  ;;  %vm11054_vm2 = vcmp.lt.s32.totalorder %v16149_v46, 15  ;;  %v3245_v10 = vsel %vm16153_vm1, %v3233_v42, %v16152_v59  ;;  %v2403_v59 = vrot.slane %v9878_v3, 7  ;;  %v11132_v3 = vand.u32 15, %v8373_v60 }
 0x37a   : > { %vm3296_vm3 = vmand %vm11054_vm2, %vm10705_vm12  ;;  %v2413_v0 = vsel %vm16158_vm14, %v16157_v37, %v2402_v23  ;;  %v3744_v8 = vsel %vm11054_vm2, %v9839_v40, 0.0  ;;  %v11150_v40 = vadd.s32 240, %v8373_v60 }
 0x37b   : > { %3476 = vrot.lane.b32.xlu0 %v3390_v12, %s15764_s16  ;;  %v11061_v1 = vpop.permute.xlu1 %1359  ;;  %v3392_v39 = vsel %vm3296_vm3, %v3245_v10, 0.0  ;;  %vm2019_vm12 = vmand %vm10968_vm9, %vm11080_vm6  ;;  %v2530_v13 = vsel %vm10916_vm7, %v2413_v0, 0.0  ;;  %v2411_v24 = vsel %vm16161_vm13, %v2403_v59, %v16160_v44  ;;  %16162 = vst [vmem:[#allocation198_spill] sm:$0xff] %v11132_v3  ;;  %vm713_vm3 = vcmp.ge.s32.totalorder %v11132_v3, 1 }
 0x37c   : > { %v2115_v12 = vsel %vm2019_vm12, %v1965_v21, 0.0  ;;  %v2532_v43 = vsel %vm10941_vm0, %v2411_v24, 0.0  ;;  %vm3999_vm9 = vmand %vm11028_vm8, %vm10840_vm15  ;;  %v615_v37 = vand.u32 15, %v11150_v40  ;;  %v16216_v24 = vld [vmem:[#allocation119_spill] sm:$0xff] }
 0x37d   : > { %v11073_v4 = vpop.permute.xlu0 %1357  ;;  %2204 = vrot.lane.b32.xlu1 %v2114_v25, %s15764_s16  ;;  %v4095_v38 = vsel %vm3999_vm9, %v16165_v17, 0.0  ;;  %v2820_v17 = vrot.slane %v9902_v48, 1  ;;  %v16178_v48 = vld [vmem:[#allocation113_spill] sm:$0xff]  ;;  %vm16197_vm9 = vmmov %vm16153_vm1 }
 0x37e   : > { %vm11187_vm12 = vcmp.ge.s32.totalorder %v615_v37, 1  ;;  %v2819_v37 = vrot.slane %v9872_v45, 1 }
 0x37f   : > { %3480 = vrot.lane.b32.xlu0 %v3392_v39, %s15764_s16  ;;  %v11085_v47 = vpop.permute.xlu1 %3014  ;;  %v11138_v39 = vshra.s32 %v8373_v60, 4 }
 0x380   : > { %v2827_v45 = vsel %vm1959_vm4, %v2819_v37, %v2820_v17 }
 0x381   : > { %v11096_v46 = vpop.permute.xlu0 %3012  ;;  %2208 = vrot.lane.b32.xlu1 %v2116_v22, %s15764_s16  ;;  %16163 = vst [vmem:[#allocation201_spill] sm:$0xff] %v11138_v39  ;;  %vm15484_vm5 = vcmp.ge.s32.totalorder %v11138_v39, 1  ;;  %v2412_v22 = vsel %vm16153_vm1, %v2402_v23, %v2403_v59  ;;  %v15423_v23 = vshra.s32 %v11150_v40, 4  ;;  %v16166_v59 = vld [vmem:[#allocation98_spill] sm:$0xff] }
 0x382   : > { %vm1159_vm15 = vmand %vm15484_vm5, %vm713_vm3 }
 0x383   : > { %2206 = vrot.lane.b32.xlu0 %v2115_v12, %s15764_s16  ;;  %v11100_v52 = vpop.permute.xlu1 %1739  ;;  %v11157_v12 = vadd.s32 248, %v8373_v60  ;;  %vm11182_vm8 = vcmp.ge.s32.totalorder %v15423_v23, 1  ;;  %v2947_v23 = vsel %vm11080_vm6, %v2827_v45, 0.0 }
 0x384   : > { %vm1189_vm14 = vmand %vm11182_vm8, %vm11187_vm12 }
 0x385   : > { %v11105_v19 = vpop.permute.xlu0 %3016  ;;  %3830 = vrot.lane.b32.xlu1 %v3743_v29, %s15764_s16 }
 0x387   : > { %3828 = vrot.lane.b32.xlu0 %v3742_v26, %s15764_s16  ;;  %v11117_v10 = vpop.permute.xlu1 %1743  ;;  %v15422_v26 = vshra.s32 %v11157_v12, 4 }
 0x388   : > { %16159 = vst [vmem:[#allocation204_spill] sm:$0xff] %v11117_v10 }
 0x389   : > { %v11121_v25 = vpop.permute.xlu0 %1741  ;;  %2620 = vrot.lane.b32.xlu1 %v2530_v13, %s15764_s16  ;;  %v16167_v13 = vsel %vm8861_vm10, %v16166_v59, 0.0  ;;  %vm11194_vm10 = vcmp.ge.s32.totalorder %v15422_v26, 1  ;;  %v16176_v59 = vld [vmem:[#allocation104_spill] sm:$0xff] }
 0x38a   : > { %v1286_v26 = vsel %vm11194_vm10, %v16178_v48, 0.0  ;;  %v16181_v48 = vld [vmem:[#allocation221_spill] sm:$0xff] }
 0x38b   : > { %3832 = vrot.lane.b32.xlu0 %v3744_v8, %s15764_s16  ;;  %v11135_v18 = vpop.permute.xlu1 %3462  ;;  %v16171_v8 = vld [vmem:[#allocation112_spill] sm:$0xff]  ;;  %v16182_v10 = vrot.slane %v16181_v48, 1 }
 0x38d   : > { %v11142_v21 = vpop.permute.xlu0 %3460  ;;  %2624 = vrot.lane.b32.xlu1 %v2532_v43, %s15764_s16  ;;  %v1255_v43 = vsel %vm1159_vm15, %v16171_v8, 0.0 }
 0x38f   : > { %2622 = vrot.lane.b32.xlu0 %v2412_v22, %s15764_s16  ;;  %v11160_v29 = vpop.permute.xlu1 %2188 }
 0x390   : > { %16164 = vst [vmem:[#allocation188_spill] sm:$0xff] %v11160_v29 }
 0x391   : > { %v11164_v0 = vpop.permute.xlu0 %3464  ;;  %4182 = vrot.lane.b32.xlu1 %v4095_v38, %s15764_s16 }
 0x393   : > { %4180 = vrot.lane.b32.xlu0 %v16167_v13, %s15764_s16  ;;  %v11178_v44 = vpop.permute.xlu1 %2192  ;;  %v4096_v13 = vsel %vm11054_vm2, %v16176_v59, 0.0  ;;  %v1285_v59 = vsel %vm1189_vm14, %v16179_v36, 0.0  ;;  %v1639_v36 = vsel %vm15484_vm5, %v10115_v55, 0.0  ;;  %vm16190_vm2 = vmmov %vm16153_vm1 }
 0x394   : > { %16168 = vst [vmem:[#allocation67_spill] sm:$0xff] %v11178_v44  ;;  %vm3298_vm1 = vmand %vm9000_vm11, %vm10916_vm7 }
 0x395   : > { %v11198_v38 = vpop.permute.xlu0 %2190  ;;  %1319 = vrot.lane.b32.xlu1 %v1255_v43, %s15764_s16  ;;  %vm16205_vm7 = vmmov %vm16190_vm2 }
 0x397   : > { %4184 = vrot.lane.b32.xlu0 %v4096_v13, %s15764_s16  ;;  %v11206_v8 = vpop.permute.xlu1 %3814 }
 0x398   : > { %16177 = vst [vmem:[#allocation192_spill] sm:$0xff] %v11206_v8 }
 0x399   : > { %v11215_v43 = vpop.permute.xlu0 %3812  ;;  %1381 = vrot.lane.b32.xlu1 %v1286_v26, %s15764_s16  ;;  %v2828_v26 = vsel %vm1959_vm4, %v16182_v10, %v2819_v37  ;;  %v16187_v10 = vld [vmem:[#allocation227_spill] sm:$0xff] }
 0x39a   : > { %v3236_v37 = vrot.slane %v16187_v10, 7  ;;  %v16195_v10 = vld [vmem:[#allocation103_spill] sm:$0xff] }
 0x39b   : > { %1379 = vrot.lane.b32.xlu0 %v1285_v59, %s15764_s16  ;;  %v11222_v13 = vpop.permute.xlu1 %2604  ;;  %v16184_v59 = vld [vmem:[#allocation229_spill] sm:$0xff] }
 0x39c   : > { %16180 = vst [vmem:[#allocation202_spill] sm:$0xff] %v11222_v13  ;;  %v3237_v13 = vrot.slane %v16184_v59, 7 }
 0x39d   : > { %v11226_v44 = vpop.permute.xlu0 %3816  ;;  %3038 = vrot.lane.b32.xlu1 %v2947_v23, %s15764_s16  ;;  %v16186_v23 = vrot.slane %v10022_v28, 1 }
 0x39e   : > { %v3242_v28 = vsel %vm16190_vm2, %v3236_v37, %v3237_v13 }
 0x39f   : > { %3036 = vrot.lane.b32.xlu0 %v2828_v26, %s15764_s16  ;;  %v11234_v8 = vpop.permute.xlu1 %2608  ;;  %v2826_v48 = vsel %vm1959_vm4, %v2820_v17, %v16186_v23  ;;  %v16192_v23 = vshra.s32 %v10922_v63, 4 }
 0x3a0   : > { %16183 = vst [vmem:[#allocation206_spill] sm:$0xff] %v11234_v8  ;;  %v16189_v8 = vld [vmem:[#allocation26_spill] sm:$0xff] }
 0x3a1   : > { %v11240_v45 = vpop.permute.xlu0 %2606  ;;  %1703 = vrot.lane.b32.xlu1 %v1639_v36, %s15764_s16  ;;  %v1670_v55 = vsel %vm11194_vm10, %v16189_v8, 0.0  ;;  %v16191_v36 = vld [vmem:[#allocation231_spill] sm:$0xff]  ;;  %vm11264_vm13 = vcmp.lt.s32.totalorder %v16192_v23, 15 }
 0x3a2   : > { %16185 = vst [vmem:[#allocation199_spill] sm:$0xff] %v11240_v45  ;;  %v1669_v17 = vsel %vm11182_vm8, %v16191_v36, 0.0  ;;  %v3395_v63 = vsel %vm11264_vm13, %v3242_v28, 0.0  ;;  %v16199_v36 = vld [vmem:[#allocation230_spill] sm:$0xff]  ;;  %v16204_v28 = vrot.slane %v10059_v54, 7  ;;  %v16237_v45 = vld [vmem:[#allocation131_spill] sm:$0xff] }
 0x3a3   : > { %3040 = vrot.lane.b32.xlu0 %v2826_v48, %s15764_s16  ;;  %v11249_v26 = vpop.permute.xlu1 %4166  ;;  %v1956_v23 = vrot.slane %v16199_v36, 1 }
 0x3a4   : > { %16188 = vst [vmem:[#allocation203_spill] sm:$0xff] %v11249_v26  ;;  %v16196_v26 = vrot.slane %v16195_v10, 7  ;;  %v3241_v36 = vsel %vm16205_vm7, %v3237_v13, %v16204_v28  ;;  %v616_v13 = vand.u32 15, %v11157_v12  ;;  %v16211_v28 = vrot.slane %v10103_v58, 1  ;;  %v16245_v10 = vld [vmem:[#allocation122_spill] sm:$0xff] }
 0x3a5   : > { %v11254_v59 = vpop.permute.xlu0 %4164  ;;  %1765 = vrot.lane.b32.xlu1 %v1670_v55, %s15764_s16 }
 0x3a6   : > { %v3243_v55 = vsel %vm16197_vm9, %v16196_v26, %v3236_v37  ;;  %vm16235_vm9 = vmmov %vm16190_vm2 }
 0x3a7   : > { %1763 = vrot.lane.b32.xlu0 %v1669_v17, %s15764_s16  ;;  %v11269_v8 = vpop.permute.xlu1 %1363  ;;  %v16200_v17 = vshra.s32 %v10892_v15, 4  ;;  %v3394_v37 = vsel %vm3298_vm1, %v3243_v55, 0.0  ;;  %v16206_v15 = vld [vmem:[#allocation133_spill] sm:$0xff]  ;;  %v16208_v55 = vld [vmem:[#allocation90_spill] sm:$0xff] }
 0x3a9   : > { %v11282_v29 = vpop.permute.xlu0 %4168  ;;  %3486 = vrot.lane.b32.xlu1 %v3395_v63, %s15764_s16  ;;  %vm11287_vm15 = vcmp.lt.s32.totalorder %v16200_v17, 15  ;;  %v1957_v63 = vrot.slane %v16206_v15, 1 }
 0x3aa   : > { %vm3300_vm14 = vmand %vm11287_vm15, %vm10941_vm0  ;;  %vm11327_vm0 = vcmp.lt.s32.totalorder %v616_v13, 15 }
 0x3ab   : > { %3484 = vrot.lane.b32.xlu0 %v3394_v37, %s15764_s16  ;;  %v11293_v26 = vpop.permute.xlu1 %1367  ;;  %v16209_v37 = vld [vmem:[#allocation24_spill] sm:$0xff]  ;;  %v1960_v15 = vsel %vm1959_vm4, %v1957_v63, %v16211_v28 }
 0x3ac   : > { %16203 = vst [vmem:[#allocation193_spill] sm:$0xff] %v11293_v26  ;;  %v16210_v50 = vrot.slane %v16209_v37, 1  ;;  %v3396_v26 = vsel %vm3300_vm14, %v3241_v36, 0.0  ;;  %v1961_v37 = vsel %vm1959_vm4, %v1956_v23, %v1957_v63  ;;  %v16221_v63 = vld [vmem:[#allocation129_spill] sm:$0xff]  ;;  %vm16262_vm14 = vmmov %vm16190_vm2 }
 0x3ad   : > { %v11304_v17 = vpop.permute.xlu0 %1365  ;;  %1541 = vrot.lane.b32.xlu1 %v16208_v55, %s15479_s30  ;;  %v3748_v61 = vsel %vm11287_vm15, %v16221_v63, 0.0  ;;  %v16294_v36 = vld [vmem:[#allocation157_spill] sm:$0xff] }
 0x3ae   : > { %16207 = vst [vmem:[#allocation215_spill] sm:$0xff] %v11304_v17  ;;  %v1962_v54 = vsel %vm1959_vm4, %v16210_v50, %v1956_v23  ;;  %v2088_v50 = vsel %vm15484_vm5, %v1960_v15, 0.0 }
 0x3af   : > { %3488 = vrot.lane.b32.xlu0 %v3396_v26, %s15764_s16  ;;  %v11314_v49 = vpop.permute.xlu1 %3022  ;;  %v2118_v55 = vsel %vm11182_vm8, %v1962_v54, 0.0  ;;  %vm2023_vm8 = vmand %vm11194_vm10, %vm11327_vm0  ;;  %v16217_v54 = vld [vmem:[#allocation123_spill] sm:$0xff] }
 0x3b0   : > { %v2406_v13 = vrot.slane %v16217_v54, 7  ;;  %v2119_v15 = vsel %vm2023_vm8, %v1961_v37, 0.0  ;;  %v16224_v54 = vld [vmem:[#allocation35_spill] sm:$0xff]  ;;  %vm16226_vm10 = vmmov %vm16190_vm2 }
 0x3b1   : > { %v11322_v17 = vpop.permute.xlu0 %3020  ;;  %2212 = vrot.lane.b32.xlu1 %v2118_v55, %s15764_s16  ;;  %v3746_v55 = vsel %vm9000_vm11, %v16216_v24, 0.0 }
 0x3b2   : > { %16212 = vst [vmem:[#allocation207_spill] sm:$0xff] %v11322_v17 }
 0x3b3   : > { %2152 = vrot.lane.b32.xlu0 %v2088_v50, %s15764_s16  ;;  %v11332_v26 = vpop.permute.xlu1 %1747  ;;  %v16219_v50 = vld [vmem:[#allocation120_spill] sm:$0xff] }
 0x3b4   : > { %16215 = vst [vmem:[#allocation110_spill] sm:$0xff] %v11332_v26  ;;  %v2407_v58 = vrot.slane %v16219_v50, 7  ;;  %v16222_v26 = vld [vmem:[#allocation91_spill] sm:$0xff] }
 0x3b5   : > { %v11344_v28 = vpop.permute.xlu0 %3024  ;;  %3836 = vrot.lane.b32.xlu1 %v3746_v55, %s15764_s16  ;;  %v15426_v17 = vrot.slane %v16222_v26, 7  ;;  %v16227_v55 = vld [vmem:[#allocation117_spill] sm:$0xff] }
 0x3b6   : > { %16218 = vst [vmem:[#allocation74_spill] sm:$0xff] %v11344_v28  ;;  %v16225_v28 = vrot.slane %v16224_v54, 7 }
 0x3b7   : > { %2214 = vrot.lane.b32.xlu0 %v2119_v15, %s15764_s16  ;;  %v11349_v23 = vpop.permute.xlu1 %1751  ;;  %v3747_v15 = vsel %vm11264_vm13, %v16227_v55, 0.0  ;;  %v2439_v63 = vsel %vm16190_vm2, %v2407_v58, %v15426_v17  ;;  %v16228_v55 = vld [vmem:[#allocation92_spill] sm:$0xff]  ;;  %v16231_v17 = vld [vmem:[#allocation114_spill] sm:$0xff] }
 0x3b8   : > { %16220 = vst [vmem:[#allocation70_spill] sm:$0xff] %v11349_v23  ;;  %v2409_v37 = vsel %vm16226_vm10, %v16225_v28, %v2406_v13  ;;  %v2504_v28 = vsel %vm713_vm3, %v2439_v63, 0.0  ;;  %vm16404_vm10 = vmmov %vm16190_vm2 }
 0x3b9   : > { %v11355_v24 = vpop.permute.xlu0 %1749  ;;  %3840 = vrot.lane.b32.xlu1 %v3748_v61, %s15764_s16  ;;  %v2534_v61 = vsel %vm11187_vm12, %v2409_v37, 0.0  ;;  %v16232_v37 = vsel %vm9000_vm11, %v16231_v17, 0.0  ;;  %vm4003_vm11 = vmand %vm11264_vm13, %vm11080_vm6  ;;  %v2823_v17 = vrot.slane %v16237_v45, 1  ;;  %vm681_vm6 = vcmp.lt.s32.totalorder %v11138_v39, 15 }
 0x3ba   : > { %16223 = vst [vmem:[#allocation79_spill] sm:$0xff] %v11355_v24  ;;  %v15428_v24 = vrot.slane %v16228_v55, 1  ;;  %vm16248_vm13 = vmmov %vm16190_vm2 }
 0x3bb   : > { %3838 = vrot.lane.b32.xlu0 %v3747_v15, %s15764_s16  ;;  %v11366_v50 = vpop.permute.xlu1 %3470  ;;  %vm3272_vm1 = vmand %vm681_vm6, %vm713_vm3 }
 0x3bc   : > { %vm16252_vm3 = vmmov %vm16190_vm2 }
 0x3bd   : > { %v11374_v54 = vpop.permute.xlu0 %3468  ;;  %2628 = vrot.lane.b32.xlu1 %v2534_v61, %s15764_s16  ;;  %v16233_v61 = vld [vmem:[#allocation89_spill] sm:$0xff] }
 0x3be   : > { %v16234_v23 = vrot.slane %v16233_v61, 1  ;;  %v16238_v61 = vld [vmem:[#allocation38_spill] sm:$0xff] }
 0x3bf   : > { %2568 = vrot.lane.b32.xlu0 %v2504_v28, %s15764_s16  ;;  %v11381_v15 = vpop.permute.xlu1 %2196  ;;  %v2408_v28 = vsel %vm16235_vm9, %v2406_v13, %v2407_v58  ;;  %v3209_v55 = vrot.slane %v16238_v61, 7  ;;  %v16240_v58 = vld [vmem:[#allocation232_spill] sm:$0xff] }
 0x3c0   : > { %16229 = vst [vmem:[#allocation80_spill] sm:$0xff] %v11381_v15  ;;  %v3944_v63 = vsel %vm1959_vm4, %v16234_v23, %v15428_v24  ;;  %v15434_v13 = vrot.slane %v16240_v58, 1  ;;  %v16253_v58 = vshra.s32 %v11150_v40, 4 }
 0x3c1   : > { %v11383_v26 = vpop.permute.xlu0 %3472  ;;  %4188 = vrot.lane.b32.xlu1 %v16232_v37, %s15764_s16  ;;  %v4100_v37 = vsel %vm11287_vm15, %v3944_v63, 0.0  ;;  %v16246_v63 = vrot.slane %v16245_v10, 1 }
 0x3c2   : > { %16230 = vst [vmem:[#allocation212_spill] sm:$0xff] %v11383_v26  ;;  %v16243_v26 = vld [vmem:[#allocation142_spill] sm:$0xff]  ;;  %vm11452_vm15 = vcmp.lt.s32.totalorder %v16253_v58, 15 }
 0x3c3   : > { %2630 = vrot.lane.b32.xlu0 %v2408_v28, %s15764_s16  ;;  %v11399_v15 = vpop.permute.xlu1 %2200  ;;  %v16241_v28 = vld [vmem:[#allocation115_spill] sm:$0xff]  ;;  %v15429_v48 = vrot.slane %v16243_v26, 7  ;;  %v2824_v61 = vsel %vm1959_vm4, %v16246_v63, %v2823_v17  ;;  %vm3302_vm8 = vmand %vm11452_vm15, %vm11187_vm12 }
 0x3c4   : > { %16236 = vst [vmem:[#allocation99_spill] sm:$0xff] %v11399_v15  ;;  %v4099_v24 = vsel %vm4003_vm11, %v16241_v28, 0.0  ;;  %v16242_v15 = vld [vmem:[#allocation140_spill] sm:$0xff]  ;;  %v16249_v28 = vld [vmem:[#allocation235_spill] sm:$0xff]  ;;  %vm16416_vm11 = vmmov %vm16252_vm3 }
 0x3c5   : > { %v11409_v23 = vpop.permute.xlu0 %2198  ;;  %4192 = vrot.lane.b32.xlu1 %v4100_v37, %s15764_s16  ;;  %v2792_v42 = vrot.slane %v16242_v15, 1  ;;  %v3269_v15 = vsel %vm16248_vm13, %v3209_v55, %v15429_v48  ;;  %v3208_v10 = vrot.slane %v16249_v28, 7  ;;  %v16256_v28 = vshra.s32 %v11157_v12, 4  ;;  %vm16433_vm13 = vmmov %vm16252_vm3 }
 0x3c6   : > { %16239 = vst [vmem:[#allocation94_spill] sm:$0xff] %v11409_v23  ;;  %v3368_v48 = vsel %vm3272_vm1, %v3269_v15, 0.0 }
 0x3c7   : > { %4190 = vrot.lane.b32.xlu0 %v4099_v24, %s15764_s16  ;;  %v11417_v45 = vpop.permute.xlu1 %3822  ;;  %v2854_v24 = vsel %vm1959_vm4, %v2792_v42, %v15434_v13  ;;  %v3270_v3 = vsel %vm16252_vm3, %v3208_v10, %v3209_v55  ;;  %vm11460_vm7 = vcmp.lt.s32.totalorder %v16256_v28, 15  ;;  %v16260_v55 = vld [vmem:[#allocation47_spill] sm:$0xff] }
 0x3c8   : > { %16244 = vst [vmem:[#allocation208_spill] sm:$0xff] %v11417_v45  ;;  %v3399_v12 = vsel %vm11460_vm7, %v3270_v3, 0.0  ;;  %v16268_v3 = vld [vmem:[#allocation100_spill] sm:$0xff]  ;;  %vm4007_vm12 = vmand %vm11460_vm7, %vm11327_vm0 }
 0x3c9   : > { %v11424_v37 = vpop.permute.xlu0 %3820  ;;  %3044 = vrot.lane.b32.xlu1 %v2824_v61, %s15764_s16  ;;  %v2855_v61 = vsel %vm1959_vm4, %v2823_v17, %v2792_v42 }
 0x3ca   : > { %16247 = vst [vmem:[#allocation97_spill] sm:$0xff] %v11424_v37  ;;  %v16279_v37 = vld [vmem:[#allocation20_spill] sm:$0xff] }
 0x3cb   : > { %2984 = vrot.lane.b32.xlu0 %v2854_v24, %s15764_s16  ;;  %v11441_v63 = vpop.permute.xlu1 %2612  ;;  %v2951_v24 = vsel %vm11327_vm0, %v2855_v61, 0.0  ;;  %v16264_v61 = vld [vmem:[#allocation12_spill] sm:$0xff] }
 0x3cc   : > { %16250 = vst [vmem:[#allocation95_spill] sm:$0xff] %v11441_v63 }
 0x3cd   : > { %v11445_v26 = vpop.permute.xlu0 %3824  ;;  %3432 = vrot.lane.b32.xlu1 %v3368_v48, %s15764_s16  ;;  %v16261_v48 = vrot.slane %v16260_v55, 7  ;;  %v16266_v55 = vld [vmem:[#allocation10_spill] sm:$0xff] }
 0x3ce   : > { %16251 = vst [vmem:[#allocation98_spill] sm:$0xff] %v11445_v26 }
 0x3cf   : > { %3046 = vrot.lane.b32.xlu0 %v2951_v24, %s15764_s16  ;;  %v11465_v42 = vpop.permute.xlu1 %2616  ;;  %v3271_v40 = vsel %vm16262_vm14, %v16261_v48, %v3208_v10  ;;  %v16265_v24 = vld [vmem:[#allocation82_spill] sm:$0xff]  ;;  %v3720_v10 = vsel %vm681_vm6, %v10391_v31, 0.0  ;;  %v3751_v31 = vsel %vm11460_vm7, %v10371_v14, 0.0 }
 0x3d0   : > { %16259 = vst [vmem:[#allocation112_spill] sm:$0xff] %v11465_v42  ;;  %v3398_v15 = vsel %vm3302_vm8, %v3271_v40, 0.0  ;;  %v1065_v28 = vadd.f32 %v16265_v24, %v16264_v61  ;;  %v1064_v42 = vadd.f32 %v16265_v24, %v16266_v55  ;;  %v16271_v40 = vld [vmem:[#allocation126_spill] sm:$0xff]  ;;  %v16273_v55 = vld [vmem:[#allocation16_spill] sm:$0xff]  ;;  %v1068_v14 = vadd.f32 %v16265_v24, %v16279_v37  ;;  %v16288_v37 = vld [vmem:[#allocation41_spill] sm:$0xff] }
 0x3d1   : > { %v11477_v58 = vpop.permute.xlu0 %2614  ;;  %3494 = vrot.lane.b32.xlu1 %v3399_v12, %s15764_s16 }
 0x3d2   : > { %16263 = vst [vmem:[#allocation104_spill] sm:$0xff] %v11477_v58  ;;  %v1418_v48 = vadd.f32 %v16268_v3, %v1065_v28  ;;  %v16269_v58 = vld [vmem:[#allocation136_spill] sm:$0xff]  ;;  %v16274_v28 = vld [vmem:[#allocation234_spill] sm:$0xff] }
 0x3d3   : > { %3492 = vrot.lane.b32.xlu0 %v3398_v15, %s15764_s16  ;;  %v11485_v22 = vpop.permute.xlu1 %4174  ;;  %v1417_v26 = vadd.f32 %v16269_v58, %v1064_v42  ;;  %v16275_v58 = vld [vmem:[#allocation127_spill] sm:$0xff] }
 0x3d4   : > { %16267 = vst [vmem:[#allocation113_spill] sm:$0xff] %v11485_v22  ;;  %v1802_v23 = vadd.f32 %v16271_v40, %v1418_v48  ;;  %v1066_v22 = vadd.f32 %v16265_v24, %v16273_v55  ;;  %v3750_v40 = vsel %vm11452_vm15, %v10382_v34, 0.0  ;;  %v16284_v34 = vld [vmem:[#allocation139_spill] sm:$0xff] }
 0x3d5   : > { %v11492_v12 = vpop.permute.xlu0 %4172  ;;  %3784 = vrot.lane.b32.xlu1 %v3720_v10, %s15764_s16  ;;  %v1801_v3 = vadd.f32 %v16275_v58, %v1417_v26  ;;  %v16277_v10 = vld [vmem:[#allocation102_spill] sm:$0xff] }
 0x3d6   : > { %16270 = vst [vmem:[#allocation105_spill] sm:$0xff] %v11492_v12  ;;  %v2251_v42 = vadd.f32 %v16274_v28, %v1802_v23  ;;  %v1419_v48 = vadd.f32 %v16277_v10, %v1066_v22  ;;  %v16281_v23 = vld [vmem:[#allocation6_spill] sm:$0xff]  ;;  %v16283_v22 = vld [vmem:[#allocation15_spill] sm:$0xff] }
 0x3d7   : > { %1485 = vrot.lane.b32.xlu0 %v16264_v61, %s15479_s30  ;;  %v11498_v15 = vpop.permute.xlu1 %1371  ;;  %v15437_v28 = vrot.slane %v16281_v23, 1  ;;  %v4072_v10 = vsel %vm681_vm6, %v16283_v22, 0.0  ;;  %v16292_v22 = vld [vmem:[#allocation27_spill] sm:$0xff] }
 0x3d8   : > { %16272 = vst [vmem:[#allocation221_spill] sm:$0xff] %v11498_v15  ;;  %v16278_v15 = vld [vmem:[#allocation36_spill] sm:$0xff]  ;;  %v2667_v63 = vadd.f32 %v10296_v5, %v2251_v42  ;;  %v16300_v23 = vld [vmem:[#allocation151_spill] sm:$0xff] }
 0x3d9   : > { %v11507_v12 = vpop.permute.xlu0 %4176  ;;  %3846 = vrot.lane.b32.xlu1 %v3751_v31, %s15764_s16  ;;  %v2250_v55 = vadd.f32 %v16278_v15, %v1801_v3  ;;  %v16282_v31 = vld [vmem:[#allocation132_spill] sm:$0xff]  ;;  %v16285_v15 = vld [vmem:[#allocation149_spill] sm:$0xff] }
 0x3da   : > { %16276 = vst [vmem:[#allocation229_spill] sm:$0xff] %v11507_v12  ;;  %v1803_v58 = vadd.f32 %v16282_v31, %v1419_v48  ;;  %v1421_v3 = vadd.f32 %v16285_v15, %v1068_v14  ;;  %v16286_v5 = vld [vmem:[#allocation152_spill] sm:$0xff] }
 0x3db   : > { %3844 = vrot.lane.b32.xlu0 %v3750_v40, %s15764_s16  ;;  %v11519_v26 = vpop.permute.xlu1 %1375  ;;  %v2666_v12 = vadd.f32 %v16284_v34, %v2250_v55  ;;  %v3083_v42 = vadd.f32 %v16286_v5, %v2667_v63  ;;  %v16289_v40 = vld [vmem:[#allocation9_spill] sm:$0xff]  ;;  %v16291_v14 = vld [vmem:[#allocation144_spill] sm:$0xff]  ;;  %v1070_v34 = vadd.f32 %v16265_v24, %v16292_v22 }
 0x3dc   : > { %16280 = vst [vmem:[#allocation227_spill] sm:$0xff] %v11519_v26  ;;  %v2252_v48 = vadd.f32 %v16288_v37, %v1803_v58  ;;  %v16290_v31 = vrot.slane %v16289_v40, 1  ;;  %v16296_v58 = vld [vmem:[#allocation43_spill] sm:$0xff] }
 0x3dd   : > { %v11529_v45 = vpop.permute.xlu0 %1373  ;;  %4136 = vrot.lane.b32.xlu1 %v4072_v10, %s15764_s16  ;;  %v3082_v63 = vadd.f32 %v16291_v14, %v2666_v12  ;;  %v16293_v10 = vld [vmem:[#allocation141_spill] sm:$0xff]  ;;  %v3531_v5 = vadd.f32 %v16294_v36, %v3083_v42  ;;  %v16297_v40 = vld [vmem:[#allocation23_spill] sm:$0xff] }
 0x3de   : > { %16287 = vst [vmem:[#allocation26_spill] sm:$0xff] %v11529_v45  ;;  %v3974_v55 = vsel %vm1959_vm4, %v15437_v28, %v16290_v31  ;;  %v1805_v15 = vadd.f32 %v16293_v10, %v1421_v3  ;;  %v2668_v37 = vadd.f32 %v16296_v58, %v2252_v48  ;;  %v1069_v39 = vadd.f32 %v16265_v24, %v16297_v40  ;;  %v16298_v31 = vld [vmem:[#allocation13_spill] sm:$0xff]  ;;  %v16299_v12 = vld [vmem:[#allocation155_spill] sm:$0xff]  ;;  %v16301_v45 = vld [vmem:[#allocation154_spill] sm:$0xff] }
 0x3df   : > { %3566 = vrot.lane.b32.xlu0 %v16264_v61, %s8153_s26  ;;  %v11550_v17 = vpop.permute.xlu1 %3030  ;;  %v4103_v28 = vsel %vm4007_vm12, %v16298_v31, 0.0  ;;  %v1423_v14 = vadd.f32 %v16299_v12, %v1070_v34  ;;  %v3530_v22 = vadd.f32 %v16300_v23, %v3082_v63  ;;  %v16302_v10 = vld [vmem:[#allocation158_spill] sm:$0xff]  ;;  %v16303_v61 = vld [vmem:[#allocation148_spill] sm:$0xff]  ;;  %v4102_v60 = vsel %vm11452_vm15, %v3974_v55, 0.0  ;;  %v16305_v31 = vld [vmem:[#allocation145_spill] sm:$0xff] }
 0x3e0   : > { %16295 = vst [vmem:[#allocation231_spill] sm:$0xff] %v11550_v17  ;;  %v2254_v3 = vadd.f32 %v16301_v45, %v1805_v15  ;;  %v3883_v42 = vadd.f32 %v16302_v10, %v3531_v5  ;;  %v1422_v26 = vadd.f32 %v16303_v61, %v1069_v39  ;;  %v16304_v48 = vld [vmem:[#allocation150_spill] sm:$0xff]  ;;  %v16307_v23 = vld [vmem:[#allocation48_spill] sm:$0xff] }
 0x3e1   : > { %v11560_v36 = vpop.permute.xlu0 %3028  ;;  %4198 = vrot.lane.b32.xlu1 %v4103_v28, %s15764_s16  ;;  %v3084_v58 = vadd.f32 %v16304_v48, %v2668_v37  ;;  %v1807_v17 = vadd.f32 %v16305_v31, %v1423_v14  ;;  %v16306_v34 = vld [vmem:[#allocation62_spill] sm:$0xff]  ;;  %v16309_v28 = vld [vmem:[#allocation153_spill] sm:$0xff] }
 0x3e2   : > { %v3882_v12 = vadd.f32 %v16306_v34, %v3530_v22  ;;  %v2670_v63 = vadd.f32 %v16307_v23, %v2254_v3  ;;  %v11571_v45 = vadd.f32 %v10537_v9, %v3883_v42  ;;  %v1806_v39 = vadd.f32 %v16309_v28, %v1422_v26  ;;  %v16310_v5 = vld [vmem:[#allocation146_spill] sm:$0xff]  ;;  %v16315_v3 = vld [vmem:[#allocation44_spill] sm:$0xff]  ;;  %v16316_v48 = vld [vmem:[#allocation53_spill] sm:$0xff] }
 0x3e3   : > { %4196 = vrot.lane.b32.xlu0 %v4102_v60, %s15764_s16  ;;  %v11574_v15 = vpop.permute.xlu1 %1755  ;;  %v3532_v37 = vadd.f32 %v16310_v5, %v3084_v58  ;;  %v16311_v10 = vld [vmem:[#allocation162_spill] sm:$0xff]  ;;  %v16318_v34 = vld [vmem:[#allocation164_spill] sm:$0xff]  ;;  %v16319_v23 = vld [vmem:[#allocation33_spill] sm:$0xff] }
 0x3e4   : > { %16308 = vst [vmem:[#allocation103_spill] sm:$0xff] %v11571_v45  ;;  %v2256_v13 = vadd.f32 %v16311_v10, %v1807_v17  ;;  %v16312_v55 = vld [vmem:[#allocation50_spill] sm:$0xff]  ;;  %v3086_v14 = vadd.f32 %v10617_v20, %v2670_v63  ;;  %v1072_v63 = vadd.f32 %v16265_v24, %v16319_v23  ;;  %v16320_v28 = vld [vmem:[#allocation59_spill] sm:$0xff] }
 0x3e5   : > { %v11580_v61 = vadd.f32 %v16312_v55, %v3882_v12  ;;  %v11583_v22 = vpop.permute.xlu0 %3032  ;;  %4302 = vrot.lane.b32.xlu1 %v11571_v45, %s15764_s16  ;;  %v16314_v9 = vld [vmem:[#allocation166_spill] sm:$0xff]  ;;  %v3884_v42 = vadd.f32 %v16315_v3, %v3532_v37  ;;  %v16322_v37 = vld [vmem:[#allocation172_spill] sm:$0xff]  ;;  %v16327_v23 = vld [vmem:[#allocation163_spill] sm:$0xff] }
 0x3e6   : > { %v2255_v60 = vadd.f32 %v16314_v9, %v1806_v39  ;;  %v2672_v26 = vadd.f32 %v16316_v48, %v2256_v13  ;;  %v16317_v31 = vld [vmem:[#allocation34_spill] sm:$0xff]  ;;  %v3534_v17 = vadd.f32 %v10667_v57, %v3086_v14  ;;  %v16323_v13 = vld [vmem:[#allocation180_spill] sm:$0xff]  ;;  %v16324_v14 = vld [vmem:[#allocation161_spill] sm:$0xff] }
 0x3e7   : > { %16313 = vst [vmem:[#allocation111_spill] sm:$0xff] %v11580_v61  ;;  %v1073_v58 = vadd.f32 %v16265_v24, %v16317_v31  ;;  %4300 = vrot.lane.b32.xlu0 %v11580_v61, %s15764_s16  ;;  %v11595_v20 = vpop.permute.xlu1 %1759  ;;  %v11601_v39 = vadd.f32 %v16320_v28, %v3884_v42  ;;  %v1425_v9 = vadd.f32 %v16324_v14, %v1072_v63  ;;  %v16326_v48 = vld [vmem:[#allocation178_spill] sm:$0xff]  ;;  %v16328_v28 = vld [vmem:[#allocation93_spill] sm:$0xff]  ;;  %v16338_v61 = vld [vmem:[#allocation183_spill] sm:$0xff] }
 0x3e8   : > { %v2671_v12 = vadd.f32 %v16318_v34, %v2255_v60  ;;  %v3088_v10 = vadd.f32 %v16322_v37, %v2672_v26  ;;  %v3886_v55 = vadd.f32 %v16323_v13, %v3534_v17  ;;  %v16325_v60 = vld [vmem:[#allocation159_spill] sm:$0xff]  ;;  %v16332_v63 = vld [vmem:[#allocation173_spill] sm:$0xff] }
 0x3e9   : > { %16321 = vst [vmem:[#allocation230_spill] sm:$0xff] %v11601_v39  ;;  %v1426_v5 = vadd.f32 %v10594_v6, %v1073_v58  ;;  %v11606_v57 = vpop.permute.xlu0 %1757  ;;  %1493 = vrot.lane.b32.xlu1 %v16297_v40, %s15479_s30  ;;  %v16330_v26 = vld [vmem:[#allocation39_spill] sm:$0xff] }
 0x3ea   : > { %v3087_v3 = vadd.f32 %v16325_v60, %v2671_v12  ;;  %v3536_v42 = vadd.f32 %v16327_v23, %v3088_v10  ;;  %v11615_v45 = vadd.f32 %v16328_v28, %v3886_v55  ;;  %v1074_v58 = vadd.f32 %v16265_v24, %v16330_v26  ;;  %v16331_v17 = vld [vmem:[#allocation171_spill] sm:$0xff]  ;;  %v16333_v12 = vld [vmem:[#allocation176_spill] sm:$0xff]  ;;  %v16336_v23 = vld [vmem:[#allocation45_spill] sm:$0xff] }
 0x3eb   : > { %v1810_v34 = vadd.f32 %v16326_v48, %v1426_v5  ;;  %4304 = vrot.lane.b32.xlu0 %v11601_v39, %s15764_s16  ;;  %v11619_v6 = vpop.permute.xlu1 %3478  ;;  %v1809_v37 = vadd.f32 %v16331_v17, %v1425_v9  ;;  %v16334_v5 = vld [vmem:[#allocation177_spill] sm:$0xff]  ;;  %v16335_v55 = vld [vmem:[#allocation55_spill] sm:$0xff]  ;;  %v1076_v28 = vadd.f32 %v16265_v24, %v16336_v23 }
 0x3ec   : > { %16329 = vst [vmem:[#allocation133_spill] sm:$0xff] %v11615_v45  ;;  %v3535_v13 = vadd.f32 %v16332_v63, %v3087_v3  ;;  %v3888_v60 = vadd.f32 %v16334_v5, %v3536_v42  ;;  %v1427_v48 = vadd.f32 %v16335_v55, %v1074_v58  ;;  %v16337_v39 = vld [vmem:[#allocation175_spill] sm:$0xff]  ;;  %v16340_v63 = vld [vmem:[#allocation56_spill] sm:$0xff]  ;;  %v16343_v58 = vld [vmem:[#allocation174_spill] sm:$0xff] }
 0x3ed   : > { %v2259_v14 = vadd.f32 %v16333_v12, %v1810_v34  ;;  %v11627_v10 = vpop.permute.xlu0 %3476  ;;  %4308 = vrot.lane.b32.xlu1 %v11615_v45, %s15764_s16  ;;  %v2258_v26 = vadd.f32 %v16337_v39, %v1809_v37  ;;  %v16339_v17 = vld [vmem:[#allocation187_spill] sm:$0xff]  ;;  %v16344_v45 = vld [vmem:[#allocation181_spill] sm:$0xff]  ;;  %v16345_v39 = vld [vmem:[#allocation60_spill] sm:$0xff] }
 0x3ee   : > { %v3887_v9 = vadd.f32 %v16338_v61, %v3535_v13  ;;  %v11638_v34 = vadd.f32 %v16340_v63, %v3888_v60  ;;  %v16342_v12 = vld [vmem:[#allocation167_spill] sm:$0xff]  ;;  %v1429_v37 = vadd.f32 %v16345_v39, %v1076_v28  ;;  %v16348_v28 = vld [vmem:[#allocation169_spill] sm:$0xff] }
 0x3ef   : > { %v2675_v3 = vadd.f32 %v16339_v17, %v2259_v14  ;;  %3574 = vrot.lane.b32.xlu0 %v16297_v40, %s8153_s26  ;;  %v11642_v42 = vpop.permute.xlu1 %2204  ;;  %v1811_v5 = vadd.f32 %v16342_v12, %v1427_v48  ;;  %v2674_v55 = vadd.f32 %v16343_v58, %v2258_v26  ;;  %v16346_v14 = vld [vmem:[#allocation168_spill] sm:$0xff]  ;;  %v16347_v60 = vld [vmem:[#allocation51_spill] sm:$0xff]  ;;  %v16350_v58 = vld [vmem:[#allocation73_spill] sm:$0xff] }
 0x3f0   : > { %16341 = vst [vmem:[#allocation24_spill] sm:$0xff] %v11638_v34  ;;  %v11647_v23 = vadd.f32 %v16344_v45, %v3887_v9  ;;  %v1078_v17 = vadd.f32 %v16265_v24, %v16347_v60  ;;  %v1813_v26 = vadd.f32 %v10860_v11, %v1429_v37 }
 0x3f1   : > { %v3091_v61 = vadd.f32 %v10845_v41, %v2675_v3  ;;  %v11651_v13 = vpop.permute.xlu0 %3480  ;;  %4312 = vrot.lane.b32.xlu1 %v11638_v34, %s15764_s16  ;;  %v2260_v40 = vadd.f32 %v16346_v14, %v1811_v5  ;;  %v3090_v48 = vadd.f32 %v10856_v33, %v2674_v55  ;;  %v16349_v3 = vld [vmem:[#allocation46_spill] sm:$0xff]  ;;  %v16351_v55 = vld [vmem:[#allocation197_spill] sm:$0xff] }
 0x3f2   : > { %v1077_v63 = vadd.f32 %v16265_v24, %v16349_v3  ;;  %v1431_v12 = vadd.f32 %v10821_v2, %v1078_v17  ;;  %v2262_v33 = vadd.f32 %v16350_v58, %v1813_v26  ;;  %v16358_v58 = vld [vmem:[#allocation182_spill] sm:$0xff] }
 0x3f3   : > { %v3539_v45 = vadd.f32 %v10896_v51, %v3091_v61  ;;  %4310 = vrot.lane.b32.xlu0 %v11647_v23, %s15764_s16  ;;  %v11663_v41 = vpop.permute.xlu1 %2208  ;;  %v2676_v9 = vadd.f32 %v16348_v28, %v2260_v40  ;;  %v3538_v5 = vadd.f32 %v10906_v27, %v3090_v48  ;;  %v16352_v51 = vld [vmem:[#allocation66_spill] sm:$0xff]  ;;  %v16353_v61 = vld [vmem:[#allocation189_spill] sm:$0xff]  ;;  %v16354_v40 = vld [vmem:[#allocation63_spill] sm:$0xff] }
 0x3f4   : > { %v1430_v37 = vadd.f32 %v16352_v51, %v1077_v63  ;;  %v1815_v60 = vadd.f32 %v16354_v40, %v1431_v12  ;;  %v16355_v28 = vld [vmem:[#allocation191_spill] sm:$0xff]  ;;  %v2678_v2 = vadd.f32 %v10985_v56, %v2262_v33  ;;  %v16356_v48 = vld [vmem:[#allocation186_spill] sm:$0xff] }
 0x3f5   : > { %v3891_v11 = vadd.f32 %v16351_v55, %v3539_v45  ;;  %v11672_v39 = vpop.permute.xlu0 %2206  ;;  %3582 = vrot.lane.b32.xlu1 %v16317_v31, %s8153_s26  ;;  %v3092_v14 = vadd.f32 %v16353_v61, %v2676_v9  ;;  %v3890_v34 = vadd.f32 %v16355_v28, %v3538_v5  ;;  %v16357_v45 = vld [vmem:[#allocation69_spill] sm:$0xff] }
 0x3f6   : > { %v1814_v26 = vadd.f32 %v16356_v48, %v1430_v37  ;;  %v2264_v9 = vadd.f32 %v16358_v58, %v1815_v60  ;;  %v3094_v5 = vadd.f32 %v11096_v46, %v2678_v2 }
 0x3f7   : > { %v11682_v27 = vadd.f32 %v11012_v30, %v3891_v11  ;;  %1501 = vrot.lane.b32.xlu0 %v16317_v31, %s15479_s30  ;;  %v11686_v17 = vpop.permute.xlu1 %3830  ;;  %v3540_v63 = vadd.f32 %v16357_v45, %v3092_v14  ;;  %v11692_v12 = vadd.f32 %v11018_v16, %v3890_v34  ;;  %v16359_v30 = vld [vmem:[#allocation195_spill] sm:$0xff]  ;;  %v16360_v11 = vld [vmem:[#allocation58_spill] sm:$0xff]  ;;  %v16361_v34 = vld [vmem:[#allocation57_spill] sm:$0xff] }
 0x3f8   : > { %v2263_v31 = vadd.f32 %v16359_v30, %v1814_v26  ;;  %v2680_v55 = vadd.f32 %v10997_v53, %v2264_v9  ;;  %v1081_v51 = vadd.f32 %v16265_v24, %v16360_v11  ;;  %v3542_v37 = vadd.f32 %v11142_v21, %v3094_v5  ;;  %v16363_v26 = vld [vmem:[#allocation71_spill] sm:$0xff]  ;;  %v16365_v9 = vld [vmem:[#allocation192_spill] sm:$0xff] }
 0x3f9   : > { %v11695_v56 = vpop.permute.xlu0 %3828  ;;  %4318 = vrot.lane.b32.xlu1 %v11682_v27, %s15764_s16  ;;  %v3892_v33 = vadd.f32 %v10989_v62, %v3540_v63  ;;  %v1080_v61 = vadd.f32 %v16265_v24, %v16361_v34  ;;  %v1084_v45 = vadd.f32 %v16265_v24, %v16363_v26  ;;  %v16364_v63 = vld [vmem:[#allocation188_spill] sm:$0xff]  ;;  %v16366_v5 = vld [vmem:[#allocation199_spill] sm:$0xff] }
 0x3fa   : > { %v2679_v46 = vadd.f32 %v11003_v35, %v2263_v31  ;;  %v1434_v53 = vadd.f32 %v11073_v4, %v1081_v51  ;;  %v3096_v62 = vadd.f32 %v11105_v19, %v2680_v55  ;;  %v3894_v40 = vadd.f32 %v11215_v43, %v3542_v37  ;;  %v16362_v19 = vld [vmem:[#allocation64_spill] sm:$0xff]  ;;  %v16370_v55 = vld [vmem:[#allocation203_spill] sm:$0xff] }
 0x3fb   : > { %4316 = vrot.lane.b32.xlu0 %v11692_v12, %s15764_s16  ;;  %v11707_v16 = vpop.permute.xlu1 %2620  ;;  %v11713_v14 = vadd.f32 %v11045_v32, %v3892_v33  ;;  %v1433_v60 = vadd.f32 %v11033_v7, %v1080_v61  ;;  %v1082_v43 = vadd.f32 %v16265_v24, %v16362_v19  ;;  %v16368_v30 = vld [vmem:[#allocation204_spill] sm:$0xff]  ;;  %v1437_v37 = vadd.f32 %v11269_v8, %v1084_v45 }
 0x3fc   : > { %v3095_v35 = vadd.f32 %v11085_v47, %v2679_v46  ;;  %v1818_v28 = vadd.f32 %v11121_v25, %v1434_v53  ;;  %v3544_v32 = vadd.f32 %v11164_v0, %v3096_v62  ;;  %v11727_v2 = vadd.f32 %v11254_v59, %v3894_v40  ;;  %v16373_v62 = vld [vmem:[#allocation207_spill] sm:$0xff]  ;;  %v16376_v19 = vld [vmem:[#allocation72_spill] sm:$0xff] }
 0x3fd   : > { %v11718_v21 = vpop.permute.xlu0 %3832  ;;  %1509 = vrot.lane.b32.xlu1 %v16349_v3, %s15479_s30  ;;  %v1817_v48 = vadd.f32 %v11100_v52, %v1433_v60  ;;  %v1435_v59 = vadd.f32 %v11061_v1, %v1082_v43  ;;  %v16369_v1 = vld [vmem:[#allocation202_spill] sm:$0xff]  ;;  %v1085_v43 = vadd.f32 %v16265_v24, %v16376_v19  ;;  %v16379_v26 = vld [vmem:[#allocation208_spill] sm:$0xff] }
 0x3fe   : > { %v3543_v7 = vadd.f32 %v11135_v18, %v3095_v35  ;;  %v2267_v47 = vadd.f32 %v11198_v38, %v1818_v28  ;;  %v3896_v25 = vadd.f32 %v11226_v44, %v3544_v32  ;;  %v16374_v60 = vld [vmem:[#allocation110_spill] sm:$0xff] }
 0x3ff   : > { %4320 = vrot.lane.b32.xlu0 %v11713_v14, %s15764_s16  ;;  %v11731_v4 = vpop.permute.xlu1 %2624  ;;  %v2266_v58 = vadd.f32 %v16364_v63, %v1817_v48  ;;  %v1819_v31 = vadd.f32 %v16368_v30, %v1435_v59  ;;  %v1821_v35 = vadd.f32 %v16374_v60, %v1437_v37  ;;  %v16377_v48 = vld [vmem:[#allocation193_spill] sm:$0xff] }
 0x400   : > { %v3895_v52 = vadd.f32 %v16365_v9, %v3543_v7  ;;  %v2683_v18 = vadd.f32 %v16366_v5, %v2267_v47  ;;  %v11750_v38 = vadd.f32 %v11282_v29, %v3896_v25  ;;  %v16371_v29 = vld [vmem:[#allocation67_spill] sm:$0xff]  ;;  %v16378_v25 = vld [vmem:[#allocation80_spill] sm:$0xff]  ;;  %v16381_v9 = vld [vmem:[#allocation74_spill] sm:$0xff] }
 0x401   : > { %v11739_v0 = vpop.permute.xlu0 %2622  ;;  %4324 = vrot.lane.b32.xlu1 %v11727_v2, %s15764_s16  ;;  %v2682_v33 = vadd.f32 %v16369_v1, %v2266_v58  ;;  %v2268_v61 = vadd.f32 %v16371_v29, %v1819_v31  ;;  %v2270_v59 = vadd.f32 %v16378_v25, %v1821_v35  ;;  %v16382_v5 = vld [vmem:[#allocation70_spill] sm:$0xff]  ;;  %v16383_v30 = vld [vmem:[#allocation97_spill] sm:$0xff]  ;;  %v16384_v1 = vld [vmem:[#allocation95_spill] sm:$0xff] }
 0x402   : > { %16367 = vst [vmem:[#allocation119_spill] sm:$0xff] %v11750_v38  ;;  %v11759_v51 = vadd.f32 %v16370_v55, %v3895_v52  ;;  %v3099_v46 = vadd.f32 %v11314_v49, %v2683_v18  ;;  %v16375_v49 = vld [vmem:[#allocation206_spill] sm:$0xff]  ;;  %v16385_v55 = vld [vmem:[#allocation113_spill] sm:$0xff] }
 0x403   : > { %3590 = vrot.lane.b32.xlu0 %v16349_v3, %s8153_s26  ;;  %v11754_v44 = vpop.permute.xlu1 %4182  ;;  %v16372_v3 = vld [vmem:[#allocation75_spill] sm:$0xff]  ;;  %v3098_v40 = vadd.f32 %v16373_v62, %v2682_v33  ;;  %v2684_v32 = vadd.f32 %v16375_v49, %v2268_v61  ;;  %v2686_v33 = vadd.f32 %v16384_v1, %v2270_v59  ;;  %v16387_v61 = vld [vmem:[#allocation212_spill] sm:$0xff]  ;;  %v16390_v49 = vld [vmem:[#allocation94_spill] sm:$0xff] }
 0x404   : > { %v1086_v53 = vadd.f32 %v16265_v24, %v16372_v3  ;;  %v3547_v28 = vadd.f32 %v11366_v50, %v3099_v46  ;;  %v16380_v50 = vld [vmem:[#allocation215_spill] sm:$0xff]  ;;  %v16393_v59 = vld [vmem:[#allocation104_spill] sm:$0xff] }
 0x405   : > { %v4181_v34 = vpop.permute.xlu0 %4180  ;;  %4328 = vrot.lane.b32.xlu1 %v11750_v38, %s15764_s16  ;;  %v3546_v47 = vadd.f32 %v11374_v54, %v3098_v40  ;;  %v1438_v58 = vadd.f32 %v16380_v50, %v1085_v43  ;;  %v3100_v52 = vadd.f32 %v16381_v9, %v2684_v32  ;;  %v16386_v46 = vld [vmem:[#allocation79_spill] sm:$0xff]  ;;  %v16389_v40 = vld [vmem:[#allocation105_spill] sm:$0xff]  ;;  %v3102_v35 = vadd.f32 %v11560_v36, %v2686_v33  ;;  %v16391_v32 = vld [vmem:[#allocation98_spill] sm:$0xff] }
 0x406   : > { %v1439_v7 = vadd.f32 %v16377_v48, %v1086_v53  ;;  %v3899_v45 = vadd.f32 %v16379_v26, %v3547_v28  ;;  %v16388_v53 = vld [vmem:[#allocation99_spill] sm:$0xff]  ;;  %v16392_v48 = vld [vmem:[#allocation112_spill] sm:$0xff]  ;;  %v16394_v26 = vld [vmem:[#allocation229_spill] sm:$0xff] }
 0x407   : > { %4326 = vrot.lane.b32.xlu0 %v11759_v51, %s15764_s16  ;;  %v11773_v8 = vpop.permute.xlu1 %1319  ;;  %v3898_v31 = vadd.f32 %v16383_v30, %v3546_v47  ;;  %v1822_v29 = vadd.f32 %v16386_v46, %v1438_v58  ;;  %v3548_v3 = vadd.f32 %v16387_v61, %v3100_v52  ;;  %v3550_v47 = vadd.f32 %v11627_v10, %v3102_v35  ;;  %v16396_v52 = vld [vmem:[#allocation231_spill] sm:$0xff] }
 0x408   : > { %v1823_v18 = vadd.f32 %v16382_v5, %v1439_v7  ;;  %v11790_v54 = vadd.f32 %v16385_v55, %v3899_v45 }
 0x409   : > { %v4185_v63 = vpop.permute.xlu0 %4184  ;;  %3598 = vrot.lane.b32.xlu1 %v16360_v11, %s8153_s26  ;;  %v11800_v60 = vadd.f32 %v16389_v40, %v3898_v31  ;;  %v3900_v43 = vadd.f32 %v16391_v32, %v3548_v3  ;;  %v3902_v58 = vadd.f32 %v11695_v56, %v3550_v47  ;;  %v16397_v31 = vld [vmem:[#allocation7_spill] sm:$0xff]  ;;  %v16406_v40 = vld [vmem:[#allocation78_spill] sm:$0xff] }
 0x40a   : > { %v2272_v62 = vadd.f32 %v16388_v53, %v1823_v18  ;;  %v554_v1 = vadd.s32 8, %v16397_v31 }
 0x40b   : > { %1517 = vrot.lane.b32.xlu0 %v16360_v11, %s15479_s30  ;;  %v11794_v37 = vpop.permute.xlu1 %1381  ;;  %v2271_v11 = vadd.f32 %v16390_v49, %v1822_v29  ;;  %v11817_v45 = vadd.f32 %v16394_v26, %v3900_v43  ;;  %v11825_v18 = vadd.f32 %v4181_v34, %v3902_v58  ;;  %v16407_v43 = vld [vmem:[#allocation86_spill] sm:$0xff] }
 0x40c   : > { %v2688_v7 = vadd.f32 %v16392_v48, %v2272_v62  ;;  %v11843_v46 = vshra.s32 %v554_v1, 4  ;;  %v11864_v62 = vand.u32 15, %v554_v1  ;;  %v16408_v48 = vrot.slane %v16407_v43, 1 }
 0x40d   : > { %v11803_v28 = vpop.permute.xlu0 %1379  ;;  %4334 = vrot.lane.b32.xlu1 %v11790_v54, %s15764_s16  ;;  %v2687_v36 = vadd.f32 %v16393_v59, %v2271_v11  ;;  %16395 = vst [vmem:[#allocation123_spill] sm:$0xff] %v11817_v45 }
 0x40e   : > { %v3104_v50 = vadd.f32 %v11583_v22, %v2688_v7  ;;  %16399 = vst [vmem:[#allocation129_spill] sm:$0xff] %v11843_v46  ;;  %vm15510_vm0 = vcmp.ge.s32.totalorder %v11843_v46, 1  ;;  %16405 = vst [vmem:[#allocation35_spill] sm:$0xff] %v11864_v62  ;;  %vm746_vm2 = vcmp.lt.s32.totalorder %v11864_v62, 15  ;;  %v16409_v7 = vld [vmem:[#allocation130_spill] sm:$0xff]  ;;  %vm682_vm1 = vcmp.lt.s32.totalorder %v11843_v46, 15 }
 0x40f   : > { %4332 = vrot.lane.b32.xlu0 %v11800_v60, %s15764_s16  ;;  %v11813_v25 = vpop.permute.xlu1 %3038  ;;  %v3103_v10 = vadd.f32 %v16396_v52, %v2687_v36  ;;  %v16410_v47 = vrot.slane %v16409_v7, 1  ;;  %vm1993_vm9 = vmand %vm15510_vm0, %vm746_vm2  ;;  %v16411_v36 = vld [vmem:[#allocation77_spill] sm:$0xff]  ;;  %v16414_v52 = vld [vmem:[#allocation91_spill] sm:$0xff] }
 0x410   : > { %v3552_v5 = vadd.f32 %v11651_v13, %v3104_v50  ;;  %v1088_v26 = vadd.f32 %v16265_v24, %v16411_v36  ;;  %v16412_v50 = vld [vmem:[#allocation88_spill] sm:$0xff]  ;;  %v16420_v36 = vld [vmem:[#allocation26_spill] sm:$0xff]  ;;  %vm3977_vm7 = vmand %vm682_vm1, %vm746_vm2 }
 0x411   : > { %v3037_v9 = vpop.permute.xlu0 %3036  ;;  %1525 = vrot.lane.b32.xlu1 %v16376_v19, %s15479_s30  ;;  %v3551_v22 = vadd.f32 %v11619_v6, %v3103_v10  ;;  %v1991_v59 = vsel %vm1959_vm4, %v16410_v47, %v16408_v48  ;;  %v16413_v58 = vrot.slane %v16412_v50, 7  ;;  %v16415_v10 = vrot.slane %v16414_v52, 7 }
 0x412   : > { %v3904_v56 = vadd.f32 %v11718_v21, %v3552_v5  ;;  %v1089_v48 = vadd.f32 %v16265_v24, %v16406_v40 }
 0x413   : > { %4336 = vrot.lane.b32.xlu0 %v11817_v45, %s15764_s16  ;;  %v11829_v30 = vpop.permute.xlu1 %1703  ;;  %v3903_v55 = vadd.f32 %v11686_v17, %v3551_v22  ;;  %v16400_v17 = vld [vmem:[#allocation90_spill] sm:$0xff]  ;;  %v2438_v5 = vsel %vm16416_vm11, %v16415_v10, %v16413_v58  ;;  %v16417_v22 = vld [vmem:[#allocation221_spill] sm:$0xff] }
 0x414   : > { %v11837_v13 = vadd.f32 %v4185_v63, %v3904_v56  ;;  %v16401_v21 = vrot.slane %v16400_v17, 7  ;;  %v16402_v63 = vld [vmem:[#allocation87_spill] sm:$0xff]  ;;  %v1441_v56 = vadd.f32 %v16417_v22, %v1088_v26  ;;  %v16504_v45 = vld [vmem:[#allocation30_spill] sm:$0xff] }
 0x415   : > { %v3041_v33 = vpop.permute.xlu0 %3040  ;;  %4340 = vrot.lane.b32.xlu1 %v11825_v18, %s15764_s16  ;;  %v11846_v29 = vadd.f32 %v11754_v44, %v3903_v55  ;;  %v16403_v61 = vrot.slane %v16402_v63, 7  ;;  %v2089_v55 = vsel %vm1993_vm9, %v1991_v59, 0.0  ;;  %v1442_v59 = vadd.f32 %v16420_v36, %v1089_v48  ;;  %v16425_v48 = vld [vmem:[#allocation232_spill] sm:$0xff] }
 0x416   : > { %16398 = vst [vmem:[#allocation120_spill] sm:$0xff] %v11837_v13 }
 0x417   : > { %3606 = vrot.lane.b32.xlu0 %v16376_v19, %s8153_s26  ;;  %v11841_v34 = vpop.permute.xlu1 %1765  ;;  %v1127_v19 = vsel %vm16404_vm10, %v16403_v61, %v16401_v21  ;;  %v16418_v61 = vld [vmem:[#allocation81_spill] sm:$0xff]  ;;  %v1826_v52 = vadd.f32 %v11606_v57, %v1442_v59 }
 0x418   : > { %v1256_v44 = vsel %vm15510_vm0, %v1127_v19, 0.0  ;;  %v1090_v19 = vadd.f32 %v16265_v24, %v16418_v61 }
 0x419   : > { %v11848_v6 = vpop.permute.xlu0 %1763  ;;  %4344 = vrot.lane.b32.xlu1 %v11837_v13, %s15764_s16  ;;  %v2275_v22 = vadd.f32 %v11672_v39, %v1826_v52  ;;  %v16503_v13 = vld [vmem:[#allocation108_spill] sm:$0xff] }
 0x41b   : > { %4342 = vrot.lane.b32.xlu0 %v11846_v29, %s15764_s16  ;;  %v3487_v3 = vpop.permute.xlu1 %3486 }
 0x41d   : > { %v3485_v53 = vpop.permute.xlu0 %3484  ;;  %1321 = vrot.lane.b32.xlu1 %v1256_v44, %s15764_s16  ;;  %v1825_v44 = vadd.f32 %v11574_v15, %v1441_v56 }
 0x41f   : > { %1533 = vrot.lane.b32.xlu0 %v16406_v40, %s15479_s30  ;;  %v1542_v35 = vpop.permute.xlu1 %1541  ;;  %v2274_v7 = vadd.f32 %v11642_v42, %v1825_v44  ;;  %s16544_s30 = smov 96  }
 0x420   : > { %v1640_v49 = vsel %vm15510_vm0, %v1542_v35, 0.0 }
 0x421   : > { %v3489_v11 = vpop.permute.xlu0 %3488  ;;  %1705 = vrot.lane.b32.xlu1 %v1640_v49, %s15764_s16  ;;  %v16419_v49 = vld [vmem:[#allocation227_spill] sm:$0xff]  ;;  %v2690_v50 = vadd.f32 %v11707_v16, %v2274_v7 }
 0x422   : > { %v1443_v43 = vadd.f32 %v16419_v49, %v1090_v19 }
 0x423   : > { %3614 = vrot.lane.b32.xlu0 %v16406_v40, %s8153_s26  ;;  %v11874_v32 = vpop.permute.xlu1 %2212  ;;  %v3106_v10 = vadd.f32 %v3037_v9, %v2690_v50  ;;  %v16427_v50 = vld [vmem:[#allocation14_spill] sm:$0xff] }
 0x424   : > { %v1827_v26 = vadd.f32 %v11595_v20, %v1443_v43 }
 0x425   : > { %v11894_v1 = vpop.permute.xlu0 %2152  ;;  %2570 = vrot.lane.b32.xlu1 %v2438_v5, %s15764_s16  ;;  %v3554_v42 = vadd.f32 %v3485_v53, %v3106_v10 }
 0x426   : > { %v2276_v15 = vadd.f32 %v11663_v41, %v1827_v26  ;;  %v558_v41 = vadd.s32 40, %v16397_v31 }
 0x427   : > { %2154 = vrot.lane.b32.xlu0 %v2089_v55, %s15764_s16  ;;  %v3837_v21 = vpop.permute.xlu1 %3836  ;;  %v2691_v55 = vadd.f32 %v11739_v0, %v2275_v22 }
 0x428   : > { %v2692_v40 = vadd.f32 %v11731_v4, %v2276_v15  ;;  %v3906_v20 = vadd.f32 %v3837_v21, %v3554_v42  ;;  %v11926_v0 = vshra.s32 %v558_v41, 4  ;;  %v16428_v15 = vld [vmem:[#allocation5_spill] sm:$0xff] }
 0x429   : > { %v11902_v35 = vpop.permute.xlu0 %2214  ;;  %v3107_v16 = vadd.f32 %v11813_v25, %v2691_v55  ;;  %v16423_v25 = vld [vmem:[#allocation96_spill] sm:$0xff]  ;;  %v1062_v10 = vadd.f32 %v16265_v24, %v16428_v15  ;;  %v16431_v55 = vld [vmem:[#allocation142_spill] sm:$0xff] }
 0x42a   : > { %v3108_v61 = vadd.f32 %v3041_v33, %v2692_v40  ;;  %16422 = vst [vmem:[#allocation114_spill] sm:$0xff] %v11926_v0  ;;  %vm15513_vm6 = vcmp.ge.s32.totalorder %v11926_v0, 1  ;;  %v16429_v40 = vld [vmem:[#allocation101_spill] sm:$0xff]  ;;  %vm686_vm8 = vcmp.lt.s32.totalorder %v11926_v0, 15 }
 0x42b   : > { %v3841_v47 = vpop.permute.xlu1 %3840  ;;  %v3555_v49 = vadd.f32 %v3487_v3, %v3107_v16  ;;  %v16426_v3 = vrot.slane %v16425_v48, 1  ;;  %v16430_v42 = vrot.slane %v16429_v40, 7 }
 0x42c   : > { %v3556_v44 = vadd.f32 %v3489_v11, %v3108_v61  ;;  %v16424_v11 = vrot.slane %v16423_v25, 1  ;;  %v16432_v61 = vrot.slane %v16431_v55, 7  ;;  %v16438_v55 = vld [vmem:[#allocation18_spill] sm:$0xff] }
 0x42d   : > { %v3839_v58 = vpop.permute.xlu0 %3838 }
 0x42e   : > { %v3908_v43 = vadd.f32 %v3841_v47, %v3556_v44  ;;  %v3907_v4 = vadd.f32 %v3839_v58, %v3555_v49  ;;  %v2853_v7 = vsel %vm1959_vm4, %v16426_v3, %v16424_v11  ;;  %v1260_v58 = vsel %vm15513_vm6, %v16427_v50, 0.0 }
 0x42f   : > { %v11913_v5 = vpop.permute.xlu1 %2628  ;;  %v2921_v59 = vsel %vm746_vm2, %v2853_v7, 0.0  ;;  %v11960_v44 = vand.u32 15, %v558_v41  ;;  %v1093_v49 = vadd.f32 %v16265_v24, %v16400_v17 }
 0x431   : > { %v2569_v56 = vpop.permute.xlu0 %2568  ;;  %16434 = vst [vmem:[#allocation89_spill] sm:$0xff] %v11960_v44  ;;  %vm750_vm3 = vcmp.lt.s32.totalorder %v11960_v44, 15  ;;  %v16495_v44 = vld [vmem:[#allocation107_spill] sm:$0xff] }
 0x432   : > { %vm1997_vm15 = vmand %vm15513_vm6, %vm750_vm3 }
 0x433   : > { %v4189_v19 = vpop.permute.xlu1 %4188  ;;  %vm3981_vm2 = vmand %vm686_vm8, %vm750_vm3 }
 0x434   : > { %v11919_v57 = vadd.f32 %v4189_v19, %v3906_v20  ;;  %v3268_v20 = vsel %vm16433_vm13, %v16432_v61, %v16430_v42  ;;  %v1415_v19 = vadd.f32 %v11773_v8, %v1062_v10  ;;  %v1092_v8 = vadd.f32 %v16265_v24, %v16402_v63 }
 0x435   : > { %v2631_v9 = vpop.permute.xlu0 %2630  ;;  %v4073_v61 = vsel %vm3977_vm7, %v16438_v55, 0.0  ;;  %v16449_v55 = vld [vmem:[#allocation134_spill] sm:$0xff] }
 0x436   : > { %4348 = vrot.lane.b32.xlu0 %v11919_v57, %s15764_s16 }
 0x437   : > { %v4193_v39 = vpop.permute.xlu1 %4192 }
 0x438   : > { %v11924_v53 = vadd.f32 %v4193_v39, %v3908_v43  ;;  %v1799_v43 = vadd.f32 %v11829_v30, %v1415_v19  ;;  %v1445_v30 = vadd.f32 %v11803_v28, %v1092_v8  ;;  %v16440_v8 = vld [vmem:[#allocation25_spill] sm:$0xff] }
 0x439   : > { %v4191_v33 = vpop.permute.xlu0 %4190 }
 0x43a   : > { %16421 = vst [vmem:[#allocation117_spill] sm:$0xff] %v11924_v53  ;;  %v11928_v21 = vadd.f32 %v4191_v33, %v3907_v4  ;;  %4352 = vrot.lane.b32.xlu0 %v11924_v53, %s15764_s16  ;;  %v3369_v4 = vsel %vm682_vm1, %v3268_v20, 0.0  ;;  %v1446_v33 = vadd.f32 %v11794_v37, %v1093_v49  ;;  %v2248_v25 = vadd.f32 %v11894_v1, %v1799_v43 }
 0x43b   : > { %v3045_v47 = vpop.permute.xlu1 %3044  ;;  %v1829_v37 = vadd.f32 %v11848_v6, %v1445_v30 }
 0x43c   : > { %4350 = vrot.lane.b32.xlu1 %v11928_v21, %s15764_s16  ;;  %v2664_v48 = vadd.f32 %v2569_v56, %v2248_v25 }
 0x43d   : > { %v2985_v36 = vpop.permute.xlu0 %2984  ;;  %v2278_v28 = vadd.f32 %v11874_v32, %v1829_v37 }
 0x43e   : > { %2986 = vrot.lane.b32.xlu0 %v2921_v59, %s15764_s16  ;;  %v3080_v1 = vadd.f32 %v2985_v36, %v2664_v48  ;;  %v16435_v59 = vld [vmem:[#allocation106_spill] sm:$0xff]  ;;  %v16436_v36 = vld [vmem:[#allocation116_spill] sm:$0xff] }
 0x43f   : > { %v3433_v26 = vpop.permute.xlu1 %3432  ;;  %v2093_v50 = vsel %vm1997_vm15, %v16435_v59, 0.0 }
 0x440   : > { %1329 = vrot.lane.b32.xlu1 %v1260_v58, %s15764_s16  ;;  %v2694_v58 = vadd.f32 %v11913_v5, %v2278_v28  ;;  %v3528_v15 = vadd.f32 %v3433_v26, %v3080_v1  ;;  %v11998_v5 = vadd.s32 72, %v16397_v31  ;;  %v16442_v1 = vld [vmem:[#allocation121_spill] sm:$0xff] }
 0x441   : > { %v3047_v52 = vpop.permute.xlu0 %3046 }
 0x442   : > { %v3110_v42 = vadd.f32 %v3045_v47, %v2694_v58  ;;  %16437 = vst [vmem:[#allocation131_spill] sm:$0xff] %v11998_v5  ;;  %v12007_v43 = vshra.s32 %v11998_v5, 4  ;;  %v15447_v48 = vand.u32 15, %v11998_v5 }
 0x443   : > { %v3495_v22 = vpop.permute.xlu1 %3494 }
 0x444   : > { %3622 = vrot.lane.b32.xlu1 %v16400_v17, %s8153_s26  ;;  %v1830_v17 = vadd.f32 %v11841_v34, %v1446_v33  ;;  %16439 = vst [vmem:[#allocation38_spill] sm:$0xff] %v12007_v43  ;;  %vm658_vm14 = vcmp.ge.s32.totalorder %v12007_v43, 1  ;;  %vm12055_vm12 = vcmp.lt.s32.totalorder %v15447_v48, 15  ;;  %vm690_vm11 = vcmp.lt.s32.totalorder %v12007_v43, 15  ;;  %v16498_v43 = vld [vmem:[#allocation225_spill] sm:$0xff]  ;;  %s15559_s26 = smov 104  }
 0x445   : > { %v3493_v16 = vpop.permute.xlu0 %3492  ;;  %v1264_v25 = vsel %vm658_vm14, %v16440_v8, 0.0  ;;  %vm2001_vm10 = vmand %vm658_vm14, %vm12055_vm12 }
 0x446   : > { %v2279_v63 = vadd.f32 %v11902_v35, %v1830_v17  ;;  %v3558_v26 = vadd.f32 %v3493_v16, %v3110_v42  ;;  %v16446_v42 = vld [vmem:[#allocation125_spill] sm:$0xff] }
 0x447   : > { %v3785_v39 = vpop.permute.xlu1 %3784 }
 0x448   : > { %3434 = vrot.lane.b32.xlu1 %v3369_v4, %s15764_s16  ;;  %v2695_v34 = vadd.f32 %v2631_v9, %v2279_v63  ;;  %v3880_v35 = vadd.f32 %v3785_v39, %v3528_v15 }
 0x449   : > { %v1486_v41 = vpop.permute.xlu0 %1485 }
 0x44a   : > { %v1644_v11 = vsel %vm15513_vm6, %v1486_v41, 0.0  ;;  %v3111_v10 = vadd.f32 %v3047_v52, %v2695_v34  ;;  %v16441_v41 = vld [vmem:[#allocation118_spill] sm:$0xff] }
 0x44b   : > { %1713 = vrot.lane.b32.xlu0 %v1644_v11, %s15764_s16  ;;  %v3847_v3 = vpop.permute.xlu1 %3846  ;;  %v2925_v11 = vsel %vm750_vm3, %v16441_v41, 0.0  ;;  %vm3985_vm3 = vmand %vm690_vm11, %vm12055_vm12 }
 0x44c   : > { %v3559_v9 = vadd.f32 %v3495_v22, %v3111_v10  ;;  %v12062_v10 = vadd.s32 104, %v16397_v31 }
 0x44d   : > { %v3845_v7 = vpop.permute.xlu0 %3844 }
 0x44e   : > { %v3911_v20 = vadd.f32 %v3847_v3, %v3559_v9  ;;  %v3910_v19 = vadd.f32 %v3845_v7, %v3558_v26  ;;  %v3373_v7 = vsel %vm686_vm8, %v16442_v1, 0.0  ;;  %16445 = vst [vmem:[#allocation115_spill] sm:$0xff] %v12062_v10  ;;  %v16448_v26 = vld [vmem:[#allocation31_spill] sm:$0xff] }
 0x44f   : > { %2162 = vrot.lane.b32.xlu0 %v2093_v50, %s15764_s16  ;;  %v4137_v56 = vpop.permute.xlu1 %4136 }
 0x450   : > { %v12000_v52 = vadd.f32 %v4137_v56, %v3880_v35  ;;  %v2097_v35 = vsel %vm2001_vm10, %v16446_v42, 0.0  ;;  %v570_v42 = vadd.s32 136, %v16397_v31 }
 0x451   : > { %v3567_v40 = vpop.permute.xlu0 %3566 }
 0x452   : > { %v3721_v6 = vsel %vm682_vm1, %v3567_v40, 0.0 }
 0x453   : > { %3786 = vrot.lane.b32.xlu1 %v3721_v6, %s15764_s16  ;;  %2578 = vrot.lane.b32.xlu0 %v16436_v36, %s15764_s16  ;;  %v4199_v32 = vpop.permute.xlu1 %4198  ;;  %v12072_v36 = vshra.s32 %v12062_v10, 4 }
 0x454   : > { %v12009_v39 = vadd.f32 %v4199_v32, %v3911_v20 }
 0x455   : > { %v4197_v47 = vpop.permute.xlu0 %4196  ;;  %16447 = vst [vmem:[#allocation140_spill] sm:$0xff] %v12072_v36  ;;  %vm15483_vm9 = vcmp.ge.s32.totalorder %v12072_v36, 1  ;;  %vm694_vm7 = vcmp.lt.s32.totalorder %v12072_v36, 15 }
 0x456   : > { %v12011_v22 = vadd.f32 %v4197_v47, %v3910_v19  ;;  %v4077_v47 = vsel %vm3981_vm2, %v16448_v26, 0.0  ;;  %v16450_v19 = vld [vmem:[#allocation138_spill] sm:$0xff] }
 0x457   : > { %4138 = vrot.lane.b32.xlu1 %v4073_v61, %s15764_s16  ;;  %4296 = vrot.lane.b32.xlu0 %v12000_v52, %s15764_s16  ;;  %v4303_v49 = vpop.permute.xlu1 %4302 }
 0x458   : > { %v4395_v50 = vrot.slane %v4303_v49, 1  ;;  %v2929_v49 = vsel %vm12055_vm12, %v16450_v19, 0.0  ;;  %v634_v19 = vshra.s32 %v570_v42, 4 }
 0x459   : > { %v12013_v16 = vpop.permute.xlu0 %4300 }
 0x45a   : > { %v15455_v3 = vrot.slane %v12013_v16, 1  ;;  %vm12149_vm15 = vcmp.ge.s32.totalorder %v634_v19, 1 }
 0x45b   : > { %4356 = vrot.lane.b32.xlu1 %v12011_v22, %s15764_s16  ;;  %4358 = vrot.lane.b32.xlu0 %v12009_v39, %s15764_s16  ;;  %v1494_v4 = vpop.permute.xlu1 %1493 }
 0x45c   : > { %v1648_v37 = vsel %vm658_vm14, %v1494_v4, 0.0  ;;  %v4452_v56 = vsel %vm1959_vm4, %v15455_v3, %v4395_v50  ;;  %v16451_v4 = vld [vmem:[#allocation37_spill] sm:$0xff] }
 0x45d   : > { %v12020_v33 = vpop.permute.xlu0 %4304  ;;  %v1268_v8 = vsel %vm15483_vm9, %v16451_v4, 0.0 }
 0x45e   : > { %v15452_v63 = vrot.slane %v12020_v33, 1 }
 0x45f   : > { %1337 = vrot.lane.b32.xlu1 %v1264_v25, %s15764_s16  ;;  %2994 = vrot.lane.b32.xlu0 %v2925_v11, %s15764_s16  ;;  %v12030_v30 = vpop.permute.xlu1 %4308 }
 0x460   : > { %v4451_v34 = vsel %vm1959_vm4, %v4395_v50, %v15452_v63  ;;  %v15451_v50 = vrot.slane %v12030_v30, 1 }
 0x461   : > { %v3575_v17 = vpop.permute.xlu0 %3574 }
 0x462   : > { %v3725_v6 = vsel %vm686_vm8, %v3575_v17, 0.0 }
 0x463   : > { %3442 = vrot.lane.b32.xlu0 %v3373_v7, %s15764_s16  ;;  %1721 = vrot.lane.b32.xlu1 %v1648_v37, %s15764_s16  ;;  %v12043_v59 = vpop.permute.xlu1 %4312  ;;  %v16452_v37 = vld [vmem:[#allocation143_spill] sm:$0xff]  ;;  %v15446_v7 = vand.u32 15, %v12062_v10 }
 0x464   : > { %v3377_v1 = vsel %vm690_vm11, %v16452_v37, 0.0 }
 0x465   : > { %v4311_v28 = vpop.permute.xlu0 %4310  ;;  %vm12124_vm13 = vcmp.lt.s32.totalorder %v15446_v7, 15 }
 0x466   : > { %v4399_v11 = vrot.slane %v4311_v28, 1  ;;  %vm2005_vm1 = vmand %vm15483_vm9, %vm12124_vm13 }
 0x467   : > { %4494 = vrot.lane.b32.xlu0 %v4451_v34, %s15764_s16  ;;  %4492 = vrot.lane.b32.xlu1 %v4452_v56, %s15764_s16  ;;  %v3583_v15 = vpop.permute.xlu1 %3582  ;;  %v15450_v34 = vrot.slane %v12043_v59, 1  ;;  %vm3989_vm10 = vmand %vm694_vm7, %vm12124_vm13 }
 0x468   : > { %v4448_v28 = vsel %vm1959_vm4, %v15451_v50, %v4399_v11  ;;  %v3729_v26 = vsel %vm690_vm11, %v3583_v15, 0.0  ;;  %v16459_v15 = vld [vmem:[#allocation156_spill] sm:$0xff]  ;;  %vm12235_vm11 = vcmp.lt.s32.totalorder %v634_v19, 15 }
 0x469   : > { %v1502_v40 = vpop.permute.xlu0 %1501 }
 0x46a   : > { %v1652_v17 = vsel %vm15483_vm9, %v1502_v40, 0.0  ;;  %v4447_v40 = vsel %vm1959_vm4, %v4399_v11, %v15450_v34 }
 0x46b   : > { %3794 = vrot.lane.b32.xlu0 %v3725_v6, %s15764_s16  ;;  %2170 = vrot.lane.b32.xlu1 %v2097_v35, %s15764_s16  ;;  %v12076_v32 = vpop.permute.xlu1 %4318 }
 0x46d   : > { %v12082_v9 = vpop.permute.xlu0 %4316 }
 0x46f   : > { %4146 = vrot.lane.b32.xlu0 %v4077_v47, %s15764_s16  ;;  %2586 = vrot.lane.b32.xlu1 %v16449_v55, %s15764_s16  ;;  %v1510_v61 = vpop.permute.xlu1 %1509  ;;  %v16455_v47 = vld [vmem:[#allocation147_spill] sm:$0xff] }
 0x470   : > { %v2101_v55 = vsel %vm2005_vm1, %v16455_v47, 0.0  ;;  %v602_v47 = vand.u32 15, %v570_v42 }
 0x471   : > { %v12089_v20 = vpop.permute.xlu0 %4320 }
 0x472   : > { %vm12191_vm8 = vcmp.lt.s32.totalorder %v602_v47, 15  ;;  %v16465_v47 = vld [vmem:[#allocation170_spill] sm:$0xff] }
 0x473   : > { %3002 = vrot.lane.b32.xlu0 %v2929_v49, %s15764_s16  ;;  %1345 = vrot.lane.b32.xlu1 %v1268_v8, %s15764_s16  ;;  %v12100_v25 = vpop.permute.xlu1 %4324  ;;  %v16456_v8 = vld [vmem:[#allocation42_spill] sm:$0xff]  ;;  %vm2009_vm12 = vmand %vm12149_vm15, %vm12191_vm8 }
 0x474   : > { %v4081_v11 = vsel %vm3985_vm3, %v16456_v8, 0.0  ;;  %v1656_v8 = vsel %vm12149_vm15, %v1510_v61, 0.0  ;;  %v15454_v19 = vrot.slane %v12100_v25, 1  ;;  %vm3993_vm3 = vmand %vm12235_vm11, %vm12191_vm8 }
 0x475   : > { %v3591_v41 = vpop.permute.xlu0 %3590 }
 0x477   : > { %3450 = vrot.lane.b32.xlu0 %v3377_v1, %s15764_s16  ;;  %1729 = vrot.lane.b32.xlu1 %v1652_v17, %s15764_s16  ;;  %v12129_v35 = vpop.permute.xlu1 %4328  ;;  %v16460_v1 = vld [vmem:[#allocation49_spill] sm:$0xff]  ;;  %v16466_v17 = vld [vmem:[#allocation54_spill] sm:$0xff] }
 0x478   : > { %v1272_v58 = vsel %vm12149_vm15, %v16460_v1, 0.0 }
 0x479   : > { %v12112_v56 = vpop.permute.xlu0 %4326 }
 0x47b   : > { %4500 = vrot.lane.b32.xlu1 %v4448_v28, %s15764_s16  ;;  %4502 = vrot.lane.b32.xlu0 %v4447_v40, %s15764_s16  ;;  %v12146_v4 = vpop.permute.xlu1 %3598  ;;  %v16461_v28 = vld [vmem:[#allocation160_spill] sm:$0xff] }
 0x47c   : > { %v2933_v40 = vsel %vm12124_vm13, %v16461_v28, 0.0 }
 0x47d   : > { %v1518_v49 = vpop.permute.xlu0 %1517 }
 0x47f   : > { %2178 = vrot.lane.b32.xlu1 %v2101_v55, %s15764_s16  ;;  %3802 = vrot.lane.b32.xlu0 %v3729_v26, %s15764_s16  ;;  %v12164_v26 = vpop.permute.xlu1 %4334  ;;  %v15449_v55 = vrot.slane %v12082_v9, 1 }
 0x481   : > { %v12156_v37 = vpop.permute.xlu0 %4332 }
 0x482   : > { %v15461_v10 = vrot.slane %v12156_v37, 1 }
 0x483   : > { %2594 = vrot.lane.b32.xlu1 %v16459_v15, %s15764_s16  ;;  %4154 = vrot.lane.b32.xlu0 %v4081_v11, %s15764_s16  ;;  %v15448_v11 = vrot.slane %v12089_v20, 1  ;;  %v16462_v15 = vld [vmem:[#allocation165_spill] sm:$0xff]  ;;  %v12181_v42 = vpop.permute.xlu1 %1525 }
 0x484   : > { %v3381_v1 = vsel %vm694_vm7, %v16462_v15, 0.0  ;;  %v16482_v15 = vld [vmem:[#allocation84_spill] sm:$0xff] }
 0x485   : > { %v12176_v28 = vpop.permute.xlu0 %4336 }
 0x486   : > { %v15460_v5 = vrot.slane %v12176_v28, 1 }
 0x487   : > { %1353 = vrot.lane.b32.xlu1 %v1272_v58, %s15764_s16  ;;  %3010 = vrot.lane.b32.xlu0 %v2933_v40, %s15764_s16  ;;  %v4403_v58 = vrot.slane %v12076_v32, 1  ;;  %v12207_v48 = vpop.permute.xlu1 %4340 }
 0x489   : > { %v4443_v61 = vsel %vm1959_vm4, %v4403_v58, %v15448_v11  ;;  %v4444_v40 = vsel %vm1959_vm4, %v15449_v55, %v4403_v58  ;;  %v12202_v32 = vpop.permute.xlu0 %3606  ;;  %v2105_v58 = vsel %vm2009_vm12, %v16465_v47, 0.0  ;;  %v16469_v47 = vld [vmem:[#allocation179_spill] sm:$0xff]  ;;  %v16471_v11 = vld [vmem:[#allocation61_spill] sm:$0xff] }
 0x48b   : > { %3458 = vrot.lane.b32.xlu0 %v3381_v1, %s15764_s16  ;;  %1737 = vrot.lane.b32.xlu1 %v1656_v8, %s15764_s16  ;;  %v574_v8 = vadd.s32 168, %v16397_v31  ;;  %v3733_v1 = vsel %vm694_vm7, %v3591_v41, 0.0 }
 0x48d   : > { %v638_v7 = vshra.s32 %v574_v8, 4  ;;  %v12220_v41 = vpop.permute.xlu0 %4342 }
 0x48e   : > { %v4415_v36 = vrot.slane %v12220_v41, 1 }
 0x48f   : > { %4510 = vrot.lane.b32.xlu0 %v4443_v61, %s15764_s16  ;;  %4508 = vrot.lane.b32.xlu1 %v4444_v40, %s15764_s16  ;;  %v4085_v61 = vsel %vm3989_vm10, %v16466_v17, 0.0  ;;  %vm12216_vm2 = vcmp.ge.s32.totalorder %v638_v7, 1  ;;  %vm12310_vm7 = vcmp.lt.s32.totalorder %v638_v7, 15  ;;  %v4411_v7 = vrot.slane %v12164_v26, 1 }
 0x490   : > { %v1276_v17 = vsel %vm12216_vm2, %v16471_v11, 0.0  ;;  %v1660_v34 = vsel %vm12216_vm2, %v1518_v49, 0.0  ;;  %v606_v11 = vand.u32 15, %v574_v8 }
 0x492   : > { %vm12261_vm13 = vcmp.lt.s32.totalorder %v606_v11, 15 }
 0x493   : > { %3810 = vrot.lane.b32.xlu0 %v3733_v1, %s15764_s16  ;;  %2186 = vrot.lane.b32.xlu1 %v2105_v58, %s15764_s16  ;;  %v12225_v1 = vpop.permute.xlu1 %4344  ;;  %v16470_v58 = vld [vmem:[#allocation184_spill] sm:$0xff]  ;;  %vm2013_vm1 = vmand %vm12216_vm2, %vm12261_vm13 }
 0x494   : > { %v2937_v6 = vsel %vm12191_vm8, %v16470_v58, 0.0  ;;  %v16474_v58 = vld [vmem:[#allocation190_spill] sm:$0xff]  ;;  %vm3997_vm10 = vmand %vm12310_vm7, %vm12261_vm13 }
 0x495   : > { %v3385_v50 = vsel %vm12235_vm11, %v16474_v58, 0.0  ;;  %v16477_v58 = vld [vmem:[#allocation194_spill] sm:$0xff] }
 0x496   : > { %v2109_v11 = vsel %vm2013_vm1, %v16477_v58, 0.0  ;;  %v16481_v58 = vld [vmem:[#allocation205_spill] sm:$0xff] }
 0x497   : > { %4162 = vrot.lane.b32.xlu0 %v4085_v61, %s15764_s16  ;;  %2602 = vrot.lane.b32.xlu1 %v16469_v47, %s15764_s16  ;;  %v12239_v61 = vpop.permute.xlu0 %1533  ;;  %v4407_v47 = vrot.slane %v12112_v56, 1  ;;  %v12247_v63 = vpop.permute.xlu1 %1321 }
 0x499   : > { %v4440_v56 = vsel %vm1959_vm4, %v15454_v19, %v4407_v47 }
 0x49b   : > { %3018 = vrot.lane.b32.xlu0 %v2937_v6, %s15764_s16  ;;  %1361 = vrot.lane.b32.xlu1 %v1276_v17, %s15764_s16  ;;  %v15453_v6 = vrot.slane %v12129_v35, 1  ;;  %v12274_v17 = vpop.permute.xlu1 %1705 }
 0x49d   : > { %v4439_v49 = vsel %vm1959_vm4, %v4407_v47, %v15453_v6  ;;  %v3737_v47 = vsel %vm12235_vm11, %v12146_v4, 0.0 }
 0x49f   : > { %3466 = vrot.lane.b32.xlu0 %v3385_v50, %s15764_s16  ;;  %1745 = vrot.lane.b32.xlu1 %v1660_v34, %s15764_s16  ;;  %v578_v50 = vadd.s32 200, %v16397_v31  ;;  %v12266_v34 = vpop.permute.xlu0 %3614  ;;  %v12293_v4 = vpop.permute.xlu1 %2570 }
 0x4a1   : > { %v642_v6 = vshra.s32 %v578_v50, 4 }
 0x4a3   : > { %4516 = vrot.lane.b32.xlu1 %v4440_v56, %s15764_s16  ;;  %4518 = vrot.lane.b32.xlu0 %v4439_v49, %s15764_s16  ;;  %v12286_v40 = vpop.permute.xlu0 %2154  ;;  %v16478_v56 = vld [vmem:[#allocation68_spill] sm:$0xff]  ;;  %vm12289_vm15 = vcmp.ge.s32.totalorder %v642_v6, 1  ;;  %vm12384_vm11 = vcmp.lt.s32.totalorder %v642_v6, 15  ;;  %v15473_v6 = vrot.slane %v12207_v48, 1 }
 0x4a4   : > { %v4089_v49 = vsel %vm3993_vm3, %v16478_v56, 0.0  ;;  %v1280_v55 = vsel %vm12289_vm15, %v16482_v15, 0.0  ;;  %v1664_v15 = vsel %vm12289_vm15, %v12181_v42, 0.0  ;;  %v4435_v42 = vsel %vm1959_vm4, %v4411_v7, %v15460_v5 }
 0x4a7   : > { %2194 = vrot.lane.b32.xlu1 %v2109_v11, %s15764_s16  ;;  %3818 = vrot.lane.b32.xlu0 %v3737_v47, %s15764_s16  ;;  %v16483_v11 = vld [vmem:[#allocation209_spill] sm:$0xff] }
 0x4a8   : > { %v12298_v47 = vpop.permute.xlu0 %4348  ;;  %v2941_v56 = vsel %vm12261_vm13, %v16483_v11, 0.0  ;;  %v16486_v11 = vld [vmem:[#allocation217_spill] sm:$0xff] }
 0x4a9   : > { %v3389_v62 = vsel %vm12310_vm7, %v16486_v11, 0.0 }
 0x4ab   : > { %2610 = vrot.lane.b32.xlu1 %v16481_v58, %s15764_s16  ;;  %4170 = vrot.lane.b32.xlu0 %v4089_v49, %s15764_s16  ;;  %v610_v49 = vand.u32 15, %v578_v50  ;;  %v16494_v58 = vld [vmem:[#allocation222_spill] sm:$0xff] }
 0x4ad   : > { %vm12337_vm8 = vcmp.lt.s32.totalorder %v610_v49, 15  ;;  %v3741_v49 = vsel %vm12310_vm7, %v12202_v32, 0.0 }
 0x4ae   : > { %v12306_v3 = vpop.permute.xlu1 %4350  ;;  %vm2017_vm12 = vmand %vm12289_vm15, %vm12337_vm8 }
 0x4af   : > { %1369 = vrot.lane.b32.xlu1 %v1280_v55, %s15764_s16  ;;  %3026 = vrot.lane.b32.xlu0 %v2941_v56, %s15764_s16  ;;  %v12322_v55 = vpop.permute.xlu0 %4352  ;;  %v4436_v56 = vsel %vm1959_vm4, %v15461_v10, %v4411_v7  ;;  %vm4001_vm3 = vmand %vm12384_vm11, %vm12337_vm8 }
 0x4b2   : > { %v12327_v50 = vpop.permute.xlu1 %1329 }
 0x4b3   : > { %3474 = vrot.lane.b32.xlu0 %v3389_v62, %s15764_s16  ;;  %1753 = vrot.lane.b32.xlu1 %v1664_v15, %s15764_s16  ;;  %v582_v62 = vadd.s32 232, %v16397_v31  ;;  %v12348_v26 = vpop.permute.xlu0 %2986  ;;  %v16489_v15 = vld [vmem:[#allocation218_spill] sm:$0xff] }
 0x4b4   : > { %v2113_v7 = vsel %vm2017_vm12, %v16489_v15, 0.0 }
 0x4b5   : > { %v646_v19 = vshra.s32 %v582_v62, 4 }
 0x4b6   : > { %v12354_v5 = vpop.permute.xlu1 %3622 }
 0x4b7   : > { %4526 = vrot.lane.b32.xlu0 %v4435_v42, %s15764_s16  ;;  %4524 = vrot.lane.b32.xlu1 %v4436_v56, %s15764_s16  ;;  %v16490_v56 = vld [vmem:[#allocation85_spill] sm:$0xff]  ;;  %vm12365_vm2 = vcmp.ge.s32.totalorder %v646_v19, 1  ;;  %vm12446_vm15 = vcmp.lt.s32.totalorder %v646_v19, 15  ;;  %v4420_v19 = vrot.slane %v12322_v55, 1 }
 0x4b8   : > { %v4093_v10 = vsel %vm3997_vm10, %v16490_v56, 0.0  ;;  %v1284_v56 = vsel %vm12365_vm2, %v16495_v44, 0.0  ;;  %v3393_v44 = vsel %vm12384_vm11, %v16498_v43, 0.0 }
 0x4ba   : > { %v12372_v15 = vpop.permute.xlu1 %3434 }
 0x4bb   : > { %3826 = vrot.lane.b32.xlu0 %v3741_v49, %s15764_s16  ;;  %2202 = vrot.lane.b32.xlu1 %v2113_v7, %s15764_s16  ;;  %v16493_v49 = vld [vmem:[#allocation219_spill] sm:$0xff]  ;;  %v2945_v7 = vsel %vm12337_vm8, %v16494_v58, 0.0  ;;  %v1668_v58 = vsel %vm12365_vm2, %v12239_v61, 0.0  ;;  %v4432_v61 = vsel %vm1959_vm4, %v15473_v6, %v4415_v36  ;;  %v16502_v6 = vld [vmem:[#allocation8_spill] sm:$0xff] }
 0x4bd   : > { %v12362_v42 = vpop.permute.xlu0 %1713 }
 0x4bf   : > { %4178 = vrot.lane.b32.xlu0 %v4093_v10, %s15764_s16  ;;  %2618 = vrot.lane.b32.xlu1 %v16493_v49, %s15764_s16 }
 0x4c1   : > { %v12374_v8 = vpop.permute.xlu0 %2162 }
 0x4c3   : > { %3034 = vrot.lane.b32.xlu0 %v2945_v7, %s15764_s16  ;;  %1377 = vrot.lane.b32.xlu1 %v1284_v56, %s15764_s16  ;;  %v614_v7 = vand.u32 15, %v582_v62  ;;  %v15472_v56 = vrot.slane %v12225_v1, 1 }
 0x4c5   : > { %v12388_v49 = vpop.permute.xlu0 %2578  ;;  %v12390_v46 = vpop.permute.xlu1 %3786  ;;  %v4431_v43 = vsel %vm1959_vm4, %v4415_v36, %v15472_v56  ;;  %vm12413_vm13 = vcmp.lt.s32.totalorder %v614_v7, 15  ;;  %v3745_v36 = vsel %vm12384_vm11, %v12266_v34, 0.0  ;;  %v16501_v7 = vld [vmem:[#allocation29_spill] sm:$0xff]  ;;  %v4097_v34 = vsel %vm4001_vm3, %v16503_v13, 0.0 }
 0x4c6   : > { %vm2021_vm1 = vmand %vm12365_vm2, %vm12413_vm13 }
 0x4c7   : > { %3482 = vrot.lane.b32.xlu0 %v3393_v44, %s15764_s16  ;;  %1761 = vrot.lane.b32.xlu1 %v1668_v58, %s15764_s16  ;;  %v2117_v56 = vsel %vm2021_vm1, %v16501_v7, 0.0  ;;  %vm4005_vm7 = vmand %vm12446_vm15, %vm12413_vm13 }
 0x4c9   : > { %v12403_v0 = vpop.permute.xlu0 %4296  ;;  %v4139_v41 = vpop.permute.xlu1 %4138 }
 0x4cb   : > { %4532 = vrot.lane.b32.xlu1 %v4432_v61, %s15764_s16  ;;  %4534 = vrot.lane.b32.xlu0 %v4431_v43, %s15764_s16  ;;  %v1063_v61 = vadd.f32 %v16265_v24, %v16502_v6 }
 0x4cd   : > { %v12423_v58 = vpop.permute.xlu0 %4358  ;;  %v12425_v44 = vpop.permute.xlu1 %4356  ;;  %v1416_v32 = vadd.f32 %v12247_v63, %v1063_v61  ;;  %v4419_v63 = vrot.slane %v12306_v3, 1 }
 0x4cf   : > { %2210 = vrot.lane.b32.xlu1 %v2117_v56, %s15764_s16  ;;  %3834 = vrot.lane.b32.xlu0 %v3745_v36, %s15764_s16  ;;  %v1800_v7 = vadd.f32 %v12274_v17, %v1416_v32  ;;  %v16507_v36 = vld [vmem:[#allocation128_spill] sm:$0xff]  ;;  %v16508_v17 = vld [vmem:[#allocation137_spill] sm:$0xff] }
 0x4d0   : > { %v2949_v13 = vsel %vm12413_vm13, %v16507_v36, 0.0  ;;  %v16509_v32 = vld [vmem:[#allocation17_spill] sm:$0xff] }
 0x4d1   : > { %v2995_v43 = vpop.permute.xlu0 %2994  ;;  %v1338_v53 = vpop.permute.xlu1 %1337  ;;  %v2249_v6 = vadd.f32 %v12286_v40, %v1800_v7  ;;  %v15478_v40 = vrot.slane %v12298_v47, 1  ;;  %v1067_v3 = vadd.f32 %v16265_v24, %v16509_v32  ;;  %v16512_v32 = vld [vmem:[#allocation92_spill] sm:$0xff] }
 0x4d2   : > { %v16513_v38 = vrot.slane %v16512_v32, 1 }
 0x4d3   : > { %2626 = vrot.lane.b32.xlu1 %v16504_v45, %s15764_s16  ;;  %4186 = vrot.lane.b32.xlu0 %v4097_v34, %s15764_s16  ;;  %v3397_v45 = vsel %vm12446_vm15, %v16508_v17, 0.0  ;;  %v2665_v61 = vadd.f32 %v12293_v4, %v2249_v6  ;;  %v4428_v36 = vsel %vm1959_vm4, %v15478_v40, %v4419_v63  ;;  %v16510_v4 = vld [vmem:[#allocation6_spill] sm:$0xff] }
 0x4d4   : > { %v16511_v6 = vrot.slane %v16510_v4, 1 }
 0x4d5   : > { %v3443_v10 = vpop.permute.xlu0 %3442  ;;  %v1722_v56 = vpop.permute.xlu1 %1721  ;;  %v3081_v17 = vadd.f32 %v12348_v26, %v2665_v61 }
 0x4d6   : > { %v3975_v40 = vsel %vm1959_vm4, %v16513_v38, %v16511_v6  ;;  %v16515_v6 = vld [vmem:[#allocation28_spill] sm:$0xff] }
 0x4d7   : > { %3042 = vrot.lane.b32.xlu1 %v2949_v13, %s15764_s16  ;;  %3490 = vrot.lane.b32.xlu0 %v3397_v45, %s15764_s16  ;;  %v4427_v13 = vsel %vm1959_vm4, %v4419_v63, %v4420_v19  ;;  %v1420_v45 = vadd.f32 %v12327_v50, %v1067_v3  ;;  %v3529_v26 = vadd.f32 %v12372_v15, %v3081_v17  ;;  %v3749_v3 = vsel %vm12446_vm15, %v12354_v5, 0.0 }
 0x4d8   : > { %v4101_v38 = vsel %vm4005_vm7, %v3975_v40, 0.0  ;;  %v16514_v40 = vld [vmem:[#allocation111_spill] sm:$0xff]  ;;  %v1071_v32 = vadd.f32 %v16265_v24, %v16515_v6 }
 0x4d9   : > { %v4495_v34 = vpop.permute.xlu0 %4494  ;;  %v4493_v7 = vpop.permute.xlu1 %4492  ;;  %v1804_v50 = vadd.f32 %v12362_v42, %v1420_v45  ;;  %v3881_v4 = vadd.f32 %v12390_v46, %v3529_v26  ;;  %v4392_v46 = vrot.slane %v12403_v0, 1 }
 0x4db   : > { %4540 = vrot.lane.b32.xlu1 %v4428_v36, %s15764_s16  ;;  %4542 = vrot.lane.b32.xlu0 %v4427_v13, %s15764_s16  ;;  %v4423_v36 = vrot.slane %v12423_v58, 1  ;;  %v4422_v13 = vrot.slane %v12425_v44, 1  ;;  %v2253_v62 = vadd.f32 %v12374_v8, %v1804_v50  ;;  %v12498_v15 = vadd.f32 %v4139_v41, %v3881_v4 }
 0x4dc   : > { %v1424_v50 = vadd.f32 %v1338_v53, %v1071_v32 }
 0x4dd   : > { %v3795_v63 = vpop.permute.xlu0 %3794  ;;  %v2171_v61 = vpop.permute.xlu1 %2170  ;;  %v2669_v42 = vadd.f32 %v12388_v49, %v2253_v62  ;;  %v4424_v5 = vsel %vm1959_vm4, %v4422_v13, %v4423_v36  ;;  %v4586_v49 = vmax.f32 %v16514_v40, %v4493_v7 }
 0x4de   : > { %v1808_v4 = vadd.f32 %v1722_v56, %v1424_v50 }
 0x4df   : > { %4194 = vrot.lane.b32.xlu0 %v4101_v38, %s15764_s16  ;;  %3842 = vrot.lane.b32.xlu1 %v3749_v3, %s15764_s16  ;;  %v3085_v58 = vadd.f32 %v2995_v43, %v2669_v42  ;;  %v4455_v43 = vsel %vm1959_vm4, %v4423_v36, %v4392_v46  ;;  %v16516_v3 = vld [vmem:[#allocation103_spill] sm:$0xff] }
 0x4e0   : > { %v2257_v42 = vadd.f32 %v2171_v61, %v1808_v4 }
 0x4e1   : > { %v4147_v17 = vpop.permute.xlu0 %4146  ;;  %v2587_v11 = vpop.permute.xlu1 %2586  ;;  %v3533_v8 = vadd.f32 %v3443_v10, %v3085_v58  ;;  %v4587_v10 = vmax.f32 %v16516_v3, %v4495_v34 }
 0x4e3   : > { %4298 = vrot.lane.b32.xlu1 %v12498_v15, %s15764_s16  ;;  %4548 = vrot.lane.b32.xlu0 %v4424_v5, %s15764_s16  ;;  %v3885_v26 = vadd.f32 %v3795_v63, %v3533_v8  ;;  %v2673_v5 = vadd.f32 %v2587_v11, %v2257_v42  ;;  %v16517_v8 = vld [vmem:[#allocation133_spill] sm:$0xff]  ;;  %v16518_v11 = vld [vmem:[#allocation40_spill] sm:$0xff] }
 0x4e5   : > { %v3003_v41 = vpop.permute.xlu0 %3002  ;;  %v1346_v45 = vpop.permute.xlu1 %1345  ;;  %v12518_v38 = vadd.f32 %v4147_v17, %v3885_v26 }
 0x4e6   : > { %v3089_v40 = vadd.f32 %v3003_v41, %v2673_v5  ;;  %v1075_v41 = vadd.f32 %v16265_v24, %v16518_v11 }
 0x4e7   : > { %4550 = vrot.lane.b32.xlu1 %v4455_v43, %s15764_s16  ;;  %4632 = vrot.lane.b32.xlu0 %v4586_v49, %s15764_s16 }
 0x4e8   : > { %v1428_v26 = vadd.f32 %v1346_v45, %v1075_v41 }
 0x4e9   : > { %v3451_v7 = vpop.permute.xlu0 %3450  ;;  %v1730_v62 = vpop.permute.xlu1 %1729 }
 0x4ea   : > { %v3537_v17 = vadd.f32 %v3451_v7, %v3089_v40 }
 0x4eb   : > { %4634 = vrot.lane.b32.xlu1 %v4587_v10, %s15764_s16  ;;  %4306 = vrot.lane.b32.xlu0 %v12518_v38, %s15764_s16  ;;  %v1812_v10 = vadd.f32 %v1730_v62, %v1428_v26 }
 0x4ed   : > { %v4503_v36 = vpop.permute.xlu0 %4502  ;;  %v4501_v63 = vpop.permute.xlu1 %4500 }
 0x4ee   : > { %v4591_v58 = vmax.f32 %v11647_v23, %v4503_v36  ;;  %v4590_v53 = vmax.f32 %v16517_v8, %v4501_v63 }
 0x4f0   : > { %4638 = vrot.lane.b32.xlu0 %v4591_v58, %s15764_s16  ;;  %4636 = vrot.lane.b32.xlu1 %v4590_v53, %s15764_s16 }
 0x4f1   : > { %v3803_v34 = vpop.permute.xlu0 %3802  ;;  %v2179_v56 = vpop.permute.xlu1 %2178 }
 0x4f2   : > { %v3889_v49 = vadd.f32 %v3803_v34, %v3537_v17  ;;  %v2261_v4 = vadd.f32 %v2179_v56, %v1812_v10 }
 0x4f5   : > { %v4155_v6 = vpop.permute.xlu0 %4154  ;;  %v2595_v32 = vpop.permute.xlu1 %2594 }
 0x4f6   : > { %v12527_v43 = vadd.f32 %v4155_v6, %v3889_v49  ;;  %v2677_v36 = vadd.f32 %v2595_v32, %v2261_v4  ;;  %v16519_v49 = vld [vmem:[#allocation52_spill] sm:$0xff] }
 0x4f8   : > { %4314 = vrot.lane.b32.xlu1 %v12527_v43, %s15764_s16 }
 0x4f9   : > { %v3011_v61 = vpop.permute.xlu0 %3010  ;;  %v1354_v23 = vpop.permute.xlu1 %1353 }
 0x4fa   : > { %v3093_v58 = vadd.f32 %v3011_v61, %v2677_v36 }
 0x4fd   : > { %v3459_v50 = vpop.permute.xlu0 %3458  ;;  %v1738_v3 = vpop.permute.xlu1 %1737 }
 0x4fe   : > { %v3541_v40 = vadd.f32 %v3459_v50, %v3093_v58 }
 0x501   : > { %v4511_v42 = vpop.permute.xlu0 %4510  ;;  %v4509_v7 = vpop.permute.xlu1 %4508 }
 0x502   : > { %v4595_v63 = vmax.f32 %v11682_v27, %v4511_v42  ;;  %v4594_v5 = vmax.f32 %v11692_v12, %v4509_v7  ;;  %v1079_v12 = vadd.f32 %v16265_v24, %v16519_v49 }
 0x504   : > { %4642 = vrot.lane.b32.xlu1 %v4595_v63, %s15764_s16  ;;  %4640 = vrot.lane.b32.xlu0 %v4594_v5, %s15764_s16  ;;  %v1432_v6 = vadd.f32 %v1354_v23, %v1079_v12 }
 0x505   : > { %v3811_v8 = vpop.permute.xlu0 %3810  ;;  %v2187_v53 = vpop.permute.xlu1 %2186 }
 0x506   : > { %v3893_v45 = vadd.f32 %v3811_v8, %v3541_v40  ;;  %v1816_v11 = vadd.f32 %v1738_v3, %v1432_v6  ;;  %v16520_v40 = vld [vmem:[#allocation65_spill] sm:$0xff] }
 0x508   : > { %v2265_v41 = vadd.f32 %v2187_v53, %v1816_v11 }
 0x509   : > { %v4163_v34 = vpop.permute.xlu0 %4162  ;;  %v2603_v17 = vpop.permute.xlu1 %2602 }
 0x50a   : > { %v12537_v62 = vadd.f32 %v4163_v34, %v3893_v45  ;;  %v2681_v10 = vadd.f32 %v2603_v17, %v2265_v41 }
 0x50c   : > { %4322 = vrot.lane.b32.xlu0 %v12537_v62, %s15764_s16 }
 0x50d   : > { %v3019_v56 = vpop.permute.xlu0 %3018  ;;  %v1362_v27 = vpop.permute.xlu1 %1361 }
 0x50e   : > { %v3097_v7 = vadd.f32 %v3019_v56, %v2681_v10 }
 0x511   : > { %v3467_v32 = vpop.permute.xlu0 %3466  ;;  %v1746_v61 = vpop.permute.xlu1 %1745 }
 0x512   : > { %v3545_v5 = vadd.f32 %v3467_v32, %v3097_v7 }
 0x515   : > { %v4519_v26 = vpop.permute.xlu0 %4518  ;;  %v4517_v50 = vpop.permute.xlu1 %4516 }
 0x516   : > { %v4599_v4 = vmax.f32 %v11759_v51, %v4519_v26  ;;  %v4598_v42 = vmax.f32 %v11727_v2, %v4517_v50  ;;  %v1083_v2 = vadd.f32 %v16265_v24, %v16520_v40 }
 0x518   : > { %4646 = vrot.lane.b32.xlu0 %v4599_v4, %s15764_s16  ;;  %4644 = vrot.lane.b32.xlu1 %v4598_v42, %s15764_s16  ;;  %v1436_v45 = vadd.f32 %v1362_v27, %v1083_v2 }
 0x519   : > { %v3819_v36 = vpop.permute.xlu0 %3818  ;;  %v2195_v63 = vpop.permute.xlu1 %2194 }
 0x51a   : > { %v3897_v23 = vadd.f32 %v3819_v36, %v3545_v5  ;;  %v1820_v56 = vadd.f32 %v1746_v61, %v1436_v45 }
 0x51c   : > { %v2269_v49 = vadd.f32 %v2195_v63, %v1820_v56  ;;  %v16521_v63 = vld [vmem:[#allocation76_spill] sm:$0xff] }
 0x51d   : > { %v4171_v58 = vpop.permute.xlu0 %4170  ;;  %v2611_v8 = vpop.permute.xlu1 %2610 }
 0x51e   : > { %v12547_v3 = vadd.f32 %v4171_v58, %v3897_v23  ;;  %v2685_v32 = vadd.f32 %v2611_v8, %v2269_v49 }
 0x520   : > { %4330 = vrot.lane.b32.xlu1 %v12547_v3, %s15764_s16 }
 0x521   : > { %v3027_v53 = vpop.permute.xlu0 %3026  ;;  %v1370_v51 = vpop.permute.xlu1 %1369 }
 0x522   : > { %v3101_v26 = vadd.f32 %v3027_v53, %v2685_v32  ;;  %v16522_v32 = vld [vmem:[#allocation83_spill] sm:$0xff] }
 0x525   : > { %v3475_v34 = vpop.permute.xlu0 %3474  ;;  %v1754_v17 = vpop.permute.xlu1 %1753 }
 0x526   : > { %v3549_v4 = vadd.f32 %v3475_v34, %v3101_v26 }
 0x529   : > { %v4527_v12 = vpop.permute.xlu0 %4526  ;;  %v4525_v6 = vpop.permute.xlu1 %4524 }
 0x52a   : > { %v4603_v11 = vmax.f32 %v11790_v54, %v4527_v12  ;;  %v4602_v41 = vmax.f32 %v11800_v60, %v4525_v6  ;;  %v1087_v60 = vadd.f32 %v16265_v24, %v16521_v63 }
 0x52c   : > { %4650 = vrot.lane.b32.xlu1 %v4603_v11, %s15764_s16  ;;  %4648 = vrot.lane.b32.xlu0 %v4602_v41, %s15764_s16  ;;  %v1440_v5 = vadd.f32 %v1370_v51, %v1087_v60  ;;  %v1091_v51 = vadd.f32 %v16265_v24, %v16522_v32 }
 0x52d   : > { %v3827_v50 = vpop.permute.xlu0 %3826  ;;  %v2203_v10 = vpop.permute.xlu1 %2202 }
 0x52e   : > { %v3901_v27 = vadd.f32 %v3827_v50, %v3549_v4  ;;  %v1824_v8 = vadd.f32 %v1754_v17, %v1440_v5 }
 0x530   : > { %v2273_v53 = vadd.f32 %v2203_v10, %v1824_v8 }
 0x531   : > { %v4179_v42 = vpop.permute.xlu0 %4178  ;;  %v2619_v7 = vpop.permute.xlu1 %2618 }
 0x532   : > { %v12557_v61 = vadd.f32 %v4179_v42, %v3901_v27  ;;  %v2689_v45 = vadd.f32 %v2619_v7, %v2273_v53 }
 0x534   : > { %4338 = vrot.lane.b32.xlu0 %v12557_v61, %s15764_s16 }
 0x535   : > { %v3035_v36 = vpop.permute.xlu0 %3034  ;;  %v1378_v54 = vpop.permute.xlu1 %1377 }
 0x536   : > { %v3105_v49 = vadd.f32 %v3035_v36, %v2689_v45  ;;  %v1444_v17 = vadd.f32 %v1378_v54, %v1091_v51 }
 0x539   : > { %v3483_v23 = vpop.permute.xlu0 %3482  ;;  %v1762_v58 = vpop.permute.xlu1 %1761 }
 0x53a   : > { %v3553_v11 = vadd.f32 %v3483_v23, %v3105_v49  ;;  %v1828_v10 = vadd.f32 %v1762_v58, %v1444_v17 }
 0x53d   : > { %v4535_v40 = vpop.permute.xlu0 %4534  ;;  %v4533_v2 = vpop.permute.xlu1 %4532 }
 0x53e   : > { %v4607_v34 = vmax.f32 %v11846_v29, %v4535_v40  ;;  %v4606_v56 = vmax.f32 %v11825_v18, %v4533_v2 }
 0x540   : > { %4654 = vrot.lane.b32.xlu0 %v4607_v34, %s15764_s16  ;;  %4652 = vrot.lane.b32.xlu1 %v4606_v56, %s15764_s16 }
 0x541   : > { %v3835_v12 = vpop.permute.xlu0 %3834  ;;  %v2211_v6 = vpop.permute.xlu1 %2210 }
 0x542   : > { %v3905_v41 = vadd.f32 %v3835_v12, %v3553_v11  ;;  %v2277_v29 = vadd.f32 %v2211_v6, %v1828_v10 }
 0x545   : > { %v4187_v26 = vpop.permute.xlu0 %4186  ;;  %v2627_v50 = vpop.permute.xlu1 %2626 }
 0x546   : > { %v12569_v4 = vadd.f32 %v4187_v26, %v3905_v41  ;;  %v2693_v42 = vadd.f32 %v2627_v50, %v2277_v29  ;;  %v16526_v41 = vrot.slane %v12043_v59, 1 }
 0x548   : > { %4346 = vrot.lane.b32.xlu1 %v12569_v4, %s15764_s16 }
 0x549   : > { %v3491_v18 = vpop.permute.xlu0 %3490  ;;  %v3043_v27 = vpop.permute.xlu1 %3042 }
 0x54a   : > { %v3109_v7 = vadd.f32 %v3043_v27, %v2693_v42  ;;  %v16528_v27 = vrot.slane %v12089_v20, 1  ;;  %v16529_v42 = vrot.slane %v12100_v25, 1 }
 0x54c   : > { %v3557_v60 = vadd.f32 %v3491_v18, %v3109_v7 }
 0x54d   : > { %v4543_v36 = vpop.permute.xlu0 %4542  ;;  %v4541_v63 = vpop.permute.xlu1 %4540 }
 0x54e   : > { %v4611_v24 = vmax.f32 %v11928_v21, %v4543_v36  ;;  %v4610_v54 = vmax.f32 %v11919_v57, %v4541_v63  ;;  %v16523_v21 = vrot.slane %v12013_v16, 1 }
 0x550   : > { %4658 = vrot.lane.b32.xlu1 %v4611_v24, %s15764_s16  ;;  %4656 = vrot.lane.b32.xlu0 %v4610_v54, %s15764_s16  ;;  %v16530_v54 = vrot.slane %v12129_v35, 1 }
 0x551   : > { %v4195_v5 = vpop.permute.xlu0 %4194  ;;  %v3843_v23 = vpop.permute.xlu1 %3842 }
 0x552   : > { %v3909_v58 = vadd.f32 %v3843_v23, %v3557_v60  ;;  %v16531_v60 = vrot.slane %v12156_v37, 1 }
 0x554   : > { %v12577_v8 = vadd.f32 %v4195_v5, %v3909_v58 }
 0x555   : > { %v4549_v53 = vpop.permute.xlu0 %4548  ;;  %v4299_v40 = vpop.permute.xlu1 %4298 }
 0x556   : > { %v4393_v2 = vrot.slane %v4299_v40, 1  ;;  %4354 = vrot.lane.b32.xlu0 %v12577_v8, %s15764_s16  ;;  %v4614_v49 = vmax.f32 %v12011_v22, %v4549_v53  ;;  %v16532_v40 = vrot.slane %v12176_v28, 1 }
 0x558   : > { %v4454_v57 = vsel %vm1959_vm4, %v4392_v46, %v4393_v2  ;;  %v4453_v45 = vsel %vm1959_vm4, %v4393_v2, %v16523_v21  ;;  %v16524_v46 = vrot.slane %v12020_v33, 1  ;;  %v16533_v2 = vrot.slane %v12207_v48, 1 }
 0x559   : > { %v4633_v34 = vpop.permute.xlu0 %4632  ;;  %4488 = vrot.lane.b32.xlu1 %v4454_v57, %s15764_s16  ;;  %v4551_v56 = vpop.permute.xlu1 %4550 }
 0x55a   : > { %4490 = vrot.lane.b32.xlu0 %v4453_v45, %s15764_s16  ;;  %v4615_v12 = vmax.f32 %v12009_v39, %v4551_v56  ;;  %v16525_v39 = vrot.slane %v12030_v30, 1  ;;  %v16527_v30 = vrot.slane %v12082_v9, 1  ;;  %v16534_v56 = vrot.slane %v12225_v1, 1 }
 0x55d   : > { %v4307_v6 = vpop.permute.xlu0 %4306  ;;  %4660 = vrot.lane.b32.xlu1 %v4614_v49, %s15764_s16  ;;  %v4635_v16 = vpop.permute.xlu1 %4634  ;;  %v16535_v49 = vrot.slane %v12298_v47, 1 }
 0x55e   : > { %4662 = vrot.lane.b32.xlu0 %v4615_v12, %s15764_s16  ;;  %v4397_v0 = vrot.slane %v4307_v6, 1 }
 0x560   : > { %v4450_v32 = vsel %vm1959_vm4, %v16524_v46, %v4397_v0  ;;  %v4449_v22 = vsel %vm1959_vm4, %v4397_v0, %v16525_v39  ;;  %v8061_v46 = vld [vmem:[%s16536_s3 + $0x4] ss:$12 sps:$4 sm:$0xff]  }
 0x561   : > { %4664 = vrot.lane.b32.xlu1 %v4633_v34, %s15764_s16  ;;  %4902 = vmatprep.subr.bf16.mxu1 %v8061_v46 }
 0x562   : > { %4666 = vrot.lane.b32.xlu0 %v4635_v16, %s15764_s16  ;;  %v4637_v51 = vpop.permute.xlu1 %4636  ;;  %v4639_v11 = vpop.permute.xlu0 %4638 }
 0x565   : > { %4496 = vrot.lane.b32.xlu1 %v4450_v32, %s15764_s16 }
 0x566   : > { %4498 = vrot.lane.b32.xlu0 %v4449_v22, %s15764_s16  ;;  %v8063_v22 = vld [vmem:[%s16536_s3] ss:$12 sps:$4 sm:$0xff]  }
 0x567   : > { %4903 = vmatpush1.bf16.msra.mxu1 %v8063_v22 }
 0x569   : > { %4668 = vrot.lane.b32.xlu1 %v4637_v51, %s15764_s16 }
 0x56a   : > { %4670 = vrot.lane.b32.xlu0 %v4639_v11, %s15764_s16  ;;  %v4315_v17 = vpop.permute.xlu1 %4314 }
 0x56b   : > { %v4401_v33 = vrot.slane %v4315_v17, 1 }
 0x56d   : > { %v4446_v26 = vsel %vm1959_vm4, %v16526_v41, %v4401_v33  ;;  %v4445_v50 = vsel %vm1959_vm4, %v4401_v33, %v16527_v30 }
 0x56e   : > { %4504 = vrot.lane.b32.xlu1 %v4446_v26, %s15764_s16  ;;  %4506 = vrot.lane.b32.xlu0 %v4445_v50, %s15764_s16 }
 0x576   : > { %v4641_v10 = vpop.permute.xlu0 %4640  ;;  %v4643_v29 = vpop.permute.xlu1 %4642 }
 0x577   : > { %4672 = vrot.lane.b32.xlu1 %v4641_v10, %s15764_s16  ;;  %4674 = vrot.lane.b32.xlu0 %v4643_v29, %s15764_s16 }
 0x57e   : > { %v4323_v18 = vpop.permute.xlu0 %4322 }
 0x57f   : > { %v4405_v59 = vrot.slane %v4323_v18, 1 }
 0x581   : > { %v4442_v9 = vsel %vm1959_vm4, %v16528_v27, %v4405_v59  ;;  %v4441_v7 = vsel %vm1959_vm4, %v4405_v59, %v16529_v42  ;;  %v16537_v27 = vld [vmem:[#allocation230_spill] sm:$0xff] }
 0x582   : > { %4512 = vrot.lane.b32.xlu1 %v4442_v9, %s15764_s16  ;;  %4514 = vrot.lane.b32.xlu0 %v4441_v7, %s15764_s16 }
 0x58a   : > { %v4647_v36 = vpop.permute.xlu0 %4646  ;;  %v4645_v63 = vpop.permute.xlu1 %4644 }
 0x58b   : > { %4678 = vrot.lane.b32.xlu0 %v4647_v36, %s15764_s16  ;;  %4676 = vrot.lane.b32.xlu1 %v4645_v63, %s15764_s16 }
 0x592   : > { %v4331_v24 = vpop.permute.xlu1 %4330 }
 0x593   : > { %v4409_v20 = vrot.slane %v4331_v24, 1 }
 0x595   : > { %v4438_v25 = vsel %vm1959_vm4, %v16530_v54, %v4409_v20  ;;  %v4437_v5 = vsel %vm1959_vm4, %v4409_v20, %v16531_v60 }
 0x596   : > { %4520 = vrot.lane.b32.xlu1 %v4438_v25, %s15764_s16  ;;  %4522 = vrot.lane.b32.xlu0 %v4437_v5, %s15764_s16 }
 0x59e   : > { %v4649_v23 = vpop.permute.xlu0 %4648  ;;  %v4651_v58 = vpop.permute.xlu1 %4650 }
 0x59f   : > { %4680 = vrot.lane.b32.xlu1 %v4649_v23, %s15764_s16  ;;  %4682 = vrot.lane.b32.xlu0 %v4651_v58, %s15764_s16 }
 0x5a6   : > { %v4339_v53 = vpop.permute.xlu0 %4338 }
 0x5a7   : > { %v4413_v35 = vrot.slane %v4339_v53, 1 }
 0x5a9   : > { %v4434_v37 = vsel %vm1959_vm4, %v16532_v40, %v4413_v35  ;;  %v4433_v57 = vsel %vm1959_vm4, %v4413_v35, %v16533_v2 }
 0x5aa   : > { %4528 = vrot.lane.b32.xlu1 %v4434_v37, %s15764_s16  ;;  %4530 = vrot.lane.b32.xlu0 %v4433_v57, %s15764_s16 }
 0x5b2   : > { %v4655_v21 = vpop.permute.xlu0 %4654  ;;  %v4653_v45 = vpop.permute.xlu1 %4652 }
 0x5b3   : > { %4686 = vrot.lane.b32.xlu0 %v4655_v21, %s15764_s16  ;;  %4684 = vrot.lane.b32.xlu1 %v4653_v45, %s15764_s16 }
 0x5ba   : > { %v4347_v34 = vpop.permute.xlu1 %4346 }
 0x5bb   : > { %v4417_v28 = vrot.slane %v4347_v34, 1 }
 0x5bd   : > { %v4430_v48 = vsel %vm1959_vm4, %v16534_v56, %v4417_v28  ;;  %v4429_v12 = vsel %vm1959_vm4, %v4417_v28, %v16535_v49 }
 0x5be   : > { %4536 = vrot.lane.b32.xlu1 %v4430_v48, %s15764_s16  ;;  %4538 = vrot.lane.b32.xlu0 %v4429_v12, %s15764_s16 }
 0x5c2   : > { %v4657_v6 = vpop.permute.xlu0 %4656  ;;  %v4659_v0 = vpop.permute.xlu1 %4658 }
 0x5c3   : > { %4688 = vrot.lane.b32.xlu1 %v4657_v6, %s15764_s16  ;;  %4690 = vrot.lane.b32.xlu0 %v4659_v0, %s15764_s16 }
 0x5c8   : > { %v4355_v16 = vpop.permute.xlu0 %4354 }
 0x5c9   : > { %v4421_v1 = vrot.slane %v4355_v16, 1 }
 0x5cb   : > { %v4489_v47 = vpop.permute.xlu1 %4488  ;;  %v4426_v32 = vsel %vm1959_vm4, %v4420_v19, %v4421_v1  ;;  %v4425_v39 = vsel %vm1959_vm4, %v4421_v1, %v4422_v13 }
 0x5cc   : > { %v4491_v51 = vpop.permute.xlu0 %4490  ;;  %4544 = vrot.lane.b32.xlu1 %v4426_v32, %s15764_s16  ;;  %4546 = vrot.lane.b32.xlu0 %v4425_v39, %s15764_s16  ;;  %v4584_v44 = vmax.f32 %v12000_v52, %v4489_v47 }
 0x5cd   : > { %v4585_v19 = vmax.f32 %v12498_v15, %v4491_v51 }
 0x5cf   : > { %v4661_v55 = vpop.permute.xlu1 %4660 }
 0x5d0   : > { %v4663_v11 = vpop.permute.xlu0 %4662  ;;  %4692 = vrot.lane.b32.xlu1 %v4661_v55, %s15764_s16 }
 0x5d1   : > { %4694 = vrot.lane.b32.xlu0 %v4663_v11, %s15764_s16 }
 0x5d3   : > { %v4665_v13 = vpop.permute.xlu1 %4664 }
 0x5d4   : > { %v4712_v17 = vmax.f32 %v4584_v44, %v4665_v13  ;;  %v4667_v33 = vpop.permute.xlu0 %4666 }
 0x5d5   : > { %v4713_v41 = vmax.f32 %v4585_v19, %v4667_v33 }
 0x5d6   : > { %vm4728_vm4 = vcmp.gt.f32.partialorder %v4712_v17, 0.0  ;;  %v4744_v26 = vmul.f32 0.2, %v4712_v17 }
 0x5d7   : > { %vm4729_vm8 = vcmp.gt.f32.partialorder %v4713_v41, 0.0  ;;  %v4745_v30 = vmul.f32 0.2, %v4713_v41  ;;  %v4497_v50 = vpop.permute.xlu1 %4496 }
 0x5d8   : > { %v4760_v10 = vsel %vm4728_vm4, %v4712_v17, %v4744_v26  ;;  %v4499_v29 = vpop.permute.xlu0 %4498  ;;  %v4588_v9 = vmax.f32 %v16537_v27, %v4497_v50 }
 0x5d9   : > { %v4761_v18 = vsel %vm4729_vm8, %v4713_v41, %v4745_v30  ;;  %v4589_v42 = vmax.f32 %v12518_v38, %v4499_v29  ;;  %v16538_v38 = vld [vmem:[#allocation24_spill] sm:$0xff] }
 0x5da   : > { %v4829_v59 = vpack.c.bf16 %v4761_v18, %v4760_v10 }
 0x5db   : > { %v4669_v52 = vpop.permute.xlu1 %4668 }
 0x5dc   : > { %v4714_v7 = vmax.f32 %v4588_v9, %v4669_v52  ;;  %v4671_v15 = vpop.permute.xlu0 %4670  ;;  %4845 = vrot.lane.b32.xlu1 %v4829_v59, %s15764_s16 }
 0x5dd   : > { %v4715_v36 = vmax.f32 %v4589_v42, %v4671_v15 }
 0x5de   : > { %vm4730_vm12 = vcmp.gt.f32.partialorder %v4714_v7, 0.0  ;;  %v4746_v63 = vmul.f32 0.2, %v4714_v7 }
 0x5df   : > { %vm4731_vm10 = vcmp.gt.f32.partialorder %v4715_v36, 0.0  ;;  %v4747_v24 = vmul.f32 0.2, %v4715_v36 }
 0x5e0   : > { %v4762_v20 = vsel %vm4730_vm12, %v4714_v7, %v4746_v63  ;;  %v4507_v60 = vpop.permute.xlu0 %4506  ;;  %v4505_v5 = vpop.permute.xlu1 %4504 }
 0x5e1   : > { %v4763_v54 = vsel %vm4731_vm10, %v4715_v36, %v4747_v24  ;;  %v4593_v23 = vmax.f32 %v12527_v43, %v4507_v60  ;;  %v4592_v58 = vmax.f32 %v16538_v38, %v4505_v5 }
 0x5e2   : > { %v4830_v25 = vpack.c.bf16 %v4763_v54, %v4762_v20 }
 0x5e4   : > { %4847 = vrot.lane.b32.xlu0 %v4830_v25, %s15764_s16 }
 0x5e9   : > { %v4675_v53 = vpop.permute.xlu0 %4674  ;;  %v4673_v35 = vpop.permute.xlu1 %4672 }
 0x5ea   : > { %v4717_v40 = vmax.f32 %v4593_v23, %v4675_v53  ;;  %v4716_v37 = vmax.f32 %v4592_v58, %v4673_v35 }
 0x5ec   : > { %vm4733_vm2 = vcmp.gt.f32.partialorder %v4717_v40, 0.0  ;;  %v4749_v2 = vmul.f32 0.2, %v4717_v40  ;;  %vm4732_vm11 = vcmp.gt.f32.partialorder %v4716_v37, 0.0  ;;  %v4748_v57 = vmul.f32 0.2, %v4716_v37 }
 0x5ee   : > { %v4765_v21 = vsel %vm4733_vm2, %v4717_v40, %v4749_v2  ;;  %v4764_v45 = vsel %vm4732_vm11, %v4716_v37, %v4748_v57  ;;  %v16542_v57 = vld [vmem:[#allocation117_spill] sm:$0xff]  ;;  %vm4877_vm11 = vcmask 130048  }
 0x5ef   : > { %v4831_v34 = vpack.c.bf16 %v4765_v21, %v4764_v45 }
 0x5f1   : > { %4849 = vrot.lane.b32.xlu1 %v4831_v34, %s15764_s16 }
 0x5f4   : > { %v4515_v28 = vpop.permute.xlu0 %4514  ;;  %v4513_v56 = vpop.permute.xlu1 %4512 }
 0x5f5   : > { %v4597_v48 = vmax.f32 %v12537_v62, %v4515_v28  ;;  %v4596_v43 = vmax.f32 %v11713_v14, %v4513_v56  ;;  %v16539_v62 = vld [vmem:[#allocation119_spill] sm:$0xff] }
 0x5fd   : > { %v4679_v49 = vpop.permute.xlu0 %4678  ;;  %v4677_v12 = vpop.permute.xlu1 %4676 }
 0x5fe   : > { %v4719_v6 = vmax.f32 %v4597_v48, %v4679_v49  ;;  %v4718_v0 = vmax.f32 %v4596_v43, %v4677_v12 }
 0x600   : > { %vm4735_vm13 = vcmp.gt.f32.partialorder %v4719_v6, 0.0  ;;  %v4751_v16 = vmul.f32 0.2, %v4719_v6  ;;  %vm4734_vm1 = vcmp.gt.f32.partialorder %v4718_v0, 0.0  ;;  %v4750_v1 = vmul.f32 0.2, %v4718_v0 }
 0x602   : > { %v4767_v46 = vsel %vm4735_vm13, %v4719_v6, %v4751_v16  ;;  %v4766_v47 = vsel %vm4734_vm1, %v4718_v0, %v4750_v1  ;;  %v16543_v1 = vmov 0   ;;  %vm5150_vm13 = vcmp.lt.s32.totalorder %v16397_v31, 2 }
 0x603   : > { %v4832_v32 = vpack.c.bf16 %v4767_v46, %v4766_v47 }
 0x605   : > { %4851 = vrot.lane.b32.xlu0 %v4832_v32, %s15764_s16 }
 0x608   : > { %v4523_v39 = vpop.permute.xlu0 %4522  ;;  %v4521_v22 = vpop.permute.xlu1 %4520 }
 0x609   : > { %v4601_v51 = vmax.f32 %v12547_v3, %v4523_v39  ;;  %v4600_v55 = vmax.f32 %v16539_v62, %v4521_v22  ;;  %v16540_v3 = vld [vmem:[#allocation123_spill] sm:$0xff] }
 0x611   : > { %v4683_v14 = vpop.permute.xlu0 %4682  ;;  %v4681_v11 = vpop.permute.xlu1 %4680 }
 0x612   : > { %v4721_v44 = vmax.f32 %v4601_v51, %v4683_v14  ;;  %v4720_v19 = vmax.f32 %v4600_v55, %v4681_v11 }
 0x614   : > { %vm4737_vm3 = vcmp.gt.f32.partialorder %v4721_v44, 0.0  ;;  %v4753_v13 = vmul.f32 0.2, %v4721_v44  ;;  %vm4736_vm15 = vcmp.gt.f32.partialorder %v4720_v19, 0.0  ;;  %v4752_v17 = vmul.f32 0.2, %v4720_v19 }
 0x616   : > { %v4769_v33 = vsel %vm4737_vm3, %v4721_v44, %v4753_v13  ;;  %v4768_v41 = vsel %vm4736_vm15, %v4720_v19, %v4752_v17 }
 0x617   : > { %v4833_v26 = vpack.c.bf16 %v4769_v33, %v4768_v41 }
 0x619   : > { %4853 = vrot.lane.b32.xlu1 %v4833_v26, %s15764_s16 }
 0x61c   : > { %v4531_v30 = vpop.permute.xlu0 %4530  ;;  %v4529_v50 = vpop.permute.xlu1 %4528 }
 0x61d   : > { %v4605_v10 = vmax.f32 %v12557_v61, %v4531_v30  ;;  %v4604_v29 = vmax.f32 %v16540_v3, %v4529_v50  ;;  %v16541_v61 = vld [vmem:[#allocation120_spill] sm:$0xff] }
 0x61e   : > { %v12765_v30 = vld [vmem:[%s16545_s4] ss:$0 sm:$0xff] }
 0x625   : > { %v4687_v18 = vpop.permute.xlu0 %4686  ;;  %v4685_v59 = vpop.permute.xlu1 %4684 }
 0x626   : > { %v4723_v27 = vmax.f32 %v4605_v10, %v4687_v18  ;;  %v4722_v9 = vmax.f32 %v4604_v29, %v4685_v59  ;;  %v16546_v18 = vld [vmem:[#allocation11_spill] sm:$0xff] }
 0x627   : > { %vm16547_vm1 = vcmp.ge.s32.totalorder %v16546_v18, 1 }
 0x628   : > { %vm4739_vm7 = vcmp.gt.f32.partialorder %v4723_v27, 0.0  ;;  %v4755_v42 = vmul.f32 0.2, %v4723_v27  ;;  %vm4738_vm4 = vcmp.gt.f32.partialorder %v4722_v9, 0.0  ;;  %v4754_v52 = vmul.f32 0.2, %v4722_v9 }
 0x62a   : > { %v4771_v7 = vsel %vm4739_vm7, %v4723_v27, %v4755_v42  ;;  %v4770_v15 = vsel %vm4738_vm4, %v4722_v9, %v4754_v52  ;;  %v16548_v42 = vld [vmem:[#allocation21_spill] sm:$0xff] }
 0x62b   : > { %v4834_v36 = vpack.c.bf16 %v4771_v7, %v4770_v15  ;;  %vm4801_vm3 = vcmp.ge.s32.totalorder %v16548_v42, 2  ;;  %v16549_v7 = vld [vmem:[#allocation22_spill] sm:$0xff] }
 0x62c   : > { %vm16550_vm15 = vcmp.ge.s32.totalorder %v16549_v7, 1 }
 0x62d   : > { %4855 = vrot.lane.b32.xlu0 %v4834_v36, %s15764_s16  ;;  %vm5171_vm7 = vmand %vm16550_vm15, %vm4801_vm3 }
 0x630   : > { %v4539_v63 = vpop.permute.xlu0 %4538  ;;  %v4537_v24 = vpop.permute.xlu1 %4536 }
 0x631   : > { %v4609_v20 = vmax.f32 %v12569_v4, %v4539_v63  ;;  %v4608_v54 = vmax.f32 %v16541_v61, %v4537_v24  ;;  %v8064_v4 = vld [vmem:[%s16536_s3 + $0x8] ss:$12 sps:$4 sm:$0xff]  }
 0x632   : > { %7949 = vmatprep.subr.bf16.mxu1 %v8064_v4 }
 0x635   : > { %v4691_v25 = vpop.permute.xlu0 %4690  ;;  %v4689_v60 = vpop.permute.xlu1 %4688 }
 0x636   : > { %v4725_v5 = vmax.f32 %v4609_v20, %v4691_v25  ;;  %v4724_v23 = vmax.f32 %v4608_v54, %v4689_v60 }
 0x638   : > { %vm4741_vm8 = vcmp.gt.f32.partialorder %v4725_v5, 0.0  ;;  %v4757_v38 = vmul.f32 0.2, %v4725_v5  ;;  %vm4740_vm12 = vcmp.gt.f32.partialorder %v4724_v23, 0.0  ;;  %v4756_v58 = vmul.f32 0.2, %v4724_v23 }
 0x63a   : > { %v4773_v53 = vsel %vm4741_vm8, %v4725_v5, %v4757_v38  ;;  %v4772_v35 = vsel %vm4740_vm12, %v4724_v23, %v4756_v58  ;;  %v16551_v23 = vld [vmem:[#allocation114_spill] sm:$0xff] }
 0x63b   : > { %v4835_v40 = vpack.c.bf16 %v4773_v53, %v4772_v35  ;;  %v16552_v35 = vld [vmem:[#allocation213_spill] sm:$0xff] }
 0x63c   : > { %vm4803_vm4 = vcmp.ge.s32.totalorder %v16552_v35, 2 }
 0x63d   : > { %4857 = vrot.lane.b32.xlu1 %v4835_v40, %s15764_s16 }
 0x63e   : > { %v4547_v37 = vpop.permute.xlu0 %4546  ;;  %v4545_v2 = vpop.permute.xlu1 %4544 }
 0x63f   : > { %v4612_v21 = vmax.f32 %v16542_v57, %v4545_v2  ;;  %v4613_v45 = vmax.f32 %v12577_v8, %v4547_v37  ;;  %v16553_v37 = vld [vmem:[#allocation210_spill] sm:$0xff] }
 0x640   : > { %vm16554_vm8 = vcmp.ge.s32.totalorder %v16553_v37, 1 }
 0x641   : > { %vm5173_vm12 = vmand %vm16554_vm8, %vm4803_vm4 }
 0x642   : > { %v4693_v34 = vpop.permute.xlu1 %4692 }
 0x643   : > { %v4726_v28 = vmax.f32 %v4612_v21, %v4693_v34  ;;  %v4695_v56 = vpop.permute.xlu0 %4694 }
 0x644   : > { %v4727_v48 = vmax.f32 %v4613_v45, %v4695_v56 }
 0x645   : > { %vm4742_vm10 = vcmp.gt.f32.partialorder %v4726_v28, 0.0  ;;  %v4758_v43 = vmul.f32 0.2, %v4726_v28 }
 0x646   : > { %vm4743_vm2 = vcmp.gt.f32.partialorder %v4727_v48, 0.0  ;;  %v4759_v49 = vmul.f32 0.2, %v4727_v48 }
 0x647   : > { %v4774_v12 = vsel %vm4742_vm10, %v4726_v28, %v4758_v43 }
 0x648   : > { %v4775_v6 = vsel %vm4743_vm2, %v4727_v48, %v4759_v49  ;;  %v16555_v49 = vld [vmem:[#allocation214_spill] sm:$0xff] }
 0x649   : > { %v4836_v0 = vpack.c.bf16 %v4775_v6, %v4774_v12  ;;  %vm16556_vm10 = vcmp.ge.s32.totalorder %v16555_v49, 1 }
 0x64b   : > { %4859 = vrot.lane.b32.xlu0 %v4836_v0, %s15764_s16 }
 0x64e   : > { %v4846_v16 = vpop.permute.xlu1 %4845 }
 0x64f   : > { %7883 = vmatmul.mubr.msk.bf16.vlgmr.msra.gmra.mrb[0].mxu1 %vm4877_vm11, %v4846_v16 }
 0x650   : > { %4944 = vmatprep.mubr.bf16.mxu1 %v16543_v1  ;;  %7950 = vmatpush3.bf16.msra.mxu1 %v8064_v4 }
 0x656   : > { %v4848_v8 = vpop.permute.xlu0 %4847 }
 0x657   : > { %7884 = vmatmul.mubr.msk.bf16.gmra.mrb[4].mxu1 %vm4877_vm11, %v4848_v8 }
 0x658   : > { %4954 = vmatprep.mubr.bf16.mxu1 %v16543_v1 }
 0x663   : > { %v4850_v46 = vpop.permute.xlu1 %4849 }
 0x664   : > { %7885 = vmatmul.mubr.msk.bf16.gmra.mrb[8].mxu1 %vm4877_vm11, %v4850_v46 }
 0x665   : > { %4964 = vmatprep.mubr.bf16.mxu1 %v16543_v1 }
 0x677   : > { %v4852_v47 = vpop.permute.xlu0 %4851 }
 0x678   : > { %7886 = vmatmul.mubr.msk.bf16.gmra.mrb[12].mxu1 %vm4877_vm11, %v4852_v47 }
 0x679   : > { %4974 = vmatprep.mubr.bf16.mxu1 %v16543_v1 }
 0x68b   : > { %v4854_v32 = vpop.permute.xlu1 %4853 }
 0x68c   : > { %7887 = vmatmul.mubr.msk.bf16.gmra.mrb[16].mxu1 %vm4877_vm11, %v4854_v32 }
 0x68d   : > { %4984 = vmatprep.mubr.bf16.mxu1 %v16543_v1 }
 0x69f   : > { %v4856_v39 = vpop.permute.xlu0 %4855 }
 0x6a0   : > { %7888 = vmatmul.mubr.msk.bf16.gmra.mrb[20].mxu1 %vm4877_vm11, %v4856_v39 }
 0x6a1   : > { %4994 = vmatprep.mubr.bf16.mxu1 %v16543_v1 }
 0x6af   : > { %v4858_v22 = vpop.permute.xlu1 %4857 }
 0x6b0   : > { %7889 = vmatmul.mubr.msk.bf16.gmra.mrb[24].mxu1 %vm4877_vm11, %v4858_v22 }
 0x6b1   : > { %5004 = vmatprep.mubr.bf16.mxu1 %v16543_v1 }
 0x6bd   : > { %v4860_v51 = vpop.permute.xlu0 %4859 }
 0x6be   : > { %7890 = vmatmul.mubr.msk.bf16.gmra.mrb[28].mxu1 %vm4877_vm11, %v4860_v51 }
 0x6bf   : > { %7951 = vmatprep.mubr.msk.bf16.mxu1 %vm4877_vm11, %v4846_v16  ;;  %v16557_v16 = vld [vmem:[#allocation211_spill] sm:$0xff] }
 0x6c6   : > { %7952 = vmatmul.mubr.msk.bf16.vlgmr.msra.gmra.mrb[32].mxu1 %vm4877_vm11, %v4848_v8  ;;  %v16558_v8 = vand.u32 15, %v16557_v16 }
 0x6c7   : > { %7955 = vmatprep.mubr.msk.bf16.mxu1 %vm4877_vm11, %v4850_v46 }
 0x6c8   : > { %vm12841_vm2 = vcmp.ge.s32.totalorder %v16558_v8, 2 }
 0x6ce   : > { %7956 = vmatmul.mubr.msk.bf16.gmra.mrb[36].mxu1 %vm4877_vm11, %v4852_v47 }
 0x6cf   : > { %7959 = vmatprep.mubr.msk.bf16.mxu1 %vm4877_vm11, %v4854_v32  ;;  %v16561_v32 = vld [vmem:[#allocation216_spill] sm:$0xff] }
 0x6d6   : > { %7960 = vmatmul.mubr.msk.bf16.gmra.mrb[40].mxu1 %vm4877_vm11, %v4856_v39 }
 0x6d7   : > { %7963 = vmatprep.mubr.msk.bf16.mxu1 %vm4877_vm11, %v4858_v22 }
 0x6de   : > { %7964 = vmatmul.mubr.msk.bf16.gmra.mrb[44].mxu1 %vm4877_vm11, %v4860_v51  ;;  %vm16562_vm11 = vcmp.ge.s32.totalorder %v16561_v32, 1 }
 0x6df   : > { %6386 = vmatprep.mubr.bf16.mxu1 %v16543_v1 }
 0x722   : > { %v12738_v62 = vpop.f32.mrb[0].mxu1 }
 0x723   : > { %5504 = vrot.lane.b32.xlu0 %v12738_v62, %s15788_s23  ;;  %5343 = vrot.lane.b32.xlu1 %v12738_v62, %s15764_s16  ;;  %v12744_v55 = vpop.f32.mrb[1].mxu1  ;;  %v15485_v11 = vrot.slane %v12738_v62, 6 }
 0x724   : > { %v4940_v14 = vpop.f32.mrb[2].mxu1 }
 0x725   : > { %v5135_v44 = vrot.slane %v4940_v14, 6  ;;  %v12748_v19 = vpop.f32.mrb[3].mxu1 }
 0x727   : > { %5263 = vrot.lane.b32.xlu1 %v12738_v62, %s16544_s30  ;;  %5664 = vrot.lane.b32.xlu0 %v12744_v55, %s16544_s30  ;;  %v5165_v13 = vsel %vm5150_vm13, %v15485_v11, %v5135_v44 }
 0x728   : > { %v5218_v59 = vsel %vm16547_vm1, %v5165_v13, 0.0  ;;  %vm5175_vm1 = vmand %vm16562_vm11, %vm12841_vm2 }
 0x72a   : > { %v4946_v17 = vpop.f32.mrb[4].mxu1 }
 0x72b   : > { %v5136_v33 = vrot.slane %v4946_v17, 6  ;;  %5506 = vrot.lane.b32.xlu1 %v4940_v14, %s15788_s23  ;;  %5345 = vrot.lane.b32.xlu0 %v4940_v14, %s15764_s16  ;;  %v12760_v41 = vpop.f32.mrb[5].mxu1 }
 0x72c   : > { %v4950_v26 = vpop.f32.mrb[6].mxu1 }
 0x72d   : > { %v5137_v50 = vrot.slane %v4950_v26, 6  ;;  %v4952_v10 = vpop.f32.mrb[7].mxu1  ;;  %v5164_v3 = vsel %vm5150_vm13, %v5135_v44, %v5136_v33 }
 0x72e   : > { %v5121_v29 = vadd.f32 %v12765_v30, %v4952_v10  ;;  %v5219_v54 = vsel %vm5171_vm7, %v5164_v3, 0.0 }
 0x72f   : > { %5265 = vrot.lane.b32.xlu0 %v4940_v14, %s16544_s30  ;;  %5347 = vrot.lane.b32.xlu1 %v4946_v17, %s15764_s16  ;;  %v5163_v27 = vsel %vm5150_vm13, %v5136_v33, %v5137_v50 }
 0x730   : > { %v12776_v9 = vadd.f32 %v5218_v59, %v5121_v29  ;;  %v5220_v38 = vsel %vm15513_vm6, %v5163_v27, 0.0  ;;  %v16565_v27 = vld [vmem:[#allocation109_spill] sm:$0xff] }
 0x733   : > { %5666 = vrot.lane.b32.xlu0 %v12748_v19, %s16544_s30  ;;  %5267 = vrot.lane.b32.xlu1 %v4946_v17, %s16544_s30 }
 0x737   : > { %5810 = vrot.lane.b32.xlu0 %v12748_v19, %s15764_s16  ;;  %5668 = vrot.lane.b32.xlu1 %v12760_v41, %s16544_s30  ;;  %v4956_v52 = vpop.f32.mrb[8].mxu1 }
 0x738   : > { %v5138_v15 = vrot.slane %v4956_v52, 6  ;;  %v4958_v36 = vpop.f32.mrb[9].mxu1 }
 0x739   : > { %v5122_v63 = vadd.f32 %v12765_v30, %v4958_v36  ;;  %v4960_v24 = vpop.f32.mrb[10].mxu1 }
 0x73a   : > { %v5139_v20 = vrot.slane %v4960_v24, 6  ;;  %v4962_v61 = vpop.f32.mrb[11].mxu1  ;;  %v5162_v25 = vsel %vm5150_vm13, %v5137_v50, %v5138_v15 }
 0x73b   : > { %v5123_v60 = vadd.f32 %v12765_v30, %v4962_v61  ;;  %5508 = vrot.lane.b32.xlu0 %v4946_v17, %s15788_s23  ;;  %5812 = vrot.lane.b32.xlu1 %v12760_v41, %s15764_s16  ;;  %v12797_v5 = vadd.f32 %v5219_v54, %v5122_v63  ;;  %v5221_v28 = vsel %vm5173_vm12, %v5162_v25, 0.0  ;;  %v16570_v63 = vld [vmem:[#allocation224_spill] sm:$0xff] }
 0x73c   : > { %v5161_v58 = vsel %vm5150_vm13, %v5138_v15, %v5139_v20  ;;  %v16567_v15 = vmov 0  ;;  %vm16571_vm7 = vcmp.ge.s32.totalorder %v16570_v63, 1 }
 0x73d   : > { %v12803_v53 = vadd.f32 %v5220_v38, %v5123_v60  ;;  %v5222_v12 = vsel %vm16556_vm10, %v5161_v58, 0.0 }
 0x73f   : > { %5972 = vrot.lane.b32.xlu0 %v12760_v41, %s15788_s23  ;;  %5510 = vrot.lane.b32.xlu1 %v4950_v26, %s15788_s23 }
 0x743   : > { %5349 = vrot.lane.b32.xlu0 %v4950_v26, %s15764_s16  ;;  %5974 = vrot.lane.b32.xlu1 %v4952_v10, %s15788_s23 }
 0x747   : > { %5269 = vrot.lane.b32.xlu0 %v4950_v26, %s16544_s30  ;;  %5271 = vrot.lane.b32.xlu1 %v4956_v52, %s16544_s30 }
 0x74b   : > { %5670 = vrot.lane.b32.xlu0 %v4952_v10, %s16544_s30  ;;  %5672 = vrot.lane.b32.xlu1 %v4958_v36, %s16544_s30  ;;  %v4966_v40 = vpop.f32.mrb[12].mxu1 }
 0x74c   : > { %v5140_v2 = vrot.slane %v4966_v40, 6  ;;  %v4968_v4 = vpop.f32.mrb[13].mxu1 }
 0x74d   : > { %v5124_v57 = vadd.f32 %v12765_v30, %v4968_v4  ;;  %v4970_v21 = vpop.f32.mrb[14].mxu1 }
 0x74e   : > { %v5141_v45 = vrot.slane %v4970_v21, 6  ;;  %v4972_v34 = vpop.f32.mrb[15].mxu1  ;;  %v5160_v56 = vsel %vm5150_vm13, %v5139_v20, %v5140_v2 }
 0x74f   : > { %v5125_v48 = vadd.f32 %v12765_v30, %v4972_v34  ;;  %5814 = vrot.lane.b32.xlu0 %v4952_v10, %s15764_s16  ;;  %5816 = vrot.lane.b32.xlu1 %v4958_v36, %s15764_s16  ;;  %v12825_v43 = vadd.f32 %v5221_v28, %v5124_v57  ;;  %v5223_v17 = vsel %vm5175_vm1, %v5160_v56, 0.0  ;;  %v16576_v28 = vld [vmem:[#allocation223_spill] sm:$0xff] }
 0x750   : > { %v5159_v6 = vsel %vm5150_vm13, %v5140_v2, %v5141_v45  ;;  %v16577_v56 = vand.u32 15, %v16576_v28 }
 0x751   : > { %v12831_v0 = vadd.f32 %v5222_v12, %v5125_v48  ;;  %v5224_v3 = vsel %vm658_vm14, %v5159_v6, 0.0  ;;  %v16578_v48 = vmov 0 }
 0x752   : > { %vm12921_vm10 = vcmp.ge.s32.totalorder %v16577_v56, 2 }
 0x753   : > { %5512 = vrot.lane.b32.xlu0 %v4956_v52, %s15788_s23  ;;  %5353 = vrot.lane.b32.xlu1 %v4960_v24, %s15764_s16  ;;  %v16579_v48 = vsel %vm12921_vm10, 4294967295, %v16578_v48 }
 0x754   : > { %16580 = vst [vmem:[#allocation82_spill] sm:$0xff] %v16579_v48 }
 0x757   : > { %5351 = vrot.lane.b32.xlu0 %v4956_v52, %s15764_s16  ;;  %5674 = vrot.lane.b32.xlu1 %v4962_v61, %s16544_s30  ;;  %v16566_v52 = vand.u32 15, %v16565_v27 }
 0x759   : > { %vm12879_vm15 = vcmp.ge.s32.totalorder %v16566_v52, 2 }
 0x75a   : > { %v16568_v15 = vsel %vm12879_vm15, 4294967295, %v16567_v15  ;;  %vm5177_vm8 = vmand %vm16571_vm7, %vm12879_vm15 }
 0x75b   : > { %5976 = vrot.lane.b32.xlu0 %v4958_v36, %s15788_s23  ;;  %5978 = vrot.lane.b32.xlu1 %v4962_v61, %s15788_s23  ;;  %16569 = vst [vmem:[#allocation235_spill] sm:$0xff] %v16568_v15 }
 0x75f   : > { %5273 = vrot.lane.b32.xlu0 %v4960_v24, %s16544_s30  ;;  %5275 = vrot.lane.b32.xlu1 %v4966_v40, %s16544_s30  ;;  %v4976_v47 = vpop.f32.mrb[16].mxu1 }
 0x760   : > { %v5142_v39 = vrot.slane %v4976_v47, 6  ;;  %v4978_v22 = vpop.f32.mrb[17].mxu1 }
 0x761   : > { %v5126_v51 = vadd.f32 %v12765_v30, %v4978_v22  ;;  %v12852_v14 = vpop.f32.mrb[18].mxu1 }
 0x762   : > { %v5143_v44 = vrot.slane %v12852_v14, 6  ;;  %v12855_v13 = vpop.f32.mrb[19].mxu1  ;;  %v5158_v33 = vsel %vm5150_vm13, %v5141_v45, %v5142_v39 }
 0x763   : > { %v5127_v26 = vadd.f32 %v12765_v30, %v12855_v13  ;;  %5514 = vrot.lane.b32.xlu0 %v4960_v24, %s15788_s23  ;;  %5516 = vrot.lane.b32.xlu1 %v4966_v40, %s15788_s23  ;;  %v12863_v50 = vadd.f32 %v5223_v17, %v5126_v51  ;;  %v5225_v38 = vsel %vm5177_vm8, %v5158_v33, 0.0 }
 0x764   : > { %v5157_v29 = vsel %vm5150_vm13, %v5142_v39, %v5143_v44 }
 0x765   : > { %v12869_v59 = vadd.f32 %v5224_v3, %v5127_v26 }
 0x767   : > { %16564 = vst [vmem:[#allocation122_spill] sm:$0xff] %v12869_v59  ;;  %5818 = vrot.lane.b32.xlu0 %v4962_v61, %s15764_s16  ;;  %5820 = vrot.lane.b32.xlu1 %v4968_v4, %s15764_s16 }
 0x76b   : > { %5355 = vrot.lane.b32.xlu0 %v4966_v40, %s15764_s16  ;;  %5676 = vrot.lane.b32.xlu1 %v4968_v4, %s16544_s30 }
 0x76f   : > { %5980 = vrot.lane.b32.xlu0 %v4968_v4, %s15788_s23  ;;  %5357 = vrot.lane.b32.xlu1 %v4970_v21, %s15764_s16  ;;  %v16573_v4 = vld [vmem:[#allocation19_spill] sm:$0xff] }
 0x770   : > { %vm16574_vm12 = vcmp.ge.s32.totalorder %v16573_v4, 1 }
 0x771   : > { %v5226_v57 = vsel %vm16574_vm12, %v5157_v29, 0.0 }
 0x773   : > { %5518 = vrot.lane.b32.xlu0 %v4970_v21, %s15788_s23  ;;  %5277 = vrot.lane.b32.xlu1 %v4970_v21, %s16544_s30  ;;  %v12885_v36 = vpop.f32.mrb[20].mxu1 }
 0x774   : > { %v5144_v24 = vrot.slane %v12885_v36, 6  ;;  %v12892_v20 = vpop.f32.mrb[21].mxu1 }
 0x775   : > { %v5128_v61 = vadd.f32 %v12765_v30, %v12892_v20  ;;  %v12896_v54 = vpop.f32.mrb[22].mxu1 }
 0x776   : > { %v5145_v25 = vrot.slane %v12896_v54, 6  ;;  %v12899_v60 = vpop.f32.mrb[23].mxu1  ;;  %v5156_v58 = vsel %vm5150_vm13, %v5143_v44, %v5144_v24 }
 0x777   : > { %v5129_v40 = vadd.f32 %v12765_v30, %v12899_v60  ;;  %5822 = vrot.lane.b32.xlu1 %v4972_v34, %s15764_s16  ;;  %5678 = vrot.lane.b32.xlu0 %v4972_v34, %s16544_s30  ;;  %v12907_v2 = vadd.f32 %v5225_v38, %v5128_v61  ;;  %v16588_v61 = vmov 0 }
 0x778   : > { %v5155_v21 = vsel %vm5150_vm13, %v5144_v24, %v5145_v25 }
 0x779   : > { %16572 = vst [vmem:[#allocation47_spill] sm:$0xff] %v12907_v2  ;;  %v12913_v45 = vadd.f32 %v5226_v57, %v5129_v40  ;;  %v5228_v29 = vsel %vm15483_vm9, %v5155_v21, 0.0  ;;  %v16593_v40 = vld [vmem:[#allocation124_spill] sm:$0xff]  ;;  %v5119_v2 = vadd.f32 %v12765_v30, %v12748_v19 }
 0x77b   : > { %16575 = vst [vmem:[#allocation12_spill] sm:$0xff] %v12913_v45  ;;  %5982 = vrot.lane.b32.xlu1 %v4972_v34, %s15788_s23  ;;  %5279 = vrot.lane.b32.xlu0 %v4976_v47, %s16544_s30  ;;  %v16581_v34 = vld [vmem:[#allocation226_spill] sm:$0xff]  ;;  %v16609_v45 = vld [vmem:[#allocation32_spill] sm:$0xff] }
 0x77c   : > { %vm16582_vm11 = vcmp.ge.s32.totalorder %v16581_v34, 1  ;;  %v8067_v34 = vld [vmem:[%s16622_s5 + $0x4] ss:$12 sps:$4 sm:$0xff]  }
 0x77d   : > { %vm5179_vm1 = vmand %vm16582_vm11, %vm12921_vm10  ;;  %vm16594_vm11 = vcmp.ge.s32.totalorder %v16593_v40, 1  ;;  %6354 = vmatprep.subr.bf16.mxu1 %v8067_v34 }
 0x77e   : > { %v5227_v44 = vsel %vm5179_vm1, %v5156_v58, 0.0  ;;  %v16592_v58 = vld [vmem:[#allocation196_spill] sm:$0xff] }
 0x77f   : > { %5520 = vrot.lane.b32.xlu1 %v4976_v47, %s15788_s23  ;;  %5824 = vrot.lane.b32.xlu0 %v4978_v22, %s15764_s16  ;;  %vm4799_vm12 = vcmp.ge.s32.totalorder %v16592_v58, 2  ;;  %v16636_v58 = vld [vmem:[#allocation200_spill] sm:$0xff] }
 0x783   : > { %5359 = vrot.lane.b32.xlu1 %v4976_v47, %s15764_s16  ;;  %5984 = vrot.lane.b32.xlu0 %v4978_v22, %s15788_s23  ;;  %v12927_v12 = vpop.f32.mrb[24].mxu1 }
 0x784   : > { %v5146_v6 = vrot.slane %v12927_v12, 6  ;;  %v12934_v16 = vpop.f32.mrb[25].mxu1 }
 0x785   : > { %v5130_v8 = vadd.f32 %v12765_v30, %v12934_v16  ;;  %v12938_v39 = vpop.f32.mrb[26].mxu1 }
 0x786   : > { %v5147_v47 = vrot.slane %v12938_v39, 6  ;;  %v12941_v51 = vpop.f32.mrb[27].mxu1  ;;  %v5154_v17 = vsel %vm5150_vm13, %v5145_v25, %v5146_v6  ;;  %v16591_v25 = vld [vmem:[#allocation198_spill] sm:$0xff] }
 0x787   : > { %v5131_v33 = vadd.f32 %v12765_v30, %v12941_v51  ;;  %5680 = vrot.lane.b32.xlu1 %v4978_v22, %s16544_s30  ;;  %5361 = vrot.lane.b32.xlu0 %v12852_v14, %s15764_s16  ;;  %v12950_v26 = vadd.f32 %v5227_v44, %v5130_v8  ;;  %v16586_v22 = vld [vmem:[#allocation135_spill] sm:$0xff]  ;;  %vm15524_vm8 = vcmp.ge.s32.totalorder %v16591_v25, 2  ;;  %v5118_v44 = vadd.f32 %v12765_v30, %v12744_v55 }
 0x788   : > { %v5153_v27 = vsel %vm5150_vm13, %v5146_v6, %v5147_v47  ;;  %v16587_v24 = vand.u32 15, %v16586_v22  ;;  %vm12991_vm9 = vmand %vm15484_vm5, %vm15524_vm8  ;;  %v16600_v22 = vld [vmem:[#allocation185_spill] sm:$0xff] }
 0x789   : > { %16583 = vst [vmem:[#allocation10_spill] sm:$0xff] %v12950_v26  ;;  %v12956_v52 = vadd.f32 %v5228_v29, %v5131_v33  ;;  %v5120_v26 = vadd.f32 %v12765_v30, %v12760_v41 }
 0x78a   : > { %vm12964_vm7 = vcmp.ge.s32.totalorder %v16587_v24, 2 }
 0x78b   : > { %16585 = vst [vmem:[#allocation100_spill] sm:$0xff] %v12956_v52  ;;  %5281 = vrot.lane.b32.xlu1 %v12852_v14, %s16544_s30  ;;  %5682 = vrot.lane.b32.xlu0 %v12855_v13, %s16544_s30  ;;  %v16589_v61 = vsel %vm12964_vm7, 4294967295, %v16588_v61  ;;  %vm12980_vm1 = vmand %vm16594_vm11, %vm12964_vm7  ;;  %vm16601_vm11 = vcmp.ge.s32.totalorder %v16600_v22, 1 }
 0x78c   : > { %16590 = vst [vmem:[#allocation136_spill] sm:$0xff] %v16589_v61  ;;  %vm13012_vm5 = vmand %vm16601_vm11, %vm4799_vm12  ;;  %v5229_v1 = vsel %vm12980_vm1, %v5154_v17, 0.0  ;;  %vm16610_vm1 = vcmp.ge.s32.totalorder %v16609_v45, 1 }
 0x78d   : > { %v5230_v15 = vsel %vm16610_vm1, %v5153_v27, 0.0  ;;  %vm4783_vm1 = vcmp.lt.s32.totalorder %v16600_v22, 7 }
 0x78f   : > { %5522 = vrot.lane.b32.xlu1 %v12852_v14, %s15788_s23  ;;  %5283 = vrot.lane.b32.xlu0 %v12885_v36, %s16544_s30 }
 0x791   : > { %v12973_v38 = vpop.f32.mrb[28].mxu1 }
 0x792   : > { %v5148_v21 = vrot.slane %v12973_v38, 6  ;;  %v12985_v14 = vpop.f32.mrb[29].mxu1 }
 0x793   : > { %v5132_v6 = vadd.f32 %v12765_v30, %v12985_v14  ;;  %5826 = vrot.lane.b32.xlu1 %v12855_v13, %s15764_s16  ;;  %5524 = vrot.lane.b32.xlu0 %v12885_v36, %s15788_s23  ;;  %v13001_v8 = vpop.f32.mrb[30].mxu1 }
 0x794   : > { %v5149_v33 = vrot.slane %v13001_v8, 6  ;;  %v13006_v29 = vpop.f32.mrb[31].mxu1  ;;  %v5152_v11 = vsel %vm5150_vm13, %v5147_v47, %v5148_v21  ;;  %v16607_v47 = vrot.slane %v12738_v62, 6 }
 0x795   : > { %v5133_v61 = vadd.f32 %v12765_v30, %v13006_v29  ;;  %v13022_v52 = vpop.permute.xlu0 %5504  ;;  %v13024_v40 = vpop.permute.xlu1 %5343  ;;  %v5215_v3 = vsel %vm12991_vm9, %v5152_v11, 0.0  ;;  %v13028_v48 = vadd.f32 %v5229_v1, %v5132_v6  ;;  %vm16631_vm9 = vmmov %vm16601_vm11 }
 0x796   : > { %16604 = vst [vmem:[#allocation126_spill] sm:$0xff] %v13022_v52  ;;  %16605 = vst [vmem:[#allocation16_spill] sm:$0xff] %v13024_v40  ;;  %v5166_v17 = vsel %vm5150_vm13, %v5149_v33, %v16607_v47  ;;  %v13036_v57 = vadd.f32 %v5215_v3, %v5118_v44  ;;  %v5151_v62 = vsel %vm5150_vm13, %v5148_v21, %v5149_v33  ;;  %v16612_v3 = vld [vmem:[#allocation129_spill] sm:$0xff] }
 0x797   : > { %16606 = vst [vmem:[#allocation234_spill] sm:$0xff] %v13028_v48  ;;  %5986 = vrot.lane.b32.xlu1 %v12855_v13, %s15788_s23  ;;  %5828 = vrot.lane.b32.xlu0 %v12892_v20, %s15764_s16  ;;  %v5217_v1 = vsel %vm13012_vm5, %v5166_v17, 0.0  ;;  %v13050_v11 = vadd.f32 %v5230_v15, %v5133_v61  ;;  %v5216_v27 = vsel %vm15510_vm0, %v5151_v62, 0.0  ;;  %vm5407_vm5 = vcmp.lt.s32.totalorder %v16397_v31, 6  ;;  %vm16633_vm11 = vmmov %vm16631_vm9 }
 0x798   : > { %16608 = vst [vmem:[#allocation127_spill] sm:$0xff] %v13036_v57  ;;  %v13052_v41 = vadd.f32 %v5217_v1, %v5120_v26  ;;  %v13058_v13 = vadd.f32 %v5216_v27, %v5119_v2 }
 0x799   : > { %16611 = vst [vmem:[#allocation102_spill] sm:$0xff] %v13050_v11  ;;  %v13056_v30 = vpop.permute.xlu0 %5664  ;;  %v7953_v56 = vpop.f32.mrb[32].mxu1 }
 0x79a   : > { %16613 = vst [vmem:[#allocation36_spill] sm:$0xff] %v13056_v30  ;;  %16614 = vst [vmem:[#allocation20_spill] sm:$0xff] %v13058_v13  ;;  %v13060_v6 = vpop.permute.xlu1 %5263  ;;  %v13062_v44 = vpop.f32.mrb[33].mxu1  ;;  %v6082_v26 = vrot.slane %v7953_v56, 2 }
 0x79b   : > { %5363 = vrot.lane.b32.xlu1 %v12885_v36, %s15764_s16  ;;  %5988 = vrot.lane.b32.xlu0 %v12892_v20, %s15788_s23  ;;  %v7954_v15 = vpop.f32.mrb[34].mxu1  ;;  %v15493_v33 = vrot.slane %v13062_v44, 2 }
 0x79c   : > { %v6083_v61 = vrot.slane %v7954_v15, 2  ;;  %v5052_v21 = vpop.f32.mrb[35].mxu1 }
 0x79d   : > { %v6081_v2 = vrot.slane %v5052_v21, 2  ;;  %v13070_v24 = vpop.permute.xlu0 %5345 }
 0x79e   : > { %v13074_v47 = vsel %vm5407_vm5, %v6082_v26, %v6083_v61  ;;  %v13076_v17 = vpop.permute.xlu1 %5506 }
 0x79f   : > { %16615 = vst [vmem:[#allocation132_spill] sm:$0xff] %v13074_v47  ;;  %16616 = vst [vmem:[#allocation15_spill] sm:$0xff] %v13076_v17  ;;  %v13080_v36 = vsel %vm5407_vm5, %v6081_v2, %v6082_v26  ;;  %v13086_v1 = vsel %vm5407_vm5, %v15493_v33, %v6081_v2  ;;  %5684 = vrot.lane.b32.xlu1 %v12892_v20, %s16544_s30  ;;  %5365 = vrot.lane.b32.xlu0 %v12896_v54, %s15764_s16 }
 0x7a0   : > { %16617 = vst [vmem:[#allocation139_spill] sm:$0xff] %v13080_v36  ;;  %16618 = vst [vmem:[#allocation149_spill] sm:$0xff] %v13086_v1 }
 0x7a1   : > { %v13092_v62 = vpop.permute.xlu0 %5265  ;;  %v7957_v27 = vpop.f32.mrb[36].mxu1 }
 0x7a2   : > { %v13094_v56 = vpop.permute.xlu1 %5347  ;;  %v5065_v15 = vpop.f32.mrb[37].mxu1  ;;  %v6086_v2 = vrot.slane %v7957_v27, 2 }
 0x7a3   : > { %v6084_v26 = vrot.slane %v5065_v15, 2  ;;  %5526 = vrot.lane.b32.xlu1 %v12896_v54, %s15788_s23  ;;  %5686 = vrot.lane.b32.xlu0 %v12899_v60, %s16544_s30  ;;  %v7958_v21 = vpop.f32.mrb[38].mxu1 }
 0x7a4   : > { %v6087_v33 = vrot.slane %v7958_v21, 2  ;;  %v5068_v20 = vpop.f32.mrb[39].mxu1 }
 0x7a5   : > { %v13102_v36 = vsel %vm5407_vm5, %v6083_v61, %v6084_v26  ;;  %v6085_v1 = vrot.slane %v5068_v20, 2  ;;  %v13104_v11 = vpop.permute.xlu0 %5666 }
 0x7a6   : > { %16619 = vst [vmem:[#allocation152_spill] sm:$0xff] %v13102_v36  ;;  %16620 = vst [vmem:[#allocation41_spill] sm:$0xff] %v13104_v11  ;;  %v13108_v15 = vsel %vm5407_vm5, %v6086_v2, %v6087_v33  ;;  %v13110_v48 = vpop.permute.xlu1 %5267  ;;  %v8065_v36 = vld [vmem:[%s16622_s5] ss:$12 sps:$4 sm:$0xff]   ;;  %v16626_v11 = vrot.slane %v13062_v44, 2 }
 0x7a7   : > { %v13114_v45 = vsel %vm5407_vm5, %v6085_v1, %v6086_v2  ;;  %v13118_v27 = vsel %vm5407_vm5, %v6084_v26, %v6085_v1  ;;  %5830 = vrot.lane.b32.xlu1 %v12899_v60, %s15764_s16  ;;  %5528 = vrot.lane.b32.xlu0 %v12927_v12, %s15788_s23 }
 0x7a8   : > { %6355 = vmatpush1.bf16.msra.mxu1 %v8065_v36 }
 0x7a9   : > { %v13124_v61 = vpop.permute.xlu0 %5810  ;;  %v7961_v21 = vpop.f32.mrb[40].mxu1 }
 0x7aa   : > { %16621 = vst [vmem:[#allocation9_spill] sm:$0xff] %v13124_v61  ;;  %v13126_v20 = vpop.permute.xlu1 %5668  ;;  %v5081_v57 = vpop.f32.mrb[41].mxu1  ;;  %v6090_v13 = vrot.slane %v7961_v21, 2 }
 0x7ab   : > { %v6088_v59 = vrot.slane %v5081_v57, 2  ;;  %5367 = vrot.lane.b32.xlu1 %v12927_v12, %s15764_s16  ;;  %5832 = vrot.lane.b32.xlu0 %v12934_v16, %s15764_s16  ;;  %v7962_v1 = vpop.f32.mrb[42].mxu1 }
 0x7ac   : > { %v6091_v26 = vrot.slane %v7962_v1, 2  ;;  %v5084_v2 = vpop.f32.mrb[43].mxu1 }
 0x7ad   : > { %v13140_v57 = vsel %vm5407_vm5, %v6087_v33, %v6088_v59  ;;  %v6089_v21 = vrot.slane %v5084_v2, 2  ;;  %v13142_v47 = vpop.permute.xlu0 %5508 }
 0x7ae   : > { %v13146_v25 = vsel %vm5407_vm5, %v6090_v13, %v6091_v26  ;;  %v13148_v1 = vpop.permute.xlu1 %5812 }
 0x7af   : > { %v13152_v30 = vsel %vm5407_vm5, %v6089_v21, %v6090_v13  ;;  %v13156_v63 = vsel %vm5407_vm5, %v6088_v59, %v6089_v21  ;;  %5688 = vrot.lane.b32.xlu1 %v12934_v16, %s16544_s30  ;;  %5690 = vrot.lane.b32.xlu0 %v12941_v51, %s16544_s30 }
 0x7b1   : > { %v13162_v33 = vpop.permute.xlu0 %5972  ;;  %v7965_v2 = vpop.f32.mrb[44].mxu1 }
 0x7b2   : > { %16623 = vst [vmem:[#allocation144_spill] sm:$0xff] %v13162_v33  ;;  %v13164_v4 = vpop.permute.xlu1 %5510  ;;  %v5097_v34 = vpop.f32.mrb[45].mxu1  ;;  %v6094_v13 = vrot.slane %v7965_v2, 2 }
 0x7b3   : > { %v6092_v52 = vrot.slane %v5097_v34, 2  ;;  %5834 = vrot.lane.b32.xlu1 %v12941_v51, %s15764_s16  ;;  %5291 = vrot.lane.b32.xlu0 %v12973_v38, %s16544_s30  ;;  %v7966_v59 = vpop.f32.mrb[46].mxu1 }
 0x7b4   : > { %v6095_v21 = vrot.slane %v7966_v59, 2  ;;  %v5100_v10 = vpop.f32.mrb[47].mxu1 }
 0x7b5   : > { %v13172_v36 = vsel %vm5407_vm5, %v6091_v26, %v6092_v52  ;;  %v6093_v33 = vrot.slane %v5100_v10, 2  ;;  %v13174_v61 = vpop.permute.xlu0 %5349  ;;  %v15503_v26 = vrot.slane %v13070_v24, 2 }
 0x7b6   : > { %16624 = vst [vmem:[#allocation27_spill] sm:$0xff] %v13172_v36  ;;  %v13178_v34 = vsel %vm5407_vm5, %v6094_v13, %v6095_v21  ;;  %v13184_v28 = vsel %vm5407_vm5, %v6095_v21, %v16626_v11  ;;  %v13186_v2 = vpop.permute.xlu1 %5974  ;;  %v5313_v21 = vsel %vm16631_vm9, %v13060_v6, 0.0  ;;  %vm13277_vm9 = vmand %vm4783_vm1, %vm4799_vm12 }
 0x7b7   : > { %16625 = vst [vmem:[#allocation141_spill] sm:$0xff] %v13178_v34  ;;  %16627 = vst [vmem:[#allocation157_spill] sm:$0xff] %v13184_v28  ;;  %v13190_v59 = vsel %vm5407_vm5, %v6093_v33, %v6094_v13  ;;  %v13194_v10 = vsel %vm5407_vm5, %v6092_v52, %v6093_v33  ;;  %5371 = vrot.lane.b32.xlu1 %v12973_v38, %s15764_s16  ;;  %5836 = vrot.lane.b32.xlu0 %v12985_v14, %s15764_s16  ;;  %v15502_v13 = vrot.slane %v13024_v40, 2 }
 0x7b8   : > { %16628 = vst [vmem:[#allocation43_spill] sm:$0xff] %v13186_v2  ;;  %16629 = vst [vmem:[#allocation23_spill] sm:$0xff] %v13190_v59  ;;  %v15505_v34 = vrot.slane %v13076_v17, 6  ;;  %v5329_v2 = vadd.f32 %v5313_v21, %v13052_v41  ;;  %v8071_v21 = vld [vmem:[%s16622_s5 + $0x8] ss:$12 sps:$4 sm:$0xff]  }
 0x7b9   : > { %16630 = vst [vmem:[#allocation13_spill] sm:$0xff] %v13194_v10  ;;  %v13200_v44 = vpop.permute.xlu0 %5269  ;;  %v5422_v28 = vsel %vm5407_vm5, %v15502_v13, %v15503_v26  ;;  %7967 = vmatprep.subr.bf16.mxu0 %v8071_v21 }
 0x7ba   : > { %v13202_v11 = vpop.permute.xlu1 %5271  ;;  %v5474_v6 = vsel %vm16633_vm11, %v5422_v28, 0.0  ;;  %v8070_v28 = vld [vmem:[%s16622_s5 + $0x1c] ss:$12 sps:$4 sm:$0xff]   ;;  %7968 = vmatpush3.bf16.msra.mxu0 %v8071_v21  ;;  %vm16637_vm11 = vcmp.ge.s32.totalorder %v16546_v18, 1 }
 0x7bb   : > { %5293 = vrot.lane.b32.xlu1 %v13001_v8, %s16544_s30  ;;  %5373 = vrot.lane.b32.xlu0 %v13001_v8, %s15764_s16  ;;  %v5490_v41 = vadd.f32 %v5474_v6, %v5329_v2 }
 0x7bc   : > { %6356 = vmatprep.subr.bf16.mxu1 %v8070_v28 }
 0x7bd   : > { %v13209_v52 = vpop.permute.xlu0 %5670  ;;  %v16711_v22 = vld [vmem:[#allocation27_spill] sm:$0xff] }
 0x7be   : > { %v13211_v33 = vpop.permute.xlu1 %5672  ;;  %v5715_v26 = vrot.slane %v13209_v52, 2 }
 0x7bf   : > { %5534 = vrot.lane.b32.xlu1 %v13001_v8, %s15788_s23  ;;  %5369 = vrot.lane.b32.xlu0 %v12938_v39, %s15764_s16  ;;  %v16632_v8 = vrot.slane %v13142_v47, 6 }
 0x7c1   : > { %v13226_v10 = vpop.permute.xlu0 %5814  ;;  %v5581_v40 = vsel %vm5150_vm13, %v15505_v34, %v16632_v8  ;;  %v15508_v8 = vrot.slane %v13126_v20, 2 }
 0x7c2   : > { %v13231_v59 = vpop.permute.xlu1 %5816  ;;  %v15506_v36 = vrot.slane %v13226_v10, 6  ;;  %v5618_v34 = vsel %vm4799_vm12, %v5581_v40, 0.0  ;;  %vm4816_vm12 = vcmp.lt.s32.totalorder %v16636_v58, 14 }
 0x7c3   : > { %v15507_v13 = vrot.slane %v13231_v59, 6  ;;  %5285 = vrot.lane.b32.xlu1 %v12896_v54, %s16544_s30  ;;  %5287 = vrot.lane.b32.xlu0 %v12927_v12, %s16544_s30  ;;  %v8068_v12 = vld [vmem:[%s16622_s5 + $0x18] ss:$12 sps:$4 sm:$0xff]   ;;  %v5740_v2 = vsel %vm5407_vm5, %v15508_v8, %v5715_v26  ;;  %v5634_v6 = vadd.f32 %v5618_v34, %v5490_v41  ;;  %v8072_v34 = vld [vmem:[%s16622_s5 + $0x20] ss:$12 sps:$4 sm:$0xff]   ;;  %v5393_v8 = vrot.slane %v13094_v56, 2 }
 0x7c4   : > { %6357 = vmatpush1.bf16.msra.mxu1 %v8068_v12  ;;  %7969 = vmatprep.subr.bf16.mxu0 %v8072_v34  ;;  %v6162_v56 = vsel %vm4783_vm1, %v13118_v27, 0.0 }
 0x7c5   : > { %v13249_v17 = vpop.permute.xlu0 %5512  ;;  %v5883_v52 = vsel %vm5150_vm13, %v15506_v36, %v15507_v13  ;;  %v5794_v28 = vadd.f32 %v5740_v2, %v5634_v6  ;;  %7970 = vmatpush3.bf16.msra.mxu0 %v8072_v34  ;;  %v5555_v34 = vrot.slane %v13164_v4, 6 }
 0x7c6   : > { %v13255_v54 = vpop.permute.xlu1 %5353  ;;  %v5938_v13 = vsel %vm13277_vm9, %v5883_v52, 0.0  ;;  %v5556_v2 = vrot.slane %v13249_v17, 6  ;;  %vm16638_vm9 = vmmov %vm16637_vm11 }
 0x7c7   : > { %5289 = vrot.lane.b32.xlu1 %v12938_v39, %s16544_s30  ;;  %5530 = vrot.lane.b32.xlu0 %v12938_v39, %s15788_s23  ;;  %v5954_v12 = vadd.f32 %v5938_v13, %v5794_v28  ;;  %v5314_v13 = vsel %vm16637_vm11, %v13092_v62, 0.0  ;;  %vm13325_vm0 = vmand %vm16638_vm9, %vm4816_vm12  ;;  %v5716_v62 = vrot.slane %v13211_v33, 2  ;;  %vm4784_vm9 = vcmp.lt.s32.totalorder %v16546_v18, 7 }
 0x7c9   : > { %v13288_v39 = vpop.permute.xlu0 %5351 }
 0x7ca   : > { %v13290_v36 = vpop.permute.xlu1 %5674 }
 0x7cb   : > { %5532 = vrot.lane.b32.xlu1 %v12973_v38, %s15788_s23  ;;  %5990 = vrot.lane.b32.xlu0 %v12899_v60, %s15788_s23  ;;  %v5394_v38 = vrot.slane %v13174_v61, 2 }
 0x7cd   : > { %v5977_v41 = vpop.permute.xlu0 %5976 }
 0x7ce   : > { %v6050_v52 = vsel %vm4783_vm1, %v5977_v41, 0.0  ;;  %v5979_v40 = vpop.permute.xlu1 %5978  ;;  %v5420_v41 = vsel %vm5407_vm5, %v5393_v8, %v5394_v38  ;;  %vm16642_vm1 = vcmp.ge.s32.totalorder %v16549_v7, 1 }
 0x7cf   : > { %v6066_v60 = vadd.f32 %v6050_v52, %v5954_v12  ;;  %5992 = vrot.lane.b32.xlu1 %v12934_v16, %s15788_s23  ;;  %5994 = vrot.lane.b32.xlu0 %v12941_v51, %s15788_s23  ;;  %v16641_v51 = vrot.slane %v13070_v24, 2  ;;  %v5330_v24 = vadd.f32 %v5314_v13, %v12776_v9  ;;  %v5315_v33 = vsel %vm16642_vm1, %v13110_v48, 0.0  ;;  %vm16643_vm11 = vmmov %vm16642_vm1 }
 0x7d0   : > { %v5476_v52 = vsel %vm16643_vm11, %v5420_v41, 0.0  ;;  %v5739_v9 = vsel %vm5407_vm5, %v5715_v26, %v5716_v62  ;;  %v5331_v48 = vadd.f32 %v5315_v33, %v12797_v5  ;;  %v5717_v26 = vrot.slane %v13290_v36, 2 }
 0x7d1   : > { %v13317_v21 = vadd.f32 %v6162_v56, %v6066_v60  ;;  %v13319_v6 = vpop.permute.xlu0 %5273  ;;  %v5421_v27 = vsel %vm5407_vm5, %v16641_v51, %v5393_v8  ;;  %v5579_v8 = vsel %vm5150_vm13, %v5555_v34, %v5556_v2  ;;  %v16644_v60 = vrot.slane %v13142_v47, 6 }
 0x7d2   : > { %v13334_v28 = vpop.permute.xlu1 %5275  ;;  %v5475_v4 = vsel %vm13325_vm0, %v5421_v27, 0.0  ;;  %v5620_v16 = vsel %vm4801_vm3, %v5579_v8, 0.0  ;;  %v5492_v51 = vadd.f32 %v5476_v52, %v5331_v48  ;;  %v5779_v5 = vsel %vm4816_vm12, %v5739_v9, 0.0 }
 0x7d3   : > { %5996 = vrot.lane.b32.xlu1 %v12985_v14, %s15788_s23  ;;  %5692 = vrot.lane.b32.xlu0 %v12985_v14, %s16544_s30  ;;  %v5580_v56 = vsel %vm5150_vm13, %v16644_v60, %v5555_v34  ;;  %v5491_v13 = vadd.f32 %v5475_v4, %v5330_v24  ;;  %vm4785_vm0 = vcmp.lt.s32.totalorder %v16549_v7, 7  ;;  %v5738_v8 = vsel %vm5407_vm5, %v5716_v62, %v5717_v26 }
 0x7d4   : > { %v5636_v33 = vadd.f32 %v5620_v16, %v5492_v51  ;;  %vm13390_vm1 = vmand %vm4785_vm0, %vm4801_vm3  ;;  %v16647_v52 = vrot.slane %v13231_v59, 6  ;;  %v6051_v16 = vsel %vm4784_vm9, %v5979_v40, 0.0 }
 0x7d5   : > { %v13355_v12 = vpop.permute.xlu0 %5514  ;;  %v5635_v27 = vadd.f32 %v5580_v56, %v5491_v13  ;;  %vm6115_vm3 = vmand %vm4784_vm9, %vm4816_vm12  ;;  %v5395_v13 = vrot.slane %v13288_v39, 2 }
 0x7d6   : > { %v13361_v14 = vpop.permute.xlu1 %5516  ;;  %v5796_v51 = vadd.f32 %v5738_v8, %v5636_v33  ;;  %v6164_v8 = vsel %vm4785_vm0, %v13108_v15, 0.0 }
 0x7d7   : > { %5808 = vrot.lane.b32.xlu0 %v12744_v55, %s15764_s16  ;;  %5694 = vrot.lane.b32.xlu1 %v13006_v29, %s16544_s30  ;;  %v5795_v4 = vadd.f32 %v5779_v5, %v5635_v27 }
 0x7d9   : > { %v5819_v47 = vpop.permute.xlu0 %5818 }
 0x7da   : > { %v5861_v41 = vrot.slane %v5819_v47, 6  ;;  %v13377_v34 = vpop.permute.xlu1 %5820  ;;  %v6163_v47 = vsel %vm6115_vm3, %v13114_v45, 0.0  ;;  %v5419_v45 = vsel %vm5407_vm5, %v5394_v38, %v5395_v13 }
 0x7db   : > { %v5862_v24 = vrot.slane %v13377_v34, 6  ;;  %5968 = vrot.lane.b32.xlu0 %v12744_v55, %s15788_s23  ;;  %5838 = vrot.lane.b32.xlu1 %v13006_v29, %s15764_s16 }
 0x7dc   : > { %v5882_v55 = vsel %vm5150_vm13, %v16647_v52, %v5861_v41  ;;  %v5316_v52 = vsel %vm15513_vm6, %v13200_v44, 0.0 }
 0x7dd   : > { %v5939_v9 = vsel %vm4784_vm9, %v5882_v55, 0.0  ;;  %v5881_v48 = vsel %vm5150_vm13, %v5861_v41, %v5862_v24  ;;  %v13406_v60 = vpop.permute.xlu0 %5355  ;;  %v15511_v55 = vrot.slane %v13317_v21, 2  ;;  %vm4786_vm9 = vcmp.lt.s32.totalorder %v16551_v23, 7 }
 0x7de   : > { %v5955_v62 = vadd.f32 %v5939_v9, %v5795_v4  ;;  %v13412_v59 = vpop.permute.xlu1 %5676  ;;  %v5940_v56 = vsel %vm13390_vm1, %v5881_v48, 0.0  ;;  %v16648_v4 = vld [vmem:[#allocation89_spill] sm:$0xff]  ;;  %v5557_v9 = vrot.slane %v13355_v12, 6 }
 0x7df   : > { %5998 = vrot.lane.b32.xlu0 %v13006_v29, %s15788_s23  ;;  %5970 = vrot.lane.b32.xlu1 %v12748_v19, %s15788_s23  ;;  %v5956_v41 = vadd.f32 %v5940_v56, %v5796_v51  ;;  %vm4818_vm12 = vcmp.lt.s32.totalorder %v16648_v4, 14  ;;  %v5718_v29 = vrot.slane %v13412_v59, 2  ;;  %v5332_v59 = vadd.f32 %v5316_v52, %v12803_v53 }
 0x7e0   : > { %v6067_v5 = vadd.f32 %v6051_v16, %v5955_v62  ;;  %vm13435_vm11 = vmand %vm15513_vm6, %vm4818_vm12  ;;  %v5396_v51 = vrot.slane %v13255_v54, 2 }
 0x7e1   : > { %v5981_v27 = vpop.permute.xlu0 %5980  ;;  %v5477_v62 = vsel %vm13435_vm11, %v5419_v45, 0.0  ;;  %v5737_v56 = vsel %vm5407_vm5, %v5717_v26, %v5718_v29  ;;  %vm6117_vm3 = vmand %vm4786_vm9, %vm4818_vm12  ;;  %vm4787_vm11 = vcmp.lt.s32.totalorder %v16553_v37, 7 }
 0x7e2   : > { %v13425_v36 = vadd.f32 %v6163_v47, %v6067_v5  ;;  %v6052_v39 = vsel %vm4785_vm0, %v5981_v27, 0.0  ;;  %v13429_v40 = vpop.permute.xlu1 %5357  ;;  %v5578_v5 = vsel %vm5150_vm13, %v5556_v2, %v5557_v9  ;;  %v5558_v47 = vrot.slane %v13361_v14, 6 }
 0x7e3   : > { %v6068_v33 = vadd.f32 %v6052_v39, %v5956_v41  ;;  %v5493_v27 = vadd.f32 %v5477_v62, %v5332_v59  ;;  %v5418_v26 = vsel %vm5407_vm5, %v5395_v13, %v5396_v51  ;;  %v5781_v54 = vsel %vm4818_vm12, %v5737_v56, 0.0  ;;  %vm5894_vm12 = vmand %vm4787_vm11, %vm4803_vm4 }
 0x7e4   : > { %16649 = vst [vmem:[#allocation155_spill] sm:$0xff] %v13425_v36  ;;  %v6195_v61 = vrot.slane %v13425_v36, 2  ;;  %vm16654_vm0 = vcmp.ge.s32.totalorder %v16553_v37, 1  ;;  %v16699_v37 = vrot.slane %v13429_v40, 2 }
 0x7e5   : > { %v13453_v48 = vadd.f32 %v6164_v8, %v6068_v33  ;;  %v13455_v38 = vpop.permute.xlu0 %5518  ;;  %v5317_v2 = vsel %vm16654_vm0, %v13202_v11, 0.0  ;;  %v5637_v19 = vadd.f32 %v5578_v5, %v5493_v27  ;;  %v5577_v33 = vsel %vm5150_vm13, %v5557_v9, %v5558_v47  ;;  %vm16655_vm1 = vmmov %vm16654_vm0 }
 0x7e6   : > { %v13463_v15 = vsel %vm5407_vm5, %v15511_v55, %v6195_v61  ;;  %v13465_v44 = vpop.permute.xlu1 %5277  ;;  %v5478_v13 = vsel %vm16655_vm1, %v5418_v26, 0.0  ;;  %v5333_v62 = vadd.f32 %v5317_v2, %v12825_v43  ;;  %v5622_v9 = vsel %vm4803_vm4, %v5577_v33, 0.0 }
 0x7e7   : > { %16652 = vst [vmem:[#allocation151_spill] sm:$0xff] %v13463_v15  ;;  %v6196_v16 = vrot.slane %v13453_v48, 2  ;;  %v6165_v43 = vsel %vm6117_vm3, %v13140_v57, 0.0  ;;  %vm16657_vm0 = vcmp.ge.s32.totalorder %v16555_v49, 1  ;;  %vm16661_vm3 = vcmp.ge.s32.totalorder %v16561_v32, 1 }
 0x7e8   : > { %vm16660_vm1 = vmmov %vm16657_vm0  ;;  %v5320_v23 = vsel %vm658_vm14, %v13465_v44, 0.0 }
 0x7e9   : > { %v13481_v53 = vsel %vm5407_vm5, %v6195_v61, %v6196_v16  ;;  %v13483_v41 = vpop.permute.xlu0 %5678  ;;  %v5797_v61 = vadd.f32 %v5781_v54, %v5637_v19 }
 0x7ea   : > { %16653 = vst [vmem:[#allocation154_spill] sm:$0xff] %v13481_v53  ;;  %v5823_v39 = vpop.permute.xlu1 %5822  ;;  %v5719_v8 = vrot.slane %v13483_v41, 2  ;;  %v5494_v41 = vadd.f32 %v5478_v13, %v5333_v62 }
 0x7eb   : > { %v5863_v45 = vrot.slane %v5823_v39, 6 }
 0x7ec   : > { %v5736_v34 = vsel %vm5407_vm5, %v5718_v29, %v5719_v8  ;;  %v5638_v54 = vadd.f32 %v5622_v9, %v5494_v41 }
 0x7ed   : > { %v5880_v52 = vsel %vm5150_vm13, %v5862_v24, %v5863_v45  ;;  %v13506_v11 = vpop.permute.xlu0 %5279 }
 0x7ee   : > { %v5941_v59 = vsel %vm4786_vm9, %v5880_v52, 0.0  ;;  %v5983_v56 = vpop.permute.xlu1 %5982  ;;  %v5798_v33 = vadd.f32 %v5736_v34, %v5638_v54 }
 0x7ef   : > { %v5957_v5 = vadd.f32 %v5941_v59, %v5797_v61  ;;  %v6053_v27 = vsel %vm4786_vm9, %v5983_v56, 0.0 }
 0x7f1   : > { %v6069_v24 = vadd.f32 %v6053_v27, %v5957_v5  ;;  %v5825_v26 = vpop.permute.xlu0 %5824 }
 0x7f2   : > { %v5864_v39 = vrot.slane %v5825_v26, 6  ;;  %v13517_v2 = vpop.permute.xlu1 %5520 }
 0x7f3   : > { %v13523_v19 = vadd.f32 %v6165_v43, %v6069_v24  ;;  %v5397_v24 = vrot.slane %v13406_v60, 2  ;;  %v15512_v43 = vrot.slane %v13429_v40, 2  ;;  %v16703_v40 = vld [vmem:[#allocation144_spill] sm:$0xff] }
 0x7f4   : > { %v5879_v29 = vsel %vm5150_vm13, %v5863_v45, %v5864_v39  ;;  %v6166_v45 = vsel %vm4787_vm11, %v13156_v63, 0.0 }
 0x7f5   : > { %v6197_v13 = vrot.slane %v13523_v19, 2  ;;  %v5985_v52 = vpop.permute.xlu0 %5984  ;;  %v5942_v61 = vsel %vm5894_vm12, %v5879_v29, 0.0  ;;  %vm4788_vm12 = vcmp.lt.s32.totalorder %v16555_v49, 7 }
 0x7f6   : > { %v5958_v62 = vadd.f32 %v5942_v61, %v5798_v33  ;;  %v6054_v57 = vsel %vm4787_vm11, %v5985_v52, 0.0  ;;  %v13530_v59 = vpop.permute.xlu1 %5359  ;;  %v5417_v33 = vsel %vm5407_vm5, %v5396_v51, %v5397_v24  ;;  %v5416_v51 = vsel %vm5407_vm5, %v5397_v24, %v15512_v43  ;;  %vm16662_vm11 = vmmov %vm16661_vm3 }
 0x7f7   : > { %v13534_v56 = vsel %vm5407_vm5, %v6196_v16, %v6197_v13  ;;  %v16656_v16 = vld [vmem:[#allocation220_spill] sm:$0xff] }
 0x7f8   : > { %v6228_v9 = vmax.f32 %v13453_v48, %v13534_v56  ;;  %v6070_v5 = vadd.f32 %v6054_v57, %v5958_v62  ;;  %vm4820_vm4 = vcmp.lt.s32.totalorder %v16656_v16, 14  ;;  %v5559_v62 = vrot.slane %v13455_v38, 6  ;;  %v16664_v56 = vld [vmem:[#allocation35_spill] sm:$0xff]  ;;  %v16690_v16 = vld [vmem:[#allocation132_spill] sm:$0xff] }
 0x7f9   : > { %v13541_v27 = vpop.permute.xlu0 %5361  ;;  %vm13563_vm9 = vmand %vm16657_vm0, %vm4820_vm4  ;;  %v15518_v57 = vrot.slane %v13517_v2, 6  ;;  %vm4789_vm0 = vcmp.lt.s32.totalorder %v16561_v32, 7 }
 0x7fa   : > { %v13543_v41 = vadd.f32 %v6166_v45, %v6070_v5  ;;  %v5681_v34 = vpop.permute.xlu1 %5680  ;;  %v5479_v45 = vsel %vm13563_vm9, %v5417_v33, 0.0  ;;  %v5576_v60 = vsel %vm5150_vm13, %v5558_v47, %v5559_v62  ;;  %vm5896_vm9 = vmand %vm4789_vm0, %vm12841_vm2 }
 0x7fb   : > { %v5720_v61 = vrot.slane %v5681_v34, 2  ;;  %v5575_v24 = vsel %vm5150_vm13, %v5559_v62, %v15518_v57  ;;  %v5400_v57 = vrot.slane %v13541_v27, 2  ;;  %v16691_v27 = vmov 0 }
 0x7fc   : > { %v6198_v26 = vrot.slane %v13543_v41, 2  ;;  %v5624_v55 = vsel %vm12841_vm2, %v5575_v24, 0.0 }
 0x7fd   : > { %v13547_v54 = vpop.permute.xlu0 %5682  ;;  %v5735_v38 = vsel %vm5407_vm5, %v5719_v8, %v5720_v61 }
 0x7fe   : > { %v13555_v63 = vsel %vm5407_vm5, %v6197_v13, %v6198_v26  ;;  %v13557_v29 = vpop.permute.xlu1 %5281  ;;  %v5318_v13 = vsel %vm16660_vm1, %v13319_v6, 0.0  ;;  %v5319_v6 = vsel %vm16661_vm3, %v13334_v28, 0.0  ;;  %v5783_v14 = vsel %vm4820_vm4, %v5735_v38, 0.0  ;;  %vm6119_vm1 = vmand %vm4788_vm12, %vm4820_vm4 }
 0x7ff   : > { %v6229_v52 = vmax.f32 %v13523_v19, %v13555_v63  ;;  %v5334_v34 = vadd.f32 %v5318_v13, %v12831_v0  ;;  %v5480_v0 = vsel %vm16662_vm11, %v5416_v51, 0.0  ;;  %v15517_v13 = vrot.slane %v13547_v54, 2  ;;  %v16666_v19 = vld [vmem:[#allocation131_spill] sm:$0xff] }
 0x800   : > { %v5335_v8 = vadd.f32 %v5319_v6, %v12863_v50  ;;  %vm15532_vm3 = vcmp.lt.s32.totalorder %v16664_v56, 14  ;;  %vm15516_vm11 = vcmp.lt.s32.totalorder %v16612_v3, 7  ;;  %v16667_v63 = vand.u32 15, %v16666_v19  ;;  %v16681_v19 = vld [vmem:[#allocation19_spill] sm:$0xff] }
 0x801   : > { %v13576_v5 = vpop.permute.xlu0 %5283  ;;  %v5495_v33 = vadd.f32 %v5479_v45, %v5334_v34  ;;  %v5734_v45 = vsel %vm5407_vm5, %v5720_v61, %v15517_v13 }
 0x802   : > { %v13584_v12 = vpop.permute.xlu1 %5522  ;;  %v5496_v62 = vadd.f32 %v5480_v0, %v5335_v8 }
 0x803   : > { %v5639_v47 = vadd.f32 %v5576_v60, %v5495_v33  ;;  %v5561_v7 = vrot.slane %v13584_v12, 6 }
 0x804   : > { %v5640_v6 = vadd.f32 %v5624_v55, %v5496_v62 }
 0x805   : > { %v13603_v28 = vpop.permute.xlu0 %5524  ;;  %v5799_v34 = vadd.f32 %v5783_v14, %v5639_v47  ;;  %v6167_v14 = vsel %vm6119_vm1, %v13152_v30, 0.0  ;;  %vm13694_vm1 = vmand %vm15516_vm11, %vm15532_vm3 }
 0x806   : > { %v5827_v17 = vpop.permute.xlu1 %5826  ;;  %v5800_v55 = vadd.f32 %v5734_v45, %v5640_v6  ;;  %v5562_v58 = vrot.slane %v13603_v28, 6 }
 0x807   : > { %v5865_v43 = vrot.slane %v5827_v17, 6 }
 0x809   : > { %v5878_v50 = vsel %vm5150_vm13, %v5864_v39, %v5865_v43  ;;  %v13617_v51 = vpop.permute.xlu0 %5828 }
 0x80a   : > { %v15515_v38 = vrot.slane %v13617_v51, 6  ;;  %v5943_v17 = vsel %vm4788_vm12, %v5878_v50, 0.0  ;;  %v5987_v60 = vpop.permute.xlu1 %5986 }
 0x80b   : > { %v5959_v24 = vadd.f32 %v5943_v17, %v5799_v34  ;;  %v6055_v39 = vsel %vm4788_vm12, %v5987_v60, 0.0  ;;  %v6168_v60 = vsel %vm4789_vm0, %v13146_v25, 0.0 }
 0x80c   : > { %v5877_v61 = vsel %vm5150_vm13, %v5865_v43, %v15515_v38 }
 0x80d   : > { %v6071_v33 = vadd.f32 %v6055_v39, %v5959_v24  ;;  %v5989_v0 = vpop.permute.xlu0 %5988  ;;  %v5944_v8 = vsel %vm5896_vm9, %v5877_v61, 0.0 }
 0x80e   : > { %v5960_v46 = vadd.f32 %v5944_v8, %v5800_v55  ;;  %v6056_v47 = vsel %vm4789_vm0, %v5989_v0, 0.0  ;;  %v13634_v62 = vpop.permute.xlu1 %5363  ;;  %vm13677_vm0 = vcmp.lt.s32.totalorder %v16667_v63, 14  ;;  %v16683_v63 = vld [vmem:[#allocation36_spill] sm:$0xff] }
 0x80f   : > { %v6183_v50 = vadd.f32 %v6167_v14, %v6071_v33 }
 0x810   : > { %v6072_v34 = vadd.f32 %v6056_v47, %v5960_v46 }
 0x811   : > { %v6199_v17 = vrot.slane %v6183_v50, 2  ;;  %v13639_v43 = vpop.permute.xlu0 %5365 }
 0x812   : > { %v13641_v45 = vadd.f32 %v6168_v60, %v6072_v34  ;;  %v13643_v6 = vpop.permute.xlu1 %5684  ;;  %v16671_v60 = vld [vmem:[#allocation41_spill] sm:$0xff] }
 0x813   : > { %v6216_v30 = vsel %vm5407_vm5, %v6198_v26, %v6199_v17 }
 0x814   : > { %16663 = vst [vmem:[#allocation158_spill] sm:$0xff] %v13641_v45  ;;  %v6230_v24 = vmax.f32 %v13543_v41, %v6216_v30  ;;  %v15514_v39 = vrot.slane %v13641_v45, 2  ;;  %v16672_v30 = vld [vmem:[#allocation9_spill] sm:$0xff]  ;;  %v16714_v45 = vld [vmem:[#allocation47_spill] sm:$0xff] }
 0x815   : > { %v13651_v61 = vpop.permute.xlu0 %5686 }
 0x816   : > { %v6242_v32 = vmax.f32 %v6228_v9, %v6230_v24  ;;  %v6215_v25 = vsel %vm5407_vm5, %v6199_v17, %v15514_v39  ;;  %v13660_v55 = vpop.permute.xlu1 %5526  ;;  %v5858_v9 = vrot.slane %v13148_v1, 6  ;;  %v5713_v1 = vrot.slane %v16671_v60, 2  ;;  %v16688_v60 = vld [vmem:[#allocation15_spill] sm:$0xff] }
 0x817   : > { %v6231_v33 = vmax.f32 %v6183_v50, %v6215_v25  ;;  %v16665_v50 = vld [vmem:[#allocation201_spill] sm:$0xff]  ;;  %v15519_v24 = vrot.slane %v16672_v30, 6  ;;  %v5399_v25 = vrot.slane %v13530_v59, 2  ;;  %v16682_v59 = vld [vmem:[#allocation224_spill] sm:$0xff]  ;;  %v16684_v39 = vrot.slane %v13126_v20, 2  ;;  %v16707_v30 = vld [vmem:[#allocation122_spill] sm:$0xff] }
 0x818   : > { %v6258_v0 = vmul.f32 0.2, %v6242_v32  ;;  %vm6250_vm2 = vcmp.gt.f32.partialorder %v6242_v32, 0.0  ;;  %vm4781_vm12 = vcmp.lt.s32.totalorder %v16665_v50, 7  ;;  %v5336_v15 = vadd.f32 %v5320_v23, %v16707_v30 }
 0x819   : > { %v6243_v41 = vmax.f32 %v6229_v52, %v6231_v33  ;;  %v13665_v26 = vpop.permute.xlu0 %5528  ;;  %v16674_v33 = vld [vmem:[#allocation126_spill] sm:$0xff]  ;;  %v5741_v38 = vsel %vm5407_vm5, %v5713_v1, %v16684_v39  ;;  %vm13721_vm11 = vmand %vm4781_vm12, %vm15524_vm8  ;;  %v16689_v39 = vrot.slane %v16688_v60, 6  ;;  %v13739_v4 = vsel %vm4781_vm12, %v16690_v16, 0.0 }
 0x81a   : > { %v13667_v8 = vpop.permute.xlu1 %5830  ;;  %v6266_v46 = vsel %vm6250_vm2, %v6242_v32, %v6258_v0  ;;  %v16673_v32 = vld [vmem:[#allocation38_spill] sm:$0xff]  ;;  %v15525_v0 = vrot.slane %v16674_v33, 6  ;;  %v5415_v35 = vsel %vm5407_vm5, %v16699_v37, %v5399_v25  ;;  %v16700_v37 = vmov 0 }
 0x81b   : > { %vm6251_vm4 = vcmp.gt.f32.partialorder %v6243_v41, 0.0  ;;  %v6259_v48 = vmul.f32 0.2, %v6243_v41  ;;  %vm15526_vm9 = vcmp.lt.s32.totalorder %v16673_v32, 7  ;;  %v16694_v60 = vld [vmem:[#allocation226_spill] sm:$0xff]  ;;  %v5414_v12 = vsel %vm5407_vm5, %v5399_v25, %v5400_v57 }
 0x81c   : > { %vm13748_vm8 = vmand %vm15526_vm9, %vm13677_vm0  ;;  %v16713_v23 = vrot.slane %v13226_v10, 6  ;;  %v16733_v52 = vrot.slane %v13665_v26, 6 }
 0x81d   : > { %v13672_v14 = vpop.permute.xlu0 %5832  ;;  %v6267_v47 = vsel %vm6251_vm4, %v6243_v41, %v6259_v48  ;;  %v16677_v48 = vld [vmem:[#allocation228_spill] sm:$0xff]  ;;  %vm4792_vm4 = vcmp.lt.s32.totalorder %v16681_v19, 7  ;;  %v16692_v27 = vsel %vm13748_vm8, 4294967295, %v16691_v27  ;;  %vm13766_vm9 = vmand %vm658_vm14, %vm13677_vm0  ;;  %vm16706_vm14 = vcmp.ge.s32.totalorder %v16682_v59, 1  ;;  %v16771_v41 = vld [vmem:[#allocation234_spill] sm:$0xff] }
 0x81e   : > { %v13681_v34 = vpop.permute.xlu1 %5367  ;;  %v13683_v17 = vpack.c.bf16 %v6267_v47, %v6266_v46  ;;  %v16678_v46 = vand.u32 15, %v16677_v48  ;;  %v13715_v48 = vsel %vm5150_vm13, %v15519_v24, %v5858_v9  ;;  %v13734_v24 = vsel %vm5150_vm13, %v15525_v0, %v16689_v39  ;;  %16693 = vst [vmem:[#allocation150_spill] sm:$0xff] %v16692_v27  ;;  %v16696_v0 = vld [vmem:[#allocation152_spill] sm:$0xff] }
 0x81f   : > { %v16695_v39 = vrot.slane %v16683_v63, 2  ;;  %v5321_v44 = vsel %vm16706_vm14, %v13506_v11, 0.0  ;;  %v5481_v18 = vsel %vm13766_vm9, %v5415_v35, 0.0  ;;  %v5722_v63 = vrot.slane %v13643_v6, 2  ;;  %vm16715_vm9 = vmmov %vm16706_vm14 }
 0x820   : > { %16670 = vst [vmem:[#allocation148_spill] sm:$0xff] %v13683_v17  ;;  %vm13700_vm2 = vcmp.lt.s32.totalorder %v16678_v46, 14  ;;  %v16685_v46 = vld [vmem:[#allocation198_spill] sm:$0xff]  ;;  %v5884_v30 = vsel %vm5150_vm13, %v5858_v9, %v16713_v23  ;;  %v5337_v53 = vadd.f32 %v5321_v44, %v16714_v45  ;;  %v5482_v36 = vsel %vm16715_vm9, %v5414_v12, 0.0 }
 0x821   : > { %v13726_v20 = vpop.permute.xlu0 %5690  ;;  %v13757_v16 = vsel %vm5407_vm5, %v16695_v39, %v5713_v1  ;;  %v5401_v1 = vrot.slane %v13634_v62, 2  ;;  %v13777_v39 = vsel %vm15532_vm3, %v5741_v38, 0.0  ;;  %vm13790_vm6 = vmand %vm4792_vm4, %vm13700_vm2  ;;  %v13797_v38 = vsel %vm4781_vm12, %v16703_v40, 0.0  ;;  %v16704_v62 = vld [vmem:[#allocation43_spill] sm:$0xff] }
 0x822   : > { %v13742_v49 = vpop.permute.xlu1 %5688  ;;  %v16701_v37 = vsel %vm13790_vm6, 4294967295, %v16700_v37  ;;  %vm16705_vm3 = vcmp.lt.s32.totalorder %v16612_v3, 7  ;;  %v5573_v40 = vsel %vm5150_vm13, %v5561_v7, %v5562_v58  ;;  %v5497_v27 = vadd.f32 %v5481_v18, %v5336_v15 }
 0x823   : > { %16702 = vst [vmem:[#allocation145_spill] sm:$0xff] %v16701_v37  ;;  %v13802_v28 = vsel %vm16705_vm3, %v16704_v62, 0.0  ;;  %vm16708_vm3 = vcmp.ge.s32.totalorder %v16681_v19, 1  ;;  %v5413_v35 = vsel %vm5407_vm5, %v5400_v57, %v5401_v1  ;;  %v16718_v17 = vrot.slane %v13517_v2, 6  ;;  %v16727_v37 = vld [vmem:[#allocation141_spill] sm:$0xff] }
 0x824   : > { %vm13822_vm12 = vmand %vm16708_vm3, %vm13700_vm2  ;;  %v5626_v45 = vsel %vm12879_vm15, %v5573_v40, 0.0  ;;  %v16721_v15 = vrot.slane %v13547_v54, 2  ;;  %v16722_v40 = vld [vmem:[#allocation12_spill] sm:$0xff]  ;;  %vm16725_vm9 = vcmp.lt.s32.totalorder %v16612_v3, 7  ;;  %v5723_v11 = vrot.slane %v13651_v61, 2 }
 0x825   : > { %v5292_v42 = vpop.permute.xlu0 %5291  ;;  %vm16716_vm14 = vmmov %vm16708_vm3  ;;  %vm16717_vm3 = vcmp.ge.s32.totalorder %v16694_v60, 1  ;;  %v5574_v10 = vsel %vm5150_vm13, %v16718_v17, %v5561_v7  ;;  %v5483_v12 = vsel %vm13822_vm12, %v5413_v35, 0.0  ;;  %v5563_v7 = vrot.slane %v13660_v55, 6  ;;  %v16723_v35 = vld [vmem:[#allocation13_spill] sm:$0xff] }
 0x826   : > { %v13815_v62 = vpop.permute.xlu1 %5834  ;;  %v5322_v57 = vsel %vm16716_vm14, %v13557_v29, 0.0  ;;  %v5323_v25 = vsel %vm16717_vm3, %v13576_v5, 0.0  ;;  %v16720_v29 = vrot.slane %v13639_v43, 2  ;;  %v5733_v2 = vsel %vm5407_vm5, %v16721_v15, %v5722_v63 }
 0x827   : > { %v5498_v17 = vadd.f32 %v5482_v36, %v5337_v53  ;;  %v5338_v23 = vadd.f32 %v5322_v57, %v16722_v40  ;;  %vm16724_vm12 = vcmp.lt.s32.totalorder %v16682_v59, 7  ;;  %v5937_v54 = vsel %vm16725_vm9, %v5884_v30, 0.0 }
 0x828   : > { %v5412_v18 = vsel %vm5407_vm5, %v5401_v1, %v16720_v29  ;;  %v13873_v6 = vsel %vm16724_vm12, %v16723_v35, 0.0  ;;  %v16726_v1 = vld [vmem:[#allocation10_spill] sm:$0xff]  ;;  %v5641_v15 = vadd.f32 %v5574_v10, %v5497_v27  ;;  %vm16728_vm14 = vcmp.lt.s32.totalorder %v16694_v60, 7 }
 0x829   : > { %v13853_v44 = vpop.permute.xlu0 %5836  ;;  %v5339_v29 = vadd.f32 %v5323_v25, %v16726_v1  ;;  %v13881_v55 = vsel %vm16728_vm14, %v16727_v37, 0.0  ;;  %v5642_v36 = vadd.f32 %v5626_v45, %v5498_v17  ;;  %v5499_v53 = vadd.f32 %v5483_v12, %v5338_v23  ;;  %v16745_v37 = vld [vmem:[#allocation127_spill] sm:$0xff] }
 0x82a   : > { %v13866_v5 = vpop.permute.xlu1 %5371  ;;  %v5484_v57 = vsel %vm16717_vm3, %v5412_v18, 0.0  ;;  %v5785_v40 = vsel %vm13677_vm0, %v5733_v2, 0.0  ;;  %v5572_v25 = vsel %vm5150_vm13, %v5562_v58, %v5563_v7  ;;  %vm16729_vm12 = vcmp.lt.s32.totalorder %v16664_v56, 14  ;;  %v16735_v18 = vld [vmem:[#allocation115_spill] sm:$0xff] }
 0x82b   : > { %v15547_v27 = vrot.slane %v13866_v5, 2  ;;  %vm16730_vm9 = vcmp.ge.s32.totalorder %v16612_v3, 1  ;;  %v5571_v61 = vsel %vm5150_vm13, %v5563_v7, %v16733_v52  ;;  %v5867_v45 = vrot.slane %v13667_v8, 6  ;;  %v16740_v8 = vld [vmem:[#allocation16_spill] sm:$0xff] }
 0x82c   : > { %vm13895_vm14 = vmand %vm16730_vm9, %vm16729_vm12  ;;  %v5724_v58 = vrot.slane %v13742_v49, 2  ;;  %v16736_v2 = vand.u32 15, %v16735_v18  ;;  %vm16739_vm12 = vcmp.ge.s32.totalorder %v16665_v50, 1  ;;  %v16741_v1 = vrot.slane %v16740_v8, 2 }
 0x82d   : > { %v5374_v35 = vpop.permute.xlu0 %5373  ;;  %vm16734_vm0 = vmmov %vm16730_vm9  ;;  %v5311_v23 = vsel %vm16739_vm12, %v5292_v42, 0.0  ;;  %v5500_v52 = vadd.f32 %v5484_v57, %v5339_v29  ;;  %v5868_v18 = vrot.slane %v13672_v14, 6  ;;  %v5801_v42 = vadd.f32 %v5785_v40, %v5641_v15 }
 0x82e   : > { %v5406_v30 = vrot.slane %v5374_v35, 2  ;;  %v5294_v10 = vpop.permute.xlu1 %5293  ;;  %vm13909_vm3 = vcmp.lt.s32.totalorder %v16736_v2, 14  ;;  %v16742_v35 = vld [vmem:[#allocation20_spill] sm:$0xff]  ;;  %v5732_v3 = vsel %vm5407_vm5, %v5722_v63, %v5723_v11  ;;  %vm16743_vm9 = vmmov %vm16739_vm12  ;;  %v5643_v29 = vadd.f32 %v5572_v25, %v5499_v53 }
 0x82f   : > { %v5312_v12 = vsel %vm16734_vm0, %v5294_v10, 0.0  ;;  %v5628_v14 = vsel %vm12921_vm10, %v5571_v61, 0.0  ;;  %v16746_v15 = vrot.slane %v13617_v51, 6  ;;  %v5731_v40 = vsel %vm5407_vm5, %v5723_v11, %v5724_v58 }
 0x830   : > { %v5408_v7 = vsel %vm5407_vm5, %v15547_v27, %v5406_v30  ;;  %v5423_v49 = vsel %vm5407_vm5, %v5406_v30, %v16741_v1  ;;  %v5328_v10 = vadd.f32 %v5312_v12, %v16742_v35  ;;  %v5869_v27 = vrot.slane %v13815_v62, 6 }
 0x831   : > { %v5473_v2 = vsel %vm13895_vm14, %v5423_v49, 0.0  ;;  %v13927_v56 = vpop.permute.xlu0 %5369  ;;  %v5472_v8 = vsel %vm16743_vm9, %v5408_v7, 0.0  ;;  %v5327_v12 = vadd.f32 %v5311_v23, %v16745_v37  ;;  %v5876_v63 = vsel %vm5150_vm13, %v16746_v15, %v5867_v45 }
 0x832   : > { %v5489_v30 = vadd.f32 %v5473_v2, %v5328_v10  ;;  %v13934_v1 = vpop.permute.xlu1 %5534  ;;  %v5403_v62 = vrot.slane %v13681_v34, 2  ;;  %v5875_v53 = vsel %vm5150_vm13, %v5867_v45, %v5868_v18  ;;  %v5725_v25 = vrot.slane %v13726_v20, 2  ;;  %v16752_v2 = vld [vmem:[#allocation233_spill] sm:$0xff]  ;;  %v16766_v34 = vld [vmem:[#allocation124_spill] sm:$0xff] }
 0x833   : > { %v5567_v49 = vrot.slane %v13934_v1, 6  ;;  %v5488_v61 = vadd.f32 %v5472_v8, %v5327_v12  ;;  %v16747_v23 = vrot.slane %v16674_v33, 6  ;;  %vm16748_vm14 = vcmp.lt.s32.totalorder %v16682_v59, 7 }
 0x834   : > { %v5633_v7 = vadd.f32 %v13734_v24, %v5489_v30  ;;  %vm13961_vm0 = vmand %vm16748_vm14, %vm12879_vm15  ;;  %v5874_v24 = vsel %vm5150_vm13, %v5868_v18, %v5869_v27  ;;  %v5870_v11 = vrot.slane %v13853_v44, 6  ;;  %vm16751_vm12 = vcmp.ge.s32.totalorder %v16685_v46, 2 }
 0x835   : > { %v5583_v51 = vsel %vm5150_vm13, %v5567_v49, %v16747_v23  ;;  %v5288_v35 = vpop.permute.xlu0 %5287  ;;  %v16753_v8 = vand.u32 15, %v16752_v2  ;;  %v5787_v30 = vsel %vm13700_vm2, %v5731_v40, 0.0  ;;  %vm16756_vm15 = vcmp.lt.s32.totalorder %v16673_v32, 7  ;;  %v16793_v2 = vld [vmem:[#allocation23_spill] sm:$0xff] }
 0x836   : > { %v5793_v33 = vadd.f32 %v13777_v39, %v5633_v7  ;;  %v5616_v45 = vsel %vm16751_vm12, %v5583_v51, 0.0  ;;  %v5286_v10 = vpop.permute.xlu1 %5285  ;;  %v5945_v18 = vsel %vm16756_vm15, %v5876_v63, 0.0  ;;  %v5802_v12 = vadd.f32 %v5732_v3, %v5642_v36  ;;  %v16758_v51 = vld [vmem:[#allocation140_spill] sm:$0xff] }
 0x837   : > { %vm13973_vm9 = vcmp.lt.s32.totalorder %v16753_v8, 14  ;;  %v5632_v37 = vadd.f32 %v5616_v45, %v5488_v61  ;;  %v5644_v15 = vadd.f32 %v5628_v14, %v5500_v52  ;;  %v16757_v39 = vrot.slane %v13639_v43, 2 }
 0x838   : > { %v5953_v23 = vadd.f32 %v5937_v54, %v5793_v33  ;;  %vm16759_vm14 = vcmp.ge.s32.totalorder %v16758_v51, 1  ;;  %v5946_v47 = vsel %vm13961_vm0, %v5875_v53, 0.0  ;;  %v5730_v3 = vsel %vm5407_vm5, %v5724_v58, %v5725_v25 }
 0x839   : > { %v5411_v7 = vsel %vm5407_vm5, %v16757_v39, %v5403_v62  ;;  %vm13989_vm12 = vmand %vm16759_vm14, %vm13909_vm3  ;;  %v5404_v43 = vrot.slane %v13927_v56, 2  ;;  %v5792_v54 = vadd.f32 %v13757_v16, %v5632_v37  ;;  %v14001_v36 = vpop.permute.xlu0 %5530  ;;  %v5947_v52 = vsel %vm4792_vm4, %v5874_v24, 0.0 }
 0x83a   : > { %v5873_v14 = vsel %vm5150_vm13, %v5869_v27, %v5870_v11  ;;  %v6065_v63 = vadd.f32 %v13802_v28, %v5953_v23  ;;  %v5290_v40 = vpop.permute.xlu1 %5289  ;;  %v5961_v53 = vadd.f32 %v5945_v18, %v5801_v42  ;;  %v5803_v61 = vadd.f32 %v5787_v30, %v5643_v29 }
 0x83b   : > { %vm16762_vm2 = vcmp.lt.s32.totalorder %v16694_v60, 7  ;;  %v16765_v16 = vsel %vm13721_vm11, %v13715_v48, 0.0  ;;  %vm16767_vm15 = vcmp.ge.s32.totalorder %v16766_v34, 1  ;;  %v5485_v28 = vsel %vm13989_vm12, %v5411_v7, 0.0 }
 0x83c   : > { %vm14014_vm0 = vmand %vm16762_vm2, %vm12921_vm10  ;;  %v5952_v58 = vadd.f32 %v16765_v16, %v5792_v54  ;;  %v5325_v27 = vsel %vm16767_vm15, %v5288_v35, 0.0  ;;  %v5324_v42 = vsel %vm16759_vm14, %v5286_v10, 0.0  ;;  %v16768_v29 = vsel %vm13694_vm1, %v16696_v0, 0.0  ;;  %v16769_v35 = vld [vmem:[#allocation32_spill] sm:$0xff] }
 0x83d   : > { %v6177_v57 = vadd.f32 %v16768_v29, %v6065_v63  ;;  %v5963_v24 = vadd.f32 %v5947_v52, %v5803_v61  ;;  %v5962_v33 = vadd.f32 %v5946_v47, %v5802_v12  ;;  %v5804_v13 = vadd.f32 %v5730_v3, %v5644_v15  ;;  %v5991_v30 = vpop.permute.xlu0 %5990  ;;  %v16772_v0 = vld [vmem:[#allocation100_spill] sm:$0xff]  ;;  %vm16779_vm2 = vmmov %vm16767_vm15  ;;  %v16780_v3 = vld [vmem:[#allocation102_spill] sm:$0xff] }
 0x83e   : > { %v5410_v48 = vsel %vm5407_vm5, %v5403_v62, %v5404_v43  ;;  %v6064_v45 = vadd.f32 %v13797_v38, %v5952_v58  ;;  %vm16770_vm10 = vcmp.ge.s32.totalorder %v16769_v35, 1  ;;  %v5948_v10 = vsel %vm14014_vm0, %v5873_v14, 0.0  ;;  %v5533_v15 = vpop.permute.xlu1 %5532  ;;  %v16783_v29 = vld [vmem:[#allocation155_spill] sm:$0xff] }
 0x83f   : > { %v5326_v8 = vsel %vm16770_vm10, %v5290_v40, 0.0  ;;  %v6193_v37 = vrot.slane %v6177_v57, 2  ;;  %v5341_v18 = vadd.f32 %v5325_v27, %v16771_v41  ;;  %v5340_v39 = vadd.f32 %v5324_v42, %v16772_v0  ;;  %vm16775_vm1 = vmmov %vm16770_vm10 }
 0x840   : > { %vm16773_vm11 = vcmp.lt.s32.totalorder %v16673_v32, 7  ;;  %v16774_v62 = vrot.slane %v13866_v5, 2  ;;  %v14048_v7 = vadd.f32 %v13739_v4, %v6064_v45  ;;  %v5565_v23 = vrot.slane %v14001_v36, 6  ;;  %vm14055_vm12 = vmand %vm16775_vm1, %vm13973_vm9 }
 0x841   : > { %v6057_v12 = vsel %vm16773_vm11, %v5991_v30, 0.0  ;;  %v16778_v47 = vrot.slane %v13317_v21, 2  ;;  %v5486_v4 = vsel %vm16779_vm2, %v5410_v48, 0.0  ;;  %v5964_v54 = vadd.f32 %v5948_v10, %v5804_v13  ;;  %v5995_v61 = vpop.permute.xlu0 %5994 }
 0x842   : > { %v5409_v38 = vsel %vm5407_vm5, %v5404_v43, %v16774_v62  ;;  %v6073_v32 = vadd.f32 %v6057_v12, %v5961_v53  ;;  %v5342_v43 = vadd.f32 %v5326_v8, %v16780_v3  ;;  %v6192_v52 = vrot.slane %v14048_v7, 2  ;;  %v5993_v42 = vpop.permute.xlu1 %5992  ;;  %v16790_v62 = vld [vmem:[#allocation151_spill] sm:$0xff] }
 0x843   : > { %v6221_v5 = vsel %vm5407_vm5, %v6193_v37, %v16778_v47  ;;  %v16782_v63 = vsel %vm13748_vm8, %v16711_v22, 0.0  ;;  %v5566_v53 = vrot.slane %v5533_v15, 6  ;;  %v5502_v56 = vadd.f32 %v5486_v4, %v5341_v18  ;;  %v16788_v18 = vld [vmem:[#allocation158_spill] sm:$0xff] }
 0x844   : > { %v6225_v36 = vmax.f32 %v6177_v57, %v6221_v5  ;;  %v14071_v40 = vadd.f32 %v16782_v63, %v6073_v32  ;;  %v5501_v16 = vadd.f32 %v5485_v28, %v5340_v39  ;;  %v5487_v58 = vsel %vm14055_vm12, %v5409_v38, 0.0  ;;  %v16784_v57 = vld [vmem:[#allocation154_spill] sm:$0xff] }
 0x845   : > { %v6059_v27 = vsel %vm4792_vm4, %v5995_v61, 0.0  ;;  %v16785_v13 = vmax.f32 %v16783_v29, %v16784_v57  ;;  %v6222_v22 = vsel %vm5407_vm5, %v6192_v52, %v6193_v37  ;;  %v16786_v45 = vrot.slane %v13665_v26, 6  ;;  %v5693_v12 = vpop.permute.xlu0 %5692 }
 0x846   : > { %v6201_v8 = vrot.slane %v14071_v40, 2  ;;  %v6224_v19 = vmax.f32 %v14048_v7, %v6222_v22  ;;  %v5503_v30 = vadd.f32 %v5487_v58, %v5342_v43  ;;  %v6075_v10 = vadd.f32 %v6059_v27, %v5963_v24  ;;  %v5997_v3 = vpop.permute.xlu1 %5996 }
 0x847   : > { %v6241_v48 = vmax.f32 %v6225_v36, %v16785_v13  ;;  %v5570_v28 = vsel %vm5150_vm13, %v16786_v45, %v5565_v23  ;;  %vm16787_vm8 = vcmp.lt.s32.totalorder %v16682_v59, 7  ;;  %vm15550_vm4 = vcmask 261120   ;;  %v16797_v45 = vld [vmem:[#allocation9_spill] sm:$0xff] }
 0x848   : > { %v6058_v41 = vsel %vm16787_vm8, %v5993_v42, 0.0  ;;  %v16789_v0 = vrot.slane %v16788_v18, 2  ;;  %v5568_v26 = vsel %vm5150_vm13, %v5566_v53, %v5567_v49  ;;  %v16791_v24 = vmax.f32 %v13317_v21, %v16790_v62 }
 0x849   : > { %v6074_v39 = vadd.f32 %v6058_v41, %v5962_v33  ;;  %v6257_v15 = vmul.f32 0.2, %v6241_v48  ;;  %v16794_v32 = vsel %vm13790_vm6, %v16793_v2, 0.0  ;;  %v5726_v4 = vrot.slane %v5693_v12, 2 }
 0x84a   : > { %v6214_v37 = vsel %vm5407_vm5, %v16789_v0, %v6201_v8  ;;  %v6240_v38 = vmax.f32 %v6224_v19, %v16791_v24  ;;  %v6187_v47 = vadd.f32 %v16794_v32, %v6075_v10  ;;  %vm4795_vm0 = vcmp.lt.s32.totalorder %v16766_v34, 7 }
 0x84b   : > { %v6232_v5 = vmax.f32 %v16788_v18, %v6214_v37  ;;  %v5569_v1 = vsel %vm5150_vm13, %v5565_v23, %v5566_v53  ;;  %v6186_v49 = vadd.f32 %v13873_v6, %v6074_v39  ;;  %vm16795_vm15 = vcmp.lt.s32.totalorder %v16694_v60, 7  ;;  %v5809_v23 = vpop.permute.xlu0 %5808  ;;  %vm14154_vm11 = vmand %vm4795_vm0, %vm12964_vm7  ;;  %v16809_v6 = vld [vmem:[#allocation149_spill] sm:$0xff] }
 0x84c   : > { %v6060_v21 = vsel %vm16795_vm15, %v5997_v3, 0.0  ;;  %vm6249_vm14 = vcmp.gt.f32.partialorder %v6241_v48, 0.0  ;;  %vm4796_vm10 = vcmp.lt.s32.totalorder %v16769_v35, 7  ;;  %v5645_v33 = vadd.f32 %v5570_v28, %v5501_v16  ;;  %v5695_v16 = vpop.permute.xlu1 %5694 }
 0x84d   : > { %v6203_v43 = vrot.slane %v6187_v47, 2  ;;  %v6076_v36 = vadd.f32 %v6060_v21, %v5964_v54  ;;  %vm6248_vm6 = vcmp.gt.f32.partialorder %v6240_v38, 0.0  ;;  %v5647_v14 = vadd.f32 %v5568_v26, %v5503_v30  ;;  %v16799_v30 = vld [vmem:[#allocation36_spill] sm:$0xff] }
 0x84e   : > { %v6202_v63 = vrot.slane %v6186_v49, 2  ;;  %v5729_v61 = vsel %vm5407_vm5, %v5725_v25, %v5726_v4  ;;  %v6256_v53 = vmul.f32 0.2, %v6240_v38  ;;  %v5630_v60 = vsel %vm12964_vm7, %v5569_v1, 0.0  ;;  %vm14180_vm7 = vmand %vm4796_vm10, %vm13973_vm9 }
 0x84f   : > { %v14122_v58 = vadd.f32 %v13881_v55, %v6076_v36  ;;  %v5856_v27 = vrot.slane %v5809_v23, 6  ;;  %v6265_v42 = vsel %vm6249_vm14, %v6241_v48, %v6257_v15  ;;  %v5727_v29 = vrot.slane %v5695_v16, 2  ;;  %v5969_v41 = vpop.permute.xlu0 %5968 }
 0x850   : > { %v6212_v54 = vsel %vm5407_vm5, %v6202_v63, %v6203_v43  ;;  %v6213_v20 = vsel %vm5407_vm5, %v6201_v8, %v6202_v63  ;;  %v6264_v57 = vsel %vm6248_vm6, %v6240_v38, %v6256_v53  ;;  %v5789_v22 = vsel %vm13909_vm3, %v5729_v61, 0.0  ;;  %v5839_v39 = vpop.permute.xlu1 %5838  ;;  %v16803_v38 = vld [vmem:[#allocation148_spill] sm:$0xff] }
 0x851   : > { %v6233_v25 = vmax.f32 %v14071_v40, %v6213_v20  ;;  %v6234_v13 = vmax.f32 %v6186_v49, %v6212_v54  ;;  %v6204_v55 = vrot.slane %v14122_v58, 2  ;;  %v16798_v28 = vrot.slane %v16797_v45, 6 }
 0x852   : > { %v5728_v19 = vsel %vm5407_vm5, %v5726_v4, %v5727_v29  ;;  %v16800_v8 = vrot.slane %v16799_v30, 2  ;;  %v6305_v40 = vpack.c.bf16 %v6265_v42, %v6264_v57  ;;  %v5646_v18 = vadd.f32 %v5630_v60, %v5502_v56  ;;  %v16811_v42 = vld [vmem:[#allocation157_spill] sm:$0xff] }
 0x853   : > { %v5886_v48 = vsel %vm5150_vm13, %v5856_v27, %v16798_v28  ;;  %v6244_v0 = vmax.f32 %v6232_v5, %v6234_v13  ;;  %v6211_v37 = vsel %vm5407_vm5, %v6203_v43, %v6204_v55  ;;  %v5871_v15 = vrot.slane %v5839_v39, 6  ;;  %v5999_v4 = vpop.permute.xlu0 %5998 }
 0x854   : > { %v5743_v10 = vsel %vm5407_vm5, %v5727_v29, %v16800_v8  ;;  %v6235_v12 = vmax.f32 %v6187_v47, %v6211_v37  ;;  %7906 = vmatmul.mubr.msk.bf16.vlgmr.msra.gmra.mrb[48].mxu1 %vm15550_vm4, %v6305_v40  ;;  %7971 = vmatprep.mubr.msk.bf16.mxu0 %vm15550_vm4, %v6305_v40  ;;  %vm4794_vm1 = vcmp.lt.s32.totalorder %v16758_v51, 7  ;;  %v5806_v24 = vadd.f32 %v5728_v19, %v5646_v18 }
 0x855   : > { %v5791_v26 = vsel %vm13973_vm9, %v5743_v10, 0.0  ;;  %7972 = vmatmul.mubr.msk.bf16.vlgmr.msra.gmra.mrb[64].mxu0 %vm15550_vm4, %v16803_v38  ;;  %v5805_v59 = vadd.f32 %v5789_v22, %v5645_v33  ;;  %v5951_v2 = vsel %vm4796_vm10, %v5886_v48, 0.0  ;;  %v16804_v32 = vmov 0  }
 0x856   : > { %v5807_v62 = vadd.f32 %v5791_v26, %v5647_v14  ;;  %6396 = vmatprep.mubr.bf16.mxu1 %v16804_v32  ;;  %vm6252_vm12 = vcmp.gt.f32.partialorder %v6244_v0, 0.0  ;;  %v5872_v47 = vsel %vm5150_vm13, %v5870_v11, %v5871_v15  ;;  %v5887_v5 = vsel %vm5150_vm13, %v5871_v15, %v5856_v27  ;;  %v5971_v11 = vpop.permute.xlu1 %5970  ;;  %vm14188_vm13 = vmand %vm4794_vm1, %vm13909_vm3  ;;  %v16810_v27 = vld [vmem:[#allocation139_spill] sm:$0xff] }
 0x857   : > { %v6245_v1 = vmax.f32 %v6233_v25, %v6235_v12  ;;  %v5950_v49 = vsel %vm14154_vm11, %v5887_v5, 0.0  ;;  %v5949_v21 = vsel %vm4794_vm1, %v5872_v47, 0.0  ;;  %v6061_v33 = vsel %vm4794_vm1, %v5999_v4, 0.0 }
 0x858   : > { %v5967_v3 = vadd.f32 %v5951_v2, %v5807_v62  ;;  %v6260_v43 = vmul.f32 0.2, %v6244_v0  ;;  %v5966_v36 = vadd.f32 %v5950_v49, %v5806_v24  ;;  %v5965_v63 = vadd.f32 %v5949_v21, %v5805_v59 }
 0x859   : > { %v6063_v9 = vsel %vm4796_vm10, %v5971_v11, 0.0  ;;  %vm6253_vm2 = vcmp.gt.f32.partialorder %v6245_v1, 0.0  ;;  %v6062_v61 = vsel %vm4795_vm0, %v5969_v41, 0.0  ;;  %v6261_v53 = vmul.f32 0.2, %v6245_v1 }
 0x85a   : > { %v6079_v23 = vadd.f32 %v6063_v9, %v5967_v3  ;;  %v6174_v17 = vsel %vm4795_vm0, %v16809_v6, 0.0  ;;  %v6078_v60 = vadd.f32 %v6062_v61, %v5966_v36  ;;  %v6077_v51 = vadd.f32 %v6061_v33, %v5965_v63  ;;  %v14279_v36 = vld [vmem:[%s15187_s6] ss:$0 sm:$0xff] }
 0x85b   : > { %v6175_v16 = vsel %vm14180_vm7, %v16810_v27, 0.0  ;;  %v6173_v35 = vsel %vm14188_vm13, %v16811_v42, 0.0  ;;  %v6268_v20 = vsel %vm6252_vm12, %v6244_v0, %v6260_v43  ;;  %v6269_v29 = vsel %vm6253_vm2, %v6245_v1, %v6261_v53  ;;  %v16816_v27 = vld [vmem:[#allocation22_spill] sm:$0xff] }
 0x85c   : > { %v6191_v54 = vadd.f32 %v6175_v16, %v6079_v23  ;;  %v6190_v57 = vadd.f32 %v6174_v17, %v6078_v60  ;;  %v6189_v25 = vadd.f32 %v6173_v35, %v6077_v51  ;;  %7907 = vmatmul.mubr.msk.bf16.gmra.mrb[52].mxu1 %vm15550_vm4, %v16803_v38  ;;  %v6307_v34 = vpack.c.bf16 %v6269_v29, %v6268_v20  ;;  %v16813_v23 = vld [vmem:[#allocation11_spill] sm:$0xff]  ;;  %v16815_v17 = vld [vmem:[#allocation21_spill] sm:$0xff] }
 0x85d   : > { %6406 = vmatprep.mubr.bf16.mxu1 %v16804_v32  ;;  %vm16814_vm8 = vcmp.ge.s32.totalorder %v16813_v23, 1  ;;  %vm6293_vm0 = vcmp.ge.s32.totalorder %v16815_v17, 4  ;;  %vm16817_vm15 = vcmp.ge.s32.totalorder %v16816_v27, 1  ;;  %vm6289_vm11 = vcmp.ge.s32.totalorder %v16685_v46, 4 }
 0x85e   : > { %v6207_v13 = vrot.slane %v6191_v54, 2  ;;  %v6205_v22 = vrot.slane %v6189_v25, 2  ;;  %v6206_v45 = vrot.slane %v6190_v57, 2  ;;  %7975 = vmatprep.mubr.msk.bf16.mxu0 %vm15550_vm4, %v6307_v34  ;;  %vm6527_vm14 = vmand %vm16817_vm15, %vm6293_vm0  ;;  %vm16827_vm13 = vcmp.ge.s32.totalorder %v16665_v50, 1 }
 0x85f   : > { %vm14369_vm2 = vmand %vm16827_vm13, %vm6289_vm11  ;;  %vm6281_vm13 = vcmp.lt.s32.totalorder %v16665_v50, 3 }
 0x860   : > { %v6223_v28 = vsel %vm5407_vm5, %v6207_v13, %v6192_v52  ;;  %v6209_v48 = vsel %vm5407_vm5, %v6205_v22, %v6206_v45  ;;  %v6210_v19 = vsel %vm5407_vm5, %v6204_v55, %v6205_v22  ;;  %v6208_v30 = vsel %vm5407_vm5, %v6206_v45, %v6207_v13  ;;  %v16818_v22 = vld [vmem:[#allocation114_spill] sm:$0xff] }
 0x861   : > { %v6239_v8 = vmax.f32 %v6191_v54, %v6223_v28  ;;  %v6236_v10 = vmax.f32 %v14122_v58, %v6210_v19  ;;  %v6237_v40 = vmax.f32 %v6189_v25, %v6209_v48  ;;  %v6238_v41 = vmax.f32 %v6190_v57, %v6208_v30  ;;  %v16820_v48 = vld [vmem:[#allocation213_spill] sm:$0xff] }
 0x862   : > { %vm6514_vm5 = vcmp.lt.s32.totalorder %v16397_v31, 4  ;;  %vm16819_vm10 = vcmp.ge.s32.totalorder %v16818_v22, 1  ;;  %vm15552_vm6 = vcmp.ge.s32.totalorder %v16820_v48, 4  ;;  %v8154_v31 = vmov 0.0  }
 0x863   : > { %v6247_v7 = vmax.f32 %v6237_v40, %v6239_v8  ;;  %v6246_v18 = vmax.f32 %v6236_v10, %v6238_v41 }
 0x864   : > { %7908 = vmatmul.mubr.msk.bf16.gmra.mrb[56].mxu1 %vm15550_vm4, %v6307_v34 }
 0x865   : > { %6416 = vmatprep.mubr.bf16.mxu1 %v16804_v32  ;;  %vm6254_vm3 = vcmp.gt.f32.partialorder %v6246_v18, 0.0  ;;  %vm6255_vm9 = vcmp.gt.f32.partialorder %v6247_v7, 0.0  ;;  %v6262_v52 = vmul.f32 0.2, %v6246_v18  ;;  %v6263_v0 = vmul.f32 0.2, %v6247_v7 }
 0x867   : > { %v6270_v37 = vsel %vm6254_vm3, %v6246_v18, %v6262_v52  ;;  %v6271_v55 = vsel %vm6255_vm9, %v6247_v7, %v6263_v0  ;;  %v16821_v7 = vld [vmem:[#allocation196_spill] sm:$0xff]  ;;  %v16822_v18 = vld [vmem:[#allocation210_spill] sm:$0xff] }
 0x868   : > { %v6308_v26 = vpack.c.bf16 %v6271_v55, %v6270_v37  ;;  %vm6291_vm1 = vcmp.ge.s32.totalorder %v16821_v7, 4  ;;  %vm16823_vm12 = vcmp.ge.s32.totalorder %v16822_v18, 1 }
 0x869   : > { %vm14343_vm7 = vmand %vm16823_vm12, %vm15552_vm6 }
 0x86a   : > { %7976 = vmatmul.mubr.msk.bf16.gmra.mrb[68].mxu0 %vm15550_vm4, %v6308_v26 }
 0x86c   : > { %7909 = vmatmul.mubr.msk.bf16.gmra.mrb[60].mxu1 %vm15550_vm4, %v6308_v26 }
 0x927   : > { %v14227_v58 = vpop.f32.mrb[48].mxu1 }
 0x928   : > { %v7973_v39 = vpop.f32.mrb[64].mxu0  ;;  %6611 = vrot.lane.b32.xlu1 %v14227_v58, %s15764_s16  ;;  %v14231_v12 = vpop.f32.mrb[49].mxu1  ;;  %v6506_v62 = vrot.slane %v14227_v58, 4 }
 0x929   : > { %v6392_v56 = vpop.f32.mrb[50].mxu1  ;;  %v14233_v15 = vpop.f32.mrb[65].mxu0  ;;  %v6981_v2 = vrot.slane %v7973_v39, 4  ;;  %v6498_v0 = vadd.f32 %v14279_v36, %v14231_v12 }
 0x92a   : > { %v6507_v24 = vrot.slane %v6392_v56, 4  ;;  %v14237_v38 = vpop.f32.mrb[66].mxu0  ;;  %6613 = vrot.lane.b32.xlu0 %v6392_v56, %s15764_s16  ;;  %v14240_v59 = vpop.f32.mrb[51].mxu1  ;;  %v6979_v5 = vrot.slane %v14233_v15, 4 }
 0x92b   : > { %v6982_v32 = vrot.slane %v14237_v38, 4  ;;  %v6464_v47 = vpop.f32.mrb[67].mxu0 }
 0x92c   : > { %v6980_v4 = vrot.slane %v6464_v47, 4  ;;  %6571 = vrot.lane.b32.xlu1 %v14227_v58, %s16544_s30  ;;  %v6521_v3 = vsel %vm6514_vm5, %v6506_v62, %v6507_v24 }
 0x92d   : > { %v14254_v1 = vsel %vm6514_vm5, %v6981_v2, %v6982_v32  ;;  %v6550_v53 = vsel %vm16814_vm8, %v6521_v3, 0.0 }
 0x92e   : > { %v14258_v49 = vsel %vm6514_vm5, %v6980_v4, %v6981_v2  ;;  %v14264_v21 = vsel %vm6514_vm5, %v6979_v5, %v6980_v4  ;;  %6573 = vrot.lane.b32.xlu0 %v6392_v56, %s16544_s30 }
 0x92f   : > { %16812 = vst [vmem:[#allocation62_spill] sm:$0xff] %v14258_v49  ;;  %v14267_v33 = vpop.f32.mrb[52].mxu1 }
 0x930   : > { %v6508_v44 = vrot.slane %v14267_v33, 4  ;;  %6691 = vrot.lane.b32.xlu1 %v14227_v58, %s15788_s23  ;;  %v14272_v11 = vpop.f32.mrb[53].mxu1 }
 0x931   : > { %v14274_v43 = vpop.f32.mrb[54].mxu1  ;;  %v6500_v2 = vadd.f32 %v14279_v36, %v14272_v11 }
 0x932   : > { %v6509_v14 = vrot.slane %v14274_v43, 4  ;;  %6693 = vrot.lane.b32.xlu0 %v6392_v56, %s15788_s23  ;;  %v14283_v63 = vpop.f32.mrb[55].mxu1  ;;  %v6520_v9 = vsel %vm6514_vm5, %v6507_v24, %v6508_v44  ;;  %v6499_v24 = vadd.f32 %v14279_v36, %v14240_v59 }
 0x933   : > { %v6501_v61 = vadd.f32 %v14279_v36, %v14283_v63  ;;  %v6551_v57 = vsel %vm6527_vm14, %v6520_v9, 0.0 }
 0x934   : > { %6771 = vrot.lane.b32.xlu1 %v14231_v12, %s16544_s30  ;;  %v6519_v6 = vsel %vm6514_vm5, %v6508_v44, %v6509_v14 }
 0x935   : > { %v14296_v60 = vadd.f32 %v6550_v53, %v6501_v61  ;;  %v6552_v45 = vsel %vm16819_vm10, %v6519_v6, 0.0  ;;  %v16831_v53 = vld [vmem:[#allocation185_spill] sm:$0xff] }
 0x936   : > { %6775 = vrot.lane.b32.xlu0 %v14272_v11, %s16544_s30  ;;  %vm16832_vm3 = vcmp.ge.s32.totalorder %v16831_v53, 1 }
 0x937   : > { %v14300_v51 = vpop.f32.mrb[56].mxu1  ;;  %vm14389_vm9 = vmand %vm16832_vm3, %vm6291_vm1 }
 0x938   : > { %v6510_v16 = vrot.slane %v14300_v51, 4  ;;  %6843 = vrot.lane.b32.xlu1 %v14231_v12, %s15764_s16  ;;  %v14309_v42 = vpop.f32.mrb[57].mxu1  ;;  %vm16841_vm14 = vmmov %vm16832_vm3 }
 0x939   : > { %v14311_v35 = vpop.f32.mrb[58].mxu1  ;;  %v6502_v54 = vadd.f32 %v14279_v36, %v14309_v42  ;;  %vm16842_vm10 = vmmov %vm16832_vm3 }
 0x93a   : > { %v6511_v20 = vrot.slane %v14311_v35, 4  ;;  %6847 = vrot.lane.b32.xlu0 %v14272_v11, %s15764_s16  ;;  %v14318_v29 = vpop.f32.mrb[59].mxu1  ;;  %v6518_v25 = vsel %vm6514_vm5, %v6509_v14, %v6510_v16 }
 0x93b   : > { %v6503_v34 = vadd.f32 %v14279_v36, %v14318_v29  ;;  %v14324_v13 = vadd.f32 %v6551_v57, %v6502_v54 }
 0x93c   : > { %6773 = vrot.lane.b32.xlu1 %v14240_v59, %s16544_s30  ;;  %v6517_v28 = vsel %vm6514_vm5, %v6510_v16, %v6511_v20  ;;  %v6553_v16 = vsel %vm14343_vm7, %v6518_v25, 0.0  ;;  %vm15554_vm7 = vcmp.lt.s32.totalorder %v16813_v23, 3 }
 0x93d   : > { %v7977_v19 = vpop.f32.mrb[68].mxu0  ;;  %v14333_v30 = vadd.f32 %v6552_v45, %v6503_v34  ;;  %v16835_v34 = vld [vmem:[#allocation214_spill] sm:$0xff] }
 0x93e   : > { %6617 = vrot.lane.b32.xlu0 %v14274_v43, %s15764_s16  ;;  %v6477_v8 = vpop.f32.mrb[69].mxu0  ;;  %v6985_v55 = vrot.slane %v7977_v19, 4  ;;  %vm16836_vm8 = vcmp.ge.s32.totalorder %v16835_v34, 1  ;;  %vm6288_vm6 = vcmp.lt.s32.totalorder %v16835_v34, 3 }
 0x93f   : > { %v6418_v10 = vpop.f32.mrb[60].mxu1  ;;  %v6983_v40 = vrot.slane %v6477_v8, 4  ;;  %v7978_v41 = vpop.f32.mrb[70].mxu0  ;;  %v6554_v45 = vsel %vm16836_vm8, %v6517_v28, 0.0  ;;  %vm15553_vm8 = vcmp.lt.s32.totalorder %v16816_v27, 3 }
 0x940   : > { %v6512_v37 = vrot.slane %v6418_v10, 4  ;;  %6845 = vrot.lane.b32.xlu1 %v14240_v59, %s15764_s16  ;;  %v14351_v26 = vpop.f32.mrb[61].mxu1  ;;  %v6986_v39 = vrot.slane %v7978_v41, 4  ;;  %v6480_v56 = vpop.f32.mrb[71].mxu0  ;;  %v16837_v41 = vld [vmem:[#allocation129_spill] sm:$0xff] }
 0x941   : > { %v14361_v47 = vsel %vm6514_vm5, %v6982_v32, %v6983_v40  ;;  %v6422_v4 = vpop.f32.mrb[62].mxu1  ;;  %v6984_v3 = vrot.slane %v6480_v56, 4  ;;  %v6504_v44 = vadd.f32 %v14279_v36, %v14351_v26  ;;  %vm16838_vm15 = vcmp.ge.s32.totalorder %v16837_v41, 1 }
 0x942   : > { %16826 = vst [vmem:[#allocation48_spill] sm:$0xff] %v14361_v47  ;;  %v6513_v9 = vrot.slane %v6422_v4, 4  ;;  %v14375_v38 = vsel %vm6514_vm5, %v6985_v55, %v6986_v39  ;;  %v14381_v32 = vsel %vm6514_vm5, %v6986_v39, %v6979_v5  ;;  %6577 = vrot.lane.b32.xlu0 %v14274_v43, %s16544_s30  ;;  %v6424_v61 = vpop.f32.mrb[63].mxu1  ;;  %v6516_v19 = vsel %vm6514_vm5, %v6511_v20, %v6512_v37 }
 0x943   : > { %16830 = vst [vmem:[#allocation153_spill] sm:$0xff] %v14381_v32  ;;  %v14397_v15 = vsel %vm6514_vm5, %v6984_v3, %v6985_v55  ;;  %v14401_v5 = vsel %vm6514_vm5, %v6983_v40, %v6984_v3  ;;  %v6505_v54 = vadd.f32 %v14279_v36, %v6424_v61  ;;  %v14404_v57 = vadd.f32 %v6553_v16, %v6504_v44 }
 0x944   : > { %6615 = vrot.lane.b32.xlu1 %v14267_v33, %s15764_s16  ;;  %v6522_v25 = vsel %vm6514_vm5, %v6513_v9, %v6506_v62  ;;  %v6515_v8 = vsel %vm6514_vm5, %v6512_v37, %v6513_v9  ;;  %v6547_v58 = vsel %vm14369_vm2, %v6516_v19, 0.0  ;;  %vm15551_vm2 = vcmp.lt.s32.totalorder %v16822_v18, 3 }
 0x945   : > { %v6549_v36 = vsel %vm14389_vm9, %v6522_v25, 0.0  ;;  %v14420_v40 = vadd.f32 %v6554_v45, %v6505_v54  ;;  %v6548_v62 = vsel %vm16838_vm15, %v6515_v8, 0.0  ;;  %v14430_v20 = vadd.f32 %v6547_v58, %v6498_v0 }
 0x946   : > { %6697 = vrot.lane.b32.xlu0 %v14274_v43, %s15788_s23  ;;  %v14428_v28 = vadd.f32 %v6549_v36, %v6500_v2  ;;  %v14432_v52 = vadd.f32 %v6548_v62, %v6499_v24  ;;  %vm6283_vm9 = vcmp.lt.s32.totalorder %v16831_v53, 3  ;;  %vm16846_vm15 = vcmp.ge.s32.totalorder %v16813_v23, 1 }
 0x947   : > { %v14595_v32 = vsel %vm6281_vm13, %v14254_v1, 0.0  ;;  %v14602_v47 = vsel %vm15551_vm2, %v14264_v21, 0.0  ;;  %v14616_v1 = vsel %vm15553_vm8, %v14375_v38, 0.0  ;;  %vm6282_vm2 = vcmp.lt.s32.totalorder %v16837_v41, 3 }
 0x948   : > { %16839 = vst [vmem:[#allocation146_spill] sm:$0xff] %v14432_v52  ;;  %6575 = vrot.lane.b32.xlu1 %v14267_v33, %s16544_s30  ;;  %16849 = vst [vmem:[#allocation50_spill] sm:$0xff] %v14595_v32  ;;  %vm16858_vm8 = vcmp.ge.s32.totalorder %v16818_v22, 1 }
 0x949   : > { %16850 = vst [vmem:[#allocation166_spill] sm:$0xff] %v14602_v47  ;;  %16852 = vst [vmem:[#allocation53_spill] sm:$0xff] %v14616_v1 }
 0x94a   : > { %6929 = vrot.lane.b32.xlu0 %v14283_v63, %s15788_s23 }
 0x94c   : > { %6695 = vrot.lane.b32.xlu1 %v14267_v33, %s15788_s23  ;;  %v8073_v33 = vld [vmem:[%s15188_s7] sm:$0xff]  }
 0x94d   : > { %7979 = vmatprep.subr.bf16.mxu1 %v8073_v33 }
 0x94e   : > { %6619 = vrot.lane.b32.xlu0 %v14300_v51, %s15764_s16  ;;  %7980 = vmatpush3.bf16.msra.mxu1 %v8073_v33 }
 0x950   : > { %6927 = vrot.lane.b32.xlu1 %v14272_v11, %s15788_s23  ;;  %v8074_v11 = vld [vmem:[%s15188_s7 + $0x8] sm:$0xff]  }
 0x951   : > { %7981 = vmatprep.subr.bf16.mxu1 %v8074_v11 }
 0x952   : > { %6779 = vrot.lane.b32.xlu0 %v14309_v42, %s16544_s30  ;;  %7982 = vmatpush3.bf16.msra.mxu1 %v8074_v11 }
 0x953   : > { %7987 = vmatprep.subr.mxu1 %v8154_v31 }
 0x954   : > { %6777 = vrot.lane.b32.xlu1 %v14283_v63, %s16544_s30 }
 0x956   : > { %6851 = vrot.lane.b32.xlu0 %v14309_v42, %s15764_s16 }
 0x958   : > { %6849 = vrot.lane.b32.xlu1 %v14283_v63, %s15764_s16 }
 0x95a   : > { %6581 = vrot.lane.b32.xlu0 %v14311_v35, %s16544_s30 }
 0x95c   : > { %6579 = vrot.lane.b32.xlu1 %v14300_v51, %s16544_s30 }
 0x95e   : > { %6781 = vrot.lane.b32.xlu0 %v14318_v29, %s16544_s30 }
 0x960   : > { %6699 = vrot.lane.b32.xlu1 %v14300_v51, %s15788_s23 }
 0x962   : > { %6583 = vrot.lane.b32.xlu0 %v6418_v10, %s16544_s30 }
 0x964   : > { %6621 = vrot.lane.b32.xlu1 %v14311_v35, %s15764_s16 }
 0x966   : > { %6703 = vrot.lane.b32.xlu0 %v6418_v10, %s15788_s23 }
 0x968   : > { %6701 = vrot.lane.b32.xlu1 %v14311_v35, %s15788_s23 }
 0x96a   : > { %6855 = vrot.lane.b32.xlu0 %v14351_v26, %s15764_s16 }
 0x96c   : > { %6853 = vrot.lane.b32.xlu1 %v14318_v29, %s15764_s16 }
 0x96e   : > { %6625 = vrot.lane.b32.xlu0 %v6422_v4, %s15764_s16 }
 0x970   : > { %6623 = vrot.lane.b32.xlu1 %v6418_v10, %s15764_s16 }
 0x972   : > { %6933 = vrot.lane.b32.xlu0 %v14318_v29, %s15788_s23 }
 0x974   : > { %6783 = vrot.lane.b32.xlu1 %v14351_v26, %s16544_s30 }
 0x976   : > { %6705 = vrot.lane.b32.xlu0 %v6422_v4, %s15788_s23 }
 0x978   : > { %6585 = vrot.lane.b32.xlu1 %v6422_v4, %s16544_s30 }
 0x97a   : > { %6785 = vrot.lane.b32.xlu0 %v6424_v61, %s16544_s30 }
 0x97c   : > { %6931 = vrot.lane.b32.xlu1 %v14309_v42, %s15788_s23 }
 0x97e   : > { %6857 = vrot.lane.b32.xlu0 %v6424_v61, %s15764_s16 }
 0x980   : > { %6935 = vrot.lane.b32.xlu1 %v14351_v26, %s15788_s23 }
 0x982   : > { %6923 = vrot.lane.b32.xlu0 %v14231_v12, %s15788_s23 }
 0x984   : > { %6925 = vrot.lane.b32.xlu1 %v14240_v59, %s15788_s23 }
 0x986   : > { %6937 = vrot.lane.b32.xlu0 %v6424_v61, %s15788_s23 }
 0x99a   : > { %v14495_v43 = vpop.permute.xlu1 %6611 }
 0x99b   : > { %v15548_v44 = vrot.slane %v14495_v43, 4 }
 0x99c   : > { %v14497_v63 = vpop.permute.xlu0 %6613 }
 0x99d   : > { %v6636_v4 = vrot.slane %v14497_v63, 4 }
 0x99e   : > { %v6572_v51 = vpop.permute.xlu1 %6571 }
 0x99f   : > { %v6597_v9 = vsel %vm16841_vm14, %v6572_v51, 0.0  ;;  %v6649_v6 = vsel %vm6514_vm5, %v15548_v44, %v6636_v4 }
 0x9a0   : > { %v6574_v42 = vpop.permute.xlu0 %6573  ;;  %v6605_v25 = vadd.f32 %v6597_v9, %v14428_v28  ;;  %v6677_v8 = vsel %vm16842_vm10, %v6649_v6, 0.0 }
 0x9a2   : > { %v14499_v35 = vpop.permute.xlu1 %6691  ;;  %v6685_v62 = vadd.f32 %v6677_v8, %v6605_v25 }
 0x9a4   : > { %v14501_v12 = vpop.permute.xlu0 %6693 }
 0x9a5   : > { %v6716_v16 = vrot.slane %v14501_v12, 4 }
 0x9a6   : > { %v14503_v29 = vpop.permute.xlu1 %6771 }
 0x9a7   : > { %16840 = vst [vmem:[#allocation162_spill] sm:$0xff] %v14503_v29 }
 0x9a8   : > { %v14505_v59 = vpop.permute.xlu0 %6775 }
 0x9a9   : > { %v6797_v11 = vrot.slane %v14505_v59, 4 }
 0x9aa   : > { %v14507_v10 = vpop.permute.xlu1 %6843 }
 0x9ac   : > { %v14509_v0 = vpop.permute.xlu0 %6847 }
 0x9ad   : > { %v6869_v21 = vrot.slane %v14509_v0, 4 }
 0x9ae   : > { %v14511_v37 = vpop.permute.xlu1 %6773 }
 0x9b0   : > { %v14513_v55 = vpop.permute.xlu0 %6617 }
 0x9b2   : > { %v14515_v26 = vpop.permute.xlu1 %6845 }
 0x9b4   : > { %v14517_v39 = vpop.permute.xlu0 %6577 }
 0x9b5   : > { %v6600_v47 = vsel %vm16858_vm8, %v14517_v39, 0.0 }
 0x9b6   : > { %v14519_v56 = vpop.permute.xlu1 %6615 }
 0x9b7   : > { %v6637_v25 = vrot.slane %v14519_v56, 4  ;;  %v16848_v56 = vld [vmem:[#allocation89_spill] sm:$0xff] }
 0x9b8   : > { %v14521_v24 = vpop.permute.xlu0 %6697  ;;  %vm6302_vm10 = vcmp.lt.s32.totalorder %v16848_v56, 12  ;;  %v16863_v56 = vrot.slane %v14503_v29, 4  ;;  %v6608_v29 = vadd.f32 %v6600_v47, %v14333_v30 }
 0x9ba   : > { %v14523_v2 = vpop.permute.xlu1 %6575 }
 0x9bc   : > { %v14526_v3 = vpop.permute.xlu0 %6929 }
 0x9bd   : > { %v14741_v39 = vsel %vm6282_vm2, %v14526_v3, 0.0 }
 0x9be   : > { %v14529_v14 = vpop.permute.xlu1 %6695 }
 0x9bf   : > { %v15549_v61 = vrot.slane %v14529_v14, 4 }
 0x9c0   : > { %v14539_v54 = vpop.permute.xlu0 %6619 }
 0x9c1   : > { %v6728_v45 = vsel %vm6514_vm5, %v6716_v16, %v15549_v61  ;;  %v6639_v38 = vrot.slane %v14539_v54, 4 }
 0x9c2   : > { %v14546_v19 = vpop.permute.xlu1 %6927  ;;  %v6749_v58 = vsel %vm6291_vm1, %v6728_v45, 0.0  ;;  %v16843_v45 = vld [vmem:[#allocation200_spill] sm:$0xff] }
 0x9c3   : > { %v6757_v63 = vadd.f32 %v6749_v58, %v6685_v62  ;;  %vm6300_vm12 = vcmp.lt.s32.totalorder %v16843_v45, 12  ;;  %v6598_v62 = vsel %vm16846_vm15, %v6574_v42, 0.0  ;;  %v14750_v7 = vsel %vm6281_vm13, %v14546_v19, 0.0 }
 0x9c4   : > { %v14550_v36 = vpop.permute.xlu0 %6779  ;;  %vm14580_vm3 = vmand %vm15554_vm7, %vm6300_vm12  ;;  %v6606_v32 = vadd.f32 %v6598_v62, %v14296_v60  ;;  %v16855_v60 = vrot.slane %v14499_v35, 4  ;;  %v6718_v62 = vrot.slane %v14521_v24, 4  ;;  %v16888_v58 = vrot.slane %v14495_v43, 4 }
 0x9c5   : > { %vm14624_vm4 = vmand %vm16846_vm15, %vm6300_vm12  ;;  %vm16857_vm15 = vcmp.ge.s32.totalorder %v16816_v27, 1  ;;  %v16892_v43 = vrot.slane %v14499_v35, 4 }
 0x9c6   : > { %v6778_v33 = vpop.permute.xlu1 %6777  ;;  %v14639_v0 = vsel %vm6514_vm5, %v16855_v60, %v6716_v16  ;;  %v15557_v16 = vrot.slane %v14550_v36, 4  ;;  %vm14676_vm7 = vmand %vm16858_vm8, %vm6302_vm10 }
 0x9c7   : > { %v6798_v28 = vrot.slane %v6778_v33, 4  ;;  %v16847_v33 = vld [vmem:[#allocation35_spill] sm:$0xff]  ;;  %16856 = vst [vmem:[#allocation34_spill] sm:$0xff] %v14639_v0 }
 0x9c8   : > { %v14555_v51 = vpop.permute.xlu0 %6851  ;;  %vm6298_vm14 = vcmp.lt.s32.totalorder %v16847_v33, 12 }
 0x9c9   : > { %v6807_v12 = vsel %vm6514_vm5, %v6797_v11, %v6798_v28  ;;  %v6806_v24 = vsel %vm6514_vm5, %v6798_v28, %v15557_v16  ;;  %v16865_v28 = vrot.slane %v14529_v14, 4  ;;  %v16866_v16 = vrot.slane %v14507_v10, 4 }
 0x9ca   : > { %v14559_v9 = vpop.permute.xlu1 %6849  ;;  %v14561_v44 = vadd.f32 %v6807_v12, %v6757_v63  ;;  %v6796_v63 = vrot.slane %v14511_v37, 4  ;;  %v6868_v12 = vrot.slane %v14515_v26, 4  ;;  %v14611_v26 = vsel %vm6283_vm9, %v14401_v5, 0.0 }
 0x9cb   : > { %16851 = vst [vmem:[#allocation44_spill] sm:$0xff] %v14611_v26  ;;  %v6648_v5 = vsel %vm6514_vm5, %v6636_v4, %v6637_v25  ;;  %v6638_v4 = vrot.slane %v14513_v55, 4  ;;  %v6599_v26 = vsel %vm16857_vm15, %v14523_v2, 0.0  ;;  %vm14668_vm15 = vmand %vm6281_vm13, %vm6289_vm11  ;;  %v6870_v37 = vrot.slane %v14559_v9, 4 }
 0x9cc   : > { %v14563_v6 = vpop.permute.xlu0 %6581  ;;  %v6808_v1 = vsel %vm6514_vm5, %v6796_v63, %v6797_v11  ;;  %v14648_v54 = vsel %vm6514_vm5, %v6868_v12, %v6869_v21  ;;  %v6678_v11 = vsel %vm14624_vm4, %v6648_v5, 0.0  ;;  %v14694_v22 = vsel %vm6514_vm5, %v16863_v56, %v6796_v63 }
 0x9cd   : > { %v6647_v55 = vsel %vm6514_vm5, %v6637_v25, %v6638_v4  ;;  %v6646_v25 = vsel %vm6514_vm5, %v6638_v4, %v6639_v38  ;;  %16864 = vst [vmem:[#allocation164_spill] sm:$0xff] %v14694_v22  ;;  %v14698_v4 = vsel %vm6298_vm14, %v6808_v1, 0.0  ;;  %v6607_v52 = vadd.f32 %v6599_v26, %v14324_v13  ;;  %v16868_v1 = vld [vmem:[#allocation220_spill] sm:$0xff] }
 0x9ce   : > { %v14565_v61 = vpop.permute.xlu1 %6579  ;;  %v6727_v9 = vsel %vm6514_vm5, %v16865_v28, %v6718_v62  ;;  %v6881_v5 = vsel %vm6514_vm5, %v16866_v16, %v6868_v12  ;;  %v6686_v56 = vadd.f32 %v6678_v11, %v6606_v32  ;;  %v6871_v63 = vrot.slane %v14555_v51, 4 }
 0x9cf   : > { %vm16867_vm4 = vcmp.ge.s32.totalorder %v16816_v27, 1  ;;  %v6680_v14 = vsel %vm14676_vm7, %v6646_v25, 0.0  ;;  %v6907_v26 = vsel %vm14668_vm15, %v14648_v54, 0.0  ;;  %v6830_v12 = vsel %vm6300_vm12, %v6806_v24, 0.0  ;;  %vm14734_vm7 = vmand %vm6283_vm9, %vm6291_vm1 }
 0x9d0   : > { %v14569_v59 = vpop.permute.xlu0 %6781  ;;  %v6679_v13 = vsel %vm16867_vm4, %v6647_v55, 0.0  ;;  %vm6304_vm8 = vcmp.lt.s32.totalorder %v16868_v1, 12  ;;  %v6758_v30 = vadd.f32 %v6727_v9, %v6686_v56  ;;  %v6878_v47 = vsel %vm6514_vm5, %v6870_v37, %v6871_v63 }
 0x9d1   : > { %v6687_v11 = vadd.f32 %v6679_v13, %v6607_v52  ;;  %v6879_v24 = vsel %vm6514_vm5, %v6869_v21, %v6870_v37  ;;  %vm16872_vm1 = vcmp.ge.s32.totalorder %v16835_v34, 1  ;;  %vm16873_vm12 = vcmp.ge.s32.totalorder %v16822_v18, 1 }
 0x9d2   : > { %v14574_v8 = vpop.permute.xlu1 %6699  ;;  %v6838_v28 = vadd.f32 %v6830_v12, %v6758_v30  ;;  %v6602_v3 = vsel %vm16872_vm1, %v14563_v6, 0.0  ;;  %v6601_v19 = vsel %vm16873_vm12, %v14565_v61, 0.0  ;;  %v6800_v21 = vrot.slane %v14569_v59, 4  ;;  %vm16877_vm1 = vmmov %vm16873_vm12 }
 0x9d3   : > { %v16869_v32 = vrot.slane %v14574_v8, 4  ;;  %vm16874_vm13 = vcmp.lt.s32.totalorder %v16813_v23, 3  ;;  %v14774_v30 = vsel %vm6282_vm2, %v6879_v24, 0.0  ;;  %v6610_v61 = vadd.f32 %v6602_v3, %v14420_v40 }
 0x9d4   : > { %v14597_v49 = vpop.permute.xlu0 %6583  ;;  %vm16875_vm4 = vcmp.ge.s32.totalorder %v16665_v50, 1  ;;  %v6609_v45 = vadd.f32 %v6601_v19, %v14404_v57  ;;  %vm16878_vm12 = vcmp.ge.s32.totalorder %v16835_v34, 1  ;;  %v16881_v24 = vrot.slane %v14550_v36, 4 }
 0x9d5   : > { %v6726_v51 = vsel %vm6514_vm5, %v6718_v62, %v16869_v32  ;;  %v14745_v62 = vsel %vm6288_vm6, %v6881_v5, 0.0  ;;  %v6909_v5 = vsel %vm14734_vm7, %v6878_v47, 0.0  ;;  %vm16876_vm7 = vmmov %vm16874_vm13  ;;  %vm16907_vm15 = vcmp.lt.s32.totalorder %v16816_v27, 3 }
 0x9d6   : > { %v14632_v42 = vpop.permute.xlu1 %6621  ;;  %v6751_v9 = vsel %vm6293_vm0, %v6726_v51, 0.0  ;;  %v6917_v32 = vadd.f32 %v6909_v5, %v14561_v44  ;;  %v6805_v57 = vsel %vm6514_vm5, %v16881_v24, %v6800_v21 }
 0x9d7   : > { %v6640_v16 = vrot.slane %v14632_v42, 4  ;;  %v6688_v42 = vadd.f32 %v6680_v14, %v6608_v29  ;;  %v6759_v47 = vadd.f32 %v6751_v9, %v6687_v11 }
 0x9d8   : > { %v14654_v60 = vpop.permute.xlu0 %6703 }
 0x9d9   : > { %v6645_v37 = vsel %vm6514_vm5, %v6639_v38, %v6640_v16  ;;  %v6595_v38 = vsel %vm16875_vm4, %v14597_v49, 0.0  ;;  %v6721_v51 = vrot.slane %v14654_v60, 4  ;;  %v6839_v19 = vadd.f32 %v6805_v57, %v6759_v47 }
 0x9da   : > { %v14688_v0 = vpop.permute.xlu1 %6701  ;;  %v6681_v40 = vsel %vm16877_vm1, %v6645_v37, 0.0  ;;  %v6603_v9 = vadd.f32 %v6595_v38, %v14430_v20 }
 0x9db   : > { %v6720_v13 = vrot.slane %v14688_v0, 4  ;;  %v6689_v37 = vadd.f32 %v6681_v40, %v6609_v45  ;;  %v16894_v40 = vld [vmem:[#allocation146_spill] sm:$0xff] }
 0x9dc   : > { %v14711_v22 = vpop.permute.xlu0 %6855 }
 0x9de   : > { %v6854_v55 = vpop.permute.xlu1 %6853 }
 0x9df   : > { %v6872_v25 = vrot.slane %v6854_v55, 4 }
 0x9e0   : > { %v6626_v52 = vpop.permute.xlu0 %6625 }
 0x9e1   : > { %v6877_v29 = vsel %vm6514_vm5, %v6871_v63, %v6872_v25  ;;  %v6642_v14 = vrot.slane %v6626_v52, 4  ;;  %v6724_v52 = vsel %vm6514_vm5, %v6720_v13, %v6721_v51 }
 0x9e2   : > { %v6624_v56 = vpop.permute.xlu1 %6623  ;;  %v6910_v6 = vsel %vm16874_vm13, %v6877_v29, 0.0  ;;  %vm14793_vm13 = vmand %vm16878_vm12, %vm6304_vm8  ;;  %v6873_v29 = vrot.slane %v14711_v22, 4  ;;  %vm16889_vm12 = vcmp.ge.s32.totalorder %v16837_v41, 1 }
 0x9e3   : > { %v6641_v63 = vrot.slane %v6624_v56, 4  ;;  %v6918_v12 = vadd.f32 %v6910_v6, %v6838_v28  ;;  %v16883_v56 = vrot.slane %v14574_v8, 4 }
 0x9e4   : > { %v6934_v59 = vpop.permute.xlu0 %6933  ;;  %v6876_v8 = vsel %vm6514_vm5, %v6872_v25, %v6873_v29 }
 0x9e5   : > { %v6643_v0 = vsel %vm6514_vm5, %v6641_v63, %v6642_v14  ;;  %v6966_v55 = vsel %vm16876_vm7, %v6934_v59, 0.0  ;;  %v6644_v49 = vsel %vm6514_vm5, %v6640_v16, %v6641_v63  ;;  %v16882_v16 = vsel %vm14580_vm3, %v14397_v15, 0.0 }
 0x9e6   : > { %v6974_v60 = vadd.f32 %v6966_v55, %v6918_v12  ;;  %v6784_v11 = vpop.permute.xlu1 %6783  ;;  %v6675_v28 = vsel %vm16875_vm4, %v6643_v0, 0.0  ;;  %v6725_v6 = vsel %vm6514_vm5, %v16883_v56, %v6720_v13  ;;  %v6682_v63 = vsel %vm14793_vm13, %v6644_v49, 0.0  ;;  %vm16893_vm13 = vmmov %vm16889_vm12  ;;  %v16898_v56 = vld [vmem:[#allocation162_spill] sm:$0xff] }
 0x9e7   : > { %v6801_v3 = vrot.slane %v6784_v11, 4  ;;  %vm16884_vm7 = vcmp.lt.s32.totalorder %v16816_v27, 3  ;;  %vm16887_vm3 = vcmp.ge.s32.totalorder %v16820_v48, 4  ;;  %v6650_v13 = vsel %vm6514_vm5, %v6642_v14, %v16888_v58  ;;  %v16895_v11 = vld [vmem:[#allocation114_spill] sm:$0xff] }
 0x9e8   : > { %v14813_v5 = vadd.f32 %v16882_v16, %v6974_v60  ;;  %v6706_v36 = vpop.permute.xlu0 %6705  ;;  %vm14825_vm1 = vmand %vm16884_vm7, %vm6293_vm0  ;;  %v6753_v15 = vsel %vm16887_vm3, %v6724_v52, 0.0  ;;  %v6683_v12 = vadd.f32 %v6675_v28, %v6603_v9  ;;  %v6760_v0 = vadd.f32 %v6725_v6, %v6688_v42  ;;  %v16897_v9 = vld [vmem:[#allocation164_spill] sm:$0xff] }
 0x9e9   : > { %v6722_v20 = vrot.slane %v6706_v36, 4  ;;  %vm14841_vm0 = vmand %vm16889_vm12, %vm6298_vm14  ;;  %v6804_v59 = vsel %vm6514_vm5, %v6800_v21, %v6801_v3  ;;  %v6690_v55 = vadd.f32 %v6682_v63, %v6610_v61  ;;  %v6911_v35 = vsel %vm14825_vm1, %v6876_v8, 0.0 }
 0x9ea   : > { %v6586_v47 = vpop.permute.xlu1 %6585  ;;  %vm6286_vm4 = vcmp.lt.s32.totalorder %v16895_v11, 3  ;;  %v6761_v24 = vadd.f32 %v6753_v15, %v6689_v37  ;;  %v6832_v42 = vsel %vm6302_vm10, %v6804_v59, 0.0  ;;  %v16899_v6 = vrot.slane %v16898_v56, 4  ;;  %v16900_v37 = vld [vmem:[#allocation34_spill] sm:$0xff]  ;;  %vm14905_vm1 = vmand %vm6282_vm2, %vm6298_vm14 }
 0x9eb   : > { %v6723_v25 = vsel %vm6514_vm5, %v6721_v51, %v6722_v20  ;;  %v6730_v14 = vsel %vm6514_vm5, %v6722_v20, %v16892_v43  ;;  %v6596_v38 = vsel %vm16893_vm13, %v6586_v47, 0.0  ;;  %v6676_v51 = vsel %vm14841_vm0, %v6650_v13, 0.0  ;;  %vm14924_vm2 = vmand %vm6288_vm6, %vm6304_vm8 }
 0x9ec   : > { %v6747_v45 = vsel %vm6289_vm11, %v6730_v14, 0.0  ;;  %v6604_v44 = vadd.f32 %v6596_v38, %v16894_v40  ;;  %v6786_v49 = vpop.permute.xlu0 %6785  ;;  %v6762_v61 = vadd.f32 %v6723_v25, %v6690_v55  ;;  %v6919_v13 = vadd.f32 %v6911_v35, %v6839_v19  ;;  %vm16901_vm11 = vmmov %vm16887_vm3  ;;  %v16905_v19 = vld [vmem:[#allocation44_spill] sm:$0xff]  ;;  %v16910_v40 = vld [vmem:[#allocation50_spill] sm:$0xff] }
 0x9ed   : > { %v6755_v21 = vadd.f32 %v6747_v45, %v6683_v12  ;;  %v6802_v60 = vrot.slane %v6786_v49, 4  ;;  %v7038_v12 = vrot.slane %v14813_v5, 4  ;;  %v6840_v2 = vadd.f32 %v6832_v42, %v6760_v0  ;;  %vm14939_vm14 = vmand %vm6286_vm4, %vm6302_vm10 }
 0x9ee   : > { %v6684_v52 = vadd.f32 %v6676_v51, %v6604_v44  ;;  %v6932_v28 = vpop.permute.xlu1 %6931  ;;  %v16906_v48 = vrot.slane %v14507_v10, 4  ;;  %vm16921_vm0 = vcmask 261120   ;;  %vm16923_vm13 = vcmp.ge.s32.totalorder %v16813_v23, 1 }
 0x9ef   : > { %v6835_v16 = vadd.f32 %v16897_v9, %v6755_v21  ;;  %v6803_v36 = vsel %vm6514_vm5, %v6801_v3, %v6802_v60  ;;  %v6810_v63 = vsel %vm6514_vm5, %v6802_v60, %v16899_v6  ;;  %v6965_v20 = vsel %vm6283_vm9, %v6932_v28, 0.0 }
 0x9f0   : > { %v6756_v22 = vadd.f32 %v16900_v37, %v6684_v52  ;;  %v6834_v15 = vsel %vm6304_vm8, %v6810_v63, 0.0  ;;  %v6973_v8 = vadd.f32 %v6965_v20, %v6917_v32  ;;  %v6858_v58 = vpop.permute.xlu0 %6857  ;;  %vm16902_vm9 = vcmp.lt.s32.totalorder %v16822_v18, 3  ;;  %v16918_v63 = vld [vmem:[#allocation166_spill] sm:$0xff] }
 0x9f1   : > { %v6915_v3 = vadd.f32 %v6907_v26, %v6835_v16  ;;  %v6874_v17 = vrot.slane %v6858_v58, 4  ;;  %vm14886_vm7 = vmand %vm16902_vm9, %vm16901_vm11  ;;  %v6842_v59 = vadd.f32 %v6834_v15, %v6762_v61  ;;  %v6841_v14 = vadd.f32 %v6803_v36, %v6761_v24  ;;  %v16919_v37 = vld [vmem:[#allocation62_spill] sm:$0xff] }
 0x9f2   : > { %v6836_v32 = vadd.f32 %v14698_v4, %v6756_v22  ;;  %v7029_v25 = vadd.f32 %v16905_v19, %v6973_v8  ;;  %v6936_v43 = vpop.permute.xlu1 %6935  ;;  %vm16911_vm3 = vmmov %vm16902_vm9  ;;  %v7026_v34 = vsel %vm14924_vm2, %v16919_v37, 0.0  ;;  %vm16927_vm9 = vcmp.ge.s32.totalorder %v16837_v41, 1 }
 0x9f3   : > { %v6971_v54 = vadd.f32 %v14750_v7, %v6915_v3  ;;  %v6875_v26 = vsel %vm6514_vm5, %v6873_v29, %v6874_v17  ;;  %v6882_v38 = vsel %vm6514_vm5, %v6874_v17, %v16906_v48  ;;  %v6967_v55 = vsel %vm16907_vm15, %v6936_v43, 0.0  ;;  %v16920_v17 = vld [vmem:[#allocation153_spill] sm:$0xff]  ;;  %vm16924_vm11 = vmmov %vm16923_vm13 }
 0x9f4   : > { %v6916_v7 = vadd.f32 %v14774_v30, %v6836_v32  ;;  %v7037_v0 = vrot.slane %v7029_v25, 4  ;;  %v6975_v29 = vadd.f32 %v6967_v55, %v6919_v13  ;;  %v6924_v45 = vpop.permute.xlu0 %6923  ;;  %v6913_v10 = vsel %vm14886_vm7, %v6882_v38, 0.0  ;;  %v16912_v30 = vld [vmem:[#allocation53_spill] sm:$0xff]  ;;  %vm16928_vm7 = vmmov %vm16927_vm9 }
 0x9f5   : > { %v7027_v44 = vadd.f32 %v16910_v40, %v6971_v54  ;;  %v6921_v27 = vadd.f32 %v6913_v10, %v6841_v14  ;;  %v6969_v33 = vsel %vm16911_vm3, %v6924_v45, 0.0  ;;  %v6922_v49 = vadd.f32 %v14745_v62, %v6842_v59  ;;  %v16915_v62 = vld [vmem:[#allocation48_spill] sm:$0xff] }
 0x9f6   : > { %v6972_v21 = vadd.f32 %v14741_v39, %v6916_v7  ;;  %v7047_v51 = vsel %vm6514_vm5, %v7037_v0, %v7038_v12  ;;  %v7031_v60 = vadd.f32 %v16912_v30, %v6975_v29  ;;  %v6926_v24 = vpop.permute.xlu1 %6925  ;;  %v6912_v18 = vsel %vm6286_vm4, %v6875_v26, 0.0 }
 0x9f7   : > { %v7020_v39 = vsel %vm14905_vm1, %v16915_v62, 0.0  ;;  %v7053_v42 = vmax.f32 %v7029_v25, %v7047_v51  ;;  %v6977_v61 = vadd.f32 %v6969_v33, %v6921_v27  ;;  %v6970_v52 = vsel %vm6288_vm6, %v6926_v24, 0.0 }
 0x9f8   : > { %v7028_v1 = vadd.f32 %v7020_v39, %v6972_v21  ;;  %v7039_v28 = vrot.slane %v7031_v60, 4  ;;  %v6978_v9 = vadd.f32 %v6970_v52, %v6922_v49  ;;  %v6938_v36 = vpop.permute.xlu0 %6937  ;;  %v6920_v56 = vadd.f32 %v6912_v18, %v6840_v2  ;;  %v7919_v39 = vld [vmem:[%s15189_s8] ss:$0 sm:$0xff] }
 0x9f9   : > { %v7035_v6 = vrot.slane %v7027_v44, 4  ;;  %v7033_v20 = vadd.f32 %v16918_v63, %v6977_v61  ;;  %v6968_v22 = vsel %vm6286_vm4, %v6938_v36, 0.0  ;;  %v7024_v47 = vsel %vm14939_vm14, %v16920_v17, 0.0 }
 0x9fa   : > { %v7036_v15 = vrot.slane %v7028_v1, 4  ;;  %v7046_v57 = vsel %vm6514_vm5, %v7038_v12, %v7039_v28  ;;  %v7034_v8 = vadd.f32 %v7026_v34, %v6978_v9  ;;  %v6976_v58 = vadd.f32 %v6968_v22, %v6920_v56 }
 0x9fb   : > { %v7054_v13 = vmax.f32 %v14813_v5, %v7046_v57  ;;  %v7041_v3 = vrot.slane %v7033_v20, 4  ;;  %vm7083_vm4 = vcmp.lt.s32.totalorder %v16813_v23, 1  ;;  %vm16929_vm15 = vcmp.ge.s32.totalorder %v16831_v53, 1 }
 0x9fc   : > { %v7049_v59 = vsel %vm6514_vm5, %v7035_v6, %v7036_v15  ;;  %v7048_v11 = vsel %vm6514_vm5, %v7036_v15, %v7037_v0  ;;  %v7042_v32 = vrot.slane %v7034_v8, 4  ;;  %v7032_v19 = vadd.f32 %v7024_v47, %v6976_v58  ;;  %vm16930_vm1 = vmmov %vm16929_vm15 }
 0x9fd   : > { %v7051_v25 = vmax.f32 %v7027_v44, %v7049_v59  ;;  %v7052_v43 = vmax.f32 %v7028_v1, %v7048_v11  ;;  %vm7081_vm3 = vcmp.lt.s32.totalorder %v16837_v41, 1  ;;  %vm7082_vm2 = vcmp.lt.s32.totalorder %v16831_v53, 1 }
 0x9fe   : > { %v7043_v12 = vsel %vm6514_vm5, %v7041_v3, %v7042_v32  ;;  %v7050_v5 = vsel %vm6514_vm5, %v7042_v32, %v7035_v6  ;;  %v7040_v14 = vrot.slane %v7032_v19, 4  ;;  %vm16931_vm14 = vcmp.ge.s32.totalorder %v16665_v50, 1 }
 0x9ff   : > { %v7059_v2 = vmax.f32 %v7051_v25, %v7053_v42  ;;  %v7057_v54 = vmax.f32 %v7033_v20, %v7043_v12  ;;  %v7058_v26 = vmax.f32 %v7034_v8, %v7050_v5  ;;  %v7060_v48 = vmax.f32 %v7052_v43, %v7054_v13 }
 0xa00   : > { %v7044_v38 = vsel %vm6514_vm5, %v7040_v14, %v7041_v3  ;;  %v7045_v55 = vsel %vm6514_vm5, %v7039_v28, %v7040_v14  ;;  %vm16922_vm5 = vmmov %vm16921_vm0 }
 0xa01   : > { %v7067_v4 = vmul.f32 0.2, %v7059_v2  ;;  %v7055_v7 = vmax.f32 %v7031_v60, %v7045_v55  ;;  %v7056_v0 = vmax.f32 %v7032_v19, %v7044_v38  ;;  %vm7063_vm6 = vcmp.gt.f32.partialorder %v7059_v2, 0.0 }
 0xa02   : > { %vm7064_vm10 = vcmp.gt.f32.partialorder %v7060_v48, 0.0  ;;  %v7068_v29 = vmul.f32 0.2, %v7060_v48 }
 0xa03   : > { %v7061_v45 = vmax.f32 %v7055_v7, %v7057_v54  ;;  %v7062_v10 = vmax.f32 %v7056_v0, %v7058_v26  ;;  %v7071_v40 = vsel %vm7063_vm6, %v7059_v2, %v7067_v4  ;;  %vm16932_vm6 = vmmov %vm16931_vm14 }
 0xa04   : > { %v7072_v44 = vsel %vm7064_vm10, %v7060_v48, %v7068_v29  ;;  %vm7080_vm10 = vcmp.lt.s32.totalorder %v16665_v50, 1  ;;  %v7591_v50 = vld [vmem:[%s15190_s9] sm:$0xff] }
 0xa05   : > { %vm7065_vm8 = vcmp.gt.f32.partialorder %v7061_v45, 0.0  ;;  %vm7066_vm12 = vcmp.gt.f32.partialorder %v7062_v10, 0.0  ;;  %v7069_v27 = vmul.f32 0.2, %v7061_v45  ;;  %v7070_v33 = vmul.f32 0.2, %v7062_v10 }
 0xa06   : > { %v7092_v49 = vpack.c.bf16 %v7072_v44, %v7071_v40 }
 0xa07   : > { %v7073_v21 = vsel %vm7065_vm8, %v7061_v45, %v7069_v27  ;;  %v7074_v51 = vsel %vm7066_vm12, %v7062_v10, %v7070_v33  ;;  %vm8159_vm8 = vmmov 0   ;;  %vm7573_vm12 = vcmp.eq.s32.totalorder %v16685_v46, 0  ;;  %v7669_v46 = vld [vmem:[%s15192_s11] sm:$0xff] }
 0xa08   : > { %v7093_v30 = vpack.c.bf16 %v7074_v51, %v7073_v21  ;;  %7983 = vmatprep.mubr.msk.bf16.mxu1 %vm16921_vm0, %v7092_v49 }
 0xa0a   : > { %7984 = vmatmul.mubr.msk.bf16.vlgmr.msra.gmra.mrb[64].mxu1 %vm16922_vm5, %v7093_v30  ;;  %vm7581_vm5 = vcmask 326912  }
 0xa0b   : > { %7988 = vmatpush3.msra.mxu1 %v7591_v50  ;;  %7989 = vmatprep.mubr.msk.f32.mxu1 %vm8159_vm8, %v8154_v31 }
 0xa0c   : > { %7992 = vmatprep.subr.mxu1 %v8154_v31 }
 0xadd   : > { %v14970_v60 = vpop.f32.mrb[64].mxu1 }
 0xade   : > { %7301 = vrot.lane.b32.xlu0 %v14970_v60, %s15559_s26  ;;  %v14974_v35 = vpop.f32.mrb[65].mxu1  ;;  %s16925_s26 = smov 112   ;;  %v7186_v23 = vsel %vm16927_vm9, %v14970_v60, 0.0 }
 0xadf   : > { %v14976_v24 = vpop.f32.mrb[66].mxu1  ;;  %v7188_v62 = vsel %vm16923_vm13, %v14974_v35, 0.0  ;;  %vm7596_vm13 = vcmask 64512  }
 0xae0   : > { %v14978_v18 = vpop.f32.mrb[67].mxu1 }
 0xae1   : > { %7215 = vrot.lane.b32.xlu1 %v14978_v18, %s8156_s0 }
 0xae2   : > { %7435 = vrot.lane.b32.xlu0 %v14978_v18, %s8157_s1 }
 0xae5   : > { %7385 = vrot.lane.b32.xlu1 %v14974_v35, %s15772_s25 }
 0xae6   : > { %7199 = vrot.lane.b32.xlu0 %v7188_v62, %s15788_s23 }
 0xae9   : > { %7166 = vrot.lane.b32.xlu1 %v7919_v39, %s15788_s23 }
 0xaea   : > { %7287 = vrot.lane.b32.xlu0 %v8154_v31, %s15788_s23 }
 0xaee   : > { %7375 = vrot.lane.b32.xlu0 %v8154_v31, %s15788_s23 }
 0xb50   : > { %v7302_v42 = vpop.permute.xlu0 %7301 }
 0xb53   : > { %v7216_v61 = vpop.permute.xlu1 %7215 }
 0xb54   : > { %v7228_v52 = vsel %vm16924_vm11, %v7216_v61, 0.0  ;;  %v7436_v1 = vpop.permute.xlu0 %7435 }
 0xb55   : > { %v7456_v28 = vsel %vm7083_vm4, %v7436_v1, 0.0  ;;  %7239 = vrot.lane.b32.xlu1 %v7228_v52, %s15788_s23 }
 0xb56   : > { %7467 = vrot.lane.b32.xlu0 %v7456_v28, %s15788_s23 }
 0xb57   : > { %v7386_v9 = vpop.permute.xlu1 %7385 }
 0xb58   : > { %v7412_v16 = vsel %vm7083_vm4, %v7386_v9, 0.0  ;;  %v7200_v36 = vpop.permute.xlu0 %7199  ;;  %vm7746_vm4 = vcmask 57344  }
 0xb59   : > { %7331 = vrot.lane.b32.xlu1 %v7302_v42, %s15788_s23 }
 0xb5a   : > { %7213 = vrot.lane.b32.xlu0 %v14974_v35, %s8156_s0 }
 0xb5b   : > { %v15029_v56 = vpop.permute.xlu1 %7166 }
 0xb5c   : > { %v7288_v6 = vpop.permute.xlu0 %7287  ;;  %v7172_v63 = vadd.f32 %v14976_v24, %v15029_v56  ;;  %v7170_v29 = vadd.f32 %v15029_v56, %v14978_v18  ;;  %v7171_v44 = vadd.f32 %v14970_v60, %v15029_v56 }
 0xb5d   : > { %7423 = vrot.lane.b32.xlu1 %v7412_v16, %s15788_s23 }
 0xb5e   : > { %7251 = vrot.lane.b32.xlu0 %v14978_v18, %s16925_s26  ;;  %v7208_v20 = vadd.f32 %v7200_v36, %v7172_v63 }
 0xb60   : > { %v7376_v37 = vpop.permute.xlu0 %7375 }
 0xb61   : > { %7515 = vrot.lane.b32.xlu1 %v8154_v31, %s15788_s23 }
 0xb62   : > { %7347 = vrot.lane.b32.xlu0 %v14976_v24, %s8158_s17 }
 0xb65   : > { %7219 = vrot.lane.b32.xlu1 %v14976_v24, %s8156_s0 }
 0xb66   : > { %7433 = vrot.lane.b32.xlu0 %v14974_v35, %s8157_s1 }
 0xb69   : > { %7297 = vrot.lane.b32.xlu1 %v14974_v35, %s16926_s2 }
 0xb6a   : > { %7479 = vrot.lane.b32.xlu0 %v14978_v18, %s15764_s16 }
 0xb6d   : > { %7389 = vrot.lane.b32.xlu1 %v14970_v60, %s15772_s25 }
 0xb6e   : > { %7195 = vrot.lane.b32.xlu0 %v7186_v23, %s15788_s23 }
 0xb71   : > { %7439 = vrot.lane.b32.xlu1 %v14976_v24, %s8157_s1 }
 0xbc7   : > { %v7240_v34 = vpop.permute.xlu1 %7239 }
 0xbc8   : > { %v7248_v22 = vadd.f32 %v7240_v34, %v7208_v20  ;;  %v7468_v58 = vpop.permute.xlu0 %7467 }
 0xbca   : > { %v7296_v15 = vadd.f32 %v7288_v6, %v7248_v22 }
 0xbcb   : > { %v7332_v57 = vpop.permute.xlu1 %7331 }
 0xbcc   : > { %v7340_v8 = vadd.f32 %v7332_v57, %v7296_v15  ;;  %v7214_v59 = vpop.permute.xlu0 %7213 }
 0xbcd   : > { %v7227_v14 = vsel %vm16930_vm1, %v7214_v59, 0.0 }
 0xbce   : > { %v7384_v13 = vadd.f32 %v7376_v37, %v7340_v8 }
 0xbcf   : > { %v7424_v3 = vpop.permute.xlu1 %7423 }
 0xbd0   : > { %v7432_v17 = vadd.f32 %v7424_v3, %v7384_v13  ;;  %v7252_v43 = vpop.permute.xlu0 %7251 }
 0xbd1   : > { %v7275_v5 = vsel %vm16929_vm15, %v7252_v43, 0.0 }
 0xbd2   : > { %v7476_v47 = vadd.f32 %v7468_v58, %v7432_v17 }
 0xbd3   : > { %v7516_v11 = vpop.permute.xlu1 %7515 }
 0xbd4   : > { %v7524_v32 = vadd.f32 %v7516_v11, %v7476_v47  ;;  %v7348_v54 = vpop.permute.xlu0 %7347 }
 0xbd6   : > { %7535 = vrot.lane.b32.xlu1 %v7524_v32, %s16544_s30 }
 0xbd7   : > { %v7220_v19 = vpop.permute.xlu1 %7219 }
 0xbd8   : > { %v7226_v25 = vsel %vm16928_vm7, %v7220_v19, 0.0  ;;  %v7434_v38 = vpop.permute.xlu0 %7433 }
 0xbd9   : > { %7235 = vrot.lane.b32.xlu0 %v7226_v25, %s15788_s23  ;;  %v7455_v41 = vsel %vm7082_vm2, %v7434_v38, 0.0 }
 0xbda   : > { %8052 = vrot.lane.b32.xlu1 %v8154_v31, %s15788_s23 }
 0xbdb   : > { %v7298_v12 = vpop.permute.xlu1 %7297 }
 0xbdc   : > { %v7480_v4 = vpop.permute.xlu0 %7479 }
 0xbdd   : > { %7285 = vrot.lane.b32.xlu0 %v7275_v5, %s15788_s23  ;;  %v7503_v7 = vsel %vm7082_vm2, %v7480_v4, 0.0 }
 0xbde   : > { %7237 = vrot.lane.b32.xlu1 %v7227_v14, %s15788_s23 }
 0xbdf   : > { %v7390_v2 = vpop.permute.xlu1 %7389 }
 0xbe0   : > { %v7410_v26 = vsel %vm7081_vm3, %v7390_v2, 0.0  ;;  %v7196_v53 = vpop.permute.xlu0 %7195 }
 0xbe1   : > { %8057 = vrot.lane.b32.xlu0 %v8154_v31, %s15788_s23  ;;  %v7206_v40 = vadd.f32 %v7196_v53, %v7170_v29 }
 0xbe2   : > { %7327 = vrot.lane.b32.xlu1 %v7298_v12, %s15788_s23  ;;  %v7169_v12 = vadd.f32 %v15029_v56, %v14974_v35 }
 0xbe3   : > { %v7440_v48 = vpop.permute.xlu1 %7439 }
 0xbe4   : > { %v7454_v55 = vsel %vm7081_vm3, %v7440_v48, 0.0 }
 0xbe5   : > { %7419 = vrot.lane.b32.xlu0 %v7410_v26, %s15788_s23 }
 0xbe6   : > { %7373 = vrot.lane.b32.xlu1 %v7348_v54, %s15788_s23 }
 0xbe9   : > { %7463 = vrot.lane.b32.xlu0 %v7454_v55, %s15788_s23 }
 0xbea   : > { %7421 = vrot.lane.b32.xlu1 %v8154_v31, %s15788_s23 }
 0xbed   : > { %7511 = vrot.lane.b32.xlu0 %v8154_v31, %s15788_s23 }
 0xbee   : > { %7465 = vrot.lane.b32.xlu1 %v7455_v41, %s15788_s23 }
 0xbf2   : > { %7513 = vrot.lane.b32.xlu1 %v7503_v7, %s15788_s23 }
 0xbf6   : > { %7217 = vrot.lane.b32.xlu1 %v14970_v60, %s8156_s0  ;;  %s7923_s0 = sshll.u32 %s8262_s22, 4 }
 0xbf7   : > { %s15128_s2 = scalar_lea.hbm %s15195_s14, %s7923_s0  ;;  %s8160_s0 = smov [#allocation2]  }
 0xbfa   : > { %7343 = vrot.lane.b32.xlu1 %v14978_v18, %s8158_s17 }
 0xbfe   : > { %7483 = vrot.lane.b32.xlu1 %v14976_v24, %s15764_s16 }
 0xc48   : > { %v7536_v0 = vpop.permute.xlu1 %7535 }
 0xc49   : > { %7541 = vrot.lane.b32.xlu0 %v7536_v0, %s15788_s23 }
 0xc4b   : > { %v7236_v45 = vpop.permute.xlu0 %7235 }
 0xc4c   : > { %v8053_v10 = vpop.permute.xlu1 %8052  ;;  %v7246_v27 = vadd.f32 %v7236_v45, %v7206_v40 }
 0xc4d   : > { %7255 = vrot.lane.b32.xlu0 %v14976_v24, %s16925_s26  ;;  %v8077_v49 = vadd.low.f32.bf16 %v7171_v44, %v8053_v10  ;;  %s8085_s26 = sshll.u32 %s8160_s0, 4  ;;  %s8086_s26 = int_to_ptr.vmem [resolvable:$false] %s8085_s26 }
 0xc4e   : > { %v8078_v18 = vadd.high.f32.bf16 %v7246_v27, %v8053_v10  ;;  %s8087_s17 = scalar_lea.vmem %s8086_s26, 32 }
 0xc4f   : > { %v7286_v33 = vpop.permute.xlu0 %7285 }
 0xc50   : > { %v7238_v21 = vpop.permute.xlu1 %7237 }
 0xc51   : > { %v7247_v51 = vadd.f32 %v8077_v49, %v7238_v21  ;;  %7437 = vrot.lane.b32.xlu0 %v14970_v60, %s8157_s1 }
 0xc53   : > { %v7295_v30 = vadd.f32 %v7286_v33, %v7247_v51  ;;  %v8058_v62 = vpop.permute.xlu0 %8057 }
 0xc54   : > { %v7328_v39 = vpop.permute.xlu1 %7327 }
 0xc55   : > { %v7338_v42 = vadd.f32 %v8078_v18, %v7328_v39  ;;  %v8079_v61 = vadd.low.f32.bf16 %v7295_v30, %v8058_v62 }
 0xc57   : > { %v7420_v52 = vpop.permute.xlu0 %7419  ;;  %v8080_v1 = vadd.high.f32.bf16 %v7338_v42, %v8058_v62 }
 0xc58   : > { %v7374_v36 = vpop.permute.xlu1 %7373 }
 0xc59   : > { %v7430_v24 = vadd.f32 %v8080_v1, %v7420_v52  ;;  %v7383_v63 = vadd.f32 %v8079_v61, %v7374_v36  ;;  %v7670_v1 = vld [vmem:[%s15193_s12] sm:$0x1] }
 0xc5b   : > { %v7464_v28 = vpop.permute.xlu0 %7463 }
 0xc5c   : > { %v7474_v9 = vadd.f32 %v7464_v28, %v7430_v24  ;;  %v7422_v60 = vpop.permute.xlu1 %7421 }
 0xc5d   : > { %v7431_v20 = vadd.f32 %v7422_v60, %v7383_v63 }
 0xc5f   : > { %v7512_v16 = vpop.permute.xlu0 %7511 }
 0xc60   : > { %v7522_v23 = vadd.f32 %v7512_v16, %v7474_v9  ;;  %v7466_v6 = vpop.permute.xlu1 %7465 }
 0xc61   : > { %v7475_v34 = vadd.f32 %v7466_v6, %v7431_v20 }
 0xc62   : > { %7531 = vrot.lane.b32.xlu0 %v7522_v23, %s16544_s30 }
 0xc64   : > { %v7514_v37 = vpop.permute.xlu1 %7513 }
 0xc65   : > { %v7523_v22 = vadd.f32 %v7514_v37, %v7475_v34 }
 0xc66   : > { %7193 = vrot.lane.b32.xlu0 %v8154_v31, %s15788_s23 }
 0xc68   : > { %v7218_v8 = vpop.permute.xlu1 %7217 }
 0xc69   : > { %v7225_v3 = vsel %vm16932_vm6, %v7218_v8, 0.0 }
 0xc6c   : > { %v7344_v17 = vpop.permute.xlu1 %7343 }
 0xc70   : > { %v7484_v11 = vpop.permute.xlu1 %7483 }
 0xc71   : > { %v7501_v32 = vsel %vm7080_vm10, %v7484_v11, 0.0 }
 0xcbb   : > { %v7542_v15 = vpop.permute.xlu0 %7541 }
 0xcbc   : > { %v7551_v57 = vmax.f32 %v7523_v22, %v7542_v15 }
 0xcbe   : > { %7555 = vrot.lane.b32.xlu1 %v7551_v57, %s16544_s30 }
 0xcbf   : > { %v7256_v58 = vpop.permute.xlu0 %7255 }
 0xcc0   : > { %v7273_v13 = vsel %vm16931_vm14, %v7256_v58, 0.0 }
 0xcc1   : > { %7281 = vrot.lane.b32.xlu0 %v7273_v13, %s15788_s23 }
 0xcc2   : > { %7233 = vrot.lane.b32.xlu1 %v7225_v3, %s15788_s23 }
 0xcc3   : > { %v7438_v47 = vpop.permute.xlu0 %7437 }
 0xcc4   : > { %v7453_v59 = vsel %vm7080_vm10, %v7438_v47, 0.0 }
 0xcc5   : > { %7369 = vrot.lane.b32.xlu0 %v7344_v17, %s15788_s23 }
 0xcc6   : > { %7325 = vrot.lane.b32.xlu1 %v8154_v31, %s15788_s23 }
 0xcc9   : > { %7461 = vrot.lane.b32.xlu0 %v7453_v59, %s15788_s23 }
 0xcca   : > { %7417 = vrot.lane.b32.xlu1 %v8154_v31, %s15788_s23 }
 0xcce   : > { %7509 = vrot.lane.b32.xlu1 %v7501_v32, %s15788_s23 }
 0xcd4   : > { %v7532_v19 = vpop.permute.xlu0 %7531 }
 0xcd5   : > { %7537 = vrot.lane.b32.xlu0 %v7532_v19, %s15788_s23 }
 0xcd8   : > { %v7194_v43 = vpop.permute.xlu0 %7193 }
 0xcd9   : > { %v7205_v14 = vadd.f32 %v7194_v43, %v7169_v12 }
 0xd30   : > { %v7556_v25 = vpop.permute.xlu1 %7555 }
 0xd31   : > { %7559 = vrot.lane.b32.xlu1 %v7556_v25, %s15788_s23  ;;  %s498_s23 = sand.u32 1, %s8135_s19  }
 0xd32   : > { %s499_s1 = scalar_lea.vmem [#allocation2], %s498_s23  ;;  %s7755_s4 = scalar_lea.sflag [#allocation3], %s498_s23 }
 0xd33   : > { %v7282_v54 = vpop.permute.xlu0 %7281  ;;  %s7770_s3 = sshll.u32 %s499_s1, 4  ;;  %s15130_s3 = int_to_ptr.vmem [resolvable:$true] %s7770_s3 }
 0xd34   : > { %v7234_v5 = vpop.permute.xlu1 %7233  ;;  %s8081_s5 = scalar_lea.vmem %s15130_s3, 16  ;;  %p8088_p1 = scmp.lt.s32.totalorder %s15130_s3, %s8086_s26 }
 0xd35   : > { %v7245_v2 = vadd.f32 %v7234_v5, %v7205_v14  ;;  %p8082_p12 = scmp.ne.s32.totalorder %s15130_s3, %s8081_s5  ;;  %p8089_p2 = scmp.lt.s32.totalorder %s8087_s17, %s8081_s5 }
 0xd37   : > { %v7293_v26 = vadd.f32 %v7282_v54, %v7245_v2  ;;  %v7370_v55 = vpop.permute.xlu0 %7369  ;;  %p8083_p13 = pnand %p8082_p12, %p8279_p5  ;;  %p8090_p3 = por %p8089_p2, %p8088_p1 }
 0xd38   : > { %v7326_v48 = vpop.permute.xlu1 %7325 }
 0xd39   : > { %v7337_v38 = vadd.f32 %v7326_v48, %v7293_v26  ;;  %p8084_p0 = pneg %p8083_p13 }
 0xd3b   : > { %v7381_v41 = vadd.f32 %v7370_v55, %v7337_v38  ;;  %v7462_v53 = vpop.permute.xlu0 %7461  ;;  %p8091_p4 = pnand %p8090_p3, %p8084_p0 }
 0xd3c   : > { %v7418_v4 = vpop.permute.xlu1 %7417 }
 0xd3d   : > { %v7429_v7 = vadd.f32 %v7418_v4, %v7381_v41 }
 0xd3f   : > { %v7473_v0 = vadd.f32 %v7462_v53, %v7429_v7 }
 0xd40   : > { %v7510_v29 = vpop.permute.xlu1 %7509 }
 0xd41   : > { %v7521_v10 = vadd.f32 %v7510_v29, %v7473_v0 }
 0xd47   : > { %v7538_v45 = vpop.permute.xlu0 %7537 }
 0xd48   : > { %v7549_v40 = vmax.f32 %v7521_v10, %v7538_v45 }
 0xda3   : > { %v7560_v44 = vpop.permute.xlu1 %7559 }
 0xda4   : > { %v7565_v27 = vmax.f32 %v7549_v40, %v7560_v44 }
 0xda6   : > { %vm7567_vm0 = vcmp.gt.f32.partialorder %v7565_v27, 0.0  ;;  %v7569_v35 = vmul.f32 0.2, %v7565_v27 }
 0xda8   : > { %v7571_v56 = vsel %vm7567_vm0, %v7565_v27, %v7569_v35 }
 0xda9   : > { %v7579_v33 = vsel %vm7573_vm12, %v7571_v56, 0.0 }
 0xdaa   : > { %v7582_v49 = vsel %vm7581_vm5, %v7579_v33, 0.0 }
 0xdab   : > { %v7585_v21 = vrot.slane %v7582_v49, 4 }
 0xdad   : > { %v7586_v51 = vadd.f32 %v7585_v21, %v7582_v49 }
 0xdaf   : > { %v7587_v30 = vrot.slane %v7586_v51, 2 }
 0xdb1   : > { %v7588_v62 = vadd.f32 %v7587_v30, %v7586_v51 }
 0xdb3   : > { %v7589_v18 = vrot.slane %v7588_v62, 1 }
 0xdb5   : > { %v7590_v39 = vadd.f32 %v7589_v18, %v7588_v62 }
 0xdb7   : > { %7594 = vrot.lane.b32.xlu0 %v7590_v39, %s16544_s30  ;;  %s15114_s30 = scalar_select %p511_p11, %s8262_s22, 1 }
 0xdb9   : > { %s513_s25 = scalar_lea.vmem %s15194_s13, %s15114_s30 }
 0xdba   : > { %v7743_v36 = vld [vmem:[%s513_s25] sm:$0x1]  ;;  %s516_s25 = scalar_lea.vmem %s15196_s15, %s15114_s30 }
 0xe29   : > { %v7595_v42 = vpop.permute.xlu0 %7594 }
 0xe2a   : > { %7990 = vmatmul.mubr.msk.f32.vlgmr.msra.gmra.mrb[68].mxu1 %vm7596_vm13, %v7595_v42 }
 0xe2b   : > { %7993 = vmatpush3.msra.mxu1 %v7669_v46  ;;  %7994 = vmatprep.mubr.msk.f32.mxu1 %vm8159_vm8, %v8154_v31  ;;  %v7592_v31 = vld [vmem:[%s15191_s10] sm:$0x1] }
 0xe2e   : > { %7995 = vmatmul.mubr.msk.f32.vlgmr.msra.gmra.mrb[70].mxu1 %vm7596_vm13, %v7595_v42 }
 0xefd   : > { %v7665_v61 = vpop.f32.mrb[68].mxu1 }
 0xefe   : > { %v7991_v52 = vpop.f32.mrb[69].mxu1  ;;  %v7666_v23 = vadd.f32 %v7665_v61, %v7592_v31 }
 0xf00   : > { %v7749_v6 = vmul.f32 %v7666_v23, %v7666_v23 }
 0xf01   : > { %v7737_v24 = vpop.f32.mrb[70].mxu1 }
 0xf02   : > { %v7738_v28 = vadd.f32 %v7737_v24, %v7670_v1  ;;  %v7996_v9 = vpop.f32.mrb[71].mxu1 }
 0xf04   : > { %v7741_v16 = vmul.f32 1.442695, %v7738_v28 }
 0xf06   : > { %8075 = vpow2.f32 %v7741_v16 }
 0xf10   : > { %v8076_v60 = vpop.eup %8075 }
 0xf11   : > { %v7748_v63 = vmul.f32 %v8076_v60, %v8076_v60  ;;  %v7744_v20 = vmul.f32 %v8076_v60, %v7743_v36 }
 0xf13   : > { %v7750_v37 = vadd.f32 %v7749_v6, %v7748_v63  ;;  %v7745_v34 = vadd.f32 %v7744_v20, %v7666_v23 }
 0xf15   : > { %v7751_v22 = vsub.f32 %v7750_v37, %v7738_v28  ;;  %7747 = vst.msk [vmem:[%s499_s1] sm:$0x1] %vm7746_vm4, %v7745_v34 }
 0xf16   : > { %8094 = shalt.err (!%p8091_p4)
}
 0xf17   : > { %s8095_s23 = scalar_lea.hbm %s15128_s2, 16  ;;  %s8099_s16 = scalar_lea.hbm %s15195_s14, 32 }
 0xf18   : > { %p8096_p7 = scmp.ne.s32.totalorder %s15128_s2, %s8095_s23  ;;  %p8100_p10 = scmp.lt.u32.totalorder %s15128_s2, %s15195_s14 }
 0xf19   : > { %p8101_p11 = scmp.lt.u32.totalorder %s8099_s16, %s8095_s23  ;;  %p8103_p13 = scmp.lt.u32.totalorder %s8095_s23, %s15128_s2 }
 0xf1a   : > { %p8097_p8 = pnand %p8096_p7, %p8279_p5 }
 0xf1b   : > { %p8102_p12 = por %p8101_p11, %p8100_p10 }
 0xf1c   : > { %p8098_p9 = pneg %p8097_p8 }
 0xf1d   : > { %p8104_p0 = por %p8103_p13, %p8102_p12 }
 0xf1f   : > { %p8105_p1 = pnand %p8104_p0, %p8098_p9 }
 0xf21   : > { %8108 = shalt.err (!%p8105_p1)
}
 0xf22   : > { %7997 = dma.vmem_to_hbm [thread:$0]  (%p8279_p5), %s15130_s3, 16, %s15128_s2, %s7755_s4   ;;  %v7922_v15 = vadd.f32 -0.5, %v7751_v22 }
 0xf24   : > { %7753 = vst.msk [vmem:[%s516_s25] sm:$0x1] %vm7746_vm4, %v7922_v15 }
 0xf25 PF: > { %p8003_p2 = scmp.ge.s32.totalorder %s8143_s21, 2  ;;  %s7785_s23 = sand.u32 1, %s8131_s18  }
 0xf26   : > { %s7786_s28 = scalar_lea.sflag [#allocation3], %s7785_s23 }
 0xf27   : > { %p8000_p3 = pnand %p8003_p2, %p8283_p6 }
 0xf29   : > { %8126 = dma.done.wait (!%p8000_p3), %s7786_s28, 16  }
 0xf2a   : > { %8128 = vsyncadd (!%p8000_p3), %s7786_s28, 4294967280  ;;  %p26_p5 = scmp.ge.s32.totalorder %s8266_s24, 4   ;;  %s16933_s18 = smov %s8135_s19 }
 0xf2b   : > { %s16934_s19 = smov %s8139_s20  ;;  %s16935_s20 = smov %s8277_s27 }
 0xf2c   : > { %s16936_s21 = smov %s8266_s24  ;;  %28 = sbr.rel (!%p26_p5) target bundleno = 10 (0xa), region = 126 }
 0xf33   :  { %7796 = vsyncpa [#allocation3], 1 }
 0xf34   :  { %7798 = vsyncpa [#allocation3 + $0x1], 1 }

</bundles_post_ra>
